<compile_context>
chip_gen: v7x
topology: tpu7x:2x2x1
jax: 0.10.0
libtpu: 0.0.40
codegen_flags: <defaults>
</compile_context>

<pallas_src>
import functools

import jax
import jax.numpy as jnp
from jax.experimental import pallas as pl
from jax.experimental.pallas import tpu as pltpu

BN_EPS = 1e-5
LANES = 128


def _round_up(n, m):
    return ((n + m - 1) // m) * m


def _spec(shape):
    nd = len(shape)
    return pl.BlockSpec(shape, lambda *args, _nd=nd: (0,) * _nd)


# ----------------------------- Pallas kernels ------------------------------ #

def _conv_bn_relu_kernel(bn_train, p_ref, w_ref, g_ref, b_ref, o_ref):
    """One frame-group: patches [R,Kp](bf16) @ w [Kp,COp](bf16) -> BN -> ReLU -> [R,COp](f32).

    BN stats are computed over the rows of this grid step only (one frame's
    B*OH*OW rows), matching PyTorch's separate encoder(x0)/encoder(x1) calls.
    """
    y = jnp.dot(p_ref[...], w_ref[...], preferred_element_type=jnp.float32)
    if bn_train:
        # PyTorch BatchNorm2d normalizes with the *biased* variance in training mode.
        mean = jnp.mean(y, axis=0, keepdims=True)
        var = jnp.mean(jnp.square(y - mean), axis=0, keepdims=True)
        y = (y - mean) * jax.lax.rsqrt(var + BN_EPS) * g_ref[...] + b_ref[...]
    else:
        # eval mode: BN scale already folded into the conv weights; only bias remains.
        y = y + b_ref[...]
    o_ref[...] = jnp.maximum(y, 0.0)


def _fwd_mlp_kernel(s_ref, a_ref, w1s_ref, w1a_ref, b1_ref, w2_ref, b2_ref, o_ref):
    """ForwardModel head; cat([s, a]) @ W1 is computed as s@W1s + a@W1a (no host concat)."""
    s = s_ref[...].astype(jnp.bfloat16)
    a = a_ref[...].astype(jnp.bfloat16)
    h = (jnp.dot(s, w1s_ref[...], preferred_element_type=jnp.float32)
         + jnp.dot(a, w1a_ref[...], preferred_element_type=jnp.float32)
         + b1_ref[...])
    h = jnp.maximum(h, 0.0).astype(jnp.bfloat16)
    o_ref[...] = jnp.dot(h, w2_ref[...], preferred_element_type=jnp.float32) + b2_ref[...]


def _inv_mlp_softmax_kernel(s0_ref, s1_ref, w1a_ref, w1b_ref, b1_ref, w2_ref, b2_ref, o_ref):
    """InverseModel head + softmax(dim=1); cat([s0, s1]) @ W1 split into two dots."""
    x0 = s0_ref[...].astype(jnp.bfloat16)
    x1 = s1_ref[...].astype(jnp.bfloat16)
    h = (jnp.dot(x0, w1a_ref[...], preferred_element_type=jnp.float32)
         + jnp.dot(x1, w1b_ref[...], preferred_element_type=jnp.float32)
         + b1_ref[...])
    h = jnp.maximum(h, 0.0).astype(jnp.bfloat16)
    logits = jnp.dot(h, w2_ref[...], preferred_element_type=jnp.float32) + b2_ref[...]
    m = jnp.max(logits, axis=1, keepdims=True)
    e = jnp.exp(logits - m)
    denom = jnp.sum(e, axis=1, keepdims=True)
    o_ref[...] = e * pl.reciprocal(denom, approx=True)   # EUP slot instead of VALU divide


# ----------------------------- kernel wrappers ------------------------------ #

def conv_bn_relu(patches, w_t, gamma, beta, bn_train):
    """patches: (G, R, Kp) bf16; w_t: (Kp, COp) bf16; gamma/beta: (1, COp) f32."""
    G, R, Kp = patches.shape
    COp = w_t.shape[1]
    return pl.pallas_call(
        functools.partial(_conv_bn_relu_kernel, bn_train),
        out_shape=jax.ShapeDtypeStruct((G, R, COp), jnp.float32),
        grid=(G,),
        in_specs=[
            pl.BlockSpec((pl.Squeezed(), R, Kp), lambda g: (g, 0, 0)),
            pl.BlockSpec((Kp, COp), lambda g: (0, 0)),
            pl.BlockSpec((1, COp), lambda g: (0, 0)),
            pl.BlockSpec((1, COp), lambda g: (0, 0)),
        ],
        out_specs=pl.BlockSpec((pl.Squeezed(), R, COp), lambda g: (g, 0, 0)),
        compiler_params=pltpu.CompilerParams(dimension_semantics=("parallel",)),
    )(patches, w_t, gamma, beta)


def mlp_call(kernel, out_dim, *args):
    rows = args[0].shape[0]
    return pl.pallas_call(
        kernel,
        out_shape=jax.ShapeDtypeStruct((rows, out_dim), jnp.float32),
        grid=(1,),
        in_specs=[_spec(a.shape) for a in args],
        out_specs=_spec((rows, out_dim)),
    )(*args)


# ------------------------------- glue (JAX) --------------------------------- #

def im2col_3x3_s2_p1(x_nhwc):
    """im2col for Conv2d(k=3, stride=2, padding=1). Column order: (ki, kj, c)."""
    B, H, W, C = x_nhwc.shape
    OH, OW = (H + 1) // 2, (W + 1) // 2
    xp = jnp.pad(x_nhwc, ((0, 0), (1, 1), (1, 1), (0, 0)))
    cols = []
    for ki in range(3):
        for kj in range(3):
            cols.append(xp[:, ki:ki + 2 * OH - 1:2, kj:kj + 2 * OW - 1:2, :])
    patches = jnp.stack(cols, axis=3)                     # (B, OH, OW, 9, C)
    return patches.reshape(B * OH * OW, 9 * C), (B, OH, OW)


class IntrinsicCuriosityModule:
    """JAX/Pallas port of the PyTorch IntrinsicCuriosityModule forward pass."""

    NUM_FEATURES = 288  # 32 channels * 3 * 3 spatial (input spatial 42x42)
    CO = 32
    CO_PAD = 128        # lane-dense conv output; extra channels are zero and sliced off

    def __init__(self, c_in, num_actions, use_random_features, key):
        self.random = use_random_features
        self.num_actions = num_actions
        ks = iter(jax.random.split(key, 20))

        inv_sqrt = 1.0 / jnp.sqrt(1.0 + BN_EPS)  # eval-mode BN with init running stats

        # --- FeatureEncoder: 4x (Conv2d 3x3 s2 p1 no-bias + BN + ReLU) ---
        self.conv_params = []
        cin = c_in
        for _ in range(4):
            w_pt = 0.1 * jax.random.normal(next(ks), (32, cin, 3, 3), jnp.float32)  # PyTorch layout
            # reorder to patch column order (ki, kj, c_in), then (9*cin, 32)
            w_t = jnp.transpose(w_pt, (0, 2, 3, 1)).reshape(32, 9 * cin).T
            gamma = 1.0 + 0.1 * jax.random.normal(next(ks), (1, 32), jnp.float32)
            beta = 0.1 * jax.random.normal(next(ks), (1, 32), jnp.float32)
            if self.random:
                # NOTE: assumes freshly-initialized running stats (mean=0, var=1). If weights
                # were loaded from a trained PyTorch checkpoint, fold its real running stats.
                w_t = w_t * (gamma * inv_sqrt)   # fold BN scale into the conv weights
            K = 9 * cin
            Kp = _round_up(K, LANES)
            w_pad = jnp.zeros((Kp, self.CO_PAD), jnp.float32).at[:K, :32].set(w_t)
            g_pad = jnp.zeros((1, self.CO_PAD), jnp.float32).at[:, :32].set(gamma)
            b_pad = jnp.zeros((1, self.CO_PAD), jnp.float32).at[:, :32].set(beta)
            self.conv_params.append((w_pad.astype(jnp.bfloat16), g_pad, b_pad))
            cin = 32

        nf = self.NUM_FEATURES
        A = num_actions

        # --- ForwardModel: Linear(nf + A, 256) -> ReLU -> Linear(256, 288) ---
        fw1 = 0.05 * jax.random.normal(next(ks), (256, nf + A), jnp.float32)
        fb1 = 0.05 * jax.random.normal(next(ks), (256,), jnp.float32)
        fw2 = 0.05 * jax.random.normal(next(ks), (288, 256), jnp.float32)
        fb2 = 0.05 * jax.random.normal(next(ks), (288,), jnp.float32)
        self.fwd_params = (fw1[:, :nf].T.astype(jnp.bfloat16),   # W1 feature block
                           fw1[:, nf:].T.astype(jnp.bfloat16),   # W1 action block
                           fb1.reshape(1, -1),
                           fw2.T.astype(jnp.bfloat16),
                           fb2.reshape(1, -1))

        # --- InverseModel: Linear(2*nf, 256) -> ReLU -> Linear(256, A) -> softmax ---
        if not self.random:
            iw1 = 0.05 * jax.random.normal(next(ks), (256, 2 * nf), jnp.float32)
            ib1 = 0.05 * jax.random.normal(next(ks), (256,), jnp.float32)
            iw2 = 0.05 * jax.random.normal(next(ks), (A, 256), jnp.float32)
            ib2 = 0.05 * jax.random.normal(next(ks), (A,), jnp.float32)
            self.inv_params = (iw1[:, :nf].T.astype(jnp.bfloat16),
                               iw1[:, nf:].T.astype(jnp.bfloat16),
                               ib1.reshape(1, -1),
                               iw2.T.astype(jnp.bfloat16),
                               ib2.reshape(1, -1))

    def encode_pair(self, x0_nchw, x1_nchw):
        """One encoder pass over both frames (group axis of size 2)."""
        bn_train = not self.random
        x = jnp.concatenate([x0_nchw, x1_nchw], axis=0)   # (2B, C, H, W)
        x = jnp.transpose(x, (0, 2, 3, 1))                # NCHW -> NHWC
        B2 = x.shape[0]
        for (w_t, gamma, beta) in self.conv_params:
            patches, (_, OH, OW) = im2col_3x3_s2_p1(x)    # (2B*OH*OW, K) f32
            K = patches.shape[1]
            Kp = w_t.shape[0]
            p = patches.astype(jnp.bfloat16)
            if Kp != K:
                p = jnp.pad(p, ((0, 0), (0, Kp - K)))     # zero-pad contraction to 128 mult
            R = (B2 // 2) * OH * OW
            p = p.reshape(2, R, Kp)                       # group axis: [x0 rows | x1 rows]
            y = conv_bn_relu(p, w_t, gamma, beta, bn_train)   # (2, R, 128) f32
            x = y[:, :, :self.CO].reshape(B2, OH, OW, self.CO)
        B = B2 // 2
        # flatten exactly like PyTorch x.view(B, -1) on an NCHW tensor
        feats = jnp.transpose(x, (0, 3, 1, 2)).reshape(B2, -1)
        return feats[:B], feats[B:]

    def __call__(self, x0, a, x1):
        s0, s1 = self.encode_pair(x0, x1)
        action_pred = None
        if not self.random:
            action_pred = mlp_call(_inv_mlp_softmax_kernel, self.num_actions,
                                   s0, s1, *self.inv_params)
        s1_pred = mlp_call(_fwd_mlp_kernel, self.NUM_FEATURES, s0, a, *self.fwd_params)
        return s1, s1_pred, action_pred


# ---------------------------------- demo ------------------------------------ #

if __name__ == "__main__":
    key = jax.random.PRNGKey(0)
    B, C_IN, H, W = 2, 4, 42, 42          # 42 -> 21 -> 11 -> 6 -> 3  => 32*3*3 = 288 features
    NUM_ACTIONS = 6
    kx0, kx1, ka, kp = jax.random.split(key, 4)

    x0 = jax.random.normal(kx0, (B, C_IN, H, W), jnp.float32)
    x1 = jax.random.normal(kx1, (B, C_IN, H, W), jnp.float32)
    a_idx = jax.random.randint(ka, (B,), 0, NUM_ACTIONS)
    a = jax.nn.one_hot(a_idx, NUM_ACTIONS, dtype=jnp.float32)

    icm = IntrinsicCuriosityModule(C_IN, NUM_ACTIONS, use_random_features=False, key=kp)
    icm_fn = jax.jit(icm.__call__)

    s1, s1_pred, action_pred = icm_fn(x0, a, x1)
    jax.block_until_ready((s1, s1_pred, action_pred))

    assert s1.shape == (B, 288)
    assert s1_pred.shape == (B, 288)
    assert action_pred.shape == (B, NUM_ACTIONS)
    assert bool(jnp.all(jnp.isfinite(s1)) & jnp.all(jnp.isfinite(s1_pred))
                & jnp.all(jnp.isfinite(action_pred)))
    # approx reciprocal in the softmax => allow small error on the row sums
    assert bool(jnp.allclose(jnp.sum(action_pred, axis=1), 1.0, atol=1e-2))

    print("KERNEL_OK")
</pallas_src>

<mosaic_0001>
module attributes {stable_mosaic.version = 11 : i64} {
  func.func @_conv_bn_relu_kernel(%arg0: i32, %arg1: memref<1x882x128xbf16, #tpu.memory_space<vmem>>, %arg2: memref<128x128xbf16, #tpu.memory_space<vmem>>, %arg3: memref<1x128xf32, #tpu.memory_space<vmem>>, %arg4: memref<1x128xf32, #tpu.memory_space<vmem>>, %arg5: memref<1x882x128xf32, #tpu.memory_space<vmem>>) attributes {dimension_semantics = [#tpu.dimension_semantics<parallel>], iteration_bounds = array<i64: 2>, scalar_prefetch = 0 : i64, scratch_operands = 0 : i64, tpu.core_type = #tpu.core_type<tc>, window_params = [{transform_indices = @transform_0, window_bounds = array<i64: 1, 882, 128>}, {pipeline_mode = #tpu.pipeline_mode<synchronous>, transform_indices = @transform_1, window_bounds = array<i64: 128, 128>}, {pipeline_mode = #tpu.pipeline_mode<synchronous>, transform_indices = @transform_2, window_bounds = array<i64: 1, 128>}, {pipeline_mode = #tpu.pipeline_mode<synchronous>, transform_indices = @transform_3, window_bounds = array<i64: 1, 128>}, {transform_indices = @transform_4, window_bounds = array<i64: 1, 882, 128>}]} {
    %c0 = arith.constant 0 : index
    %c0_0 = arith.constant 0 : index
    %c0_1 = arith.constant 0 : index
    %0 = vector.load %arg1[%c0, %c0_0, %c0_1] : memref<1x882x128xbf16, #tpu.memory_space<vmem>>, vector<1x882x128xbf16>
    %1 = vector.shape_cast %0 : vector<1x882x128xbf16> to vector<882x128xbf16>
    %c0_2 = arith.constant 0 : index
    %c0_3 = arith.constant 0 : index
    %2 = vector.load %arg2[%c0_2, %c0_3] : memref<128x128xbf16, #tpu.memory_space<vmem>>, vector<128x128xbf16>
    %cst = arith.constant dense<0.000000e+00> : vector<882x128xf32>
    %3 = tpu.matmul %1, %2, %cst {dimension_numbers = #tpu.dot_dimension_numbers<[1], [0], [0], [1], [0, 0, 1, 1], [], []>} : vector<882x128xbf16>, vector<128x128xbf16>, vector<882x128xf32> -> vector<882x128xf32>
    %cst_4 = arith.constant dense<0.000000e+00> : vector<128xf32>
    %4 = vector.multi_reduction <add>, %3, %cst_4 [0] : vector<882x128xf32> to vector<128xf32>
    %5 = vector.shape_cast %4 : vector<128xf32> to vector<1x128xf32>
    %cst_5 = arith.constant 8.820000e+02 : f32
    %6 = vector.broadcast %cst_5 : f32 to vector<1x128xf32>
    %7 = arith.divf %5, %6 : vector<1x128xf32>
    %8 = vector.broadcast %7 : vector<1x128xf32> to vector<882x128xf32>
    %9 = arith.subf %3, %8 : vector<882x128xf32>
    %10 = arith.mulf %9, %9 : vector<882x128xf32>
    %cst_6 = arith.constant dense<0.000000e+00> : vector<128xf32>
    %11 = vector.multi_reduction <add>, %10, %cst_6 [0] : vector<882x128xf32> to vector<128xf32>
    %12 = vector.shape_cast %11 : vector<128xf32> to vector<1x128xf32>
    %cst_7 = arith.constant 8.820000e+02 : f32
    %13 = vector.broadcast %cst_7 : f32 to vector<1x128xf32>
    %14 = arith.divf %12, %13 : vector<1x128xf32>
    %15 = vector.broadcast %7 : vector<1x128xf32> to vector<882x128xf32>
    %16 = arith.subf %3, %15 : vector<882x128xf32>
    %cst_8 = arith.constant 9.99999974E-6 : f32
    %17 = vector.broadcast %cst_8 : f32 to vector<1x128xf32>
    %18 = arith.addf %14, %17 : vector<1x128xf32>
    %19 = math.rsqrt %18 : vector<1x128xf32>
    %20 = vector.broadcast %19 : vector<1x128xf32> to vector<882x128xf32>
    %21 = arith.mulf %16, %20 : vector<882x128xf32>
    %c0_9 = arith.constant 0 : index
    %c0_10 = arith.constant 0 : index
    %22 = vector.load %arg3[%c0_9, %c0_10] : memref<1x128xf32, #tpu.memory_space<vmem>>, vector<1x128xf32>
    %23 = vector.broadcast %22 : vector<1x128xf32> to vector<882x128xf32>
    %24 = arith.mulf %21, %23 : vector<882x128xf32>
    %c0_11 = arith.constant 0 : index
    %c0_12 = arith.constant 0 : index
    %25 = vector.load %arg4[%c0_11, %c0_12] : memref<1x128xf32, #tpu.memory_space<vmem>>, vector<1x128xf32>
    %26 = vector.broadcast %25 : vector<1x128xf32> to vector<882x128xf32>
    %27 = arith.addf %24, %26 : vector<882x128xf32>
    %cst_13 = arith.constant 0.000000e+00 : f32
    %28 = vector.broadcast %cst_13 : f32 to vector<882x128xf32>
    %29 = arith.maximumf %27, %28 : vector<882x128xf32>
    %c0_14 = arith.constant 0 : index
    %c0_15 = arith.constant 0 : index
    %c0_16 = arith.constant 0 : index
    %30 = vector.load %arg5[%c0_14, %c0_15, %c0_16] : memref<1x882x128xf32, #tpu.memory_space<vmem>>, vector<1x882x128xf32>
    %31 = vector.shape_cast %30 : vector<1x882x128xf32> to vector<882x128xf32>
    %32 = vector.shape_cast %29 : vector<882x128xf32> to vector<1x882x128xf32>
    tpu.vector_store %arg5[%c0_14, %c0_15, %c0_16], %32 {strides = array<i32>} : memref<1x882x128xf32, #tpu.memory_space<vmem>>, vector<1x882x128xf32>,
    return
  }
  func.func @transform_0(%arg0: i32) -> (i32, i32, i32) {
    %c0_i32 = arith.constant 0 : i32
    %c0_i32_0 = arith.constant 0 : i32
    %c0_i32_1 = arith.constant 0 : i32
    return %arg0, %c0_i32, %c0_i32_0 : i32, i32, i32
  }
  func.func @transform_1(%arg0: i32) -> (i32, i32) {
    %c0_i32 = arith.constant 0 : i32
    %c0_i32_0 = arith.constant 0 : i32
    %c0_i32_1 = arith.constant 0 : i32
    return %c0_i32, %c0_i32_0 : i32, i32
  }
  func.func @transform_2(%arg0: i32) -> (i32, i32) {
    %c0_i32 = arith.constant 0 : i32
    %c0_i32_0 = arith.constant 0 : i32
    %c0_i32_1 = arith.constant 0 : i32
    return %c0_i32, %c0_i32_0 : i32, i32
  }
  func.func @transform_3(%arg0: i32) -> (i32, i32) {
    %c0_i32 = arith.constant 0 : i32
    %c0_i32_0 = arith.constant 0 : i32
    %c0_i32_1 = arith.constant 0 : i32
    return %c0_i32, %c0_i32_0 : i32, i32
  }
  func.func @transform_4(%arg0: i32) -> (i32, i32, i32) {
    %c0_i32 = arith.constant 0 : i32
    %c0_i32_0 = arith.constant 0 : i32
    %c0_i32_1 = arith.constant 0 : i32
    return %arg0, %c0_i32, %c0_i32_0 : i32, i32, i32
  }
}

module attributes {stable_mosaic.version = 11 : i64} {
  func.func @_conv_bn_relu_kernel(%arg0: i32, %arg1: memref<1x242x384xbf16, #tpu.memory_space<vmem>>, %arg2: memref<384x128xbf16, #tpu.memory_space<vmem>>, %arg3: memref<1x128xf32, #tpu.memory_space<vmem>>, %arg4: memref<1x128xf32, #tpu.memory_space<vmem>>, %arg5: memref<1x242x128xf32, #tpu.memory_space<vmem>>) attributes {dimension_semantics = [#tpu.dimension_semantics<parallel>], iteration_bounds = array<i64: 2>, scalar_prefetch = 0 : i64, scratch_operands = 0 : i64, tpu.core_type = #tpu.core_type<tc>, window_params = [{transform_indices = @transform_0, window_bounds = array<i64: 1, 242, 384>}, {pipeline_mode = #tpu.pipeline_mode<synchronous>, transform_indices = @transform_1, window_bounds = array<i64: 384, 128>}, {pipeline_mode = #tpu.pipeline_mode<synchronous>, transform_indices = @transform_2, window_bounds = array<i64: 1, 128>}, {pipeline_mode = #tpu.pipeline_mode<synchronous>, transform_indices = @transform_3, window_bounds = array<i64: 1, 128>}, {transform_indices = @transform_4, window_bounds = array<i64: 1, 242, 128>}]} {
    %c0 = arith.constant 0 : index
    %c0_0 = arith.constant 0 : index
    %c0_1 = arith.constant 0 : index
    %0 = vector.load %arg1[%c0, %c0_0, %c0_1] : memref<1x242x384xbf16, #tpu.memory_space<vmem>>, vector<1x242x384xbf16>
    %1 = vector.shape_cast %0 : vector<1x242x384xbf16> to vector<242x384xbf16>
    %c0_2 = arith.constant 0 : index
    %c0_3 = arith.constant 0 : index
    %2 = vector.load %arg2[%c0_2, %c0_3] : memref<384x128xbf16, #tpu.memory_space<vmem>>, vector<384x128xbf16>
    %cst = arith.constant dense<0.000000e+00> : vector<242x128xf32>
    %3 = tpu.matmul %1, %2, %cst {dimension_numbers = #tpu.dot_dimension_numbers<[1], [0], [0], [1], [0, 0, 1, 1], [], []>} : vector<242x384xbf16>, vector<384x128xbf16>, vector<242x128xf32> -> vector<242x128xf32>
    %cst_4 = arith.constant dense<0.000000e+00> : vector<128xf32>
    %4 = vector.multi_reduction <add>, %3, %cst_4 [0] : vector<242x128xf32> to vector<128xf32>
    %5 = vector.shape_cast %4 : vector<128xf32> to vector<1x128xf32>
    %cst_5 = arith.constant 2.420000e+02 : f32
    %6 = vector.broadcast %cst_5 : f32 to vector<1x128xf32>
    %7 = arith.divf %5, %6 : vector<1x128xf32>
    %8 = vector.broadcast %7 : vector<1x128xf32> to vector<242x128xf32>
    %9 = arith.subf %3, %8 : vector<242x128xf32>
    %10 = arith.mulf %9, %9 : vector<242x128xf32>
    %cst_6 = arith.constant dense<0.000000e+00> : vector<128xf32>
    %11 = vector.multi_reduction <add>, %10, %cst_6 [0] : vector<242x128xf32> to vector<128xf32>
    %12 = vector.shape_cast %11 : vector<128xf32> to vector<1x128xf32>
    %cst_7 = arith.constant 2.420000e+02 : f32
    %13 = vector.broadcast %cst_7 : f32 to vector<1x128xf32>
    %14 = arith.divf %12, %13 : vector<1x128xf32>
    %15 = vector.broadcast %7 : vector<1x128xf32> to vector<242x128xf32>
    %16 = arith.subf %3, %15 : vector<242x128xf32>
    %cst_8 = arith.constant 9.99999974E-6 : f32
    %17 = vector.broadcast %cst_8 : f32 to vector<1x128xf32>
    %18 = arith.addf %14, %17 : vector<1x128xf32>
    %19 = math.rsqrt %18 : vector<1x128xf32>
    %20 = vector.broadcast %19 : vector<1x128xf32> to vector<242x128xf32>
    %21 = arith.mulf %16, %20 : vector<242x128xf32>
    %c0_9 = arith.constant 0 : index
    %c0_10 = arith.constant 0 : index
    %22 = vector.load %arg3[%c0_9, %c0_10] : memref<1x128xf32, #tpu.memory_space<vmem>>, vector<1x128xf32>
    %23 = vector.broadcast %22 : vector<1x128xf32> to vector<242x128xf32>
    %24 = arith.mulf %21, %23 : vector<242x128xf32>
    %c0_11 = arith.constant 0 : index
    %c0_12 = arith.constant 0 : index
    %25 = vector.load %arg4[%c0_11, %c0_12] : memref<1x128xf32, #tpu.memory_space<vmem>>, vector<1x128xf32>
    %26 = vector.broadcast %25 : vector<1x128xf32> to vector<242x128xf32>
    %27 = arith.addf %24, %26 : vector<242x128xf32>
    %cst_13 = arith.constant 0.000000e+00 : f32
    %28 = vector.broadcast %cst_13 : f32 to vector<242x128xf32>
    %29 = arith.maximumf %27, %28 : vector<242x128xf32>
    %c0_14 = arith.constant 0 : index
    %c0_15 = arith.constant 0 : index
    %c0_16 = arith.constant 0 : index
    %30 = vector.load %arg5[%c0_14, %c0_15, %c0_16] : memref<1x242x128xf32, #tpu.memory_space<vmem>>, vector<1x242x128xf32>
    %31 = vector.shape_cast %30 : vector<1x242x128xf32> to vector<242x128xf32>
    %32 = vector.shape_cast %29 : vector<242x128xf32> to vector<1x242x128xf32>
    tpu.vector_store %arg5[%c0_14, %c0_15, %c0_16], %32 {strides = array<i32>} : memref<1x242x128xf32, #tpu.memory_space<vmem>>, vector<1x242x128xf32>,
    return
  }
  func.func @transform_0(%arg0: i32) -> (i32, i32, i32) {
    %c0_i32 = arith.constant 0 : i32
    %c0_i32_0 = arith.constant 0 : i32
    %c0_i32_1 = arith.constant 0 : i32
    return %arg0, %c0_i32, %c0_i32_0 : i32, i32, i32
  }
  func.func @transform_1(%arg0: i32) -> (i32, i32) {
    %c0_i32 = arith.constant 0 : i32
    %c0_i32_0 = arith.constant 0 : i32
    %c0_i32_1 = arith.constant 0 : i32
    return %c0_i32, %c0_i32_0 : i32, i32
  }
  func.func @transform_2(%arg0: i32) -> (i32, i32) {
    %c0_i32 = arith.constant 0 : i32
    %c0_i32_0 = arith.constant 0 : i32
    %c0_i32_1 = arith.constant 0 : i32
    return %c0_i32, %c0_i32_0 : i32, i32
  }
  func.func @transform_3(%arg0: i32) -> (i32, i32) {
    %c0_i32 = arith.constant 0 : i32
    %c0_i32_0 = arith.constant 0 : i32
    %c0_i32_1 = arith.constant 0 : i32
    return %c0_i32, %c0_i32_0 : i32, i32
  }
  func.func @transform_4(%arg0: i32) -> (i32, i32, i32) {
    %c0_i32 = arith.constant 0 : i32
    %c0_i32_0 = arith.constant 0 : i32
    %c0_i32_1 = arith.constant 0 : i32
    return %arg0, %c0_i32, %c0_i32_0 : i32, i32, i32
  }
}

module attributes {stable_mosaic.version = 11 : i64} {
  func.func @_conv_bn_relu_kernel(%arg0: i32, %arg1: memref<1x72x384xbf16, #tpu.memory_space<vmem>>, %arg2: memref<384x128xbf16, #tpu.memory_space<vmem>>, %arg3: memref<1x128xf32, #tpu.memory_space<vmem>>, %arg4: memref<1x128xf32, #tpu.memory_space<vmem>>, %arg5: memref<1x72x128xf32, #tpu.memory_space<vmem>>) attributes {dimension_semantics = [#tpu.dimension_semantics<parallel>], iteration_bounds = array<i64: 2>, scalar_prefetch = 0 : i64, scratch_operands = 0 : i64, tpu.core_type = #tpu.core_type<tc>, window_params = [{transform_indices = @transform_0, window_bounds = array<i64: 1, 72, 384>}, {pipeline_mode = #tpu.pipeline_mode<synchronous>, transform_indices = @transform_1, window_bounds = array<i64: 384, 128>}, {pipeline_mode = #tpu.pipeline_mode<synchronous>, transform_indices = @transform_2, window_bounds = array<i64: 1, 128>}, {pipeline_mode = #tpu.pipeline_mode<synchronous>, transform_indices = @transform_3, window_bounds = array<i64: 1, 128>}, {transform_indices = @transform_4, window_bounds = array<i64: 1, 72, 128>}]} {
    %c0 = arith.constant 0 : index
    %c0_0 = arith.constant 0 : index
    %c0_1 = arith.constant 0 : index
    %0 = vector.load %arg1[%c0, %c0_0, %c0_1] : memref<1x72x384xbf16, #tpu.memory_space<vmem>>, vector<1x72x384xbf16>
    %1 = vector.shape_cast %0 : vector<1x72x384xbf16> to vector<72x384xbf16>
    %c0_2 = arith.constant 0 : index
    %c0_3 = arith.constant 0 : index
    %2 = vector.load %arg2[%c0_2, %c0_3] : memref<384x128xbf16, #tpu.memory_space<vmem>>, vector<384x128xbf16>
    %cst = arith.constant dense<0.000000e+00> : vector<72x128xf32>
    %3 = tpu.matmul %1, %2, %cst {dimension_numbers = #tpu.dot_dimension_numbers<[1], [0], [0], [1], [0, 0, 1, 1], [], []>} : vector<72x384xbf16>, vector<384x128xbf16>, vector<72x128xf32> -> vector<72x128xf32>
    %cst_4 = arith.constant dense<0.000000e+00> : vector<128xf32>
    %4 = vector.multi_reduction <add>, %3, %cst_4 [0] : vector<72x128xf32> to vector<128xf32>
    %5 = vector.shape_cast %4 : vector<128xf32> to vector<1x128xf32>
    %cst_5 = arith.constant 7.200000e+01 : f32
    %6 = vector.broadcast %cst_5 : f32 to vector<1x128xf32>
    %7 = arith.divf %5, %6 : vector<1x128xf32>
    %8 = vector.broadcast %7 : vector<1x128xf32> to vector<72x128xf32>
    %9 = arith.subf %3, %8 : vector<72x128xf32>
    %10 = arith.mulf %9, %9 : vector<72x128xf32>
    %cst_6 = arith.constant dense<0.000000e+00> : vector<128xf32>
    %11 = vector.multi_reduction <add>, %10, %cst_6 [0] : vector<72x128xf32> to vector<128xf32>
    %12 = vector.shape_cast %11 : vector<128xf32> to vector<1x128xf32>
    %cst_7 = arith.constant 7.200000e+01 : f32
    %13 = vector.broadcast %cst_7 : f32 to vector<1x128xf32>
    %14 = arith.divf %12, %13 : vector<1x128xf32>
    %15 = vector.broadcast %7 : vector<1x128xf32> to vector<72x128xf32>
    %16 = arith.subf %3, %15 : vector<72x128xf32>
    %cst_8 = arith.constant 9.99999974E-6 : f32
    %17 = vector.broadcast %cst_8 : f32 to vector<1x128xf32>
    %18 = arith.addf %14, %17 : vector<1x128xf32>
    %19 = math.rsqrt %18 : vector<1x128xf32>
    %20 = vector.broadcast %19 : vector<1x128xf32> to vector<72x128xf32>
    %21 = arith.mulf %16, %20 : vector<72x128xf32>
    %c0_9 = arith.constant 0 : index
    %c0_10 = arith.constant 0 : index
    %22 = vector.load %arg3[%c0_9, %c0_10] : memref<1x128xf32, #tpu.memory_space<vmem>>, vector<1x128xf32>
    %23 = vector.broadcast %22 : vector<1x128xf32> to vector<72x128xf32>
    %24 = arith.mulf %21, %23 : vector<72x128xf32>
    %c0_11 = arith.constant 0 : index
    %c0_12 = arith.constant 0 : index
    %25 = vector.load %arg4[%c0_11, %c0_12] : memref<1x128xf32, #tpu.memory_space<vmem>>, vector<1x128xf32>
    %26 = vector.broadcast %25 : vector<1x128xf32> to vector<72x128xf32>
    %27 = arith.addf %24, %26 : vector<72x128xf32>
    %cst_13 = arith.constant 0.000000e+00 : f32
    %28 = vector.broadcast %cst_13 : f32 to vector<72x128xf32>
    %29 = arith.maximumf %27, %28 : vector<72x128xf32>
    %c0_14 = arith.constant 0 : index
    %c0_15 = arith.constant 0 : index
    %c0_16 = arith.constant 0 : index
    %30 = vector.load %arg5[%c0_14, %c0_15, %c0_16] : memref<1x72x128xf32, #tpu.memory_space<vmem>>, vector<1x72x128xf32>
    %31 = vector.shape_cast %30 : vector<1x72x128xf32> to vector<72x128xf32>
    %32 = vector.shape_cast %29 : vector<72x128xf32> to vector<1x72x128xf32>
    tpu.vector_store %arg5[%c0_14, %c0_15, %c0_16], %32 {strides = array<i32>} : memref<1x72x128xf32, #tpu.memory_space<vmem>>, vector<1x72x128xf32>,
    return
  }
  func.func @transform_0(%arg0: i32) -> (i32, i32, i32) {
    %c0_i32 = arith.constant 0 : i32
    %c0_i32_0 = arith.constant 0 : i32
    %c0_i32_1 = arith.constant 0 : i32
    return %arg0, %c0_i32, %c0_i32_0 : i32, i32, i32
  }
  func.func @transform_1(%arg0: i32) -> (i32, i32) {
    %c0_i32 = arith.constant 0 : i32
    %c0_i32_0 = arith.constant 0 : i32
    %c0_i32_1 = arith.constant 0 : i32
    return %c0_i32, %c0_i32_0 : i32, i32
  }
  func.func @transform_2(%arg0: i32) -> (i32, i32) {
    %c0_i32 = arith.constant 0 : i32
    %c0_i32_0 = arith.constant 0 : i32
    %c0_i32_1 = arith.constant 0 : i32
    return %c0_i32, %c0_i32_0 : i32, i32
  }
  func.func @transform_3(%arg0: i32) -> (i32, i32) {
    %c0_i32 = arith.constant 0 : i32
    %c0_i32_0 = arith.constant 0 : i32
    %c0_i32_1 = arith.constant 0 : i32
    return %c0_i32, %c0_i32_0 : i32, i32
  }
  func.func @transform_4(%arg0: i32) -> (i32, i32, i32) {
    %c0_i32 = arith.constant 0 : i32
    %c0_i32_0 = arith.constant 0 : i32
    %c0_i32_1 = arith.constant 0 : i32
    return %arg0, %c0_i32, %c0_i32_0 : i32, i32, i32
  }
}

module attributes {stable_mosaic.version = 11 : i64} {
  func.func @_conv_bn_relu_kernel(%arg0: i32, %arg1: memref<1x18x384xbf16, #tpu.memory_space<vmem>>, %arg2: memref<384x128xbf16, #tpu.memory_space<vmem>>, %arg3: memref<1x128xf32, #tpu.memory_space<vmem>>, %arg4: memref<1x128xf32, #tpu.memory_space<vmem>>, %arg5: memref<1x18x128xf32, #tpu.memory_space<vmem>>) attributes {dimension_semantics = [#tpu.dimension_semantics<parallel>], iteration_bounds = array<i64: 2>, scalar_prefetch = 0 : i64, scratch_operands = 0 : i64, tpu.core_type = #tpu.core_type<tc>, window_params = [{transform_indices = @transform_0, window_bounds = array<i64: 1, 18, 384>}, {pipeline_mode = #tpu.pipeline_mode<synchronous>, transform_indices = @transform_1, window_bounds = array<i64: 384, 128>}, {pipeline_mode = #tpu.pipeline_mode<synchronous>, transform_indices = @transform_2, window_bounds = array<i64: 1, 128>}, {pipeline_mode = #tpu.pipeline_mode<synchronous>, transform_indices = @transform_3, window_bounds = array<i64: 1, 128>}, {transform_indices = @transform_4, window_bounds = array<i64: 1, 18, 128>}]} {
    %c0 = arith.constant 0 : index
    %c0_0 = arith.constant 0 : index
    %c0_1 = arith.constant 0 : index
    %0 = vector.load %arg1[%c0, %c0_0, %c0_1] : memref<1x18x384xbf16, #tpu.memory_space<vmem>>, vector<1x18x384xbf16>
    %1 = vector.shape_cast %0 : vector<1x18x384xbf16> to vector<18x384xbf16>
    %c0_2 = arith.constant 0 : index
    %c0_3 = arith.constant 0 : index
    %2 = vector.load %arg2[%c0_2, %c0_3] : memref<384x128xbf16, #tpu.memory_space<vmem>>, vector<384x128xbf16>
    %cst = arith.constant dense<0.000000e+00> : vector<18x128xf32>
    %3 = tpu.matmul %1, %2, %cst {dimension_numbers = #tpu.dot_dimension_numbers<[1], [0], [0], [1], [0, 0, 1, 1], [], []>} : vector<18x384xbf16>, vector<384x128xbf16>, vector<18x128xf32> -> vector<18x128xf32>
    %cst_4 = arith.constant dense<0.000000e+00> : vector<128xf32>
    %4 = vector.multi_reduction <add>, %3, %cst_4 [0] : vector<18x128xf32> to vector<128xf32>
    %5 = vector.shape_cast %4 : vector<128xf32> to vector<1x128xf32>
    %cst_5 = arith.constant 1.800000e+01 : f32
    %6 = vector.broadcast %cst_5 : f32 to vector<1x128xf32>
    %7 = arith.divf %5, %6 : vector<1x128xf32>
    %8 = vector.broadcast %7 : vector<1x128xf32> to vector<18x128xf32>
    %9 = arith.subf %3, %8 : vector<18x128xf32>
    %10 = arith.mulf %9, %9 : vector<18x128xf32>
    %cst_6 = arith.constant dense<0.000000e+00> : vector<128xf32>
    %11 = vector.multi_reduction <add>, %10, %cst_6 [0] : vector<18x128xf32> to vector<128xf32>
    %12 = vector.shape_cast %11 : vector<128xf32> to vector<1x128xf32>
    %cst_7 = arith.constant 1.800000e+01 : f32
    %13 = vector.broadcast %cst_7 : f32 to vector<1x128xf32>
    %14 = arith.divf %12, %13 : vector<1x128xf32>
    %15 = vector.broadcast %7 : vector<1x128xf32> to vector<18x128xf32>
    %16 = arith.subf %3, %15 : vector<18x128xf32>
    %cst_8 = arith.constant 9.99999974E-6 : f32
    %17 = vector.broadcast %cst_8 : f32 to vector<1x128xf32>
    %18 = arith.addf %14, %17 : vector<1x128xf32>
    %19 = math.rsqrt %18 : vector<1x128xf32>
    %20 = vector.broadcast %19 : vector<1x128xf32> to vector<18x128xf32>
    %21 = arith.mulf %16, %20 : vector<18x128xf32>
    %c0_9 = arith.constant 0 : index
    %c0_10 = arith.constant 0 : index
    %22 = vector.load %arg3[%c0_9, %c0_10] : memref<1x128xf32, #tpu.memory_space<vmem>>, vector<1x128xf32>
    %23 = vector.broadcast %22 : vector<1x128xf32> to vector<18x128xf32>
    %24 = arith.mulf %21, %23 : vector<18x128xf32>
    %c0_11 = arith.constant 0 : index
    %c0_12 = arith.constant 0 : index
    %25 = vector.load %arg4[%c0_11, %c0_12] : memref<1x128xf32, #tpu.memory_space<vmem>>, vector<1x128xf32>
    %26 = vector.broadcast %25 : vector<1x128xf32> to vector<18x128xf32>
    %27 = arith.addf %24, %26 : vector<18x128xf32>
    %cst_13 = arith.constant 0.000000e+00 : f32
    %28 = vector.broadcast %cst_13 : f32 to vector<18x128xf32>
    %29 = arith.maximumf %27, %28 : vector<18x128xf32>
    %c0_14 = arith.constant 0 : index
    %c0_15 = arith.constant 0 : index
    %c0_16 = arith.constant 0 : index
    %30 = vector.load %arg5[%c0_14, %c0_15, %c0_16] : memref<1x18x128xf32, #tpu.memory_space<vmem>>, vector<1x18x128xf32>
    %31 = vector.shape_cast %30 : vector<1x18x128xf32> to vector<18x128xf32>
    %32 = vector.shape_cast %29 : vector<18x128xf32> to vector<1x18x128xf32>
    tpu.vector_store %arg5[%c0_14, %c0_15, %c0_16], %32 {strides = array<i32>} : memref<1x18x128xf32, #tpu.memory_space<vmem>>, vector<1x18x128xf32>,
    return
  }
  func.func @transform_0(%arg0: i32) -> (i32, i32, i32) {
    %c0_i32 = arith.constant 0 : i32
    %c0_i32_0 = arith.constant 0 : i32
    %c0_i32_1 = arith.constant 0 : i32
    return %arg0, %c0_i32, %c0_i32_0 : i32, i32, i32
  }
  func.func @transform_1(%arg0: i32) -> (i32, i32) {
    %c0_i32 = arith.constant 0 : i32
    %c0_i32_0 = arith.constant 0 : i32
    %c0_i32_1 = arith.constant 0 : i32
    return %c0_i32, %c0_i32_0 : i32, i32
  }
  func.func @transform_2(%arg0: i32) -> (i32, i32) {
    %c0_i32 = arith.constant 0 : i32
    %c0_i32_0 = arith.constant 0 : i32
    %c0_i32_1 = arith.constant 0 : i32
    return %c0_i32, %c0_i32_0 : i32, i32
  }
  func.func @transform_3(%arg0: i32) -> (i32, i32) {
    %c0_i32 = arith.constant 0 : i32
    %c0_i32_0 = arith.constant 0 : i32
    %c0_i32_1 = arith.constant 0 : i32
    return %c0_i32, %c0_i32_0 : i32, i32
  }
  func.func @transform_4(%arg0: i32) -> (i32, i32, i32) {
    %c0_i32 = arith.constant 0 : i32
    %c0_i32_0 = arith.constant 0 : i32
    %c0_i32_1 = arith.constant 0 : i32
    return %arg0, %c0_i32, %c0_i32_0 : i32, i32, i32
  }
}

module attributes {stable_mosaic.version = 11 : i64} {
  func.func @_inv_mlp_softmax_kernel(%arg0: i32, %arg1: memref<2x288xf32, #tpu.memory_space<vmem>>, %arg2: memref<2x288xf32, #tpu.memory_space<vmem>>, %arg3: memref<288x256xbf16, #tpu.memory_space<vmem>>, %arg4: memref<288x256xbf16, #tpu.memory_space<vmem>>, %arg5: memref<1x256xf32, #tpu.memory_space<vmem>>, %arg6: memref<256x6xbf16, #tpu.memory_space<vmem>>, %arg7: memref<1x6xf32, #tpu.memory_space<vmem>>, %arg8: memref<2x6xf32, #tpu.memory_space<vmem>>) attributes {dimension_semantics = [#tpu.dimension_semantics<arbitrary>], iteration_bounds = array<i64: 1>, scalar_prefetch = 0 : i64, scratch_operands = 0 : i64, tpu.core_type = #tpu.core_type<tc>, window_params = [{pipeline_mode = #tpu.pipeline_mode<synchronous>, transform_indices = @transform_0, window_bounds = array<i64: 2, 288>}, {pipeline_mode = #tpu.pipeline_mode<synchronous>, transform_indices = @transform_1, window_bounds = array<i64: 2, 288>}, {pipeline_mode = #tpu.pipeline_mode<synchronous>, transform_indices = @transform_2, window_bounds = array<i64: 288, 256>}, {pipeline_mode = #tpu.pipeline_mode<synchronous>, transform_indices = @transform_3, window_bounds = array<i64: 288, 256>}, {pipeline_mode = #tpu.pipeline_mode<synchronous>, transform_indices = @transform_4, window_bounds = array<i64: 1, 256>}, {pipeline_mode = #tpu.pipeline_mode<synchronous>, transform_indices = @transform_5, window_bounds = array<i64: 256, 6>}, {pipeline_mode = #tpu.pipeline_mode<synchronous>, transform_indices = @transform_6, window_bounds = array<i64: 1, 6>}, {pipeline_mode = #tpu.pipeline_mode<synchronous>, transform_indices = @transform_7, window_bounds = array<i64: 2, 6>}]} {
    %c0 = arith.constant 0 : index
    %c0_0 = arith.constant 0 : index
    %0 = vector.load %arg1[%c0, %c0_0] : memref<2x288xf32, #tpu.memory_space<vmem>>, vector<2x288xf32>
    %1 = arith.truncf %0 : vector<2x288xf32> to vector<2x288xbf16>
    %c0_1 = arith.constant 0 : index
    %c0_2 = arith.constant 0 : index
    %2 = vector.load %arg2[%c0_1, %c0_2] : memref<2x288xf32, #tpu.memory_space<vmem>>, vector<2x288xf32>
    %3 = arith.truncf %2 : vector<2x288xf32> to vector<2x288xbf16>
    %c0_3 = arith.constant 0 : index
    %c0_4 = arith.constant 0 : index
    %4 = vector.load %arg3[%c0_3, %c0_4] : memref<288x256xbf16, #tpu.memory_space<vmem>>, vector<288x256xbf16>
    %cst = arith.constant dense<0.000000e+00> : vector<2x256xf32>
    %5 = tpu.matmul %1, %4, %cst {dimension_numbers = #tpu.dot_dimension_numbers<[1], [0], [0], [1], [0, 0, 1, 1], [], []>} : vector<2x288xbf16>, vector<288x256xbf16>, vector<2x256xf32> -> vector<2x256xf32>
    %c0_5 = arith.constant 0 : index
    %c0_6 = arith.constant 0 : index
    %6 = vector.load %arg4[%c0_5, %c0_6] : memref<288x256xbf16, #tpu.memory_space<vmem>>, vector<288x256xbf16>
    %cst_7 = arith.constant dense<0.000000e+00> : vector<2x256xf32>
    %7 = tpu.matmul %3, %6, %cst_7 {dimension_numbers = #tpu.dot_dimension_numbers<[1], [0], [0], [1], [0, 0, 1, 1], [], []>} : vector<2x288xbf16>, vector<288x256xbf16>, vector<2x256xf32> -> vector<2x256xf32>
    %8 = arith.addf %5, %7 : vector<2x256xf32>
    %c0_8 = arith.constant 0 : index
    %c0_9 = arith.constant 0 : index
    %9 = vector.load %arg5[%c0_8, %c0_9] : memref<1x256xf32, #tpu.memory_space<vmem>>, vector<1x256xf32>
    %10 = vector.broadcast %9 : vector<1x256xf32> to vector<2x256xf32>
    %11 = arith.addf %8, %10 : vector<2x256xf32>
    %cst_10 = arith.constant 0.000000e+00 : f32
    %12 = vector.broadcast %cst_10 : f32 to vector<2x256xf32>
    %13 = arith.maximumf %11, %12 : vector<2x256xf32>
    %14 = arith.truncf %13 : vector<2x256xf32> to vector<2x256xbf16>
    %c0_11 = arith.constant 0 : index
    %c0_12 = arith.constant 0 : index
    %15 = vector.load %arg6[%c0_11, %c0_12] : memref<256x6xbf16, #tpu.memory_space<vmem>>, vector<256x6xbf16>
    %cst_13 = arith.constant dense<0.000000e+00> : vector<2x6xf32>
    %16 = tpu.matmul %14, %15, %cst_13 {dimension_numbers = #tpu.dot_dimension_numbers<[1], [0], [0], [1], [0, 0, 1, 1], [], []>} : vector<2x256xbf16>, vector<256x6xbf16>, vector<2x6xf32> -> vector<2x6xf32>
    %c0_14 = arith.constant 0 : index
    %c0_15 = arith.constant 0 : index
    %17 = vector.load %arg7[%c0_14, %c0_15] : memref<1x6xf32, #tpu.memory_space<vmem>>, vector<1x6xf32>
    %18 = vector.broadcast %17 : vector<1x6xf32> to vector<2x6xf32>
    %19 = arith.addf %16, %18 : vector<2x6xf32>
    %cst_16 = arith.constant dense<0xFF800000> : vector<2xf32>
    %20 = vector.multi_reduction <maximumf>, %19, %cst_16 [1] : vector<2x6xf32> to vector<2xf32>
    %21 = vector.shape_cast %20 : vector<2xf32> to vector<2x1xf32>
    %22 = vector.broadcast %21 : vector<2x1xf32> to vector<2x6xf32>
    %23 = arith.subf %19, %22 : vector<2x6xf32>
    %24 = math.exp %23 : vector<2x6xf32>
    %cst_17 = arith.constant dense<0.000000e+00> : vector<2xf32>
    %25 = vector.multi_reduction <add>, %24, %cst_17 [1] : vector<2x6xf32> to vector<2xf32>
    %26 = vector.shape_cast %25 : vector<2xf32> to vector<2x1xf32>
    %27 = tpu.reciprocal %26 {approx = true} : vector<2x1xf32> -> vector<2x1xf32>
    %28 = vector.broadcast %27 : vector<2x1xf32> to vector<2x6xf32>
    %29 = arith.mulf %24, %28 : vector<2x6xf32>
    %c0_18 = arith.constant 0 : index
    %c0_19 = arith.constant 0 : index
    %30 = vector.load %arg8[%c0_18, %c0_19] : memref<2x6xf32, #tpu.memory_space<vmem>>, vector<2x6xf32>
    tpu.vector_store %arg8[%c0_18, %c0_19], %29 {strides = array<i32>} : memref<2x6xf32, #tpu.memory_space<vmem>>, vector<2x6xf32>,
    return
  }
  func.func @transform_0(%arg0: i32) -> (i32, i32) {
    %c0_i32 = arith.constant 0 : i32
    %c0_i32_0 = arith.constant 0 : i32
    %c0_i32_1 = arith.constant 0 : i32
    return %c0_i32, %c0_i32_0 : i32, i32
  }
  func.func @transform_1(%arg0: i32) -> (i32, i32) {
    %c0_i32 = arith.constant 0 : i32
    %c0_i32_0 = arith.constant 0 : i32
    %c0_i32_1 = arith.constant 0 : i32
    return %c0_i32, %c0_i32_0 : i32, i32
  }
  func.func @transform_2(%arg0: i32) -> (i32, i32) {
    %c0_i32 = arith.constant 0 : i32
    %c0_i32_0 = arith.constant 0 : i32
    %c0_i32_1 = arith.constant 0 : i32
    return %c0_i32, %c0_i32_0 : i32, i32
  }
  func.func @transform_3(%arg0: i32) -> (i32, i32) {
    %c0_i32 = arith.constant 0 : i32
    %c0_i32_0 = arith.constant 0 : i32
    %c0_i32_1 = arith.constant 0 : i32
    return %c0_i32, %c0_i32_0 : i32, i32
  }
  func.func @transform_4(%arg0: i32) -> (i32, i32) {
    %c0_i32 = arith.constant 0 : i32
    %c0_i32_0 = arith.constant 0 : i32
    %c0_i32_1 = arith.constant 0 : i32
    return %c0_i32, %c0_i32_0 : i32, i32
  }
  func.func @transform_5(%arg0: i32) -> (i32, i32) {
    %c0_i32 = arith.constant 0 : i32
    %c0_i32_0 = arith.constant 0 : i32
    %c0_i32_1 = arith.constant 0 : i32
    return %c0_i32, %c0_i32_0 : i32, i32
  }
  func.func @transform_6(%arg0: i32) -> (i32, i32) {
    %c0_i32 = arith.constant 0 : i32
    %c0_i32_0 = arith.constant 0 : i32
    %c0_i32_1 = arith.constant 0 : i32
    return %c0_i32, %c0_i32_0 : i32, i32
  }
  func.func @transform_7(%arg0: i32) -> (i32, i32) {
    %c0_i32 = arith.constant 0 : i32
    %c0_i32_0 = arith.constant 0 : i32
    %c0_i32_1 = arith.constant 0 : i32
    return %c0_i32, %c0_i32_0 : i32, i32
  }
}

module attributes {stable_mosaic.version = 11 : i64} {
  func.func @_fwd_mlp_kernel(%arg0: i32, %arg1: memref<2x288xf32, #tpu.memory_space<vmem>>, %arg2: memref<2x6xf32, #tpu.memory_space<vmem>>, %arg3: memref<288x256xbf16, #tpu.memory_space<vmem>>, %arg4: memref<6x256xbf16, #tpu.memory_space<vmem>>, %arg5: memref<1x256xf32, #tpu.memory_space<vmem>>, %arg6: memref<256x288xbf16, #tpu.memory_space<vmem>>, %arg7: memref<1x288xf32, #tpu.memory_space<vmem>>, %arg8: memref<2x288xf32, #tpu.memory_space<vmem>>) attributes {dimension_semantics = [#tpu.dimension_semantics<arbitrary>], iteration_bounds = array<i64: 1>, scalar_prefetch = 0 : i64, scratch_operands = 0 : i64, tpu.core_type = #tpu.core_type<tc>, window_params = [{pipeline_mode = #tpu.pipeline_mode<synchronous>, transform_indices = @transform_0, window_bounds = array<i64: 2, 288>}, {pipeline_mode = #tpu.pipeline_mode<synchronous>, transform_indices = @transform_1, window_bounds = array<i64: 2, 6>}, {pipeline_mode = #tpu.pipeline_mode<synchronous>, transform_indices = @transform_2, window_bounds = array<i64: 288, 256>}, {pipeline_mode = #tpu.pipeline_mode<synchronous>, transform_indices = @transform_3, window_bounds = array<i64: 6, 256>}, {pipeline_mode = #tpu.pipeline_mode<synchronous>, transform_indices = @transform_4, window_bounds = array<i64: 1, 256>}, {pipeline_mode = #tpu.pipeline_mode<synchronous>, transform_indices = @transform_5, window_bounds = array<i64: 256, 288>}, {pipeline_mode = #tpu.pipeline_mode<synchronous>, transform_indices = @transform_6, window_bounds = array<i64: 1, 288>}, {pipeline_mode = #tpu.pipeline_mode<synchronous>, transform_indices = @transform_7, window_bounds = array<i64: 2, 288>}]} {
    %c0 = arith.constant 0 : index
    %c0_0 = arith.constant 0 : index
    %0 = vector.load %arg1[%c0, %c0_0] : memref<2x288xf32, #tpu.memory_space<vmem>>, vector<2x288xf32>
    %1 = arith.truncf %0 : vector<2x288xf32> to vector<2x288xbf16>
    %c0_1 = arith.constant 0 : index
    %c0_2 = arith.constant 0 : index
    %2 = vector.load %arg2[%c0_1, %c0_2] : memref<2x6xf32, #tpu.memory_space<vmem>>, vector<2x6xf32>
    %3 = arith.truncf %2 : vector<2x6xf32> to vector<2x6xbf16>
    %c0_3 = arith.constant 0 : index
    %c0_4 = arith.constant 0 : index
    %4 = vector.load %arg3[%c0_3, %c0_4] : memref<288x256xbf16, #tpu.memory_space<vmem>>, vector<288x256xbf16>
    %cst = arith.constant dense<0.000000e+00> : vector<2x256xf32>
    %5 = tpu.matmul %1, %4, %cst {dimension_numbers = #tpu.dot_dimension_numbers<[1], [0], [0], [1], [0, 0, 1, 1], [], []>} : vector<2x288xbf16>, vector<288x256xbf16>, vector<2x256xf32> -> vector<2x256xf32>
    %c0_5 = arith.constant 0 : index
    %c0_6 = arith.constant 0 : index
    %6 = vector.load %arg4[%c0_5, %c0_6] : memref<6x256xbf16, #tpu.memory_space<vmem>>, vector<6x256xbf16>
    %cst_7 = arith.constant dense<0.000000e+00> : vector<2x256xf32>
    %7 = tpu.matmul %3, %6, %cst_7 {dimension_numbers = #tpu.dot_dimension_numbers<[1], [0], [0], [1], [0, 0, 1, 1], [], []>} : vector<2x6xbf16>, vector<6x256xbf16>, vector<2x256xf32> -> vector<2x256xf32>
    %8 = arith.addf %5, %7 : vector<2x256xf32>
    %c0_8 = arith.constant 0 : index
    %c0_9 = arith.constant 0 : index
    %9 = vector.load %arg5[%c0_8, %c0_9] : memref<1x256xf32, #tpu.memory_space<vmem>>, vector<1x256xf32>
    %10 = vector.broadcast %9 : vector<1x256xf32> to vector<2x256xf32>
    %11 = arith.addf %8, %10 : vector<2x256xf32>
    %cst_10 = arith.constant 0.000000e+00 : f32
    %12 = vector.broadcast %cst_10 : f32 to vector<2x256xf32>
    %13 = arith.maximumf %11, %12 : vector<2x256xf32>
    %14 = arith.truncf %13 : vector<2x256xf32> to vector<2x256xbf16>
    %c0_11 = arith.constant 0 : index
    %c0_12 = arith.constant 0 : index
    %15 = vector.load %arg6[%c0_11, %c0_12] : memref<256x288xbf16, #tpu.memory_space<vmem>>, vector<256x288xbf16>
    %cst_13 = arith.constant dense<0.000000e+00> : vector<2x288xf32>
    %16 = tpu.matmul %14, %15, %cst_13 {dimension_numbers = #tpu.dot_dimension_numbers<[1], [0], [0], [1], [0, 0, 1, 1], [], []>} : vector<2x256xbf16>, vector<256x288xbf16>, vector<2x288xf32> -> vector<2x288xf32>
    %c0_14 = arith.constant 0 : index
    %c0_15 = arith.constant 0 : index
    %17 = vector.load %arg7[%c0_14, %c0_15] : memref<1x288xf32, #tpu.memory_space<vmem>>, vector<1x288xf32>
    %18 = vector.broadcast %17 : vector<1x288xf32> to vector<2x288xf32>
    %19 = arith.addf %16, %18 : vector<2x288xf32>
    %c0_16 = arith.constant 0 : index
    %c0_17 = arith.constant 0 : index
    %20 = vector.load %arg8[%c0_16, %c0_17] : memref<2x288xf32, #tpu.memory_space<vmem>>, vector<2x288xf32>
    tpu.vector_store %arg8[%c0_16, %c0_17], %19 {strides = array<i32>} : memref<2x288xf32, #tpu.memory_space<vmem>>, vector<2x288xf32>,
    return
  }
  func.func @transform_0(%arg0: i32) -> (i32, i32) {
    %c0_i32 = arith.constant 0 : i32
    %c0_i32_0 = arith.constant 0 : i32
    %c0_i32_1 = arith.constant 0 : i32
    return %c0_i32, %c0_i32_0 : i32, i32
  }
  func.func @transform_1(%arg0: i32) -> (i32, i32) {
    %c0_i32 = arith.constant 0 : i32
    %c0_i32_0 = arith.constant 0 : i32
    %c0_i32_1 = arith.constant 0 : i32
    return %c0_i32, %c0_i32_0 : i32, i32
  }
  func.func @transform_2(%arg0: i32) -> (i32, i32) {
    %c0_i32 = arith.constant 0 : i32
    %c0_i32_0 = arith.constant 0 : i32
    %c0_i32_1 = arith.constant 0 : i32
    return %c0_i32, %c0_i32_0 : i32, i32
  }
  func.func @transform_3(%arg0: i32) -> (i32, i32) {
    %c0_i32 = arith.constant 0 : i32
    %c0_i32_0 = arith.constant 0 : i32
    %c0_i32_1 = arith.constant 0 : i32
    return %c0_i32, %c0_i32_0 : i32, i32
  }
  func.func @transform_4(%arg0: i32) -> (i32, i32) {
    %c0_i32 = arith.constant 0 : i32
    %c0_i32_0 = arith.constant 0 : i32
    %c0_i32_1 = arith.constant 0 : i32
    return %c0_i32, %c0_i32_0 : i32, i32
  }
  func.func @transform_5(%arg0: i32) -> (i32, i32) {
    %c0_i32 = arith.constant 0 : i32
    %c0_i32_0 = arith.constant 0 : i32
    %c0_i32_1 = arith.constant 0 : i32
    return %c0_i32, %c0_i32_0 : i32, i32
  }
  func.func @transform_6(%arg0: i32) -> (i32, i32) {
    %c0_i32 = arith.constant 0 : i32
    %c0_i32_0 = arith.constant 0 : i32
    %c0_i32_1 = arith.constant 0 : i32
    return %c0_i32, %c0_i32_0 : i32, i32
  }
  func.func @transform_7(%arg0: i32) -> (i32, i32) {
    %c0_i32 = arith.constant 0 : i32
    %c0_i32_0 = arith.constant 0 : i32
    %c0_i32_1 = arith.constant 0 : i32
    return %c0_i32, %c0_i32_0 : i32, i32
  }
}

</mosaic_0001>

<bundles_post_ra>
// kernel: a_call__.6
= control target key start
LH: loop header
LB: loop body
LE: loop exit
PB: predicated region body
PF: predicated region fallthrough
CT: control target
= control target key end

     0   :  { %s2666_s15 = smov 0   ;;  %s5340_s0 = inlined_call_operand.vmem [shape: bf16[2,882,128], index: 0, kind: input, shape index: {}]   ;;  %s5341_s1 = inlined_call_operand.vmem [shape: bf16[128,128], index: 1, kind: input, shape index: {}]   ;;  %s5342_s2 = inlined_call_operand.vmem [shape: f32[1,128], index: 2, kind: input, shape index: {}]   ;;  %s5343_s3 = inlined_call_operand.vmem [shape: f32[1,128], index: 3, kind: input, shape index: {}]   ;;  %s5344_s4 = inlined_call_operand.vmem [shape: f32[2,882,128], index: 4, kind: output, shape index: {}]  }
   0x1 LB: > { %s2274_s16 = sadd.s32 4294967295, %s2639_s15   ;;  %p2278_p0 = scmp.ge.s32.totalorder %s2639_s15, 1  ;;  %s2639_s15 = sphi %s2666_s15, %s14_s15  }
   0x2   : > { %p162_p1 = scmp.lt.s32.totalorder %s2639_s15, 3 }
   0x4   : > { %p163_p2 = pnand %p2278_p0, %p162_p1 }
   0x6   : > { %166 = sbr.rel (%p163_p2) target bundleno = 975 (0x3cf), region = 36 }
   0xd   : > { %v2567_v0 = vld [vmem:[%s5341_s1] sm:$0xff]   ;;  %p188_p3 = scmp.lt.s32.totalorder %s2274_s16, 1  ;;  %v2568_v1 = vld [vmem:[%s5341_s1 + $0x8] sm:$0xff]   ;;  %v2569_v2 = vld [vmem:[%s5341_s1 + $0x10] sm:$0xff]   ;;  %vm1297_vm0 = vcmask 1041408  }
   0xe   : > { %2413 = vmatprep.subr.bf16.mxu0 %v2567_v0  ;;  %2541 = vmatprep.subr.bf16.mxu1 %v2567_v0  ;;  %v2570_v3 = vld [vmem:[%s5341_s1 + $0x18] sm:$0xff]   ;;  %v2571_v5 = vld [vmem:[%s5341_s1 + $0x20] sm:$0xff]   ;;  %v2572_v6 = vld [vmem:[%s5341_s1 + $0x28] sm:$0xff]  }
   0xf   : > { %s6181_s16 = smov (!%p188_p3, %s2274_s16), 1  ;;  %2414 = vmatpush3.bf16.msra.mxu0 %v2567_v0  ;;  %2549 = vmatpush3.bf16.msra.mxu1 %v2567_v0  ;;  %v2573_v7 = vld [vmem:[%s5341_s1 + $0x30] sm:$0xff]   ;;  %v2574_v8 = vld [vmem:[%s5341_s1 + $0x38] sm:$0xff]  }
  0x10   : > { %2415 = vmatprep.subr.bf16.mxu0 %v2568_v1  ;;  %s2557_s23 = smul.u32 444, %s6181_s16  ;;  %2542 = vmatprep.subr.bf16.mxu1 %v2568_v1 }
  0x11   : > { %s2558_s17 = smul.u32 888, %s6181_s16 }
  0x12   : > { %s2689_s26 = scalar_lea.vmem %s5340_s0, %s2557_s23 }
  0x13   : > { %2416 = vmatpush3.bf16.msra.mxu0 %v2568_v1  ;;  %2550 = vmatpush3.bf16.msra.mxu1 %v2568_v1  ;;  %v2575_v4 = vld [vmem:[%s2689_s26] sm:$0xff]   ;;  %v2576_v9 = vld [vmem:[%s2689_s26 + $0x8] sm:$0xff]   ;;  %v2577_v10 = vld [vmem:[%s2689_s26 + $0x10] sm:$0xff]   ;;  %s5093_s19 = scalar_lea.vmem %s5344_s4, %s2558_s17 }
  0x14   : > { %2417 = vmatprep.subr.bf16.mxu0 %v2569_v2  ;;  %2543 = vmatprep.subr.bf16.mxu1 %v2569_v2  ;;  %v2578_v11 = vld [vmem:[%s2689_s26 + $0x18] sm:$0xff]   ;;  %v2603_v12 = vld [vmem:[%s2689_s26 + $0xe0] sm:$0xff]   ;;  %v2604_v13 = vld [vmem:[%s2689_s26 + $0xe8] sm:$0xff]  }
  0x15   : > { %2429 = vmatprep.mubr.bf16.mxu0 %v2575_v4  ;;  %2485 = vmatprep.mubr.bf16.mxu1 %v2603_v12  ;;  %v2605_v14 = vld [vmem:[%s2689_s26 + $0xf0] sm:$0xff]   ;;  %v2579_v15 = vld [vmem:[%s2689_s26 + $0x20] sm:$0xff]   ;;  %v2606_v16 = vld [vmem:[%s2689_s26 + $0xf8] sm:$0xff]  }
  0x16   : > { %v2607_v17 = vld [vmem:[%s2689_s26 + $0x100] sm:$0xff]   ;;  %v2580_v18 = vld [vmem:[%s2689_s26 + $0x28] sm:$0xff]   ;;  %v2581_v19 = vld [vmem:[%s2689_s26 + $0x30] sm:$0xff]  }
  0x17   : > { %2418 = vmatpush3.bf16.msra.mxu0 %v2569_v2  ;;  %2551 = vmatpush3.bf16.msra.mxu1 %v2569_v2  ;;  %v2608_v20 = vld [vmem:[%s2689_s26 + $0x108] sm:$0xff]   ;;  %v2609_v21 = vld [vmem:[%s2689_s26 + $0x110] sm:$0xff]   ;;  %v2582_v22 = vld [vmem:[%s2689_s26 + $0x38] sm:$0xff]  }
  0x18   : > { %2419 = vmatprep.subr.bf16.mxu0 %v2570_v3  ;;  %2544 = vmatprep.subr.bf16.mxu1 %v2570_v3  ;;  %v2583_v23 = vld [vmem:[%s2689_s26 + $0x40] sm:$0xff]   ;;  %v2610_v24 = vld [vmem:[%s2689_s26 + $0x118] sm:$0xff]   ;;  %v2584_v26 = vld [vmem:[%s2689_s26 + $0x48] sm:$0xff]  }
  0x19   : > { %v2611_v25 = vld [vmem:[%s2689_s26 + $0x120] sm:$0xff]   ;;  %v2585_v27 = vld [vmem:[%s2689_s26 + $0x50] sm:$0xff]   ;;  %v2612_v28 = vld [vmem:[%s2689_s26 + $0x128] sm:$0xff]  }
  0x1a   : > { %v2613_v29 = vld [vmem:[%s2689_s26 + $0x130] sm:$0xff]   ;;  %v2586_v30 = vld [vmem:[%s2689_s26 + $0x58] sm:$0xff]   ;;  %v2587_v31 = vld [vmem:[%s2689_s26 + $0x60] sm:$0xff]  }
  0x1b   : > { %2420 = vmatpush3.bf16.msra.mxu0 %v2570_v3  ;;  %2552 = vmatpush3.bf16.msra.mxu1 %v2570_v3  ;;  %v2614_v32 = vld [vmem:[%s2689_s26 + $0x138] sm:$0xff]   ;;  %v2615_v33 = vld [vmem:[%s2689_s26 + $0x140] sm:$0xff]   ;;  %v2588_v34 = vld [vmem:[%s2689_s26 + $0x68] sm:$0xff]  }
  0x1c   : > { %2421 = vmatprep.subr.bf16.mxu0 %v2571_v5  ;;  %2545 = vmatprep.subr.bf16.mxu1 %v2571_v5  ;;  %v2589_v35 = vld [vmem:[%s2689_s26 + $0x70] sm:$0xff]   ;;  %v2616_v36 = vld [vmem:[%s2689_s26 + $0x148] sm:$0xff]   ;;  %v2590_v38 = vld [vmem:[%s2689_s26 + $0x78] sm:$0xff]  }
  0x1d   : > { %v2617_v37 = vld [vmem:[%s2689_s26 + $0x150] sm:$0xff]   ;;  %v2591_v39 = vld [vmem:[%s2689_s26 + $0x80] sm:$0xff]   ;;  %v2618_v40 = vld [vmem:[%s2689_s26 + $0x158] sm:$0xff]  }
  0x1e   : > { %v2619_v41 = vld [vmem:[%s2689_s26 + $0x160] sm:$0xff]   ;;  %v2592_v42 = vld [vmem:[%s2689_s26 + $0x88] sm:$0xff]   ;;  %v2593_v43 = vld [vmem:[%s2689_s26 + $0x90] sm:$0xff]  }
  0x1f   : > { %2422 = vmatpush3.bf16.msra.mxu0 %v2571_v5  ;;  %2553 = vmatpush3.bf16.msra.mxu1 %v2571_v5  ;;  %v2620_v44 = vld [vmem:[%s2689_s26 + $0x168] sm:$0xff]   ;;  %v2621_v45 = vld [vmem:[%s2689_s26 + $0x170] sm:$0xff]   ;;  %v2594_v46 = vld [vmem:[%s2689_s26 + $0x98] sm:$0xff]  }
  0x20   : > { %2423 = vmatprep.subr.bf16.mxu0 %v2572_v6  ;;  %2546 = vmatprep.subr.bf16.mxu1 %v2572_v6  ;;  %v2595_v47 = vld [vmem:[%s2689_s26 + $0xa0] sm:$0xff]   ;;  %v2622_v48 = vld [vmem:[%s2689_s26 + $0x178] sm:$0xff]   ;;  %v2596_v50 = vld [vmem:[%s2689_s26 + $0xa8] sm:$0xff]  }
  0x21   : > { %v2623_v49 = vld [vmem:[%s2689_s26 + $0x180] sm:$0xff]   ;;  %v2597_v51 = vld [vmem:[%s2689_s26 + $0xb0] sm:$0xff]   ;;  %v2624_v52 = vld [vmem:[%s2689_s26 + $0x188] sm:$0xff]  }
  0x22   : > { %v2625_v53 = vld [vmem:[%s2689_s26 + $0x190] sm:$0xff]   ;;  %v2598_v54 = vld [vmem:[%s2689_s26 + $0xb8] sm:$0xff]   ;;  %v2599_v55 = vld [vmem:[%s2689_s26 + $0xc0] sm:$0xff]  }
  0x23   : > { %2424 = vmatpush3.bf16.msra.mxu0 %v2572_v6  ;;  %2554 = vmatpush3.bf16.msra.mxu1 %v2572_v6  ;;  %v2626_v56 = vld [vmem:[%s2689_s26 + $0x198] sm:$0xff]   ;;  %v2627_v57 = vld [vmem:[%s2689_s26 + $0x1a0] sm:$0xff]   ;;  %v2600_v58 = vld [vmem:[%s2689_s26 + $0xc8] sm:$0xff]  }
  0x24   : > { %2425 = vmatprep.subr.bf16.mxu0 %v2573_v7  ;;  %2547 = vmatprep.subr.bf16.mxu1 %v2573_v7  ;;  %v2601_v59 = vld [vmem:[%s2689_s26 + $0xd0] sm:$0xff]   ;;  %v2628_v60 = vld [vmem:[%s2689_s26 + $0x1a8] sm:$0xff]   ;;  %v2602_v62 = vld [vmem:[%s2689_s26 + $0xd8] sm:$0xff]  }
  0x25   : > { %v2629_v61 = vld [vmem:[%s2689_s26 + $0x1b0] sm:$0xff]   ;;  %v2630_v63 = vld [vmem:[%s2689_s26 + $0x1b8] ss:$0 sps:$4 sm:$0x11]  }
  0x27   : > { %2426 = vmatpush3.bf16.msra.mxu0 %v2573_v7  ;;  %2555 = vmatpush3.bf16.msra.mxu1 %v2573_v7 }
  0x28   : > { %2427 = vmatprep.subr.bf16.mxu0 %v2574_v8  ;;  %2548 = vmatprep.subr.bf16.mxu1 %v2574_v8 }
  0x2b   : > { %2428 = vmatpush3.bf16.msra.mxu0 %v2574_v8  ;;  %2556 = vmatpush3.bf16.msra.mxu1 %v2574_v8 }
  0x2e   : > { %2430 = vmatmul.mubr.bf16.vlgmr.msra.gmra.mrb[0].mxu0 %v2576_v9  ;;  %2486 = vmatmul.mubr.bf16.vlgmr.msra.gmra.mrb[0].mxu1 %v2604_v13 }
  0x2f   : > { %2433 = vmatprep.mubr.bf16.mxu0 %v2577_v10  ;;  %2489 = vmatprep.mubr.bf16.mxu1 %v2605_v14 }
  0x36   : > { %2434 = vmatmul.mubr.bf16.gmra.mrb[4].mxu0 %v2578_v11  ;;  %2490 = vmatmul.mubr.bf16.gmra.mrb[4].mxu1 %v2606_v16 }
  0x37   : > { %2437 = vmatprep.mubr.bf16.mxu0 %v2579_v15  ;;  %2493 = vmatprep.mubr.bf16.mxu1 %v2607_v17 }
  0x3e   : > { %2438 = vmatmul.mubr.bf16.gmra.mrb[8].mxu0 %v2580_v18  ;;  %2494 = vmatmul.mubr.bf16.gmra.mrb[8].mxu1 %v2608_v20 }
  0x3f   : > { %2441 = vmatprep.mubr.bf16.mxu0 %v2581_v19  ;;  %2497 = vmatprep.mubr.bf16.mxu1 %v2609_v21 }
  0x46   : > { %2442 = vmatmul.mubr.bf16.gmra.mrb[12].mxu0 %v2582_v22  ;;  %2498 = vmatmul.mubr.bf16.gmra.mrb[12].mxu1 %v2610_v24 }
  0x47   : > { %2445 = vmatprep.mubr.bf16.mxu0 %v2583_v23  ;;  %2501 = vmatprep.mubr.bf16.mxu1 %v2611_v25 }
  0x4e   : > { %2446 = vmatmul.mubr.bf16.gmra.mrb[16].mxu0 %v2584_v26  ;;  %2502 = vmatmul.mubr.bf16.gmra.mrb[16].mxu1 %v2612_v28 }
  0x4f   : > { %2449 = vmatprep.mubr.bf16.mxu0 %v2585_v27  ;;  %2505 = vmatprep.mubr.bf16.mxu1 %v2613_v29 }
  0x56   : > { %2450 = vmatmul.mubr.bf16.gmra.mrb[20].mxu0 %v2586_v30  ;;  %2506 = vmatmul.mubr.bf16.gmra.mrb[20].mxu1 %v2614_v32 }
  0x57   : > { %2453 = vmatprep.mubr.bf16.mxu0 %v2587_v31  ;;  %2509 = vmatprep.mubr.bf16.mxu1 %v2615_v33 }
  0x5e   : > { %2454 = vmatmul.mubr.bf16.gmra.mrb[24].mxu0 %v2588_v34  ;;  %2510 = vmatmul.mubr.bf16.gmra.mrb[24].mxu1 %v2616_v36 }
  0x5f   : > { %2457 = vmatprep.mubr.bf16.mxu0 %v2589_v35  ;;  %2513 = vmatprep.mubr.bf16.mxu1 %v2617_v37 }
  0x66   : > { %2458 = vmatmul.mubr.bf16.gmra.mrb[28].mxu0 %v2590_v38  ;;  %2514 = vmatmul.mubr.bf16.gmra.mrb[28].mxu1 %v2618_v40 }
  0x67   : > { %2461 = vmatprep.mubr.bf16.mxu0 %v2591_v39  ;;  %2517 = vmatprep.mubr.bf16.mxu1 %v2619_v41 }
  0x6e   : > { %2462 = vmatmul.mubr.bf16.gmra.mrb[32].mxu0 %v2592_v42  ;;  %2518 = vmatmul.mubr.bf16.gmra.mrb[32].mxu1 %v2620_v44 }
  0x6f   : > { %2465 = vmatprep.mubr.bf16.mxu0 %v2593_v43  ;;  %2521 = vmatprep.mubr.bf16.mxu1 %v2621_v45 }
  0x76   : > { %2466 = vmatmul.mubr.bf16.gmra.mrb[36].mxu0 %v2594_v46  ;;  %2522 = vmatmul.mubr.bf16.gmra.mrb[36].mxu1 %v2622_v48 }
  0x77   : > { %2469 = vmatprep.mubr.bf16.mxu0 %v2595_v47  ;;  %2525 = vmatprep.mubr.bf16.mxu1 %v2623_v49 }
  0x7e   : > { %2470 = vmatmul.mubr.bf16.gmra.mrb[40].mxu0 %v2596_v50  ;;  %2526 = vmatmul.mubr.bf16.gmra.mrb[40].mxu1 %v2624_v52 }
  0x7f   : > { %2473 = vmatprep.mubr.bf16.mxu0 %v2597_v51  ;;  %2529 = vmatprep.mubr.bf16.mxu1 %v2625_v53 }
  0x86   : > { %2474 = vmatmul.mubr.bf16.gmra.mrb[44].mxu0 %v2598_v54  ;;  %2530 = vmatmul.mubr.bf16.gmra.mrb[44].mxu1 %v2626_v56 }
  0x87   : > { %2477 = vmatprep.mubr.bf16.mxu0 %v2599_v55  ;;  %2533 = vmatprep.mubr.bf16.mxu1 %v2627_v57 }
  0x8e   : > { %2478 = vmatmul.mubr.bf16.gmra.mrb[48].mxu0 %v2600_v58  ;;  %2534 = vmatmul.mubr.bf16.gmra.mrb[48].mxu1 %v2628_v60 }
  0x8f   : > { %2481 = vmatprep.mubr.bf16.mxu0 %v2601_v59  ;;  %2537 = vmatprep.mubr.bf16.mxu1 %v2629_v61 }
  0x96   : > { %2482 = vmatmul.mubr.bf16.gmra.mrb[52].mxu0 %v2602_v62  ;;  %2538 = vmatmul.mubr.bf16.gmra.mrb[52].mxu1 %v2630_v63 }
 0x101   : > { %v2762_v0 = vpop.f32.mrb[0].mxu0  ;;  %v2772_v5 = vpop.f32.mrb[0].mxu1 }
 0x102   : > { %5486 = vst [vmem:[#allocation2_spill] sm:$0xff] %v2762_v0  ;;  %v2764_v1 = vpop.f32.mrb[1].mxu0  ;;  %v2775_v7 = vpop.f32.mrb[1].mxu1 }
 0x103   : > { %5487 = vst [vmem:[#allocation3_spill] sm:$0xff] %v2764_v1  ;;  %v2766_v2 = vpop.f32.mrb[2].mxu0  ;;  %v2777_v8 = vpop.f32.mrb[2].mxu1 }
 0x104   : > { %5488 = vst [vmem:[#allocation4_spill] sm:$0xff] %v2766_v2  ;;  %v2768_v3 = vpop.f32.mrb[3].mxu0  ;;  %v2782_v11 = vpop.f32.mrb[3].mxu1 }
 0x105   : > { %5489 = vst [vmem:[#allocation5_spill] sm:$0xff] %v2768_v3  ;;  %v1188_v4 = vadd.f32 %v2768_v3, %v2764_v1 }
 0x107   : > { %v1189_v6 = vadd.f32 %v2762_v0, %v1188_v4 }
 0x109   : > { %v2779_v9 = vpop.f32.mrb[4].mxu0  ;;  %v1190_v10 = vadd.f32 %v2766_v2, %v1189_v6  ;;  %v2792_v17 = vpop.f32.mrb[4].mxu1 }
 0x10a   : > { %5490 = vst [vmem:[#allocation6_spill] sm:$0xff] %v2779_v9  ;;  %v2784_v12 = vpop.f32.mrb[5].mxu0  ;;  %v2795_v19 = vpop.f32.mrb[5].mxu1 }
 0x10b   : > { %5491 = vst [vmem:[#allocation7_spill] sm:$0xff] %v2784_v12  ;;  %v1191_v13 = vadd.f32 %v1190_v10, %v2784_v12  ;;  %v2787_v14 = vpop.f32.mrb[6].mxu0  ;;  %v2797_v20 = vpop.f32.mrb[6].mxu1 }
 0x10c   : > { %5492 = vst [vmem:[#allocation8_spill] sm:$0xff] %v2787_v14  ;;  %v2789_v15 = vpop.f32.mrb[7].mxu0  ;;  %v2802_v23 = vpop.f32.mrb[7].mxu1 }
 0x10d   : > { %5493 = vst [vmem:[#allocation9_spill] sm:$0xff] %v2789_v15  ;;  %v1192_v16 = vadd.f32 %v1191_v13, %v2789_v15 }
 0x10f   : > { %v1193_v18 = vadd.f32 %v2779_v9, %v1192_v16 }
 0x111   : > { %v2799_v21 = vpop.f32.mrb[8].mxu0  ;;  %v1194_v22 = vadd.f32 %v2787_v14, %v1193_v18  ;;  %v2812_v29 = vpop.f32.mrb[8].mxu1 }
 0x112   : > { %5494 = vst [vmem:[#allocation10_spill] sm:$0xff] %v2799_v21  ;;  %v2804_v24 = vpop.f32.mrb[9].mxu0  ;;  %v2815_v31 = vpop.f32.mrb[9].mxu1 }
 0x113   : > { %5495 = vst [vmem:[#allocation11_spill] sm:$0xff] %v2804_v24  ;;  %v1195_v25 = vadd.f32 %v1194_v22, %v2804_v24  ;;  %v2807_v26 = vpop.f32.mrb[10].mxu0  ;;  %v2817_v32 = vpop.f32.mrb[10].mxu1 }
 0x114   : > { %5496 = vst [vmem:[#allocation12_spill] sm:$0xff] %v2807_v26  ;;  %v2809_v27 = vpop.f32.mrb[11].mxu0  ;;  %v2822_v35 = vpop.f32.mrb[11].mxu1 }
 0x115   : > { %5497 = vst [vmem:[#allocation13_spill] sm:$0xff] %v2809_v27  ;;  %v1196_v28 = vadd.f32 %v1195_v25, %v2809_v27 }
 0x117   : > { %v1197_v30 = vadd.f32 %v2799_v21, %v1196_v28 }
 0x119   : > { %v2819_v33 = vpop.f32.mrb[12].mxu0  ;;  %v1198_v34 = vadd.f32 %v2807_v26, %v1197_v30  ;;  %v2832_v41 = vpop.f32.mrb[12].mxu1 }
 0x11a   : > { %5498 = vst [vmem:[#allocation14_spill] sm:$0xff] %v2819_v33  ;;  %v2824_v36 = vpop.f32.mrb[13].mxu0  ;;  %v2835_v43 = vpop.f32.mrb[13].mxu1 }
 0x11b   : > { %5499 = vst [vmem:[#allocation15_spill] sm:$0xff] %v2824_v36  ;;  %v1199_v37 = vadd.f32 %v1198_v34, %v2824_v36  ;;  %v2827_v38 = vpop.f32.mrb[14].mxu0  ;;  %v2837_v44 = vpop.f32.mrb[14].mxu1 }
 0x11c   : > { %5500 = vst [vmem:[#allocation16_spill] sm:$0xff] %v2827_v38  ;;  %v2829_v39 = vpop.f32.mrb[15].mxu0  ;;  %v2842_v47 = vpop.f32.mrb[15].mxu1 }
 0x11d   : > { %5501 = vst [vmem:[#allocation17_spill] sm:$0xff] %v2829_v39  ;;  %v1200_v40 = vadd.f32 %v1199_v37, %v2829_v39 }
 0x11f   : > { %v1201_v42 = vadd.f32 %v2819_v33, %v1200_v40 }
 0x121   : > { %v2839_v45 = vpop.f32.mrb[16].mxu0  ;;  %v1202_v46 = vadd.f32 %v2827_v38, %v1201_v42  ;;  %v2852_v53 = vpop.f32.mrb[16].mxu1 }
 0x122   : > { %5502 = vst [vmem:[#allocation18_spill] sm:$0xff] %v2839_v45  ;;  %v2844_v48 = vpop.f32.mrb[17].mxu0  ;;  %v2855_v55 = vpop.f32.mrb[17].mxu1 }
 0x123   : > { %5503 = vst [vmem:[#allocation19_spill] sm:$0xff] %v2844_v48  ;;  %v1203_v49 = vadd.f32 %v1202_v46, %v2844_v48  ;;  %v2847_v50 = vpop.f32.mrb[18].mxu0  ;;  %v2857_v56 = vpop.f32.mrb[18].mxu1 }
 0x124   : > { %5504 = vst [vmem:[#allocation20_spill] sm:$0xff] %v2847_v50  ;;  %v2849_v51 = vpop.f32.mrb[19].mxu0  ;;  %v2862_v59 = vpop.f32.mrb[19].mxu1 }
 0x125   : > { %5505 = vst [vmem:[#allocation21_spill] sm:$0xff] %v2849_v51  ;;  %v1204_v52 = vadd.f32 %v1203_v49, %v2849_v51 }
 0x127   : > { %v1205_v54 = vadd.f32 %v2839_v45, %v1204_v52 }
 0x129   : > { %v2859_v57 = vpop.f32.mrb[20].mxu0  ;;  %v1206_v58 = vadd.f32 %v2847_v50, %v1205_v54  ;;  %v2872_v6 = vpop.f32.mrb[20].mxu1 }
 0x12a   : > { %5506 = vst [vmem:[#allocation22_spill] sm:$0xff] %v2859_v57  ;;  %v2864_v60 = vpop.f32.mrb[21].mxu0  ;;  %v2875_v13 = vpop.f32.mrb[21].mxu1 }
 0x12b   : > { %5507 = vst [vmem:[#allocation23_spill] sm:$0xff] %v2864_v60  ;;  %v1207_v61 = vadd.f32 %v1206_v58, %v2864_v60  ;;  %v2867_v62 = vpop.f32.mrb[22].mxu0  ;;  %v2877_v16 = vpop.f32.mrb[22].mxu1 }
 0x12c   : > { %5508 = vst [vmem:[#allocation24_spill] sm:$0xff] %v2867_v62  ;;  %v2869_v63 = vpop.f32.mrb[23].mxu0  ;;  %v2882_v25 = vpop.f32.mrb[23].mxu1 }
 0x12d   : > { %5509 = vst [vmem:[#allocation25_spill] sm:$0xff] %v2869_v63  ;;  %v1208_v4 = vadd.f32 %v1207_v61, %v2869_v63 }
 0x12f   : > { %v1209_v10 = vadd.f32 %v2859_v57, %v1208_v4 }
 0x131   : > { %v2879_v18 = vpop.f32.mrb[24].mxu0  ;;  %v1210_v22 = vadd.f32 %v2867_v62, %v1209_v10  ;;  %v2892_v42 = vpop.f32.mrb[24].mxu1 }
 0x132   : > { %5510 = vst [vmem:[#allocation26_spill] sm:$0xff] %v2879_v18  ;;  %v2884_v28 = vpop.f32.mrb[25].mxu0  ;;  %v2895_v49 = vpop.f32.mrb[25].mxu1 }
 0x133   : > { %5511 = vst [vmem:[#allocation27_spill] sm:$0xff] %v2884_v28  ;;  %v1211_v30 = vadd.f32 %v1210_v22, %v2884_v28  ;;  %v2887_v34 = vpop.f32.mrb[26].mxu0  ;;  %v2897_v52 = vpop.f32.mrb[26].mxu1 }
 0x134   : > { %5512 = vst [vmem:[#allocation28_spill] sm:$0xff] %v2887_v34  ;;  %v2889_v37 = vpop.f32.mrb[27].mxu0  ;;  %v2902_v61 = vpop.f32.mrb[27].mxu1 }
 0x135   : > { %5513 = vst [vmem:[#allocation29_spill] sm:$0xff] %v2889_v37  ;;  %v1212_v40 = vadd.f32 %v1211_v30, %v2889_v37 }
 0x137   : > { %v1213_v46 = vadd.f32 %v2879_v18, %v1212_v40 }
 0x139   : > { %v2899_v54 = vpop.f32.mrb[28].mxu0  ;;  %v1214_v58 = vadd.f32 %v2887_v34, %v1213_v46  ;;  %v2912_v18 = vpop.f32.mrb[28].mxu1 }
 0x13a   : > { %5514 = vst [vmem:[#allocation30_spill] sm:$0xff] %v2899_v54  ;;  %v2904_v4 = vpop.f32.mrb[29].mxu0  ;;  %v2915_v28 = vpop.f32.mrb[29].mxu1 }
 0x13b   : > { %5515 = vst [vmem:[#allocation31_spill] sm:$0xff] %v2904_v4  ;;  %v1215_v10 = vadd.f32 %v1214_v58, %v2904_v4  ;;  %v2907_v22 = vpop.f32.mrb[30].mxu0  ;;  %v2917_v62 = vpop.f32.mrb[30].mxu1 }
 0x13c   : > { %5516 = vst [vmem:[#allocation32_spill] sm:$0xff] %v2907_v22  ;;  %v2909_v30 = vpop.f32.mrb[31].mxu0  ;;  %v2922_v57 = vpop.f32.mrb[31].mxu1 }
 0x13d   : > { %5517 = vst [vmem:[#allocation33_spill] sm:$0xff] %v2909_v30  ;;  %v1216_v40 = vadd.f32 %v1215_v10, %v2909_v30 }
 0x13f   : > { %v1217_v37 = vadd.f32 %v2899_v54, %v1216_v40 }
 0x141   : > { %v2919_v46 = vpop.f32.mrb[32].mxu0  ;;  %v1218_v34 = vadd.f32 %v2907_v22, %v1217_v37  ;;  %v2932_v54 = vpop.f32.mrb[32].mxu1 }
 0x142   : > { %5518 = vst [vmem:[#allocation34_spill] sm:$0xff] %v2919_v46  ;;  %v2924_v58 = vpop.f32.mrb[33].mxu0  ;;  %v2935_v60 = vpop.f32.mrb[33].mxu1 }
 0x143   : > { %5519 = vst [vmem:[#allocation35_spill] sm:$0xff] %v2924_v58  ;;  %v1219_v4 = vadd.f32 %v1218_v34, %v2924_v58  ;;  %v2927_v63 = vpop.f32.mrb[34].mxu0  ;;  %v2937_v50 = vpop.f32.mrb[34].mxu1 }
 0x144   : > { %5520 = vst [vmem:[#allocation36_spill] sm:$0xff] %v2927_v63  ;;  %v2929_v10 = vpop.f32.mrb[35].mxu0  ;;  %v2942_v45 = vpop.f32.mrb[35].mxu1 }
 0x145   : > { %5521 = vst [vmem:[#allocation37_spill] sm:$0xff] %v2929_v10  ;;  %v1220_v40 = vadd.f32 %v1219_v4, %v2929_v10 }
 0x147   : > { %v1221_v30 = vadd.f32 %v2919_v46, %v1220_v40 }
 0x149   : > { %v2939_v37 = vpop.f32.mrb[36].mxu0  ;;  %v1222_v22 = vadd.f32 %v2927_v63, %v1221_v30  ;;  %v2952_v46 = vpop.f32.mrb[36].mxu1 }
 0x14a   : > { %5522 = vst [vmem:[#allocation38_spill] sm:$0xff] %v2939_v37  ;;  %v2944_v34 = vpop.f32.mrb[37].mxu0  ;;  %5526 = vst [vmem:[#allocation42_spill] sm:$0xff] %v2952_v46  ;;  %v2955_v48 = vpop.f32.mrb[37].mxu1 }
 0x14b   : > { %5523 = vst [vmem:[#allocation39_spill] sm:$0xff] %v2944_v34  ;;  %v1223_v58 = vadd.f32 %v1222_v22, %v2944_v34  ;;  %v2947_v51 = vpop.f32.mrb[38].mxu0  ;;  %v2957_v38 = vpop.f32.mrb[38].mxu1 }
 0x14c   : > { %5524 = vst [vmem:[#allocation40_spill] sm:$0xff] %v2947_v51  ;;  %v2949_v4 = vpop.f32.mrb[39].mxu0  ;;  %5527 = vst [vmem:[#allocation43_spill] sm:$0xff] %v2957_v38  ;;  %v2962_v33 = vpop.f32.mrb[39].mxu1 }
 0x14d   : > { %5525 = vst [vmem:[#allocation41_spill] sm:$0xff] %v2949_v4  ;;  %v1224_v40 = vadd.f32 %v1223_v58, %v2949_v4 }
 0x14f   : > { %v1225_v10 = vadd.f32 %v2939_v37, %v1224_v40 }
 0x151   : > { %v2959_v30 = vpop.f32.mrb[40].mxu0  ;;  %v1226_v63 = vadd.f32 %v2947_v51, %v1225_v10  ;;  %v2972_v37 = vpop.f32.mrb[40].mxu1 }
 0x152   : > { %5528 = vst [vmem:[#allocation44_spill] sm:$0xff] %v2959_v30  ;;  %v2964_v22 = vpop.f32.mrb[41].mxu0  ;;  %v2975_v36 = vpop.f32.mrb[41].mxu1 }
 0x153   : > { %5529 = vst [vmem:[#allocation45_spill] sm:$0xff] %v2964_v22  ;;  %v1227_v34 = vadd.f32 %v1226_v63, %v2964_v22  ;;  %v2967_v39 = vpop.f32.mrb[42].mxu0  ;;  %5532 = vst [vmem:[#allocation48_spill] sm:$0xff] %v2975_v36  ;;  %v2977_v26 = vpop.f32.mrb[42].mxu1 }
 0x154   : > { %5530 = vst [vmem:[#allocation46_spill] sm:$0xff] %v2967_v39  ;;  %v2969_v58 = vpop.f32.mrb[43].mxu0  ;;  %v2982_v21 = vpop.f32.mrb[43].mxu1 }
 0x155   : > { %5531 = vst [vmem:[#allocation47_spill] sm:$0xff] %v2969_v58  ;;  %v1228_v40 = vadd.f32 %v1227_v34, %v2969_v58 }
 0x157   : > { %v1229_v4 = vadd.f32 %v2959_v30, %v1228_v40 }
 0x159   : > { %v2979_v10 = vpop.f32.mrb[44].mxu0  ;;  %v1230_v51 = vadd.f32 %v2967_v39, %v1229_v4  ;;  %v2992_v30 = vpop.f32.mrb[44].mxu1 }
 0x15a   : > { %5533 = vst [vmem:[#allocation49_spill] sm:$0xff] %v2979_v10  ;;  %v2984_v63 = vpop.f32.mrb[45].mxu0  ;;  %5537 = vst [vmem:[#allocation53_spill] sm:$0xff] %v2992_v30  ;;  %v2995_v24 = vpop.f32.mrb[45].mxu1 }
 0x15b   : > { %5534 = vst [vmem:[#allocation50_spill] sm:$0xff] %v2984_v63  ;;  %v1231_v22 = vadd.f32 %v1230_v51, %v2984_v63  ;;  %v2987_v27 = vpop.f32.mrb[46].mxu0  ;;  %v2997_v14 = vpop.f32.mrb[46].mxu1 }
 0x15c   : > { %5535 = vst [vmem:[#allocation51_spill] sm:$0xff] %v2987_v27  ;;  %v2989_v34 = vpop.f32.mrb[47].mxu0  ;;  %5538 = vst [vmem:[#allocation54_spill] sm:$0xff] %v2997_v14  ;;  %v3002_v9 = vpop.f32.mrb[47].mxu1 }
 0x15d   : > { %5536 = vst [vmem:[#allocation52_spill] sm:$0xff] %v2989_v34  ;;  %v1232_v40 = vadd.f32 %v1231_v22, %v2989_v34 }
 0x15f   : > { %v1233_v58 = vadd.f32 %v2979_v10, %v1232_v40 }
 0x161   : > { %v2999_v4 = vpop.f32.mrb[48].mxu0  ;;  %v1234_v39 = vadd.f32 %v2987_v27, %v1233_v58  ;;  %v3012_v10 = vpop.f32.mrb[48].mxu1 }
 0x162   : > { %5539 = vst [vmem:[#allocation55_spill] sm:$0xff] %v2999_v4  ;;  %v3004_v51 = vpop.f32.mrb[49].mxu0  ;;  %5543 = vst [vmem:[#allocation59_spill] sm:$0xff] %v3012_v10  ;;  %v3015_v12 = vpop.f32.mrb[49].mxu1 }
 0x163   : > { %5540 = vst [vmem:[#allocation56_spill] sm:$0xff] %v3004_v51  ;;  %v1235_v63 = vadd.f32 %v1234_v39, %v3004_v51  ;;  %v3007_v15 = vpop.f32.mrb[50].mxu0  ;;  %5544 = vst [vmem:[#allocation60_spill] sm:$0xff] %v3015_v12  ;;  %v3017_v2 = vpop.f32.mrb[50].mxu1 }
 0x164   : > { %5541 = vst [vmem:[#allocation57_spill] sm:$0xff] %v3007_v15  ;;  %v3009_v22 = vpop.f32.mrb[51].mxu0  ;;  %5545 = vst [vmem:[#allocation61_spill] sm:$0xff] %v3017_v2  ;;  %v3022_v0 = vpop.f32.mrb[51].mxu1 }
 0x165   : > { %5542 = vst [vmem:[#allocation58_spill] sm:$0xff] %v3009_v22  ;;  %v1236_v40 = vadd.f32 %v1235_v63, %v3009_v22  ;;  %5546 = vst [vmem:[#allocation62_spill] sm:$0xff] %v3022_v0 }
 0x167   : > { %v1237_v34 = vadd.f32 %v2999_v4, %v1236_v40 }
 0x169   : > { %v3019_v58 = vpop.f32.mrb[52].mxu0  ;;  %v1238_v27 = vadd.f32 %v3007_v15, %v1237_v34  ;;  %v3032_v4 = vpop.f32.mrb[52].mxu1 }
 0x16a   : > { %v3024_v39 = vpop.f32.mrb[53].mxu0  ;;  %5550 = vst [vmem:[#allocation66_spill] sm:$0xff] %v3032_v4  ;;  %v3035_v1 = vpop.f32.mrb[53].mxu1 }
 0x16b   : > { %5547 = vst [vmem:[#allocation63_spill] sm:$0xff] %v3024_v39  ;;  %v1239_v51 = vadd.f32 %v1238_v27, %v3024_v39  ;;  %v3027_v3 = vpop.f32.mrb[54].mxu0  ;;  %5551 = vst [vmem:[#allocation67_spill] sm:$0xff] %v3035_v1  ;;  %v2540_v2 = vpop.f32.mrb[54].mxu1 }
 0x16c   : > { %5548 = vst [vmem:[#allocation64_spill] sm:$0xff] %v3027_v3  ;;  %v3029_v63 = vpop.f32.mrb[55].mxu0  ;;  %v3038_v15 = vpop.f32.mrb[55].mxu1 }
 0x16d   : > { %5549 = vst [vmem:[#allocation65_spill] sm:$0xff] %v3029_v63  ;;  %v1240_v40 = vadd.f32 %v1239_v51, %v3029_v63 }
 0x16f   : > { %v1241_v22 = vadd.f32 %v3019_v58, %v1240_v40 }
 0x171   : > { %v1242_v34 = vadd.f32 %v3027_v3, %v1241_v22 }
 0x173   : > { %v1243_v10 = vadd.f32 %v1242_v34, %v2775_v7 }
 0x175   : > { %v1244_v27 = vadd.f32 %v1243_v10, %v2782_v11 }
 0x177   : > { %v1245_v39 = vadd.f32 %v2772_v5, %v1244_v27 }
 0x179   : > { %v1246_v0 = vadd.f32 %v2777_v8, %v1245_v39 }
 0x17b   : > { %v1247_v51 = vadd.f32 %v1246_v0, %v2795_v19 }
 0x17d   : > { %v1248_v63 = vadd.f32 %v1247_v51, %v2802_v23 }
 0x17f   : > { %v1249_v40 = vadd.f32 %v2792_v17, %v1248_v63 }
 0x181   : > { %v1250_v2 = vadd.f32 %v2797_v20, %v1249_v40 }
 0x183   : > { %v1251_v22 = vadd.f32 %v1250_v2, %v2815_v31 }
 0x185   : > { %v1252_v3 = vadd.f32 %v1251_v22, %v2822_v35 }
 0x187   : > { %v1253_v34 = vadd.f32 %v2812_v29, %v1252_v3 }
 0x189   : > { %v1254_v10 = vadd.f32 %v2817_v32, %v1253_v34 }
 0x18b   : > { %v1255_v27 = vadd.f32 %v1254_v10, %v2835_v43 }
 0x18d   : > { %v1256_v39 = vadd.f32 %v1255_v27, %v2842_v47 }
 0x18f   : > { %v1257_v0 = vadd.f32 %v2832_v41, %v1256_v39 }
 0x191   : > { %v1258_v51 = vadd.f32 %v2837_v44, %v1257_v0 }
 0x193   : > { %v1259_v63 = vadd.f32 %v1258_v51, %v2855_v55 }
 0x195   : > { %v1260_v40 = vadd.f32 %v1259_v63, %v2862_v59 }
 0x197   : > { %v1261_v2 = vadd.f32 %v2852_v53, %v1260_v40 }
 0x199   : > { %v1262_v22 = vadd.f32 %v2857_v56, %v1261_v2 }
 0x19b   : > { %v1263_v3 = vadd.f32 %v1262_v22, %v2875_v13 }
 0x19d   : > { %v1264_v34 = vadd.f32 %v1263_v3, %v2882_v25 }
 0x19f   : > { %v1265_v10 = vadd.f32 %v2872_v6, %v1264_v34 }
 0x1a1   : > { %v1266_v27 = vadd.f32 %v2877_v16, %v1265_v10 }
 0x1a3   : > { %v1267_v39 = vadd.f32 %v1266_v27, %v2895_v49 }
 0x1a5   : > { %v1268_v0 = vadd.f32 %v1267_v39, %v2902_v61 }
 0x1a7   : > { %v1269_v51 = vadd.f32 %v2892_v42, %v1268_v0 }
 0x1a9   : > { %v1270_v63 = vadd.f32 %v2897_v52, %v1269_v51 }
 0x1ab   : > { %v1271_v40 = vadd.f32 %v1270_v63, %v2915_v28 }
 0x1ad   : > { %v1272_v2 = vadd.f32 %v1271_v40, %v2922_v57 }
 0x1af   : > { %v1273_v22 = vadd.f32 %v2912_v18, %v1272_v2 }
 0x1b1   : > { %v1274_v3 = vadd.f32 %v2917_v62, %v1273_v22 }
 0x1b3   : > { %v1275_v34 = vadd.f32 %v1274_v3, %v2935_v60 }
 0x1b5   : > { %v1276_v10 = vadd.f32 %v1275_v34, %v2942_v45 }
 0x1b7   : > { %v1277_v27 = vadd.f32 %v2932_v54, %v1276_v10 }
 0x1b9   : > { %v1278_v39 = vadd.f32 %v2937_v50, %v1277_v27 }
 0x1bb   : > { %v1279_v0 = vadd.f32 %v1278_v39, %v2955_v48 }
 0x1bd   : > { %v1280_v51 = vadd.f32 %v1279_v0, %v2962_v33 }
 0x1bf   : > { %v1281_v63 = vadd.f32 %v2952_v46, %v1280_v51  ;;  %v5552_v46 = vld [vmem:[#allocation62_spill] sm:$0xff] }
 0x1c1   : > { %v1282_v40 = vadd.f32 %v2957_v38, %v1281_v63  ;;  %v5553_v38 = vld [vmem:[#allocation59_spill] sm:$0xff] }
 0x1c3   : > { %v1283_v2 = vadd.f32 %v1282_v40, %v2975_v36  ;;  %v5554_v36 = vld [vmem:[#allocation61_spill] sm:$0xff] }
 0x1c5   : > { %v1284_v22 = vadd.f32 %v1283_v2, %v2982_v21 }
 0x1c7   : > { %v1285_v3 = vadd.f32 %v2972_v37, %v1284_v22 }
 0x1c9   : > { %v1286_v34 = vadd.f32 %v2977_v26, %v1285_v3 }
 0x1cb   : > { %v1287_v10 = vadd.f32 %v1286_v34, %v2995_v24  ;;  %v1298_v34 = vsel %vm1297_vm0, %v3032_v4, 0.0 }
 0x1cd   : > { %v1288_v27 = vadd.f32 %v1287_v10, %v3002_v9 }
 0x1cf   : > { %v1289_v39 = vadd.f32 %v2992_v30, %v1288_v27 }
 0x1d1   : > { %v1290_v0 = vadd.f32 %v2997_v14, %v1289_v39 }
 0x1d3   : > { %v1291_v51 = vadd.f32 %v1290_v0, %v3015_v12 }
 0x1d5   : > { %v1292_v63 = vadd.f32 %v1291_v51, %v5552_v46 }
 0x1d7   : > { %v1293_v40 = vadd.f32 %v5553_v38, %v1292_v63  ;;  %v5555_v63 = vld [vmem:[#allocation3_spill] sm:$0xff] }
 0x1d9   : > { %v1294_v2 = vadd.f32 %v5554_v36, %v1293_v40 }
 0x1db   : > { %v1295_v22 = vadd.f32 %v1294_v2, %v3035_v1  ;;  %v5557_v2 = vld [vmem:[#allocation5_spill] sm:$0xff] }
 0x1dd   : > { %v1296_v3 = vadd.f32 %v1295_v22, %v3038_v15  ;;  %v5559_v22 = vld [vmem:[#allocation2_spill] sm:$0xff] }
 0x1df   : > { %v1299_v10 = vadd.f32 %v1298_v34, %v1296_v3  ;;  %v5561_v3 = vld [vmem:[#allocation4_spill] sm:$0xff] }
 0x1e1   : > { %v1300_v27 = vrot.slane %v1299_v10, 4 }
 0x1e3   : > { %v1301_v30 = vadd.f32 %v1300_v27, %v1299_v10  ;;  %v5567_v27 = vld [vmem:[#allocation6_spill] sm:$0xff] }
 0x1e5   : > { %v1302_v39 = vrot.slane %v1301_v30, 2 }
 0x1e7   : > { %v1303_v14 = vadd.f32 %v1302_v39, %v1301_v30  ;;  %v5565_v30 = vld [vmem:[#allocation9_spill] sm:$0xff] }
 0x1e9   : > { %v1304_v0 = vrot.slane %v1303_v14, 1 }
 0x1eb   : > { %v1305_v12 = vadd.f32 %v1304_v0, %v1303_v14  ;;  %v5563_v14 = vld [vmem:[#allocation7_spill] sm:$0xff]  ;;  %v5569_v0 = vld [vmem:[#allocation8_spill] sm:$0xff] }
 0x1ed   : > { %v3096_v51 = vmul.f32 0.0011337869, %v1305_v12 }
 0x1ef   : > { %v3100_v40 = vsub.f32 %v5555_v63, %v3096_v51  ;;  %v3104_v1 = vsub.f32 %v5557_v2, %v3096_v51  ;;  %v3108_v4 = vsub.f32 %v5559_v22, %v3096_v51  ;;  %v3112_v34 = vsub.f32 %v5561_v3, %v3096_v51  ;;  %v5571_v2 = vld [vmem:[#allocation11_spill] sm:$0xff]  ;;  %v5573_v3 = vld [vmem:[#allocation13_spill] sm:$0xff] }
 0x1f0   : > { %v3116_v12 = vsub.f32 %v5563_v14, %v3096_v51  ;;  %v3120_v10 = vsub.f32 %v5565_v30, %v3096_v51  ;;  %v3124_v39 = vsub.f32 %v5567_v27, %v3096_v51  ;;  %v3128_v63 = vsub.f32 %v5569_v0, %v3096_v51 }
 0x1f1   : > { %5556 = vst [vmem:[#allocation62_spill] sm:$0xff] %v3100_v40  ;;  %5558 = vst [vmem:[#allocation59_spill] sm:$0xff] %v3104_v1  ;;  %v3132_v22 = vsub.f32 %v5571_v2, %v3096_v51  ;;  %v3136_v14 = vsub.f32 %v5573_v3, %v3096_v51 }
 0x1f2   : > { %5560 = vst [vmem:[#allocation61_spill] sm:$0xff] %v3108_v4  ;;  %5562 = vst [vmem:[#allocation3_spill] sm:$0xff] %v3112_v34 }
 0x1f3   : > { %5564 = vst [vmem:[#allocation5_spill] sm:$0xff] %v3116_v12  ;;  %5566 = vst [vmem:[#allocation2_spill] sm:$0xff] %v3120_v10  ;;  %v5575_v12 = vld [vmem:[#allocation10_spill] sm:$0xff]  ;;  %v5577_v10 = vld [vmem:[#allocation12_spill] sm:$0xff] }
 0x1f4   : > { %5568 = vst [vmem:[#allocation4_spill] sm:$0xff] %v3124_v39  ;;  %5570 = vst [vmem:[#allocation7_spill] sm:$0xff] %v3128_v63  ;;  %v3140_v30 = vsub.f32 %v5575_v12, %v3096_v51  ;;  %v3144_v27 = vsub.f32 %v5577_v10, %v3096_v51  ;;  %v5579_v39 = vld [vmem:[#allocation15_spill] sm:$0xff]  ;;  %v5581_v63 = vld [vmem:[#allocation17_spill] sm:$0xff] }
 0x1f5   : > { %5572 = vst [vmem:[#allocation9_spill] sm:$0xff] %v3132_v22  ;;  %5574 = vst [vmem:[#allocation6_spill] sm:$0xff] %v3136_v14  ;;  %v3148_v0 = vsub.f32 %v5579_v39, %v3096_v51  ;;  %v3152_v2 = vsub.f32 %v5581_v63, %v3096_v51  ;;  %v5583_v22 = vld [vmem:[#allocation14_spill] sm:$0xff]  ;;  %v5585_v14 = vld [vmem:[#allocation16_spill] sm:$0xff] }
 0x1f6   : > { %5576 = vst [vmem:[#allocation8_spill] sm:$0xff] %v3140_v30  ;;  %5578 = vst [vmem:[#allocation11_spill] sm:$0xff] %v3144_v27  ;;  %v3156_v3 = vsub.f32 %v5583_v22, %v3096_v51  ;;  %v3160_v12 = vsub.f32 %v5585_v14, %v3096_v51  ;;  %v5587_v30 = vld [vmem:[#allocation19_spill] sm:$0xff]  ;;  %v5589_v27 = vld [vmem:[#allocation21_spill] sm:$0xff] }
 0x1f7   : > { %5580 = vst [vmem:[#allocation13_spill] sm:$0xff] %v3148_v0  ;;  %5582 = vst [vmem:[#allocation10_spill] sm:$0xff] %v3152_v2  ;;  %v3164_v10 = vsub.f32 %v5587_v30, %v3096_v51  ;;  %v3168_v39 = vsub.f32 %v5589_v27, %v3096_v51  ;;  %v5591_v0 = vld [vmem:[#allocation18_spill] sm:$0xff]  ;;  %v5593_v2 = vld [vmem:[#allocation20_spill] sm:$0xff] }
 0x1f8   : > { %5584 = vst [vmem:[#allocation12_spill] sm:$0xff] %v3156_v3  ;;  %5586 = vst [vmem:[#allocation15_spill] sm:$0xff] %v3160_v12  ;;  %v3172_v63 = vsub.f32 %v5591_v0, %v3096_v51  ;;  %v3176_v22 = vsub.f32 %v5593_v2, %v3096_v51  ;;  %v5595_v3 = vld [vmem:[#allocation23_spill] sm:$0xff]  ;;  %v5597_v12 = vld [vmem:[#allocation25_spill] sm:$0xff] }
 0x1f9   : > { %5588 = vst [vmem:[#allocation17_spill] sm:$0xff] %v3164_v10  ;;  %5590 = vst [vmem:[#allocation14_spill] sm:$0xff] %v3168_v39  ;;  %v3180_v14 = vsub.f32 %v5595_v3, %v3096_v51  ;;  %v3184_v30 = vsub.f32 %v5597_v12, %v3096_v51  ;;  %v5599_v10 = vld [vmem:[#allocation22_spill] sm:$0xff]  ;;  %v5601_v39 = vld [vmem:[#allocation24_spill] sm:$0xff] }
 0x1fa   : > { %5592 = vst [vmem:[#allocation16_spill] sm:$0xff] %v3172_v63  ;;  %5594 = vst [vmem:[#allocation19_spill] sm:$0xff] %v3176_v22  ;;  %v3188_v27 = vsub.f32 %v5599_v10, %v3096_v51  ;;  %v3192_v0 = vsub.f32 %v5601_v39, %v3096_v51  ;;  %v5603_v63 = vld [vmem:[#allocation27_spill] sm:$0xff]  ;;  %v5605_v22 = vld [vmem:[#allocation29_spill] sm:$0xff] }
 0x1fb   : > { %5596 = vst [vmem:[#allocation21_spill] sm:$0xff] %v3180_v14  ;;  %5598 = vst [vmem:[#allocation18_spill] sm:$0xff] %v3184_v30  ;;  %v3196_v2 = vsub.f32 %v5603_v63, %v3096_v51  ;;  %v3200_v3 = vsub.f32 %v5605_v22, %v3096_v51  ;;  %v5607_v14 = vld [vmem:[#allocation26_spill] sm:$0xff]  ;;  %v5609_v30 = vld [vmem:[#allocation28_spill] sm:$0xff] }
 0x1fc   : > { %5600 = vst [vmem:[#allocation20_spill] sm:$0xff] %v3188_v27  ;;  %5602 = vst [vmem:[#allocation23_spill] sm:$0xff] %v3192_v0  ;;  %v3204_v12 = vsub.f32 %v5607_v14, %v3096_v51  ;;  %v3208_v10 = vsub.f32 %v5609_v30, %v3096_v51  ;;  %v5611_v27 = vld [vmem:[#allocation31_spill] sm:$0xff]  ;;  %v5613_v0 = vld [vmem:[#allocation33_spill] sm:$0xff] }
 0x1fd   : > { %5604 = vst [vmem:[#allocation25_spill] sm:$0xff] %v3196_v2  ;;  %5606 = vst [vmem:[#allocation22_spill] sm:$0xff] %v3200_v3  ;;  %v3212_v39 = vsub.f32 %v5611_v27, %v3096_v51  ;;  %v3216_v63 = vsub.f32 %v5613_v0, %v3096_v51  ;;  %v5615_v2 = vld [vmem:[#allocation30_spill] sm:$0xff]  ;;  %v5617_v3 = vld [vmem:[#allocation32_spill] sm:$0xff] }
 0x1fe   : > { %5608 = vst [vmem:[#allocation24_spill] sm:$0xff] %v3204_v12  ;;  %5610 = vst [vmem:[#allocation27_spill] sm:$0xff] %v3208_v10  ;;  %v3220_v22 = vsub.f32 %v5615_v2, %v3096_v51  ;;  %v3224_v14 = vsub.f32 %v5617_v3, %v3096_v51  ;;  %v5619_v12 = vld [vmem:[#allocation35_spill] sm:$0xff]  ;;  %v5621_v10 = vld [vmem:[#allocation37_spill] sm:$0xff] }
 0x1ff   : > { %5612 = vst [vmem:[#allocation29_spill] sm:$0xff] %v3212_v39  ;;  %5614 = vst [vmem:[#allocation26_spill] sm:$0xff] %v3216_v63  ;;  %v3228_v30 = vsub.f32 %v5619_v12, %v3096_v51  ;;  %v3232_v27 = vsub.f32 %v5621_v10, %v3096_v51  ;;  %v5623_v39 = vld [vmem:[#allocation34_spill] sm:$0xff]  ;;  %v5625_v63 = vld [vmem:[#allocation36_spill] sm:$0xff] }
 0x200   : > { %5616 = vst [vmem:[#allocation28_spill] sm:$0xff] %v3220_v22  ;;  %5618 = vst [vmem:[#allocation31_spill] sm:$0xff] %v3224_v14  ;;  %v3236_v0 = vsub.f32 %v5623_v39, %v3096_v51  ;;  %v3240_v2 = vsub.f32 %v5625_v63, %v3096_v51  ;;  %v5627_v22 = vld [vmem:[#allocation39_spill] sm:$0xff]  ;;  %v5629_v14 = vld [vmem:[#allocation41_spill] sm:$0xff] }
 0x201   : > { %5620 = vst [vmem:[#allocation33_spill] sm:$0xff] %v3228_v30  ;;  %5622 = vst [vmem:[#allocation30_spill] sm:$0xff] %v3232_v27  ;;  %v3244_v3 = vsub.f32 %v5627_v22, %v3096_v51  ;;  %v3248_v12 = vsub.f32 %v5629_v14, %v3096_v51  ;;  %v5631_v30 = vld [vmem:[#allocation38_spill] sm:$0xff]  ;;  %v5633_v27 = vld [vmem:[#allocation40_spill] sm:$0xff] }
 0x202   : > { %5624 = vst [vmem:[#allocation32_spill] sm:$0xff] %v3236_v0  ;;  %5626 = vst [vmem:[#allocation35_spill] sm:$0xff] %v3240_v2  ;;  %v3252_v10 = vsub.f32 %v5631_v30, %v3096_v51  ;;  %v3256_v39 = vsub.f32 %v5633_v27, %v3096_v51  ;;  %v5635_v0 = vld [vmem:[#allocation45_spill] sm:$0xff]  ;;  %v5637_v2 = vld [vmem:[#allocation47_spill] sm:$0xff] }
 0x203   : > { %5628 = vst [vmem:[#allocation37_spill] sm:$0xff] %v3244_v3  ;;  %5630 = vst [vmem:[#allocation34_spill] sm:$0xff] %v3248_v12  ;;  %v3260_v63 = vsub.f32 %v5635_v0, %v3096_v51  ;;  %v3264_v22 = vsub.f32 %v5637_v2, %v3096_v51  ;;  %v5639_v3 = vld [vmem:[#allocation44_spill] sm:$0xff]  ;;  %v5641_v12 = vld [vmem:[#allocation46_spill] sm:$0xff] }
 0x204   : > { %5632 = vst [vmem:[#allocation36_spill] sm:$0xff] %v3252_v10  ;;  %5634 = vst [vmem:[#allocation39_spill] sm:$0xff] %v3256_v39  ;;  %v3268_v14 = vsub.f32 %v5639_v3, %v3096_v51  ;;  %v3272_v30 = vsub.f32 %v5641_v12, %v3096_v51  ;;  %v5643_v10 = vld [vmem:[#allocation50_spill] sm:$0xff]  ;;  %v5645_v39 = vld [vmem:[#allocation52_spill] sm:$0xff] }
 0x205   : > { %5636 = vst [vmem:[#allocation41_spill] sm:$0xff] %v3260_v63  ;;  %5638 = vst [vmem:[#allocation38_spill] sm:$0xff] %v3264_v22  ;;  %v3276_v27 = vsub.f32 %v5643_v10, %v3096_v51  ;;  %v3280_v0 = vsub.f32 %v5645_v39, %v3096_v51  ;;  %v5647_v63 = vld [vmem:[#allocation49_spill] sm:$0xff]  ;;  %v5649_v22 = vld [vmem:[#allocation51_spill] sm:$0xff] }
 0x206   : > { %5640 = vst [vmem:[#allocation40_spill] sm:$0xff] %v3268_v14  ;;  %5642 = vst [vmem:[#allocation45_spill] sm:$0xff] %v3272_v30  ;;  %v3284_v2 = vsub.f32 %v5647_v63, %v3096_v51  ;;  %v3288_v3 = vsub.f32 %v5649_v22, %v3096_v51  ;;  %v5651_v14 = vld [vmem:[#allocation56_spill] sm:$0xff]  ;;  %v5652_v30 = vld [vmem:[#allocation58_spill] sm:$0xff] }
 0x207   : > { %5644 = vst [vmem:[#allocation47_spill] sm:$0xff] %v3276_v27  ;;  %5646 = vst [vmem:[#allocation44_spill] sm:$0xff] %v3280_v0  ;;  %v3292_v12 = vsub.f32 %v5651_v14, %v3096_v51  ;;  %v3296_v10 = vsub.f32 %v5652_v30, %v3096_v51  ;;  %v5654_v27 = vld [vmem:[#allocation55_spill] sm:$0xff]  ;;  %v5655_v0 = vld [vmem:[#allocation57_spill] sm:$0xff]  ;;  %v3316_v30 = vsub.f32 %v3019_v58, %v3096_v51 }
 0x208   : > { %5648 = vst [vmem:[#allocation46_spill] sm:$0xff] %v3284_v2  ;;  %5650 = vst [vmem:[#allocation50_spill] sm:$0xff] %v3288_v3  ;;  %v3300_v39 = vsub.f32 %v5654_v27, %v3096_v51  ;;  %v3304_v63 = vsub.f32 %v5655_v0, %v3096_v51  ;;  %v5656_v2 = vld [vmem:[#allocation63_spill] sm:$0xff]  ;;  %v5657_v3 = vld [vmem:[#allocation65_spill] sm:$0xff]  ;;  %v3324_v0 = vsub.f32 %v2775_v7, %v3096_v51 }
 0x209   : > { %5653 = vst [vmem:[#allocation52_spill] sm:$0xff] %v3296_v10  ;;  %v3308_v22 = vsub.f32 %v5656_v2, %v3096_v51  ;;  %v3312_v14 = vsub.f32 %v5657_v3, %v3096_v51  ;;  %v5658_v10 = vld [vmem:[#allocation64_spill] sm:$0xff]  ;;  %v3328_v2 = vsub.f32 %v2782_v11, %v3096_v51  ;;  %v3332_v3 = vsub.f32 %v2772_v5, %v3096_v51 }
 0x20a   : > { %v3320_v27 = vsub.f32 %v5658_v10, %v3096_v51  ;;  %v3336_v58 = vsub.f32 %v2777_v8, %v3096_v51  ;;  %v3340_v10 = vsub.f32 %v2795_v19, %v3096_v51  ;;  %v3344_v7 = vsub.f32 %v2802_v23, %v3096_v51 }
 0x20b   : > { %v3348_v11 = vsub.f32 %v2792_v17, %v3096_v51  ;;  %v3352_v5 = vsub.f32 %v2797_v20, %v3096_v51  ;;  %v3356_v8 = vsub.f32 %v2815_v31, %v3096_v51  ;;  %v3360_v19 = vsub.f32 %v2822_v35, %v3096_v51 }
 0x20c   : > { %v3364_v23 = vsub.f32 %v2812_v29, %v3096_v51  ;;  %v3368_v17 = vsub.f32 %v2817_v32, %v3096_v51  ;;  %v3372_v20 = vsub.f32 %v2835_v43, %v3096_v51  ;;  %v3376_v31 = vsub.f32 %v2842_v47, %v3096_v51 }
 0x20d   : > { %v3380_v35 = vsub.f32 %v2832_v41, %v3096_v51  ;;  %v3384_v29 = vsub.f32 %v2837_v44, %v3096_v51  ;;  %v3388_v32 = vsub.f32 %v2855_v55, %v3096_v51  ;;  %v3392_v43 = vsub.f32 %v2862_v59, %v3096_v51 }
 0x20e   : > { %v3396_v47 = vsub.f32 %v2852_v53, %v3096_v51  ;;  %v3400_v41 = vsub.f32 %v2857_v56, %v3096_v51  ;;  %v3404_v44 = vsub.f32 %v2875_v13, %v3096_v51  ;;  %v3408_v55 = vsub.f32 %v2882_v25, %v3096_v51 }
 0x20f   : > { %v3412_v59 = vsub.f32 %v2872_v6, %v3096_v51  ;;  %v3416_v53 = vsub.f32 %v2877_v16, %v3096_v51  ;;  %v3420_v56 = vsub.f32 %v2895_v49, %v3096_v51  ;;  %v3424_v13 = vsub.f32 %v2902_v61, %v3096_v51 }
 0x210   : > { %v3428_v25 = vsub.f32 %v2892_v42, %v3096_v51  ;;  %v3432_v6 = vsub.f32 %v2897_v52, %v3096_v51  ;;  %v3436_v16 = vsub.f32 %v2915_v28, %v3096_v51  ;;  %v3440_v49 = vsub.f32 %v2922_v57, %v3096_v51 }
 0x211   : > { %v3444_v61 = vsub.f32 %v2912_v18, %v3096_v51  ;;  %v3448_v42 = vsub.f32 %v2917_v62, %v3096_v51  ;;  %v3452_v52 = vsub.f32 %v2935_v60, %v3096_v51  ;;  %v3456_v28 = vsub.f32 %v2942_v45, %v3096_v51 }
 0x212   : > { %5659 = vst [vmem:[#allocation49_spill] sm:$0xff] %v3432_v6  ;;  %5660 = vst [vmem:[#allocation51_spill] sm:$0xff] %v3436_v16  ;;  %v3460_v57 = vsub.f32 %v2932_v54, %v3096_v51  ;;  %v3464_v18 = vsub.f32 %v2937_v50, %v3096_v51  ;;  %v3468_v62 = vsub.f32 %v2955_v48, %v3096_v51 }
 0x213   : > { %5661 = vst [vmem:[#allocation56_spill] sm:$0xff] %v3440_v49  ;;  %5662 = vst [vmem:[#allocation58_spill] sm:$0xff] %v3452_v52  ;;  %v3472_v60 = vsub.f32 %v2962_v33, %v3096_v51  ;;  %v5668_v52 = vld [vmem:[#allocation42_spill] sm:$0xff]  ;;  %v3488_v48 = vsub.f32 %v2982_v21, %v3096_v51  ;;  %v3492_v33 = vsub.f32 %v2972_v37, %v3096_v51 }
 0x214   : > { %5663 = vst [vmem:[#allocation55_spill] sm:$0xff] %v3456_v28  ;;  %5664 = vst [vmem:[#allocation57_spill] sm:$0xff] %v3460_v57  ;;  %v3476_v45 = vsub.f32 %v5668_v52, %v3096_v51  ;;  %v5670_v28 = vld [vmem:[#allocation43_spill] sm:$0xff]  ;;  %v5672_v57 = vld [vmem:[#allocation48_spill] sm:$0xff]  ;;  %v3496_v52 = vsub.f32 %v2977_v26, %v3096_v51 }
 0x215   : > { %5665 = vst [vmem:[#allocation63_spill] sm:$0xff] %v3464_v18  ;;  %5666 = vst [vmem:[#allocation65_spill] sm:$0xff] %v3468_v62  ;;  %v3480_v54 = vsub.f32 %v5670_v28, %v3096_v51  ;;  %v3484_v50 = vsub.f32 %v5672_v57, %v3096_v51  ;;  %v3500_v28 = vsub.f32 %v2995_v24, %v3096_v51 }
 0x216   : > { %5667 = vst [vmem:[#allocation64_spill] sm:$0xff] %v3472_v60  ;;  %5669 = vst [vmem:[#allocation42_spill] sm:$0xff] %v3476_v45  ;;  %v3504_v57 = vsub.f32 %v3002_v9, %v3096_v51  ;;  %v3520_v24 = vsub.f32 %v5552_v46, %v3096_v51  ;;  %v3524_v9 = vsub.f32 %v5553_v38, %v3096_v51 }
 0x217   : > { %5671 = vst [vmem:[#allocation43_spill] sm:$0xff] %v3480_v54  ;;  %5673 = vst [vmem:[#allocation48_spill] sm:$0xff] %v3484_v50  ;;  %v5679_v50 = vld [vmem:[#allocation53_spill] sm:$0xff]  ;;  %v1419_v38 = vmul.f32 %v3100_v40, %v3100_v40  ;;  %v5695_v40 = vld [vmem:[#allocation4_spill] sm:$0xff] }
 0x218   : > { %5674 = vst [vmem:[#allocation68_spill] sm:$0xff] %v3488_v48  ;;  %5675 = vst [vmem:[#allocation69_spill] sm:$0xff] %v3492_v33  ;;  %v3508_v21 = vsub.f32 %v5679_v50, %v3096_v51  ;;  %v5681_v48 = vld [vmem:[#allocation54_spill] sm:$0xff]  ;;  %v5683_v33 = vld [vmem:[#allocation60_spill] sm:$0xff]  ;;  %v3528_v50 = vsub.f32 %v5554_v36, %v3096_v51  ;;  %v1421_v36 = vmul.f32 %v3108_v4, %v3108_v4 }
 0x219   : > { %5676 = vst [vmem:[#allocation70_spill] sm:$0xff] %v3496_v52  ;;  %5677 = vst [vmem:[#allocation71_spill] sm:$0xff] %v3500_v28  ;;  %v3512_v37 = vsub.f32 %v5681_v48, %v3096_v51  ;;  %v3516_v26 = vsub.f32 %v5683_v33, %v3096_v51  ;;  %v3536_v33 = vsub.f32 %v3038_v15, %v3096_v51  ;;  %v5693_v15 = vld [vmem:[#allocation5_spill] sm:$0xff] }
 0x21a   : > { %5678 = vst [vmem:[#allocation72_spill] sm:$0xff] %v3504_v57  ;;  %5680 = vst [vmem:[#allocation53_spill] sm:$0xff] %v3508_v21  ;;  %v5688_v21 = vld [vmem:[#allocation67_spill] sm:$0xff] }
 0x21b   : > { %5682 = vst [vmem:[#allocation54_spill] sm:$0xff] %v3512_v37  ;;  %5684 = vst [vmem:[#allocation60_spill] sm:$0xff] %v3516_v26  ;;  %v3532_v48 = vsub.f32 %v5688_v21, %v3096_v51  ;;  %v5691_v26 = vld [vmem:[#allocation66_spill] sm:$0xff]  ;;  %v1422_v21 = vmul.f32 %v3112_v34, %v3112_v34  ;;  %v1425_v37 = vmul.f32 %v5695_v40, %v5695_v40  ;;  %v5696_v57 = vld [vmem:[#allocation7_spill] sm:$0xff] }
 0x21c   : > { %5685 = vst [vmem:[#allocation73_spill] sm:$0xff] %v3520_v24  ;;  %5686 = vst [vmem:[#allocation74_spill] sm:$0xff] %v3524_v9  ;;  %v3540_v46 = vsub.f32 %v5691_v26, %v3096_v51  ;;  %v1420_v9 = vmul.f32 %v3104_v1, %v3104_v1  ;;  %v5694_v51 = vld [vmem:[#allocation2_spill] sm:$0xff]  ;;  %v1426_v4 = vmul.f32 %v5696_v57, %v5696_v57 }
 0x21d   : > { %5687 = vst [vmem:[#allocation75_spill] sm:$0xff] %v3528_v50  ;;  %5689 = vst [vmem:[#allocation67_spill] sm:$0xff] %v3532_v48  ;;  %v1424_v26 = vmul.f32 %v5694_v51, %v5694_v51 }
 0x21e   : > { %5690 = vst [vmem:[#allocation76_spill] sm:$0xff] %v3536_v33  ;;  %5692 = vst [vmem:[#allocation66_spill] sm:$0xff] %v3540_v46  ;;  %v1530_v50 = vadd.f32 %v1420_v9, %v1419_v38  ;;  %v1423_v33 = vmul.f32 %v5693_v15, %v5693_v15  ;;  %v5697_v38 = vld [vmem:[#allocation9_spill] sm:$0xff] }
 0x21f   : > { %v1427_v34 = vmul.f32 %v5697_v38, %v5697_v38 }
 0x220   : > { %v1531_v48 = vadd.f32 %v1530_v50, %v1421_v36  ;;  %v5698_v36 = vld [vmem:[#allocation6_spill] sm:$0xff] }
 0x221   : > { %v1428_v15 = vmul.f32 %v5698_v36, %v5698_v36 }
 0x222   : > { %v1532_v24 = vadd.f32 %v1531_v48, %v1422_v21  ;;  %v5699_v21 = vld [vmem:[#allocation8_spill] sm:$0xff] }
 0x223   : > { %v1429_v51 = vmul.f32 %v5699_v21, %v5699_v21 }
 0x224   : > { %v1533_v46 = vadd.f32 %v1532_v24, %v1423_v33  ;;  %v5700_v33 = vld [vmem:[#allocation11_spill] sm:$0xff] }
 0x225   : > { %v1430_v40 = vmul.f32 %v5700_v33, %v5700_v33 }
 0x226   : > { %v1534_v1 = vadd.f32 %v1533_v46, %v1424_v26  ;;  %v5701_v26 = vld [vmem:[#allocation13_spill] sm:$0xff] }
 0x227   : > { %v1431_v57 = vmul.f32 %v5701_v26, %v5701_v26 }
 0x228   : > { %v1535_v9 = vadd.f32 %v1534_v1, %v1425_v37  ;;  %v5702_v37 = vld [vmem:[#allocation10_spill] sm:$0xff] }
 0x229   : > { %v1432_v38 = vmul.f32 %v5702_v37, %v5702_v37 }
 0x22a   : > { %v1536_v50 = vadd.f32 %v1535_v9, %v1426_v4  ;;  %v5703_v9 = vld [vmem:[#allocation12_spill] sm:$0xff] }
 0x22b   : > { %v1433_v36 = vmul.f32 %v5703_v9, %v5703_v9 }
 0x22c   : > { %v1537_v48 = vadd.f32 %v1536_v50, %v1427_v34  ;;  %v5704_v50 = vld [vmem:[#allocation15_spill] sm:$0xff] }
 0x22d   : > { %v1434_v21 = vmul.f32 %v5704_v50, %v5704_v50 }
 0x22e   : > { %v1538_v24 = vadd.f32 %v1537_v48, %v1428_v15  ;;  %v5705_v48 = vld [vmem:[#allocation17_spill] sm:$0xff] }
 0x22f   : > { %v1435_v33 = vmul.f32 %v5705_v48, %v5705_v48 }
 0x230   : > { %v1539_v46 = vadd.f32 %v1538_v24, %v1429_v51  ;;  %v5706_v24 = vld [vmem:[#allocation14_spill] sm:$0xff] }
 0x231   : > { %v1436_v26 = vmul.f32 %v5706_v24, %v5706_v24 }
 0x232   : > { %v1540_v1 = vadd.f32 %v1539_v46, %v1430_v40  ;;  %v5707_v46 = vld [vmem:[#allocation16_spill] sm:$0xff] }
 0x233   : > { %v1437_v37 = vmul.f32 %v5707_v46, %v5707_v46 }
 0x234   : > { %v1541_v4 = vadd.f32 %v1540_v1, %v1431_v57  ;;  %v5708_v1 = vld [vmem:[#allocation19_spill] sm:$0xff] }
 0x235   : > { %v1438_v9 = vmul.f32 %v5708_v1, %v5708_v1 }
 0x236   : > { %v1542_v34 = vadd.f32 %v1541_v4, %v1432_v38  ;;  %v5709_v4 = vld [vmem:[#allocation21_spill] sm:$0xff] }
 0x237   : > { %v1439_v50 = vmul.f32 %v5709_v4, %v5709_v4 }
 0x238   : > { %v1543_v15 = vadd.f32 %v1542_v34, %v1433_v36  ;;  %v5710_v34 = vld [vmem:[#allocation18_spill] sm:$0xff] }
 0x239   : > { %v1440_v48 = vmul.f32 %v5710_v34, %v5710_v34 }
 0x23a   : > { %v1544_v51 = vadd.f32 %v1543_v15, %v1434_v21  ;;  %v5711_v15 = vld [vmem:[#allocation20_spill] sm:$0xff] }
 0x23b   : > { %v1441_v24 = vmul.f32 %v5711_v15, %v5711_v15 }
 0x23c   : > { %v1545_v40 = vadd.f32 %v1544_v51, %v1435_v33  ;;  %v5712_v51 = vld [vmem:[#allocation23_spill] sm:$0xff] }
 0x23d   : > { %v1442_v46 = vmul.f32 %v5712_v51, %v5712_v51 }
 0x23e   : > { %v1546_v57 = vadd.f32 %v1545_v40, %v1436_v26  ;;  %v5713_v40 = vld [vmem:[#allocation25_spill] sm:$0xff] }
 0x23f   : > { %v1443_v1 = vmul.f32 %v5713_v40, %v5713_v40 }
 0x240   : > { %v1547_v38 = vadd.f32 %v1546_v57, %v1437_v37  ;;  %v5714_v57 = vld [vmem:[#allocation22_spill] sm:$0xff] }
 0x241   : > { %v1444_v4 = vmul.f32 %v5714_v57, %v5714_v57 }
 0x242   : > { %v1548_v36 = vadd.f32 %v1547_v38, %v1438_v9  ;;  %v5715_v38 = vld [vmem:[#allocation24_spill] sm:$0xff] }
 0x243   : > { %v1445_v34 = vmul.f32 %v5715_v38, %v5715_v38 }
 0x244   : > { %v1549_v21 = vadd.f32 %v1548_v36, %v1439_v50  ;;  %v5716_v36 = vld [vmem:[#allocation27_spill] sm:$0xff] }
 0x245   : > { %v1446_v15 = vmul.f32 %v5716_v36, %v5716_v36 }
 0x246   : > { %v1550_v33 = vadd.f32 %v1549_v21, %v1440_v48  ;;  %v5717_v21 = vld [vmem:[#allocation29_spill] sm:$0xff] }
 0x247   : > { %v1447_v51 = vmul.f32 %v5717_v21, %v5717_v21 }
 0x248   : > { %v1551_v26 = vadd.f32 %v1550_v33, %v1441_v24  ;;  %v5718_v33 = vld [vmem:[#allocation26_spill] sm:$0xff] }
 0x249   : > { %v1448_v40 = vmul.f32 %v5718_v33, %v5718_v33 }
 0x24a   : > { %v1552_v37 = vadd.f32 %v1551_v26, %v1442_v46  ;;  %v5719_v26 = vld [vmem:[#allocation28_spill] sm:$0xff] }
 0x24b   : > { %v1449_v57 = vmul.f32 %v5719_v26, %v5719_v26 }
 0x24c   : > { %v1553_v9 = vadd.f32 %v1552_v37, %v1443_v1  ;;  %v5720_v37 = vld [vmem:[#allocation31_spill] sm:$0xff] }
 0x24d   : > { %v1450_v38 = vmul.f32 %v5720_v37, %v5720_v37 }
 0x24e   : > { %v1554_v50 = vadd.f32 %v1553_v9, %v1444_v4  ;;  %v5721_v9 = vld [vmem:[#allocation33_spill] sm:$0xff] }
 0x24f   : > { %v1451_v36 = vmul.f32 %v5721_v9, %v5721_v9 }
 0x250   : > { %v1555_v48 = vadd.f32 %v1554_v50, %v1445_v34  ;;  %v5722_v50 = vld [vmem:[#allocation30_spill] sm:$0xff] }
 0x251   : > { %v1452_v21 = vmul.f32 %v5722_v50, %v5722_v50 }
 0x252   : > { %v1556_v24 = vadd.f32 %v1555_v48, %v1446_v15  ;;  %v5723_v48 = vld [vmem:[#allocation32_spill] sm:$0xff] }
 0x253   : > { %v1453_v33 = vmul.f32 %v5723_v48, %v5723_v48 }
 0x254   : > { %v1557_v46 = vadd.f32 %v1556_v24, %v1447_v51  ;;  %v5724_v24 = vld [vmem:[#allocation35_spill] sm:$0xff] }
 0x255   : > { %v1454_v26 = vmul.f32 %v5724_v24, %v5724_v24 }
 0x256   : > { %v1558_v1 = vadd.f32 %v1557_v46, %v1448_v40  ;;  %v5725_v46 = vld [vmem:[#allocation37_spill] sm:$0xff] }
 0x257   : > { %v1455_v37 = vmul.f32 %v5725_v46, %v5725_v46 }
 0x258   : > { %v1559_v4 = vadd.f32 %v1558_v1, %v1449_v57  ;;  %v5726_v1 = vld [vmem:[#allocation34_spill] sm:$0xff] }
 0x259   : > { %v1456_v9 = vmul.f32 %v5726_v1, %v5726_v1 }
 0x25a   : > { %v1560_v34 = vadd.f32 %v1559_v4, %v1450_v38  ;;  %v5727_v4 = vld [vmem:[#allocation36_spill] sm:$0xff] }
 0x25b   : > { %v1457_v50 = vmul.f32 %v5727_v4, %v5727_v4 }
 0x25c   : > { %v1561_v15 = vadd.f32 %v1560_v34, %v1451_v36  ;;  %v5728_v34 = vld [vmem:[#allocation39_spill] sm:$0xff] }
 0x25d   : > { %v1458_v48 = vmul.f32 %v5728_v34, %v5728_v34 }
 0x25e   : > { %v1562_v51 = vadd.f32 %v1561_v15, %v1452_v21  ;;  %v5729_v15 = vld [vmem:[#allocation41_spill] sm:$0xff] }
 0x25f   : > { %v1459_v24 = vmul.f32 %v5729_v15, %v5729_v15 }
 0x260   : > { %v1563_v40 = vadd.f32 %v1562_v51, %v1453_v33  ;;  %v5730_v51 = vld [vmem:[#allocation38_spill] sm:$0xff] }
 0x261   : > { %v1460_v46 = vmul.f32 %v5730_v51, %v5730_v51 }
 0x262   : > { %v1564_v57 = vadd.f32 %v1563_v40, %v1454_v26  ;;  %v5731_v40 = vld [vmem:[#allocation40_spill] sm:$0xff] }
 0x263   : > { %v1461_v1 = vmul.f32 %v5731_v40, %v5731_v40 }
 0x264   : > { %v1565_v38 = vadd.f32 %v1564_v57, %v1455_v37  ;;  %v5732_v57 = vld [vmem:[#allocation45_spill] sm:$0xff] }
 0x265   : > { %v1462_v4 = vmul.f32 %v5732_v57, %v5732_v57 }
 0x266   : > { %v1566_v36 = vadd.f32 %v1565_v38, %v1456_v9  ;;  %v5733_v38 = vld [vmem:[#allocation47_spill] sm:$0xff] }
 0x267   : > { %v1463_v34 = vmul.f32 %v5733_v38, %v5733_v38 }
 0x268   : > { %v1567_v21 = vadd.f32 %v1566_v36, %v1457_v50  ;;  %v5734_v36 = vld [vmem:[#allocation44_spill] sm:$0xff] }
 0x269   : > { %v1464_v15 = vmul.f32 %v5734_v36, %v5734_v36 }
 0x26a   : > { %v1568_v33 = vadd.f32 %v1567_v21, %v1458_v48  ;;  %v5735_v21 = vld [vmem:[#allocation46_spill] sm:$0xff] }
 0x26b   : > { %v1465_v51 = vmul.f32 %v5735_v21, %v5735_v21 }
 0x26c   : > { %v1569_v26 = vadd.f32 %v1568_v33, %v1459_v24  ;;  %v5736_v33 = vld [vmem:[#allocation50_spill] sm:$0xff] }
 0x26d   : > { %v1466_v40 = vmul.f32 %v5736_v33, %v5736_v33 }
 0x26e   : > { %v1570_v37 = vadd.f32 %v1569_v26, %v1460_v46  ;;  %v1467_v26 = vmul.f32 %v3292_v12, %v3292_v12 }
 0x270   : > { %v1571_v9 = vadd.f32 %v1570_v37, %v1461_v1  ;;  %v5737_v37 = vld [vmem:[#allocation52_spill] sm:$0xff] }
 0x271   : > { %v1468_v38 = vmul.f32 %v5737_v37, %v5737_v37 }
 0x272   : > { %v1572_v50 = vadd.f32 %v1571_v9, %v1462_v4  ;;  %v1469_v9 = vmul.f32 %v3300_v39, %v3300_v39 }
 0x274   : > { %v1573_v48 = vadd.f32 %v1572_v50, %v1463_v34  ;;  %v1470_v50 = vmul.f32 %v3304_v63, %v3304_v63 }
 0x276   : > { %v1574_v24 = vadd.f32 %v1573_v48, %v1464_v15  ;;  %v1471_v48 = vmul.f32 %v3308_v22, %v3308_v22 }
 0x278   : > { %v1575_v46 = vadd.f32 %v1574_v24, %v1465_v51  ;;  %v1472_v24 = vmul.f32 %v3312_v14, %v3312_v14 }
 0x27a   : > { %v1576_v1 = vadd.f32 %v1575_v46, %v1466_v40  ;;  %v1473_v46 = vmul.f32 %v3316_v30, %v3316_v30 }
 0x27c   : > { %v1577_v4 = vadd.f32 %v1576_v1, %v1467_v26  ;;  %v1474_v1 = vmul.f32 %v3320_v27, %v3320_v27 }
 0x27e   : > { %v1578_v34 = vadd.f32 %v1577_v4, %v1468_v38  ;;  %v1475_v4 = vmul.f32 %v3324_v0, %v3324_v0 }
 0x280   : > { %v1579_v15 = vadd.f32 %v1578_v34, %v1469_v9  ;;  %v1476_v34 = vmul.f32 %v3328_v2, %v3328_v2 }
 0x282   : > { %v1580_v51 = vadd.f32 %v1579_v15, %v1470_v50  ;;  %v1477_v15 = vmul.f32 %v3332_v3, %v3332_v3 }
 0x284   : > { %v1581_v40 = vadd.f32 %v1580_v51, %v1471_v48  ;;  %v1478_v51 = vmul.f32 %v3336_v58, %v3336_v58 }
 0x286   : > { %v1582_v26 = vadd.f32 %v1581_v40, %v1472_v24  ;;  %v1479_v40 = vmul.f32 %v3340_v10, %v3340_v10 }
 0x288   : > { %v1583_v38 = vadd.f32 %v1582_v26, %v1473_v46  ;;  %v1480_v26 = vmul.f32 %v3344_v7, %v3344_v7 }
 0x28a   : > { %v1584_v9 = vadd.f32 %v1583_v38, %v1474_v1  ;;  %v1481_v38 = vmul.f32 %v3348_v11, %v3348_v11 }
 0x28c   : > { %v1585_v50 = vadd.f32 %v1584_v9, %v1475_v4  ;;  %v1482_v9 = vmul.f32 %v3352_v5, %v3352_v5 }
 0x28e   : > { %v1586_v48 = vadd.f32 %v1585_v50, %v1476_v34  ;;  %v1483_v50 = vmul.f32 %v3356_v8, %v3356_v8 }
 0x290   : > { %v1587_v24 = vadd.f32 %v1586_v48, %v1477_v15  ;;  %v1484_v48 = vmul.f32 %v3360_v19, %v3360_v19 }
 0x292   : > { %v1588_v46 = vadd.f32 %v1587_v24, %v1478_v51  ;;  %v1485_v24 = vmul.f32 %v3364_v23, %v3364_v23 }
 0x294   : > { %v1589_v1 = vadd.f32 %v1588_v46, %v1479_v40  ;;  %v1486_v46 = vmul.f32 %v3368_v17, %v3368_v17 }
 0x296   : > { %v1590_v4 = vadd.f32 %v1589_v1, %v1480_v26  ;;  %v1487_v1 = vmul.f32 %v3372_v20, %v3372_v20 }
 0x298   : > { %v1591_v34 = vadd.f32 %v1590_v4, %v1481_v38  ;;  %v1488_v4 = vmul.f32 %v3376_v31, %v3376_v31 }
 0x29a   : > { %v1592_v15 = vadd.f32 %v1591_v34, %v1482_v9  ;;  %v1489_v34 = vmul.f32 %v3380_v35, %v3380_v35 }
 0x29c   : > { %v1593_v51 = vadd.f32 %v1592_v15, %v1483_v50  ;;  %v1490_v15 = vmul.f32 %v3384_v29, %v3384_v29 }
 0x29e   : > { %v1594_v40 = vadd.f32 %v1593_v51, %v1484_v48  ;;  %v1491_v51 = vmul.f32 %v3388_v32, %v3388_v32 }
 0x2a0   : > { %v1595_v26 = vadd.f32 %v1594_v40, %v1485_v24  ;;  %v1492_v40 = vmul.f32 %v3392_v43, %v3392_v43 }
 0x2a2   : > { %v1596_v38 = vadd.f32 %v1595_v26, %v1486_v46  ;;  %v1493_v26 = vmul.f32 %v3396_v47, %v3396_v47 }
 0x2a4   : > { %v1597_v9 = vadd.f32 %v1596_v38, %v1487_v1  ;;  %v1494_v38 = vmul.f32 %v3400_v41, %v3400_v41 }
 0x2a6   : > { %v1598_v50 = vadd.f32 %v1597_v9, %v1488_v4  ;;  %v1495_v9 = vmul.f32 %v3404_v44, %v3404_v44 }
 0x2a8   : > { %v1599_v48 = vadd.f32 %v1598_v50, %v1489_v34  ;;  %v1496_v50 = vmul.f32 %v3408_v55, %v3408_v55 }
 0x2aa   : > { %v1600_v24 = vadd.f32 %v1599_v48, %v1490_v15  ;;  %v1497_v48 = vmul.f32 %v3412_v59, %v3412_v59 }
 0x2ac   : > { %v1601_v46 = vadd.f32 %v1600_v24, %v1491_v51  ;;  %v1498_v24 = vmul.f32 %v3416_v53, %v3416_v53 }
 0x2ae   : > { %v1602_v1 = vadd.f32 %v1601_v46, %v1492_v40  ;;  %v1499_v46 = vmul.f32 %v3420_v56, %v3420_v56 }
 0x2b0   : > { %v1603_v4 = vadd.f32 %v1602_v1, %v1493_v26  ;;  %v1500_v1 = vmul.f32 %v3424_v13, %v3424_v13 }
 0x2b2   : > { %v1604_v34 = vadd.f32 %v1603_v4, %v1494_v38  ;;  %v1501_v4 = vmul.f32 %v3428_v25, %v3428_v25 }
 0x2b4   : > { %v1605_v15 = vadd.f32 %v1604_v34, %v1495_v9  ;;  %v1502_v34 = vmul.f32 %v3432_v6, %v3432_v6 }
 0x2b6   : > { %v1606_v51 = vadd.f32 %v1605_v15, %v1496_v50  ;;  %v1503_v15 = vmul.f32 %v3436_v16, %v3436_v16 }
 0x2b8   : > { %v1607_v40 = vadd.f32 %v1606_v51, %v1497_v48  ;;  %v1504_v51 = vmul.f32 %v3440_v49, %v3440_v49 }
 0x2ba   : > { %v1608_v26 = vadd.f32 %v1607_v40, %v1498_v24  ;;  %v1505_v40 = vmul.f32 %v3444_v61, %v3444_v61 }
 0x2bc   : > { %v1609_v38 = vadd.f32 %v1608_v26, %v1499_v46  ;;  %v1506_v26 = vmul.f32 %v3448_v42, %v3448_v42 }
 0x2be   : > { %v1610_v9 = vadd.f32 %v1609_v38, %v1500_v1  ;;  %v5738_v38 = vld [vmem:[#allocation58_spill] sm:$0xff] }
 0x2bf   : > { %v1507_v6 = vmul.f32 %v5738_v38, %v5738_v38 }
 0x2c0   : > { %v1611_v50 = vadd.f32 %v1610_v9, %v1501_v4  ;;  %v5739_v9 = vld [vmem:[#allocation55_spill] sm:$0xff] }
 0x2c1   : > { %v1508_v16 = vmul.f32 %v5739_v9, %v5739_v9 }
 0x2c2   : > { %v1612_v48 = vadd.f32 %v1611_v50, %v1502_v34  ;;  %v5740_v50 = vld [vmem:[#allocation57_spill] sm:$0xff] }
 0x2c3   : > { %v1509_v49 = vmul.f32 %v5740_v50, %v5740_v50 }
 0x2c4   : > { %v1613_v24 = vadd.f32 %v1612_v48, %v1503_v15  ;;  %v1510_v48 = vmul.f32 %v3464_v18, %v3464_v18 }
 0x2c6   : > { %v1614_v46 = vadd.f32 %v1613_v24, %v1504_v51  ;;  %v1511_v24 = vmul.f32 %v3468_v62, %v3468_v62 }
 0x2c8   : > { %v1615_v1 = vadd.f32 %v1614_v46, %v1505_v40  ;;  %v1512_v46 = vmul.f32 %v3472_v60, %v3472_v60 }
 0x2ca   : > { %v1616_v4 = vadd.f32 %v1615_v1, %v1506_v26  ;;  %v1513_v1 = vmul.f32 %v3476_v45, %v3476_v45 }
 0x2cc   : > { %v1617_v34 = vadd.f32 %v1616_v4, %v1507_v6  ;;  %v1514_v4 = vmul.f32 %v3480_v54, %v3480_v54 }
 0x2ce   : > { %v1618_v15 = vadd.f32 %v1617_v34, %v1508_v16  ;;  %v5741_v34 = vld [vmem:[#allocation48_spill] sm:$0xff] }
 0x2cf   : > { %v1515_v18 = vmul.f32 %v5741_v34, %v5741_v34 }
 0x2d0   : > { %v1619_v51 = vadd.f32 %v1618_v15, %v1509_v49  ;;  %v5742_v15 = vld [vmem:[#allocation68_spill] sm:$0xff] }
 0x2d1   : > { %v1516_v62 = vmul.f32 %v5742_v15, %v5742_v15 }
 0x2d2   : > { %v1620_v40 = vadd.f32 %v1619_v51, %v1510_v48  ;;  %v5743_v51 = vld [vmem:[#allocation69_spill] sm:$0xff] }
 0x2d3   : > { %v1517_v60 = vmul.f32 %v5743_v51, %v5743_v51 }
 0x2d4   : > { %v1621_v26 = vadd.f32 %v1620_v40, %v1511_v24  ;;  %v1518_v40 = vmul.f32 %v3496_v52, %v3496_v52 }
 0x2d6   : > { %v1622_v6 = vadd.f32 %v1621_v26, %v1512_v46  ;;  %v1519_v26 = vmul.f32 %v3500_v28, %v3500_v28 }
 0x2d8   : > { %v1623_v16 = vadd.f32 %v1622_v6, %v1513_v1  ;;  %v5744_v6 = vld [vmem:[#allocation72_spill] sm:$0xff] }
 0x2d9   : > { %v1520_v34 = vmul.f32 %v5744_v6, %v5744_v6 }
 0x2da   : > { %v1624_v49 = vadd.f32 %v1623_v16, %v1514_v4  ;;  %v5745_v16 = vld [vmem:[#allocation53_spill] sm:$0xff] }
 0x2db   : > { %v1521_v15 = vmul.f32 %v5745_v16, %v5745_v16 }
 0x2dc   : > { %v1625_v48 = vadd.f32 %v1624_v49, %v1515_v18  ;;  %v5746_v49 = vld [vmem:[#allocation54_spill] sm:$0xff] }
 0x2dd   : > { %v1522_v51 = vmul.f32 %v5746_v49, %v5746_v49 }
 0x2de   : > { %v1626_v24 = vadd.f32 %v1625_v48, %v1516_v62  ;;  %v5747_v48 = vld [vmem:[#allocation60_spill] sm:$0xff] }
 0x2df   : > { %v1523_v52 = vmul.f32 %v5747_v48, %v5747_v48 }
 0x2e0   : > { %v1627_v46 = vadd.f32 %v1626_v24, %v1517_v60  ;;  %v5748_v24 = vld [vmem:[#allocation73_spill] sm:$0xff] }
 0x2e1   : > { %v1524_v28 = vmul.f32 %v5748_v24, %v5748_v24 }
 0x2e2   : > { %v1628_v1 = vadd.f32 %v1627_v46, %v1518_v40  ;;  %v5749_v46 = vld [vmem:[#allocation74_spill] sm:$0xff] }
 0x2e3   : > { %v1525_v6 = vmul.f32 %v5749_v46, %v5749_v46 }
 0x2e4   : > { %v1629_v4 = vadd.f32 %v1628_v1, %v1519_v26  ;;  %v5750_v1 = vld [vmem:[#allocation75_spill] sm:$0xff] }
 0x2e5   : > { %v1526_v16 = vmul.f32 %v5750_v1, %v5750_v1 }
 0x2e6   : > { %v1630_v18 = vadd.f32 %v1629_v4, %v1520_v34  ;;  %v5751_v4 = vld [vmem:[#allocation67_spill] sm:$0xff] }
 0x2e7   : > { %v1527_v49 = vmul.f32 %v5751_v4, %v5751_v4 }
 0x2e8   : > { %v1631_v62 = vadd.f32 %v1630_v18, %v1521_v15  ;;  %v5752_v18 = vld [vmem:[#allocation66_spill] sm:$0xff] }
 0x2e9   : > { %v1529_v48 = vmul.f32 %v5752_v18, %v5752_v18 }
 0x2ea   : > { %v1632_v60 = vadd.f32 %v1631_v62, %v1522_v51  ;;  %v5753_v51 = vld [vmem:[#allocation76_spill] sm:$0xff] }
 0x2eb   : > { %v1528_v62 = vmul.f32 %v5753_v51, %v5753_v51 }
 0x2ec   : > { %v1633_v40 = vadd.f32 %v1632_v60, %v1523_v52  ;;  %v1639_v60 = vsel %vm1297_vm0, %v1529_v48, 0.0  ;;  %v5756_v48 = vld [vmem:[#allocation61_spill] sm:$0xff] }
 0x2ee   : > { %v1634_v26 = vadd.f32 %v1633_v40, %v1524_v28 }
 0x2f0   : > { %v1635_v34 = vadd.f32 %v1634_v26, %v1525_v6 }
 0x2f2   : > { %v1636_v15 = vadd.f32 %v1635_v34, %v1526_v16  ;;  %v5754_v34 = vld [vmem:[#allocation62_spill] sm:$0xff] }
 0x2f4   : > { %v1637_v24 = vadd.f32 %v1636_v15, %v1527_v49  ;;  %v5755_v49 = vld [vmem:[#allocation59_spill] sm:$0xff]  ;;  %v5759_v15 = vld [vmem:[#allocation2_spill] sm:$0xff] }
 0x2f6   : > { %v1638_v52 = vadd.f32 %v1637_v24, %v1528_v62 }
 0x2f8   : > { %v1640_v46 = vadd.f32 %v1639_v60, %v1638_v52  ;;  %v5760_v52 = vld [vmem:[#allocation4_spill] sm:$0xff] }
 0x2fa   : > { %v1641_v28 = vrot.slane %v1640_v46, 4 }
 0x2fc   : > { %v1642_v40 = vadd.f32 %v1641_v28, %v1640_v46  ;;  %v5761_v28 = vld [vmem:[#allocation7_spill] sm:$0xff] }
 0x2fe   : > { %v1643_v54 = vrot.slane %v1642_v40, 2 }
 0x300   : > { %v1644_v1 = vadd.f32 %v1643_v54, %v1642_v40  ;;  %v5757_v54 = vld [vmem:[#allocation3_spill] sm:$0xff] }
 0x302   : > { %v1645_v6 = vrot.slane %v1644_v1, 1 }
 0x304   : > { %v1646_v26 = vadd.f32 %v1645_v6, %v1644_v1  ;;  %v5763_v6 = vld [vmem:[#allocation9_spill] sm:$0xff] }
 0x306   : > { %v1647_v45 = vmul.f32 0.0011337869, %v1646_v26 }
 0x308   : > { %v1648_v4 = vadd.f32 1e-05, %v1647_v45  ;;  %v5758_v45 = vld [vmem:[#allocation5_spill] sm:$0xff] }
 0x30a   : > { %2631 = vrsqrt.f32 %v1648_v4 }
 0x314   : > { %v3765_v16 = vpop.eup %2631 }
 0x315   : > { %v3769_v18 = vmul.f32 %v3765_v16, %v5754_v34  ;;  %v3773_v24 = vmul.f32 %v3765_v16, %v5755_v49  ;;  %v3777_v46 = vmul.f32 %v3765_v16, %v5756_v48  ;;  %v3781_v1 = vmul.f32 %v3765_v16, %v5757_v54  ;;  %v5765_v34 = vld [vmem:[#allocation6_spill] sm:$0xff]  ;;  %v5767_v48 = vld [vmem:[#allocation8_spill] sm:$0xff] }
 0x316   : > { %v3785_v4 = vmul.f32 %v3765_v16, %v5758_v45  ;;  %v3789_v62 = vmul.f32 %v3765_v16, %v5759_v15  ;;  %v3793_v60 = vmul.f32 %v3765_v16, %v5760_v52  ;;  %v3797_v40 = vmul.f32 %v3765_v16, %v5761_v28  ;;  %v5769_v45 = vld [vmem:[#allocation11_spill] sm:$0xff]  ;;  %v5771_v52 = vld [vmem:[#allocation13_spill] sm:$0xff] }
 0x317   : > { %v3801_v26 = vmul.f32 %v3765_v16, %v5763_v6  ;;  %v3805_v49 = vmul.f32 %v3765_v16, %v5765_v34  ;;  %v3809_v54 = vmul.f32 %v3765_v16, %v5767_v48  ;;  %v3813_v15 = vmul.f32 %v3765_v16, %v5769_v45 }
 0x318   : > { %5762 = vst [vmem:[#allocation45_spill] sm:$0xff] %v3797_v40  ;;  %v3817_v28 = vmul.f32 %v3765_v16, %v5771_v52  ;;  %v5773_v40 = vld [vmem:[#allocation10_spill] sm:$0xff] }
 0x319   : > { %5764 = vst [vmem:[#allocation44_spill] sm:$0xff] %v3801_v26  ;;  %5766 = vst [vmem:[#allocation46_spill] sm:$0xff] %v3805_v49  ;;  %v3821_v6 = vmul.f32 %v3765_v16, %v5773_v40  ;;  %v5775_v26 = vld [vmem:[#allocation12_spill] sm:$0xff]  ;;  %v5777_v49 = vld [vmem:[#allocation15_spill] sm:$0xff] }
 0x31a   : > { %5768 = vst [vmem:[#allocation50_spill] sm:$0xff] %v3809_v54  ;;  %5770 = vst [vmem:[#allocation52_spill] sm:$0xff] %v3813_v15  ;;  %v3825_v34 = vmul.f32 %v3765_v16, %v5775_v26  ;;  %v3829_v48 = vmul.f32 %v3765_v16, %v5777_v49  ;;  %v5779_v54 = vld [vmem:[#allocation17_spill] sm:$0xff]  ;;  %v5781_v15 = vld [vmem:[#allocation14_spill] sm:$0xff] }
 0x31b   : > { %5772 = vst [vmem:[#allocation58_spill] sm:$0xff] %v3817_v28  ;;  %5774 = vst [vmem:[#allocation55_spill] sm:$0xff] %v3821_v6  ;;  %v3833_v45 = vmul.f32 %v3765_v16, %v5779_v54  ;;  %v3837_v52 = vmul.f32 %v3765_v16, %v5781_v15  ;;  %v5783_v28 = vld [vmem:[#allocation16_spill] sm:$0xff]  ;;  %v5785_v6 = vld [vmem:[#allocation19_spill] sm:$0xff] }
 0x31c   : > { %5776 = vst [vmem:[#allocation57_spill] sm:$0xff] %v3825_v34  ;;  %5778 = vst [vmem:[#allocation76_spill] sm:$0xff] %v3829_v48  ;;  %v3841_v40 = vmul.f32 %v3765_v16, %v5783_v28  ;;  %v3845_v26 = vmul.f32 %v3765_v16, %v5785_v6  ;;  %v5787_v34 = vld [vmem:[#allocation21_spill] sm:$0xff]  ;;  %v5789_v48 = vld [vmem:[#allocation18_spill] sm:$0xff] }
 0x31d   : > { %5780 = vst [vmem:[#allocation62_spill] sm:$0xff] %v3833_v45  ;;  %5782 = vst [vmem:[#allocation59_spill] sm:$0xff] %v3837_v52  ;;  %v3849_v49 = vmul.f32 %v3765_v16, %v5787_v34  ;;  %v3853_v54 = vmul.f32 %v3765_v16, %v5789_v48  ;;  %v5791_v45 = vld [vmem:[#allocation20_spill] sm:$0xff]  ;;  %v5793_v52 = vld [vmem:[#allocation23_spill] sm:$0xff] }
 0x31e   : > { %5784 = vst [vmem:[#allocation61_spill] sm:$0xff] %v3841_v40  ;;  %5786 = vst [vmem:[#allocation3_spill] sm:$0xff] %v3845_v26  ;;  %v3857_v15 = vmul.f32 %v3765_v16, %v5791_v45  ;;  %v3861_v28 = vmul.f32 %v3765_v16, %v5793_v52  ;;  %v5795_v40 = vld [vmem:[#allocation25_spill] sm:$0xff]  ;;  %v5797_v26 = vld [vmem:[#allocation22_spill] sm:$0xff] }
 0x31f   : > { %5788 = vst [vmem:[#allocation5_spill] sm:$0xff] %v3849_v49  ;;  %5790 = vst [vmem:[#allocation2_spill] sm:$0xff] %v3853_v54  ;;  %v3865_v6 = vmul.f32 %v3765_v16, %v5795_v40  ;;  %v3869_v34 = vmul.f32 %v3765_v16, %v5797_v26  ;;  %v5799_v49 = vld [vmem:[#allocation24_spill] sm:$0xff]  ;;  %v5801_v54 = vld [vmem:[#allocation27_spill] sm:$0xff] }
 0x320   : > { %5792 = vst [vmem:[#allocation4_spill] sm:$0xff] %v3857_v15  ;;  %5794 = vst [vmem:[#allocation7_spill] sm:$0xff] %v3861_v28  ;;  %v3873_v48 = vmul.f32 %v3765_v16, %v5799_v49  ;;  %v3877_v45 = vmul.f32 %v3765_v16, %v5801_v54  ;;  %v5803_v15 = vld [vmem:[#allocation29_spill] sm:$0xff]  ;;  %v5805_v28 = vld [vmem:[#allocation26_spill] sm:$0xff] }
 0x321   : > { %5796 = vst [vmem:[#allocation9_spill] sm:$0xff] %v3865_v6  ;;  %5798 = vst [vmem:[#allocation6_spill] sm:$0xff] %v3869_v34  ;;  %v3881_v52 = vmul.f32 %v3765_v16, %v5803_v15  ;;  %v3885_v40 = vmul.f32 %v3765_v16, %v5805_v28  ;;  %v5807_v6 = vld [vmem:[#allocation28_spill] sm:$0xff]  ;;  %v5809_v34 = vld [vmem:[#allocation31_spill] sm:$0xff] }
 0x322   : > { %5800 = vst [vmem:[#allocation8_spill] sm:$0xff] %v3873_v48  ;;  %5802 = vst [vmem:[#allocation11_spill] sm:$0xff] %v3877_v45  ;;  %v3889_v26 = vmul.f32 %v3765_v16, %v5807_v6  ;;  %v3893_v49 = vmul.f32 %v3765_v16, %v5809_v34  ;;  %v5811_v48 = vld [vmem:[#allocation33_spill] sm:$0xff]  ;;  %v5813_v45 = vld [vmem:[#allocation30_spill] sm:$0xff] }
 0x323   : > { %5804 = vst [vmem:[#allocation13_spill] sm:$0xff] %v3881_v52  ;;  %5806 = vst [vmem:[#allocation10_spill] sm:$0xff] %v3885_v40  ;;  %v3897_v54 = vmul.f32 %v3765_v16, %v5811_v48  ;;  %v3901_v15 = vmul.f32 %v3765_v16, %v5813_v45  ;;  %v5815_v52 = vld [vmem:[#allocation32_spill] sm:$0xff]  ;;  %v5817_v40 = vld [vmem:[#allocation35_spill] sm:$0xff] }
 0x324   : > { %5808 = vst [vmem:[#allocation12_spill] sm:$0xff] %v3889_v26  ;;  %5810 = vst [vmem:[#allocation15_spill] sm:$0xff] %v3893_v49  ;;  %v3905_v28 = vmul.f32 %v3765_v16, %v5815_v52  ;;  %v3909_v6 = vmul.f32 %v3765_v16, %v5817_v40  ;;  %v5819_v26 = vld [vmem:[#allocation37_spill] sm:$0xff]  ;;  %v5821_v49 = vld [vmem:[#allocation34_spill] sm:$0xff] }
 0x325   : > { %5812 = vst [vmem:[#allocation17_spill] sm:$0xff] %v3897_v54  ;;  %5814 = vst [vmem:[#allocation14_spill] sm:$0xff] %v3901_v15  ;;  %v3913_v34 = vmul.f32 %v3765_v16, %v5819_v26  ;;  %v3917_v48 = vmul.f32 %v3765_v16, %v5821_v49  ;;  %v5822_v54 = vld [vmem:[#allocation36_spill] sm:$0xff]  ;;  %v5824_v15 = vld [vmem:[#allocation39_spill] sm:$0xff] }
 0x326   : > { %5816 = vst [vmem:[#allocation16_spill] sm:$0xff] %v3905_v28  ;;  %5818 = vst [vmem:[#allocation19_spill] sm:$0xff] %v3909_v6  ;;  %v3921_v45 = vmul.f32 %v3765_v16, %v5822_v54  ;;  %v3925_v52 = vmul.f32 %v3765_v16, %v5824_v15  ;;  %v5825_v28 = vld [vmem:[#allocation41_spill] sm:$0xff]  ;;  %v5826_v6 = vld [vmem:[#allocation38_spill] sm:$0xff]  ;;  %v3941_v54 = vmul.f32 %v3765_v16, %v5732_v57 }
 0x327   : > { %5820 = vst [vmem:[#allocation21_spill] sm:$0xff] %v3913_v34  ;;  %v3929_v40 = vmul.f32 %v3765_v16, %v5825_v28  ;;  %v3933_v26 = vmul.f32 %v3765_v16, %v5826_v6  ;;  %v5827_v34 = vld [vmem:[#allocation40_spill] sm:$0xff]  ;;  %v3949_v28 = vmul.f32 %v3765_v16, %v5734_v36  ;;  %v3953_v6 = vmul.f32 %v3765_v16, %v5735_v21 }
 0x328   : > { %5823 = vst [vmem:[#allocation18_spill] sm:$0xff] %v3921_v45  ;;  %v3937_v49 = vmul.f32 %v3765_v16, %v5827_v34  ;;  %v5828_v45 = vld [vmem:[#allocation47_spill] sm:$0xff]  ;;  %v3957_v34 = vmul.f32 %v3765_v16, %v5736_v33  ;;  %v3961_v57 = vmul.f32 %v3765_v16, %v3292_v12  ;;  %v3969_v36 = vmul.f32 %v3765_v16, %v3300_v39 }
 0x329   : > { %v3945_v15 = vmul.f32 %v3765_v16, %v5828_v45  ;;  %v3965_v45 = vmul.f32 %v3765_v16, %v5737_v37  ;;  %v3973_v21 = vmul.f32 %v3765_v16, %v3304_v63  ;;  %v3977_v33 = vmul.f32 %v3765_v16, %v3308_v22 }
 0x32a   : > { %v3981_v12 = vmul.f32 %v3765_v16, %v3312_v14  ;;  %v3985_v37 = vmul.f32 %v3765_v16, %v3316_v30  ;;  %v3989_v39 = vmul.f32 %v3765_v16, %v3320_v27  ;;  %v3993_v63 = vmul.f32 %v3765_v16, %v3324_v0 }
 0x32b   : > { %v3997_v22 = vmul.f32 %v3765_v16, %v3328_v2  ;;  %v4001_v14 = vmul.f32 %v3765_v16, %v3332_v3  ;;  %v4005_v30 = vmul.f32 %v3765_v16, %v3336_v58  ;;  %v4009_v27 = vmul.f32 %v3765_v16, %v3340_v10 }
 0x32c   : > { %v4013_v0 = vmul.f32 %v3765_v16, %v3344_v7  ;;  %v4017_v2 = vmul.f32 %v3765_v16, %v3348_v11  ;;  %v4021_v3 = vmul.f32 %v3765_v16, %v3352_v5  ;;  %v4025_v58 = vmul.f32 %v3765_v16, %v3356_v8 }
 0x32d   : > { %v4029_v10 = vmul.f32 %v3765_v16, %v3360_v19  ;;  %v4033_v7 = vmul.f32 %v3765_v16, %v3364_v23  ;;  %v4037_v11 = vmul.f32 %v3765_v16, %v3368_v17  ;;  %v4041_v5 = vmul.f32 %v3765_v16, %v3372_v20 }
 0x32e   : > { %v4045_v8 = vmul.f32 %v3765_v16, %v3376_v31  ;;  %v4049_v19 = vmul.f32 %v3765_v16, %v3380_v35  ;;  %v4053_v23 = vmul.f32 %v3765_v16, %v3384_v29  ;;  %v4057_v17 = vmul.f32 %v3765_v16, %v3388_v32 }
 0x32f   : > { %v4061_v20 = vmul.f32 %v3765_v16, %v3392_v43  ;;  %v4065_v31 = vmul.f32 %v3765_v16, %v3396_v47  ;;  %v4069_v35 = vmul.f32 %v3765_v16, %v3400_v41  ;;  %v4073_v29 = vmul.f32 %v3765_v16, %v3404_v44 }
 0x330   : > { %v4077_v32 = vmul.f32 %v3765_v16, %v3408_v55  ;;  %v4081_v43 = vmul.f32 %v3765_v16, %v3412_v59  ;;  %v4085_v47 = vmul.f32 %v3765_v16, %v3416_v53  ;;  %v4089_v41 = vmul.f32 %v3765_v16, %v3420_v56 }
 0x331   : > { %v4093_v44 = vmul.f32 %v3765_v16, %v3424_v13  ;;  %v4097_v55 = vmul.f32 %v3765_v16, %v3428_v25  ;;  %v4113_v13 = vmul.f32 %v3765_v16, %v3444_v61  ;;  %v4117_v25 = vmul.f32 %v3765_v16, %v3448_v42 }
 0x332   : > { %5829 = vst [vmem:[#allocation20_spill] sm:$0xff] %v4077_v32  ;;  %5830 = vst [vmem:[#allocation23_spill] sm:$0xff] %v4081_v43  ;;  %v5832_v32 = vld [vmem:[#allocation49_spill] sm:$0xff]  ;;  %v5833_v43 = vld [vmem:[#allocation51_spill] sm:$0xff] }
 0x333   : > { %5831 = vst [vmem:[#allocation25_spill] sm:$0xff] %v4085_v47  ;;  %v4101_v59 = vmul.f32 %v3765_v16, %v5832_v32  ;;  %v4105_v53 = vmul.f32 %v3765_v16, %v5833_v43  ;;  %v5835_v47 = vld [vmem:[#allocation56_spill] sm:$0xff]  ;;  %5837 = vst [vmem:[#allocation27_spill] sm:$0xff] %v4113_v13  ;;  %v4121_v32 = vmul.f32 %v3765_v16, %v5738_v38  ;;  %v5844_v13 = vld [vmem:[#allocation65_spill] sm:$0xff] }
 0x334   : > { %v4109_v56 = vmul.f32 %v3765_v16, %v5835_v47  ;;  %5838 = vst [vmem:[#allocation29_spill] sm:$0xff] %v4117_v25  ;;  %v4125_v43 = vmul.f32 %v3765_v16, %v5739_v9  ;;  %v4129_v47 = vmul.f32 %v3765_v16, %v5740_v50  ;;  %v4137_v42 = vmul.f32 %v3765_v16, %v5844_v13  ;;  %v5846_v25 = vld [vmem:[#allocation64_spill] sm:$0xff] }
 0x335   : > { %5834 = vst [vmem:[#allocation22_spill] sm:$0xff] %v4105_v53  ;;  %5839 = vst [vmem:[#allocation26_spill] sm:$0xff] %v4121_v32  ;;  %v4141_v38 = vmul.f32 %v3765_v16, %v5846_v25  ;;  %v5848_v32 = vld [vmem:[#allocation42_spill] sm:$0xff]  ;;  %v5869_v53 = vld [vmem:[#allocation73_spill] sm:$0xff] }
 0x336   : > { %5836 = vst [vmem:[#allocation24_spill] sm:$0xff] %v4109_v56  ;;  %5840 = vst [vmem:[#allocation28_spill] sm:$0xff] %v4125_v43  ;;  %v5842_v56 = vld [vmem:[#allocation63_spill] sm:$0xff]  ;;  %v4145_v9 = vmul.f32 %v3765_v16, %v5848_v32 }
 0x337   : > { %5841 = vst [vmem:[#allocation31_spill] sm:$0xff] %v4129_v47  ;;  %v4133_v61 = vmul.f32 %v3765_v16, %v5842_v56  ;;  %5845 = vst [vmem:[#allocation30_spill] sm:$0xff] %v4137_v42  ;;  %v5850_v43 = vld [vmem:[#allocation43_spill] sm:$0xff]  ;;  %v5852_v47 = vld [vmem:[#allocation48_spill] sm:$0xff] }
 0x338   : > { %5847 = vst [vmem:[#allocation32_spill] sm:$0xff] %v4141_v38  ;;  %5849 = vst [vmem:[#allocation35_spill] sm:$0xff] %v4145_v9  ;;  %v4149_v50 = vmul.f32 %v3765_v16, %v5850_v43  ;;  %v4153_v56 = vmul.f32 %v3765_v16, %v5852_v47  ;;  %v5856_v42 = vld [vmem:[#allocation69_spill] sm:$0xff]  ;;  %v5858_v38 = vld [vmem:[#allocation70_spill] sm:$0xff] }
 0x339   : > { %5843 = vst [vmem:[#allocation33_spill] sm:$0xff] %v4133_v61  ;;  %v5854_v61 = vld [vmem:[#allocation68_spill] sm:$0xff]  ;;  %v4161_v25 = vmul.f32 %v3765_v16, %v5856_v42  ;;  %v4165_v32 = vmul.f32 %v3765_v16, %v5858_v38  ;;  %v4170_v43 = vld [vmem:[%s5342_s2] ss:$0 sm:$0xff] }
 0x33a   : > { %5851 = vst [vmem:[#allocation37_spill] sm:$0xff] %v4149_v50  ;;  %5853 = vst [vmem:[#allocation34_spill] sm:$0xff] %v4153_v56  ;;  %v4157_v13 = vmul.f32 %v3765_v16, %v5854_v61  ;;  %v5860_v50 = vld [vmem:[#allocation71_spill] sm:$0xff]  ;;  %v5862_v56 = vld [vmem:[#allocation72_spill] sm:$0xff] }
 0x33b   : > { %5857 = vst [vmem:[#allocation39_spill] sm:$0xff] %v4161_v25  ;;  %5859 = vst [vmem:[#allocation41_spill] sm:$0xff] %v4165_v32  ;;  %v4174_v47 = vmul.f32 %v3765_v16, %v5860_v50  ;;  %v4178_v61 = vmul.f32 %v3765_v16, %v5862_v56  ;;  %v5866_v25 = vld [vmem:[#allocation54_spill] sm:$0xff]  ;;  %v5867_v32 = vld [vmem:[#allocation60_spill] sm:$0xff]  ;;  %v4194_v50 = vmul.f32 %v3765_v16, %v5869_v53 }
 0x33c   : > { %5855 = vst [vmem:[#allocation36_spill] sm:$0xff] %v4157_v13  ;;  %v5864_v13 = vld [vmem:[#allocation53_spill] sm:$0xff]  ;;  %v4186_v38 = vmul.f32 %v3765_v16, %v5866_v25  ;;  %v4190_v9 = vmul.f32 %v3765_v16, %v5867_v32  ;;  %v4210_v32 = vmul.f32 %v3765_v16, %v5753_v51  ;;  %v4230_v51 = vmul.f32 %v4170_v43, %v3781_v1 }
 0x33d   : > { %5861 = vst [vmem:[#allocation38_spill] sm:$0xff] %v4174_v47  ;;  %5863 = vst [vmem:[#allocation40_spill] sm:$0xff] %v4178_v61  ;;  %v4182_v42 = vmul.f32 %v3765_v16, %v5864_v13  ;;  %v5870_v47 = vld [vmem:[#allocation74_spill] sm:$0xff]  ;;  %v5871_v61 = vld [vmem:[#allocation75_spill] sm:$0xff] }
 0x33e   : > { %5868 = vst [vmem:[#allocation49_spill] sm:$0xff] %v4190_v9  ;;  %v4198_v56 = vmul.f32 %v3765_v16, %v5870_v47  ;;  %v4202_v13 = vmul.f32 %v3765_v16, %v5871_v61  ;;  %v5873_v9 = vld [vmem:[#allocation66_spill] sm:$0xff]  ;;  %v4218_v47 = vmul.f32 %v4170_v43, %v3769_v18  ;;  %v4222_v61 = vmul.f32 %v4170_v43, %v3773_v24 }
 0x33f   : > { %5865 = vst [vmem:[#allocation47_spill] sm:$0xff] %v4182_v42  ;;  %v5872_v42 = vld [vmem:[#allocation67_spill] sm:$0xff]  ;;  %v4214_v53 = vmul.f32 %v3765_v16, %v5873_v9  ;;  %5875 = vst [vmem:[#allocation56_spill] sm:$0xff] %v4230_v51  ;;  %v4238_v18 = vmul.f32 %v4170_v43, %v3789_v62  ;;  %v4242_v24 = vmul.f32 %v4170_v43, %v3793_v60  ;;  %v5879_v9 = vld [vmem:[#allocation45_spill] sm:$0xff] }
 0x340   : > { %v4206_v25 = vmul.f32 %v3765_v16, %v5872_v42  ;;  %v4226_v42 = vmul.f32 %v4170_v43, %v3777_v46  ;;  %v4234_v16 = vmul.f32 %v4170_v43, %v3785_v4  ;;  %v4246_v46 = vmul.f32 %v4170_v43, %v5879_v9  ;;  %v5883_v51 = vld [vmem:[#allocation46_spill] sm:$0xff] }
 0x341   : > { %5877 = vst [vmem:[#allocation65_spill] sm:$0xff] %v4238_v18  ;;  %5878 = vst [vmem:[#allocation64_spill] sm:$0xff] %v4242_v24  ;;  %v4254_v4 = vmul.f32 %v4170_v43, %v5883_v51  ;;  %v5887_v18 = vld [vmem:[#allocation52_spill] sm:$0xff]  ;;  %v5889_v24 = vld [vmem:[#allocation58_spill] sm:$0xff] }
 0x342   : > { %5874 = vst [vmem:[#allocation51_spill] sm:$0xff] %v4226_v42  ;;  %5876 = vst [vmem:[#allocation63_spill] sm:$0xff] %v4234_v16  ;;  %v5881_v42 = vld [vmem:[#allocation44_spill] sm:$0xff]  ;;  %v5885_v16 = vld [vmem:[#allocation50_spill] sm:$0xff]  ;;  %v4262_v60 = vmul.f32 %v4170_v43, %v5887_v18  ;;  %v4266_v9 = vmul.f32 %v4170_v43, %v5889_v24 }
 0x343   : > { %5880 = vst [vmem:[#allocation42_spill] sm:$0xff] %v4246_v46  ;;  %v4250_v1 = vmul.f32 %v4170_v43, %v5881_v42  ;;  %5884 = vst [vmem:[#allocation48_spill] sm:$0xff] %v4254_v4  ;;  %v4258_v62 = vmul.f32 %v4170_v43, %v5885_v16  ;;  %v5891_v46 = vld [vmem:[#allocation55_spill] sm:$0xff]  ;;  %v5895_v4 = vld [vmem:[#allocation76_spill] sm:$0xff] }
 0x344   : > { %5888 = vst [vmem:[#allocation69_spill] sm:$0xff] %v4262_v60  ;;  %5890 = vst [vmem:[#allocation70_spill] sm:$0xff] %v4266_v9  ;;  %v4270_v42 = vmul.f32 %v4170_v43, %v5891_v46  ;;  %v4278_v16 = vmul.f32 %v4170_v43, %v5895_v4  ;;  %v5899_v60 = vld [vmem:[#allocation59_spill] sm:$0xff]  ;;  %v5901_v9 = vld [vmem:[#allocation61_spill] sm:$0xff] }
 0x345   : > { %5882 = vst [vmem:[#allocation43_spill] sm:$0xff] %v4250_v1  ;;  %5886 = vst [vmem:[#allocation68_spill] sm:$0xff] %v4258_v62  ;;  %v5893_v1 = vld [vmem:[#allocation57_spill] sm:$0xff]  ;;  %v5897_v62 = vld [vmem:[#allocation62_spill] sm:$0xff]  ;;  %v4286_v24 = vmul.f32 %v4170_v43, %v5899_v60  ;;  %v4290_v46 = vmul.f32 %v4170_v43, %v5901_v9 }
 0x346   : > { %5892 = vst [vmem:[#allocation71_spill] sm:$0xff] %v4270_v42  ;;  %v4274_v51 = vmul.f32 %v4170_v43, %v5893_v1  ;;  %5896 = vst [vmem:[#allocation53_spill] sm:$0xff] %v4278_v16  ;;  %v4282_v18 = vmul.f32 %v4170_v43, %v5897_v62  ;;  %v5903_v42 = vld [vmem:[#allocation3_spill] sm:$0xff]  ;;  %v5907_v16 = vld [vmem:[#allocation2_spill] sm:$0xff] }
 0x347   : > { %5900 = vst [vmem:[#allocation60_spill] sm:$0xff] %v4286_v24  ;;  %5902 = vst [vmem:[#allocation73_spill] sm:$0xff] %v4290_v46  ;;  %v4294_v1 = vmul.f32 %v4170_v43, %v5903_v42  ;;  %v4302_v62 = vmul.f32 %v4170_v43, %v5907_v16  ;;  %v5911_v24 = vld [vmem:[#allocation7_spill] sm:$0xff]  ;;  %v5913_v46 = vld [vmem:[#allocation9_spill] sm:$0xff] }
 0x348   : > { %5894 = vst [vmem:[#allocation72_spill] sm:$0xff] %v4274_v51  ;;  %5898 = vst [vmem:[#allocation54_spill] sm:$0xff] %v4282_v18  ;;  %v5905_v51 = vld [vmem:[#allocation5_spill] sm:$0xff]  ;;  %v5909_v18 = vld [vmem:[#allocation4_spill] sm:$0xff]  ;;  %v4310_v9 = vmul.f32 %v4170_v43, %v5911_v24  ;;  %v4314_v42 = vmul.f32 %v4170_v43, %v5913_v46 }
 0x349   : > { %5904 = vst [vmem:[#allocation74_spill] sm:$0xff] %v4294_v1  ;;  %v4298_v4 = vmul.f32 %v4170_v43, %v5905_v51  ;;  %5908 = vst [vmem:[#allocation67_spill] sm:$0xff] %v4302_v62  ;;  %v4306_v60 = vmul.f32 %v4170_v43, %v5909_v18  ;;  %v5915_v1 = vld [vmem:[#allocation6_spill] sm:$0xff]  ;;  %v5919_v62 = vld [vmem:[#allocation11_spill] sm:$0xff] }
 0x34a   : > { %5912 = vst [vmem:[#allocation45_spill] sm:$0xff] %v4310_v9  ;;  %5914 = vst [vmem:[#allocation44_spill] sm:$0xff] %v4314_v42  ;;  %v4318_v51 = vmul.f32 %v4170_v43, %v5915_v1  ;;  %v4326_v18 = vmul.f32 %v4170_v43, %v5919_v62  ;;  %v5923_v9 = vld [vmem:[#allocation10_spill] sm:$0xff]  ;;  %v5925_v42 = vld [vmem:[#allocation12_spill] sm:$0xff] }
 0x34b   : > { %5906 = vst [vmem:[#allocation75_spill] sm:$0xff] %v4298_v4  ;;  %5910 = vst [vmem:[#allocation66_spill] sm:$0xff] %v4306_v60  ;;  %v5917_v4 = vld [vmem:[#allocation8_spill] sm:$0xff]  ;;  %v5921_v60 = vld [vmem:[#allocation13_spill] sm:$0xff]  ;;  %v4334_v46 = vmul.f32 %v4170_v43, %v5923_v9  ;;  %v4338_v1 = vmul.f32 %v4170_v43, %v5925_v42 }
 0x34c   : > { %5916 = vst [vmem:[#allocation46_spill] sm:$0xff] %v4318_v51  ;;  %v4322_v16 = vmul.f32 %v4170_v43, %v5917_v4  ;;  %5920 = vst [vmem:[#allocation52_spill] sm:$0xff] %v4326_v18  ;;  %v4330_v24 = vmul.f32 %v4170_v43, %v5921_v60  ;;  %v5927_v51 = vld [vmem:[#allocation15_spill] sm:$0xff]  ;;  %v5930_v18 = vld [vmem:[#allocation14_spill] sm:$0xff] }
 0x34d   : > { %5924 = vst [vmem:[#allocation55_spill] sm:$0xff] %v4334_v46  ;;  %5926 = vst [vmem:[#allocation57_spill] sm:$0xff] %v4338_v1  ;;  %v4342_v4 = vmul.f32 %v4170_v43, %v5927_v51  ;;  %v4350_v60 = vmul.f32 %v4170_v43, %v5930_v18  ;;  %v5932_v46 = vld [vmem:[#allocation19_spill] sm:$0xff]  ;;  %v5933_v1 = vld [vmem:[#allocation21_spill] sm:$0xff] }
 0x34e   : > { %5918 = vst [vmem:[#allocation50_spill] sm:$0xff] %v4322_v16  ;;  %5922 = vst [vmem:[#allocation58_spill] sm:$0xff] %v4330_v24  ;;  %v5928_v16 = vld [vmem:[#allocation17_spill] sm:$0xff]  ;;  %v5931_v24 = vld [vmem:[#allocation16_spill] sm:$0xff]  ;;  %v4358_v42 = vmul.f32 %v4170_v43, %v5932_v46  ;;  %v4362_v51 = vmul.f32 %v4170_v43, %v5933_v1  ;;  %v4378_v46 = vmul.f32 %v4170_v43, %v3929_v40 }
 0x34f   : > { %v4346_v62 = vmul.f32 %v4170_v43, %v5928_v16  ;;  %v4354_v9 = vmul.f32 %v4170_v43, %v5931_v24  ;;  %v4366_v16 = vmul.f32 %v4170_v43, %v3917_v48  ;;  %v4374_v24 = vmul.f32 %v4170_v43, %v3925_v52 }
 0x350   : > { %v4382_v1 = vmul.f32 %v4170_v43, %v3933_v26  ;;  %v4386_v48 = vmul.f32 %v4170_v43, %v3937_v49  ;;  %v4394_v52 = vmul.f32 %v4170_v43, %v3945_v15  ;;  %v4398_v40 = vmul.f32 %v4170_v43, %v3949_v28 }
 0x351   : > { %5929 = vst [vmem:[#allocation76_spill] sm:$0xff] %v4346_v62  ;;  %v5934_v62 = vld [vmem:[#allocation18_spill] sm:$0xff]  ;;  %v4402_v26 = vmul.f32 %v4170_v43, %v3953_v6  ;;  %v4406_v49 = vmul.f32 %v4170_v43, %v3957_v34  ;;  %v4414_v15 = vmul.f32 %v4170_v43, %v3965_v45  ;;  %v4418_v28 = vmul.f32 %v4170_v43, %v3969_v36 }
 0x352   : > { %v4370_v18 = vmul.f32 %v4170_v43, %v5934_v62  ;;  %v4390_v62 = vmul.f32 %v4170_v43, %v3941_v54  ;;  %v4410_v54 = vmul.f32 %v4170_v43, %v3961_v57  ;;  %v4422_v6 = vmul.f32 %v4170_v43, %v3973_v21 }
 0x353   : > { %v4426_v34 = vmul.f32 %v4170_v43, %v3977_v33  ;;  %v4430_v57 = vmul.f32 %v4170_v43, %v3981_v12  ;;  %v4434_v45 = vmul.f32 %v4170_v43, %v3985_v37  ;;  %v4438_v36 = vmul.f32 %v4170_v43, %v3989_v39 }
 0x354   : > { %v4442_v21 = vmul.f32 %v4170_v43, %v3993_v63  ;;  %v4446_v33 = vmul.f32 %v4170_v43, %v3997_v22  ;;  %v4450_v12 = vmul.f32 %v4170_v43, %v4001_v14  ;;  %v4454_v37 = vmul.f32 %v4170_v43, %v4005_v30 }
 0x355   : > { %v4458_v39 = vmul.f32 %v4170_v43, %v4009_v27  ;;  %v4462_v63 = vmul.f32 %v4170_v43, %v4013_v0  ;;  %v4466_v22 = vmul.f32 %v4170_v43, %v4017_v2  ;;  %v4470_v14 = vmul.f32 %v4170_v43, %v4021_v3 }
 0x356   : > { %v4474_v30 = vmul.f32 %v4170_v43, %v4025_v58  ;;  %v4478_v27 = vmul.f32 %v4170_v43, %v4029_v10  ;;  %v4482_v0 = vmul.f32 %v4170_v43, %v4033_v7  ;;  %v4486_v2 = vmul.f32 %v4170_v43, %v4037_v11 }
 0x357   : > { %v4490_v3 = vmul.f32 %v4170_v43, %v4041_v5  ;;  %v4494_v58 = vmul.f32 %v4170_v43, %v4045_v8  ;;  %v4498_v10 = vmul.f32 %v4170_v43, %v4049_v19  ;;  %v4502_v7 = vmul.f32 %v4170_v43, %v4053_v23 }
 0x358   : > { %v4506_v11 = vmul.f32 %v4170_v43, %v4057_v17  ;;  %v4510_v5 = vmul.f32 %v4170_v43, %v4061_v20  ;;  %v4514_v8 = vmul.f32 %v4170_v43, %v4065_v31  ;;  %v4518_v19 = vmul.f32 %v4170_v43, %v4069_v35 }
 0x359   : > { %5935 = vst [vmem:[#allocation62_spill] sm:$0xff] %v4502_v7  ;;  %v4522_v23 = vmul.f32 %v4170_v43, %v4073_v29  ;;  %v5938_v7 = vld [vmem:[#allocation20_spill] sm:$0xff]  ;;  %v4538_v35 = vmul.f32 %v4170_v43, %v4089_v41  ;;  %v4542_v29 = vmul.f32 %v4170_v43, %v4093_v44 }
 0x35a   : > { %5936 = vst [vmem:[#allocation59_spill] sm:$0xff] %v4506_v11  ;;  %5937 = vst [vmem:[#allocation61_spill] sm:$0xff] %v4510_v5  ;;  %v4526_v17 = vmul.f32 %v4170_v43, %v5938_v7  ;;  %v5939_v11 = vld [vmem:[#allocation23_spill] sm:$0xff]  ;;  %v5941_v5 = vld [vmem:[#allocation25_spill] sm:$0xff]  ;;  %v4546_v7 = vmul.f32 %v4170_v43, %v4097_v55 }
 0x35b   : > { %v4530_v20 = vmul.f32 %v4170_v43, %v5939_v11  ;;  %v4534_v31 = vmul.f32 %v4170_v43, %v5941_v5  ;;  %5943 = vst [vmem:[#allocation2_spill] sm:$0xff] %v4538_v35  ;;  %5944 = vst [vmem:[#allocation4_spill] sm:$0xff] %v4542_v29  ;;  %v4550_v11 = vmul.f32 %v4170_v43, %v4101_v59  ;;  %v5951_v35 = vld [vmem:[#allocation27_spill] sm:$0xff]  ;;  %v5953_v29 = vld [vmem:[#allocation29_spill] sm:$0xff] }
 0x35c   : > { %5945 = vst [vmem:[#allocation7_spill] sm:$0xff] %v4546_v7  ;;  %v4562_v44 = vmul.f32 %v4170_v43, %v5951_v35  ;;  %v4566_v55 = vmul.f32 %v4170_v43, %v5953_v29  ;;  %v5955_v7 = vld [vmem:[#allocation26_spill] sm:$0xff] }
 0x35d   : > { %5940 = vst [vmem:[#allocation3_spill] sm:$0xff] %v4530_v20  ;;  %5942 = vst [vmem:[#allocation5_spill] sm:$0xff] %v4534_v31  ;;  %v5947_v20 = vld [vmem:[#allocation22_spill] sm:$0xff]  ;;  %v5949_v31 = vld [vmem:[#allocation24_spill] sm:$0xff]  ;;  %v4570_v59 = vmul.f32 %v4170_v43, %v5955_v7 }
 0x35e   : > { %5946 = vst [vmem:[#allocation9_spill] sm:$0xff] %v4550_v11  ;;  %v4554_v5 = vmul.f32 %v4170_v43, %v5947_v20  ;;  %v4558_v41 = vmul.f32 %v4170_v43, %v5949_v31  ;;  %5952 = vst [vmem:[#allocation11_spill] sm:$0xff] %v4562_v44  ;;  %v5957_v11 = vld [vmem:[#allocation28_spill] sm:$0xff]  ;;  %v5963_v44 = vld [vmem:[#allocation30_spill] sm:$0xff] }
 0x35f   : > { %5954 = vst [vmem:[#allocation13_spill] sm:$0xff] %v4566_v55  ;;  %5956 = vst [vmem:[#allocation10_spill] sm:$0xff] %v4570_v59  ;;  %v4574_v20 = vmul.f32 %v4170_v43, %v5957_v11  ;;  %v4586_v29 = vmul.f32 %v4170_v43, %v5963_v44  ;;  %v5965_v55 = vld [vmem:[#allocation32_spill] sm:$0xff]  ;;  %v5967_v59 = vld [vmem:[#allocation35_spill] sm:$0xff] }
 0x360   : > { %5948 = vst [vmem:[#allocation6_spill] sm:$0xff] %v4554_v5  ;;  %5950 = vst [vmem:[#allocation8_spill] sm:$0xff] %v4558_v41  ;;  %v5959_v5 = vld [vmem:[#allocation31_spill] sm:$0xff]  ;;  %v5961_v41 = vld [vmem:[#allocation33_spill] sm:$0xff]  ;;  %v4590_v7 = vmul.f32 %v4170_v43, %v5965_v55  ;;  %v4594_v11 = vmul.f32 %v4170_v43, %v5967_v59 }
 0x361   : > { %5958 = vst [vmem:[#allocation12_spill] sm:$0xff] %v4574_v20  ;;  %v4578_v31 = vmul.f32 %v4170_v43, %v5959_v5  ;;  %v4582_v35 = vmul.f32 %v4170_v43, %v5961_v41  ;;  %5964 = vst [vmem:[#allocation14_spill] sm:$0xff] %v4586_v29  ;;  %v5969_v20 = vld [vmem:[#allocation37_spill] sm:$0xff]  ;;  %v5974_v29 = vld [vmem:[#allocation39_spill] sm:$0xff] }
 0x362   : > { %5966 = vst [vmem:[#allocation16_spill] sm:$0xff] %v4590_v7  ;;  %5968 = vst [vmem:[#allocation19_spill] sm:$0xff] %v4594_v11  ;;  %v4598_v5 = vmul.f32 %v4170_v43, %v5969_v20  ;;  %v4610_v55 = vmul.f32 %v4170_v43, %v5974_v29  ;;  %v5975_v7 = vld [vmem:[#allocation41_spill] sm:$0xff]  ;;  %v5977_v11 = vld [vmem:[#allocation38_spill] sm:$0xff] }
 0x363   : > { %5960 = vst [vmem:[#allocation15_spill] sm:$0xff] %v4578_v31  ;;  %5962 = vst [vmem:[#allocation17_spill] sm:$0xff] %v4582_v35  ;;  %v5970_v31 = vld [vmem:[#allocation34_spill] sm:$0xff]  ;;  %v5972_v35 = vld [vmem:[#allocation36_spill] sm:$0xff]  ;;  %v4614_v59 = vmul.f32 %v4170_v43, %v5975_v7  ;;  %v4618_v20 = vmul.f32 %v4170_v43, %v5977_v11  ;;  %v4635_v7 = vmul.f32 %v4170_v43, %v4186_v38 }
 0x364   : > { %v4602_v41 = vmul.f32 %v4170_v43, %v5970_v31  ;;  %v4606_v44 = vmul.f32 %v4170_v43, %v5972_v35  ;;  %v4623_v31 = vld [vmem:[%s5343_s3] ss:$0 sm:$0xff]  ;;  %v4655_v38 = vmul.f32 %v4170_v43, %v4206_v25 }
 0x365   : > { %5976 = vst [vmem:[#allocation20_spill] sm:$0xff] %v4614_v59  ;;  %5978 = vst [vmem:[#allocation23_spill] sm:$0xff] %v4618_v20  ;;  %v5981_v59 = vld [vmem:[#allocation49_spill] sm:$0xff]  ;;  %v4643_v20 = vmul.f32 %v4170_v43, %v4194_v50  ;;  %v4663_v50 = vmul.f32 %v4170_v43, %v4214_v53 }
 0x366   : > { %5971 = vst [vmem:[#allocation21_spill] sm:$0xff] %v4602_v41  ;;  %5973 = vst [vmem:[#allocation18_spill] sm:$0xff] %v4606_v44  ;;  %v5979_v41 = vld [vmem:[#allocation40_spill] sm:$0xff]  ;;  %v5980_v44 = vld [vmem:[#allocation47_spill] sm:$0xff]  ;;  %v4639_v11 = vmul.f32 %v4170_v43, %v5981_v59  ;;  %v4659_v59 = vmul.f32 %v4170_v43, %v4210_v32 }
 0x367   : > { %v4627_v35 = vmul.f32 %v4170_v43, %v5979_v41  ;;  %v4631_v29 = vmul.f32 %v4170_v43, %v5980_v44  ;;  %v4647_v41 = vmul.f32 %v4170_v43, %v4198_v56  ;;  %v4651_v44 = vmul.f32 %v4170_v43, %v4202_v13  ;;  %5983 = vst [vmem:[#allocation22_spill] sm:$0xff] %v4655_v38  ;;  %v5989_v38 = vld [vmem:[#allocation56_spill] sm:$0xff]  ;;  %v5993_v53 = vld [vmem:[#allocation65_spill] sm:$0xff] }
 0x368   : > { %5984 = vst [vmem:[#allocation24_spill] sm:$0xff] %v4659_v59  ;;  %v4667_v56 = vadd.f32 %v4623_v31, %v4218_v47  ;;  %v4671_v13 = vadd.f32 %v4623_v31, %v4222_v61  ;;  %v4679_v32 = vadd.f32 %v4623_v31, %v5989_v38  ;;  %v5991_v59 = vld [vmem:[#allocation63_spill] sm:$0xff]  ;;  %v4687_v47 = vadd.f32 %v4623_v31, %v5993_v53 }
 0x369   : > { %5982 = vst [vmem:[#allocation25_spill] sm:$0xff] %v4651_v44  ;;  %v5987_v44 = vld [vmem:[#allocation51_spill] sm:$0xff]  ;;  %v4683_v43 = vadd.f32 %v4623_v31, %v5991_v59 }
 0x36a   : > { %5985 = vst [vmem:[#allocation27_spill] sm:$0xff] %v4667_v56  ;;  %5986 = vst [vmem:[#allocation29_spill] sm:$0xff] %v4671_v13  ;;  %v4675_v25 = vadd.f32 %v4623_v31, %v5987_v44  ;;  %v5995_v56 = vld [vmem:[#allocation64_spill] sm:$0xff]  ;;  %v5997_v13 = vld [vmem:[#allocation42_spill] sm:$0xff] }
 0x36b   : > { %5990 = vst [vmem:[#allocation28_spill] sm:$0xff] %v4679_v32  ;;  %5992 = vst [vmem:[#allocation31_spill] sm:$0xff] %v4683_v43  ;;  %v4691_v61 = vadd.f32 %v4623_v31, %v5995_v56  ;;  %v4695_v44 = vadd.f32 %v4623_v31, %v5997_v13  ;;  %v6001_v32 = vld [vmem:[#allocation48_spill] sm:$0xff] }
 0x36c   : > { %5988 = vst [vmem:[#allocation26_spill] sm:$0xff] %v4675_v25  ;;  %5994 = vst [vmem:[#allocation33_spill] sm:$0xff] %v4687_v47  ;;  %v5999_v25 = vld [vmem:[#allocation43_spill] sm:$0xff]  ;;  %v4703_v59 = vadd.f32 %v4623_v31, %v6001_v32  ;;  %v6003_v43 = vld [vmem:[#allocation68_spill] sm:$0xff] }
 0x36d   : > { %5996 = vst [vmem:[#allocation30_spill] sm:$0xff] %v4691_v61  ;;  %5998 = vst [vmem:[#allocation32_spill] sm:$0xff] %v4695_v44  ;;  %v4699_v38 = vadd.f32 %v4623_v31, %v5999_v25  ;;  %v4707_v53 = vadd.f32 %v4623_v31, %v6003_v43  ;;  %v6005_v47 = vld [vmem:[#allocation69_spill] sm:$0xff]  ;;  %v6007_v61 = vld [vmem:[#allocation70_spill] sm:$0xff] }
 0x36e   : > { %6002 = vst [vmem:[#allocation37_spill] sm:$0xff] %v4703_v59  ;;  %v4711_v56 = vadd.f32 %v4623_v31, %v6005_v47  ;;  %v4715_v13 = vadd.f32 %v4623_v31, %v6007_v61  ;;  %v6009_v44 = vld [vmem:[#allocation71_spill] sm:$0xff]  ;;  %v6013_v59 = vld [vmem:[#allocation53_spill] sm:$0xff] }
 0x36f   : > { %6000 = vst [vmem:[#allocation35_spill] sm:$0xff] %v4699_v38  ;;  %6004 = vst [vmem:[#allocation34_spill] sm:$0xff] %v4707_v53  ;;  %v4719_v25 = vadd.f32 %v4623_v31, %v6009_v44  ;;  %v6011_v38 = vld [vmem:[#allocation72_spill] sm:$0xff]  ;;  %v4727_v43 = vadd.f32 %v4623_v31, %v6013_v59  ;;  %v6015_v53 = vld [vmem:[#allocation54_spill] sm:$0xff] }
 0x370   : > { %6006 = vst [vmem:[#allocation36_spill] sm:$0xff] %v4711_v56  ;;  %6008 = vst [vmem:[#allocation39_spill] sm:$0xff] %v4715_v13  ;;  %v4723_v32 = vadd.f32 %v4623_v31, %v6011_v38  ;;  %v4731_v47 = vadd.f32 %v4623_v31, %v6015_v53  ;;  %v6017_v56 = vld [vmem:[#allocation60_spill] sm:$0xff]  ;;  %v6019_v13 = vld [vmem:[#allocation73_spill] sm:$0xff] }
 0x371   : > { %6010 = vst [vmem:[#allocation41_spill] sm:$0xff] %v4719_v25  ;;  %6014 = vst [vmem:[#allocation40_spill] sm:$0xff] %v4727_v43  ;;  %v4735_v61 = vadd.f32 %v4623_v31, %v6017_v56  ;;  %v4739_v44 = vadd.f32 %v4623_v31, %v6019_v13  ;;  %v6021_v25 = vld [vmem:[#allocation74_spill] sm:$0xff]  ;;  %v6025_v43 = vld [vmem:[#allocation67_spill] sm:$0xff] }
 0x372   : > { %6012 = vst [vmem:[#allocation38_spill] sm:$0xff] %v4723_v32  ;;  %6016 = vst [vmem:[#allocation47_spill] sm:$0xff] %v4731_v47  ;;  %v4743_v38 = vadd.f32 %v4623_v31, %v6021_v25  ;;  %v6023_v32 = vld [vmem:[#allocation75_spill] sm:$0xff]  ;;  %v4751_v53 = vadd.f32 %v4623_v31, %v6025_v43  ;;  %v6027_v47 = vld [vmem:[#allocation66_spill] sm:$0xff] }
 0x373   : > { %6018 = vst [vmem:[#allocation49_spill] sm:$0xff] %v4735_v61  ;;  %6020 = vst [vmem:[#allocation51_spill] sm:$0xff] %v4739_v44  ;;  %v4747_v59 = vadd.f32 %v4623_v31, %v6023_v32  ;;  %v4755_v56 = vadd.f32 %v4623_v31, %v6027_v47  ;;  %v6029_v61 = vld [vmem:[#allocation45_spill] sm:$0xff]  ;;  %v6031_v44 = vld [vmem:[#allocation44_spill] sm:$0xff] }
 0x374   : > { %6022 = vst [vmem:[#allocation56_spill] sm:$0xff] %v4743_v38  ;;  %6026 = vst [vmem:[#allocation65_spill] sm:$0xff] %v4751_v53  ;;  %v4759_v13 = vadd.f32 %v4623_v31, %v6029_v61  ;;  %v4763_v25 = vadd.f32 %v4623_v31, %v6031_v44  ;;  %v6033_v38 = vld [vmem:[#allocation46_spill] sm:$0xff]  ;;  %v6036_v53 = vld [vmem:[#allocation52_spill] sm:$0xff] }
 0x375   : > { %6024 = vst [vmem:[#allocation63_spill] sm:$0xff] %v4747_v59  ;;  %6028 = vst [vmem:[#allocation64_spill] sm:$0xff] %v4755_v56  ;;  %v4767_v32 = vadd.f32 %v4623_v31, %v6033_v38  ;;  %v6034_v59 = vld [vmem:[#allocation50_spill] sm:$0xff]  ;;  %v4775_v47 = vadd.f32 %v4623_v31, %v6036_v53 }
 0x376   : > { %6030 = vst [vmem:[#allocation42_spill] sm:$0xff] %v4759_v13  ;;  %6032 = vst [vmem:[#allocation43_spill] sm:$0xff] %v4763_v25  ;;  %v4771_v43 = vadd.f32 %v4623_v31, %v6034_v59  ;;  %v6037_v56 = vld [vmem:[#allocation58_spill] sm:$0xff]  ;;  %v6038_v13 = vld [vmem:[#allocation55_spill] sm:$0xff]  ;;  %v4791_v59 = vadd.f32 %v4623_v31, %v4342_v4  ;;  %v4811_v4 = vadd.f32 %v4623_v31, %v4362_v51 }
 0x377   : > { %v4779_v61 = vadd.f32 %v4623_v31, %v6037_v56  ;;  %v4783_v44 = vadd.f32 %v4623_v31, %v6038_v13  ;;  %v6039_v25 = vld [vmem:[#allocation57_spill] sm:$0xff]  ;;  %v4799_v56 = vadd.f32 %v4623_v31, %v4350_v60  ;;  %v4803_v13 = vadd.f32 %v4623_v31, %v4354_v9 }
 0x378   : > { %6035 = vst [vmem:[#allocation48_spill] sm:$0xff] %v4771_v43  ;;  %v4787_v38 = vadd.f32 %v4623_v31, %v6039_v25  ;;  %v6040_v43 = vld [vmem:[#allocation76_spill] sm:$0xff]  ;;  %v4807_v25 = vadd.f32 %v4623_v31, %v4358_v42  ;;  %v4819_v60 = vadd.f32 %v4623_v31, %v4370_v18  ;;  %v4823_v9 = vadd.f32 %v4623_v31, %v4374_v24 }
 0x379   : > { %v4795_v53 = vadd.f32 %v4623_v31, %v6040_v43  ;;  %v4815_v43 = vadd.f32 %v4623_v31, %v4366_v16  ;;  %v4827_v42 = vadd.f32 %v4623_v31, %v4378_v46  ;;  %v4831_v51 = vadd.f32 %v4623_v31, %v4382_v1 }
 0x37a   : > { %v4835_v16 = vadd.f32 %v4623_v31, %v4386_v48  ;;  %v4839_v18 = vadd.f32 %v4623_v31, %v4390_v62  ;;  %v4843_v24 = vadd.f32 %v4623_v31, %v4394_v52  ;;  %v4847_v46 = vadd.f32 %v4623_v31, %v4398_v40 }
 0x37b   : > { %v4851_v1 = vadd.f32 %v4623_v31, %v4402_v26  ;;  %v4855_v48 = vadd.f32 %v4623_v31, %v4406_v49  ;;  %v4859_v62 = vadd.f32 %v4623_v31, %v4410_v54  ;;  %v4863_v52 = vadd.f32 %v4623_v31, %v4414_v15 }
 0x37c   : > { %v4867_v40 = vadd.f32 %v4623_v31, %v4418_v28  ;;  %v4871_v26 = vadd.f32 %v4623_v31, %v4422_v6  ;;  %v4875_v49 = vadd.f32 %v4623_v31, %v4426_v34  ;;  %v4879_v54 = vadd.f32 %v4623_v31, %v4430_v57 }
 0x37d   : > { %v4883_v15 = vadd.f32 %v4623_v31, %v4434_v45  ;;  %v4887_v28 = vadd.f32 %v4623_v31, %v4438_v36  ;;  %v4891_v6 = vadd.f32 %v4623_v31, %v4442_v21  ;;  %v4895_v34 = vadd.f32 %v4623_v31, %v4446_v33 }
 0x37e   : > { %v4899_v57 = vadd.f32 %v4623_v31, %v4450_v12  ;;  %v4903_v45 = vadd.f32 %v4623_v31, %v4454_v37  ;;  %v4907_v36 = vadd.f32 %v4623_v31, %v4458_v39  ;;  %v4911_v21 = vadd.f32 %v4623_v31, %v4462_v63 }
 0x37f   : > { %v4915_v33 = vadd.f32 %v4623_v31, %v4466_v22  ;;  %v4919_v12 = vadd.f32 %v4623_v31, %v4470_v14  ;;  %v4923_v37 = vadd.f32 %v4623_v31, %v4474_v30  ;;  %v4927_v39 = vadd.f32 %v4623_v31, %v4478_v27 }
 0x380   : > { %v4931_v63 = vadd.f32 %v4623_v31, %v4482_v0  ;;  %v4935_v22 = vadd.f32 %v4623_v31, %v4486_v2  ;;  %v4939_v14 = vadd.f32 %v4623_v31, %v4490_v3  ;;  %v4943_v30 = vadd.f32 %v4623_v31, %v4494_v58 }
 0x381   : > { %6041 = vst [vmem:[#allocation68_spill] sm:$0xff] %v4927_v39  ;;  %v4947_v27 = vadd.f32 %v4623_v31, %v4498_v10  ;;  %v6044_v39 = vld [vmem:[#allocation62_spill] sm:$0xff]  ;;  %v4963_v58 = vadd.f32 %v4623_v31, %v4514_v8  ;;  %v4967_v10 = vadd.f32 %v4623_v31, %v4518_v19 }
 0x382   : > { %6042 = vst [vmem:[#allocation69_spill] sm:$0xff] %v4931_v63  ;;  %6043 = vst [vmem:[#allocation70_spill] sm:$0xff] %v4935_v22  ;;  %v4951_v0 = vadd.f32 %v4623_v31, %v6044_v39  ;;  %v6046_v63 = vld [vmem:[#allocation59_spill] sm:$0xff]  ;;  %v6048_v22 = vld [vmem:[#allocation61_spill] sm:$0xff]  ;;  %v4971_v39 = vadd.f32 %v4623_v31, %v4522_v23 }
 0x383   : > { %v4955_v2 = vadd.f32 %v4623_v31, %v6046_v63  ;;  %v4959_v3 = vadd.f32 %v4623_v31, %v6048_v22  ;;  %6050 = vst [vmem:[#allocation54_spill] sm:$0xff] %v4963_v58  ;;  %6051 = vst [vmem:[#allocation60_spill] sm:$0xff] %v4967_v10  ;;  %v4975_v63 = vadd.f32 %v4623_v31, %v4526_v17  ;;  %v6058_v58 = vld [vmem:[#allocation2_spill] sm:$0xff]  ;;  %v6060_v10 = vld [vmem:[#allocation4_spill] sm:$0xff] }
 0x384   : > { %6045 = vst [vmem:[#allocation71_spill] sm:$0xff] %v4951_v0  ;;  %6052 = vst [vmem:[#allocation73_spill] sm:$0xff] %v4971_v39  ;;  %v4987_v19 = vadd.f32 %v4623_v31, %v6058_v58  ;;  %v4991_v23 = vadd.f32 %v4623_v31, %v6060_v10  ;;  %v6062_v39 = vld [vmem:[#allocation7_spill] sm:$0xff] }
 0x385   : > { %6047 = vst [vmem:[#allocation72_spill] sm:$0xff] %v4955_v2  ;;  %6049 = vst [vmem:[#allocation53_spill] sm:$0xff] %v4959_v3  ;;  %v6054_v2 = vld [vmem:[#allocation3_spill] sm:$0xff]  ;;  %v6056_v3 = vld [vmem:[#allocation5_spill] sm:$0xff]  ;;  %v4995_v17 = vadd.f32 %v4623_v31, %v6062_v39 }
 0x386   : > { %6053 = vst [vmem:[#allocation74_spill] sm:$0xff] %v4975_v63  ;;  %v4979_v22 = vadd.f32 %v4623_v31, %v6054_v2  ;;  %v4983_v8 = vadd.f32 %v4623_v31, %v6056_v3  ;;  %6059 = vst [vmem:[#allocation66_spill] sm:$0xff] %v4987_v19  ;;  %v6064_v63 = vld [vmem:[#allocation9_spill] sm:$0xff]  ;;  %v6070_v19 = vld [vmem:[#allocation11_spill] sm:$0xff] }
 0x387   : > { %6061 = vst [vmem:[#allocation45_spill] sm:$0xff] %v4991_v23  ;;  %6063 = vst [vmem:[#allocation44_spill] sm:$0xff] %v4995_v17  ;;  %v4999_v2 = vadd.f32 %v4623_v31, %v6064_v63  ;;  %v5011_v10 = vadd.f32 %v4623_v31, %v6070_v19  ;;  %v6072_v23 = vld [vmem:[#allocation13_spill] sm:$0xff]  ;;  %v6074_v17 = vld [vmem:[#allocation10_spill] sm:$0xff] }
 0x388   : > { %6055 = vst [vmem:[#allocation75_spill] sm:$0xff] %v4979_v22  ;;  %6057 = vst [vmem:[#allocation67_spill] sm:$0xff] %v4983_v8  ;;  %v6066_v22 = vld [vmem:[#allocation6_spill] sm:$0xff]  ;;  %v6068_v8 = vld [vmem:[#allocation8_spill] sm:$0xff]  ;;  %v5015_v39 = vadd.f32 %v4623_v31, %v6072_v23  ;;  %v5019_v63 = vadd.f32 %v4623_v31, %v6074_v17 }
 0x389   : > { %6065 = vst [vmem:[#allocation46_spill] sm:$0xff] %v4999_v2  ;;  %v5003_v3 = vadd.f32 %v4623_v31, %v6066_v22  ;;  %v5007_v58 = vadd.f32 %v4623_v31, %v6068_v8  ;;  %6071 = vst [vmem:[#allocation58_spill] sm:$0xff] %v5011_v10  ;;  %v6076_v2 = vld [vmem:[#allocation12_spill] sm:$0xff]  ;;  %v6082_v10 = vld [vmem:[#allocation14_spill] sm:$0xff] }
 0x38a   : > { %6073 = vst [vmem:[#allocation55_spill] sm:$0xff] %v5015_v39  ;;  %6075 = vst [vmem:[#allocation57_spill] sm:$0xff] %v5019_v63  ;;  %v5023_v22 = vadd.f32 %v4623_v31, %v6076_v2  ;;  %v5036_v23 = vadd.f32 %v4623_v31, %v6082_v10  ;;  %v6084_v39 = vld [vmem:[#allocation16_spill] sm:$0xff]  ;;  %v6086_v63 = vld [vmem:[#allocation19_spill] sm:$0xff] }
 0x38b   : > { %6067 = vst [vmem:[#allocation50_spill] sm:$0xff] %v5003_v3  ;;  %6069 = vst [vmem:[#allocation52_spill] sm:$0xff] %v5007_v58  ;;  %v6078_v3 = vld [vmem:[#allocation15_spill] sm:$0xff]  ;;  %v6080_v58 = vld [vmem:[#allocation17_spill] sm:$0xff]  ;;  %v5040_v17 = vadd.f32 %v4623_v31, %v6084_v39  ;;  %v5044_v2 = vadd.f32 %v4623_v31, %v6086_v63  ;;  %v5060_v39 = vadd.f32 %v4623_v31, %v4610_v55 }
 0x38c   : > { %6077 = vst [vmem:[#allocation76_spill] sm:$0xff] %v5023_v22  ;;  %v5028_v8 = vadd.f32 %v4623_v31, %v6078_v3  ;;  %v5032_v19 = vadd.f32 %v4623_v31, %v6080_v58  ;;  %6083 = vst [vmem:[#allocation61_spill] sm:$0xff] %v5036_v23  ;;  %v5048_v3 = vadd.f32 %v4623_v31, %v4598_v5 }
 0x38d   : > { %6085 = vst [vmem:[#allocation3_spill] sm:$0xff] %v5040_v17  ;;  %6087 = vst [vmem:[#allocation5_spill] sm:$0xff] %v5044_v2  ;;  %v6094_v17 = vld [vmem:[#allocation20_spill] sm:$0xff]  ;;  %v6096_v2 = vld [vmem:[#allocation23_spill] sm:$0xff]  ;;  %v5080_v55 = vadd.f32 %v4623_v31, %v4635_v7 }
 0x38e   : > { %6079 = vst [vmem:[#allocation62_spill] sm:$0xff] %v5028_v8  ;;  %6081 = vst [vmem:[#allocation59_spill] sm:$0xff] %v5032_v19  ;;  %v6089_v8 = vld [vmem:[#allocation21_spill] sm:$0xff]  ;;  %v6091_v19 = vld [vmem:[#allocation18_spill] sm:$0xff]  ;;  %v5064_v63 = vadd.f32 %v4623_v31, %v6094_v17  ;;  %v5068_v5 = vadd.f32 %v4623_v31, %v6096_v2  ;;  %v5084_v17 = vadd.f32 %v4623_v31, %v4639_v11 }
 0x38f   : > { %6088 = vst [vmem:[#allocation2_spill] sm:$0xff] %v5048_v3  ;;  %v5052_v58 = vadd.f32 %v4623_v31, %v6089_v8  ;;  %v5056_v10 = vadd.f32 %v4623_v31, %v6091_v19  ;;  %6093 = vst [vmem:[#allocation9_spill] sm:$0xff] %v5060_v39  ;;  %v5072_v8 = vadd.f32 %v4623_v31, %v4627_v35  ;;  %v6106_v11 = vld [vmem:[#allocation22_spill] sm:$0xff]  ;;  %v6116_v39 = vld [vmem:[#allocation33_spill] sm:$0xff] }
 0x390   : > { %6095 = vst [vmem:[#allocation6_spill] sm:$0xff] %v5064_v63  ;;  %6097 = vst [vmem:[#allocation8_spill] sm:$0xff] %v5068_v5  ;;  %v5076_v19 = vadd.f32 %v4623_v31, %v4631_v29  ;;  %v5088_v2 = vadd.f32 %v4623_v31, %v4643_v20  ;;  %v5097_v35 = vadd.f32 %v4623_v31, %v4647_v41  ;;  %v6104_v29 = vld [vmem:[#allocation25_spill] sm:$0xff]  ;;  %v6108_v20 = vld [vmem:[#allocation24_spill] sm:$0xff] }
 0x391   : > { %6090 = vst [vmem:[#allocation4_spill] sm:$0xff] %v5052_v58  ;;  %6092 = vst [vmem:[#allocation7_spill] sm:$0xff] %v5056_v10  ;;  %v5101_v7 = vadd.f32 %v4623_v31, %v6104_v29  ;;  %v6111_v41 = vld [vmem:[#allocation27_spill] sm:$0xff]  ;;  %v6113_v29 = vld [vmem:[#allocation26_spill] sm:$0xff] }
 0x392   : > { %6098 = vst [vmem:[#allocation11_spill] sm:$0xff] %v5072_v8  ;;  %6099 = vst [vmem:[#allocation13_spill] sm:$0xff] %v5076_v19  ;;  %v6112_v19 = vld [vmem:[#allocation29_spill] sm:$0xff]  ;;  %v6114_v5 = vld [vmem:[#allocation28_spill] sm:$0xff] }
 0x393   : > { %6100 = vst [vmem:[#allocation10_spill] sm:$0xff] %v5080_v55  ;;  %6101 = vst [vmem:[#allocation12_spill] sm:$0xff] %v5084_v17  ;;  %v5105_v17 = vadd.f32 %v4623_v31, %v6106_v11  ;;  %v5113_v55 = vadd.f32 %v4623_v31, %v4663_v50  ;;  %v1998_v8 = vmax.f32 %v6112_v19, 0.0  ;;  %v2000_v63 = vmax.f32 %v6114_v5, 0.0  ;;  %v6115_v11 = vld [vmem:[#allocation31_spill] sm:$0xff]  ;;  %v6120_v58 = vld [vmem:[#allocation37_spill] sm:$0xff] }
 0x394   : > { %6102 = vst [vmem:[#allocation15_spill] sm:$0xff] %v5088_v2  ;;  %6103 = vst [vmem:[#allocation17_spill] sm:$0xff] %v5097_v35  ;;  %v5109_v2 = vadd.f32 %v4623_v31, %v6108_v20  ;;  %v1997_v35 = vmax.f32 %v6111_v41, 0.0  ;;  %v2002_v20 = vmax.f32 %v6116_v39, 0.0  ;;  %v6118_v31 = vld [vmem:[#allocation32_spill] sm:$0xff]  ;;  %v2006_v19 = vmax.f32 %v6120_v58, 0.0 }
 0x395   : > { %6105 = vst [vmem:[#allocation14_spill] sm:$0xff] %v5101_v7  ;;  %6107 = vst [vmem:[#allocation16_spill] sm:$0xff] %v5105_v17  ;;  %v1999_v7 = vmax.f32 %v6113_v29, 0.0  ;;  %v2001_v17 = vmax.f32 %v6115_v11, 0.0  ;;  %v2004_v50 = vmax.f32 %v6118_v31, 0.0  ;;  %v6121_v3 = vld [vmem:[#allocation34_spill] sm:$0xff] }
 0x396   : > { %6109 = vst [vmem:[#allocation19_spill] sm:$0xff] %v5109_v2  ;;  %6110 = vst [vmem:[#allocation21_spill] sm:$0xff] %v5113_v55  ;;  %v6117_v2 = vld [vmem:[#allocation30_spill] sm:$0xff]  ;;  %v6119_v55 = vld [vmem:[#allocation35_spill] sm:$0xff]  ;;  %v2007_v29 = vmax.f32 %v6121_v3, 0.0 }
 0x397   : > { %v2003_v10 = vmax.f32 %v6117_v2, 0.0  ;;  %v2005_v41 = vmax.f32 %v6119_v55, 0.0  ;;  %2108 = vst [vmem:[%s5093_s19] sm:$0xff] %v1997_v35  ;;  %2109 = vst [vmem:[%s5093_s19 + $0x8] sm:$0xff] %v1998_v8  ;;  %v6122_v5 = vld [vmem:[#allocation36_spill] sm:$0xff]  ;;  %v6123_v11 = vld [vmem:[#allocation39_spill] sm:$0xff] }
 0x398   : > { %2110 = vst [vmem:[%s5093_s19 + $0x10] sm:$0xff] %v1999_v7  ;;  %v2008_v39 = vmax.f32 %v6122_v5, 0.0  ;;  %v2009_v23 = vmax.f32 %v6123_v11, 0.0  ;;  %v6124_v2 = vld [vmem:[#allocation41_spill] sm:$0xff]  ;;  %v6125_v31 = vld [vmem:[#allocation38_spill] sm:$0xff]  ;;  %2111 = vst [vmem:[%s5093_s19 + $0x18] sm:$0xff] %v2000_v63 }
 0x399   : > { %v2010_v22 = vmax.f32 %v6124_v2, 0.0  ;;  %v2011_v0 = vmax.f32 %v6125_v31, 0.0  ;;  %2112 = vst [vmem:[%s5093_s19 + $0x20] sm:$0xff] %v2001_v17  ;;  %2113 = vst [vmem:[%s5093_s19 + $0x28] sm:$0xff] %v2002_v20  ;;  %v6126_v3 = vld [vmem:[#allocation40_spill] sm:$0xff]  ;;  %v6127_v8 = vld [vmem:[#allocation47_spill] sm:$0xff] }
 0x39a   : > { %2114 = vst [vmem:[%s5093_s19 + $0x30] sm:$0xff] %v2003_v10  ;;  %v2012_v58 = vmax.f32 %v6126_v3, 0.0  ;;  %v2013_v55 = vmax.f32 %v6127_v8, 0.0  ;;  %v6128_v35 = vld [vmem:[#allocation49_spill] sm:$0xff]  ;;  %v6129_v5 = vld [vmem:[#allocation51_spill] sm:$0xff]  ;;  %2115 = vst [vmem:[%s5093_s19 + $0x38] sm:$0xff] %v2004_v50 }
 0x39b   : > { %v2014_v7 = vmax.f32 %v6128_v35, 0.0  ;;  %v2015_v11 = vmax.f32 %v6129_v5, 0.0  ;;  %2116 = vst [vmem:[%s5093_s19 + $0x40] sm:$0xff] %v2005_v41  ;;  %2117 = vst [vmem:[%s5093_s19 + $0x48] sm:$0xff] %v2006_v19  ;;  %v6130_v63 = vld [vmem:[#allocation56_spill] sm:$0xff]  ;;  %v6131_v10 = vld [vmem:[#allocation63_spill] sm:$0xff] }
 0x39c   : > { %2118 = vst [vmem:[%s5093_s19 + $0x50] sm:$0xff] %v2007_v29  ;;  %v2016_v17 = vmax.f32 %v6130_v63, 0.0  ;;  %v2017_v20 = vmax.f32 %v6131_v10, 0.0  ;;  %v6132_v2 = vld [vmem:[#allocation65_spill] sm:$0xff]  ;;  %v6133_v3 = vld [vmem:[#allocation64_spill] sm:$0xff]  ;;  %2119 = vst [vmem:[%s5093_s19 + $0x58] sm:$0xff] %v2008_v39 }
 0x39d   : > { %v2018_v31 = vmax.f32 %v6132_v2, 0.0  ;;  %v2019_v8 = vmax.f32 %v6133_v3, 0.0  ;;  %2120 = vst [vmem:[%s5093_s19 + $0x60] sm:$0xff] %v2009_v23  ;;  %2121 = vst [vmem:[%s5093_s19 + $0x68] sm:$0xff] %v2010_v22  ;;  %v6134_v50 = vld [vmem:[#allocation42_spill] sm:$0xff]  ;;  %v6135_v19 = vld [vmem:[#allocation43_spill] sm:$0xff] }
 0x39e   : > { %2122 = vst [vmem:[%s5093_s19 + $0x70] sm:$0xff] %v2011_v0  ;;  %v2020_v41 = vmax.f32 %v6134_v50, 0.0  ;;  %v2021_v29 = vmax.f32 %v6135_v19, 0.0  ;;  %v2022_v35 = vmax.f32 %v4767_v32, 0.0  ;;  %v6136_v5 = vld [vmem:[#allocation48_spill] sm:$0xff]  ;;  %2123 = vst [vmem:[%s5093_s19 + $0x78] sm:$0xff] %v2012_v58 }
 0x39f   : > { %v2023_v63 = vmax.f32 %v6136_v5, 0.0  ;;  %2124 = vst [vmem:[%s5093_s19 + $0x80] sm:$0xff] %v2013_v55  ;;  %2125 = vst [vmem:[%s5093_s19 + $0x88] sm:$0xff] %v2014_v7  ;;  %v2024_v22 = vmax.f32 %v4775_v47, 0.0  ;;  %v2025_v0 = vmax.f32 %v4779_v61, 0.0  ;;  %v2026_v23 = vmax.f32 %v4783_v44, 0.0 }
 0x3a0   : > { %2126 = vst [vmem:[%s5093_s19 + $0x90] sm:$0xff] %v2015_v11  ;;  %v2027_v39 = vmax.f32 %v4787_v38, 0.0  ;;  %2127 = vst [vmem:[%s5093_s19 + $0x98] sm:$0xff] %v2016_v17  ;;  %v2028_v32 = vmax.f32 %v4791_v59, 0.0  ;;  %v2029_v58 = vmax.f32 %v4795_v53, 0.0  ;;  %v2030_v47 = vmax.f32 %v4799_v56, 0.0 }
 0x3a1   : > { %2128 = vst [vmem:[%s5093_s19 + $0xa0] sm:$0xff] %v2017_v20  ;;  %2129 = vst [vmem:[%s5093_s19 + $0xa8] sm:$0xff] %v2018_v31  ;;  %v2031_v61 = vmax.f32 %v4803_v13, 0.0  ;;  %v2032_v44 = vmax.f32 %v4807_v25, 0.0  ;;  %v2033_v38 = vmax.f32 %v4811_v4, 0.0  ;;  %v2034_v59 = vmax.f32 %v4815_v43, 0.0 }
 0x3a2   : > { %2130 = vst [vmem:[%s5093_s19 + $0xb0] sm:$0xff] %v2019_v8  ;;  %2131 = vst [vmem:[%s5093_s19 + $0xb8] sm:$0xff] %v2020_v41  ;;  %v2035_v53 = vmax.f32 %v4819_v60, 0.0  ;;  %v2036_v56 = vmax.f32 %v4823_v9, 0.0  ;;  %v2037_v13 = vmax.f32 %v4827_v42, 0.0  ;;  %v2038_v25 = vmax.f32 %v4831_v51, 0.0 }
 0x3a3   : > { %2132 = vst [vmem:[%s5093_s19 + $0xc0] sm:$0xff] %v2021_v29  ;;  %2133 = vst [vmem:[%s5093_s19 + $0xc8] sm:$0xff] %v2022_v35  ;;  %v2039_v4 = vmax.f32 %v4835_v16, 0.0  ;;  %v2040_v43 = vmax.f32 %v4839_v18, 0.0  ;;  %v2041_v60 = vmax.f32 %v4843_v24, 0.0  ;;  %v2042_v9 = vmax.f32 %v4847_v46, 0.0 }
 0x3a4   : > { %2134 = vst [vmem:[%s5093_s19 + $0xd0] sm:$0xff] %v2023_v63  ;;  %2135 = vst [vmem:[%s5093_s19 + $0xd8] sm:$0xff] %v2024_v22  ;;  %v2043_v42 = vmax.f32 %v4851_v1, 0.0  ;;  %v2044_v51 = vmax.f32 %v4855_v48, 0.0  ;;  %v2045_v16 = vmax.f32 %v4859_v62, 0.0  ;;  %v2046_v18 = vmax.f32 %v4863_v52, 0.0 }
 0x3a5   : > { %2136 = vst [vmem:[%s5093_s19 + $0xe0] sm:$0xff] %v2025_v0  ;;  %2137 = vst [vmem:[%s5093_s19 + $0xe8] sm:$0xff] %v2026_v23  ;;  %v2047_v24 = vmax.f32 %v4867_v40, 0.0  ;;  %v2048_v46 = vmax.f32 %v4871_v26, 0.0  ;;  %v2049_v1 = vmax.f32 %v4875_v49, 0.0  ;;  %v2050_v48 = vmax.f32 %v4879_v54, 0.0 }
 0x3a6   : > { %2138 = vst [vmem:[%s5093_s19 + $0xf0] sm:$0xff] %v2027_v39  ;;  %2139 = vst [vmem:[%s5093_s19 + $0xf8] sm:$0xff] %v2028_v32  ;;  %v2051_v62 = vmax.f32 %v4883_v15, 0.0  ;;  %v2052_v52 = vmax.f32 %v4887_v28, 0.0  ;;  %v2053_v40 = vmax.f32 %v4891_v6, 0.0  ;;  %v2054_v26 = vmax.f32 %v4895_v34, 0.0 }
 0x3a7   : > { %2140 = vst [vmem:[%s5093_s19 + $0x100] sm:$0xff] %v2029_v58  ;;  %2141 = vst [vmem:[%s5093_s19 + $0x108] sm:$0xff] %v2030_v47  ;;  %v2055_v49 = vmax.f32 %v4899_v57, 0.0  ;;  %v2056_v54 = vmax.f32 %v4903_v45, 0.0  ;;  %v2057_v15 = vmax.f32 %v4907_v36, 0.0  ;;  %v2058_v28 = vmax.f32 %v4911_v21, 0.0 }
 0x3a8   : > { %2142 = vst [vmem:[%s5093_s19 + $0x110] sm:$0xff] %v2031_v61  ;;  %2143 = vst [vmem:[%s5093_s19 + $0x118] sm:$0xff] %v2032_v44  ;;  %v2059_v6 = vmax.f32 %v4915_v33, 0.0  ;;  %v2060_v34 = vmax.f32 %v4919_v12, 0.0  ;;  %v2061_v57 = vmax.f32 %v4923_v37, 0.0  ;;  %v6137_v55 = vld [vmem:[#allocation68_spill] sm:$0xff] }
 0x3a9   : > { %2144 = vst [vmem:[%s5093_s19 + $0x120] sm:$0xff] %v2033_v38  ;;  %2145 = vst [vmem:[%s5093_s19 + $0x128] sm:$0xff] %v2034_v59  ;;  %v2062_v45 = vmax.f32 %v6137_v55, 0.0  ;;  %v6138_v7 = vld [vmem:[#allocation69_spill] sm:$0xff]  ;;  %v6139_v21 = vld [vmem:[#allocation70_spill] sm:$0xff]  ;;  %v2065_v11 = vmax.f32 %v4939_v14, 0.0 }
 0x3aa   : > { %2146 = vst [vmem:[%s5093_s19 + $0x130] sm:$0xff] %v2035_v53  ;;  %2147 = vst [vmem:[%s5093_s19 + $0x138] sm:$0xff] %v2036_v56  ;;  %v2063_v36 = vmax.f32 %v6138_v7, 0.0  ;;  %v2064_v33 = vmax.f32 %v6139_v21, 0.0  ;;  %v2066_v12 = vmax.f32 %v4943_v30, 0.0  ;;  %v2067_v37 = vmax.f32 %v4947_v27, 0.0 }
 0x3ab   : > { %2148 = vst [vmem:[%s5093_s19 + $0x140] sm:$0xff] %v2037_v13  ;;  %2149 = vst [vmem:[%s5093_s19 + $0x148] sm:$0xff] %v2038_v25  ;;  %v6140_v17 = vld [vmem:[#allocation71_spill] sm:$0xff]  ;;  %v6141_v20 = vld [vmem:[#allocation72_spill] sm:$0xff] }
 0x3ac   : > { %2150 = vst [vmem:[%s5093_s19 + $0x150] sm:$0xff] %v2039_v4  ;;  %2151 = vst [vmem:[%s5093_s19 + $0x158] sm:$0xff] %v2040_v43  ;;  %v2068_v10 = vmax.f32 %v6140_v17, 0.0  ;;  %v2069_v2 = vmax.f32 %v6141_v20, 0.0  ;;  %v6142_v31 = vld [vmem:[#allocation53_spill] sm:$0xff]  ;;  %v6143_v8 = vld [vmem:[#allocation54_spill] sm:$0xff] }
 0x3ad   : > { %2152 = vst [vmem:[%s5093_s19 + $0x160] sm:$0xff] %v2041_v60  ;;  %2153 = vst [vmem:[%s5093_s19 + $0x168] sm:$0xff] %v2042_v9  ;;  %v2070_v3 = vmax.f32 %v6142_v31, 0.0  ;;  %v2071_v14 = vmax.f32 %v6143_v8, 0.0  ;;  %v6144_v30 = vld [vmem:[#allocation60_spill] sm:$0xff]  ;;  %v6145_v50 = vld [vmem:[#allocation73_spill] sm:$0xff] }
 0x3ae   : > { %2154 = vst [vmem:[%s5093_s19 + $0x170] sm:$0xff] %v2043_v42  ;;  %2155 = vst [vmem:[%s5093_s19 + $0x178] sm:$0xff] %v2044_v51  ;;  %v2072_v27 = vmax.f32 %v6144_v30, 0.0  ;;  %v2073_v41 = vmax.f32 %v6145_v50, 0.0  ;;  %v6146_v19 = vld [vmem:[#allocation74_spill] sm:$0xff]  ;;  %v6147_v35 = vld [vmem:[#allocation75_spill] sm:$0xff] }
 0x3af   : > { %2156 = vst [vmem:[%s5093_s19 + $0x180] sm:$0xff] %v2045_v16  ;;  %2157 = vst [vmem:[%s5093_s19 + $0x188] sm:$0xff] %v2046_v18  ;;  %v2074_v29 = vmax.f32 %v6146_v19, 0.0  ;;  %v2075_v5 = vmax.f32 %v6147_v35, 0.0  ;;  %v6148_v63 = vld [vmem:[#allocation67_spill] sm:$0xff]  ;;  %v6149_v0 = vld [vmem:[#allocation66_spill] sm:$0xff] }
 0x3b0   : > { %2158 = vst [vmem:[%s5093_s19 + $0x190] sm:$0xff] %v2047_v24  ;;  %2159 = vst [vmem:[%s5093_s19 + $0x198] sm:$0xff] %v2048_v46  ;;  %v2076_v22 = vmax.f32 %v6148_v63, 0.0  ;;  %v2077_v23 = vmax.f32 %v6149_v0, 0.0  ;;  %v6150_v39 = vld [vmem:[#allocation45_spill] sm:$0xff]  ;;  %v6151_v58 = vld [vmem:[#allocation44_spill] sm:$0xff] }
 0x3b1   : > { %2160 = vst [vmem:[%s5093_s19 + $0x1a0] sm:$0xff] %v2049_v1  ;;  %2161 = vst [vmem:[%s5093_s19 + $0x1a8] sm:$0xff] %v2050_v48  ;;  %v2078_v32 = vmax.f32 %v6150_v39, 0.0  ;;  %v2079_v47 = vmax.f32 %v6151_v58, 0.0  ;;  %v6152_v61 = vld [vmem:[#allocation46_spill] sm:$0xff]  ;;  %v6154_v53 = vld [vmem:[#allocation52_spill] sm:$0xff] }
 0x3b2   : > { %2162 = vst [vmem:[%s5093_s19 + $0x1b0] sm:$0xff] %v2051_v62  ;;  %2163 = vst [vmem:[%s5093_s19 + $0x1b8] sm:$0xff] %v2052_v52  ;;  %v2080_v44 = vmax.f32 %v6152_v61, 0.0  ;;  %v6153_v38 = vld [vmem:[#allocation50_spill] sm:$0xff]  ;;  %v2082_v56 = vmax.f32 %v6154_v53, 0.0  ;;  %v6156_v4 = vld [vmem:[#allocation55_spill] sm:$0xff] }
 0x3b3   : > { %2164 = vst [vmem:[%s5093_s19 + $0x1c0] sm:$0xff] %v2053_v40  ;;  %2165 = vst [vmem:[%s5093_s19 + $0x1c8] sm:$0xff] %v2054_v26  ;;  %v2081_v59 = vmax.f32 %v6153_v38, 0.0  ;;  %v6155_v13 = vld [vmem:[#allocation58_spill] sm:$0xff]  ;;  %v2084_v43 = vmax.f32 %v6156_v4, 0.0  ;;  %v6157_v60 = vld [vmem:[#allocation57_spill] sm:$0xff] }
 0x3b4   : > { %2166 = vst [vmem:[%s5093_s19 + $0x1d0] sm:$0xff] %v2055_v49  ;;  %2167 = vst [vmem:[%s5093_s19 + $0x1d8] sm:$0xff] %v2056_v54  ;;  %v2083_v25 = vmax.f32 %v6155_v13, 0.0  ;;  %v2085_v9 = vmax.f32 %v6157_v60, 0.0  ;;  %v6158_v42 = vld [vmem:[#allocation76_spill] sm:$0xff]  ;;  %v6159_v16 = vld [vmem:[#allocation62_spill] sm:$0xff] }
 0x3b5   : > { %2168 = vst [vmem:[%s5093_s19 + $0x1e0] sm:$0xff] %v2057_v15  ;;  %2169 = vst [vmem:[%s5093_s19 + $0x1e8] sm:$0xff] %v2058_v28  ;;  %v2086_v51 = vmax.f32 %v6158_v42, 0.0  ;;  %v2087_v18 = vmax.f32 %v6159_v16, 0.0  ;;  %v6160_v24 = vld [vmem:[#allocation59_spill] sm:$0xff]  ;;  %v6161_v1 = vld [vmem:[#allocation61_spill] sm:$0xff] }
 0x3b6   : > { %2170 = vst [vmem:[%s5093_s19 + $0x1f0] sm:$0xff] %v2059_v6  ;;  %2171 = vst [vmem:[%s5093_s19 + $0x1f8] sm:$0xff] %v2060_v34  ;;  %v2088_v46 = vmax.f32 %v6160_v24, 0.0  ;;  %v2089_v48 = vmax.f32 %v6161_v1, 0.0  ;;  %v6162_v62 = vld [vmem:[#allocation3_spill] sm:$0xff]  ;;  %v6163_v40 = vld [vmem:[#allocation5_spill] sm:$0xff] }
 0x3b7   : > { %2172 = vst [vmem:[%s5093_s19 + $0x200] sm:$0xff] %v2061_v57  ;;  %2173 = vst [vmem:[%s5093_s19 + $0x208] sm:$0xff] %v2062_v45  ;;  %v2090_v52 = vmax.f32 %v6162_v62, 0.0  ;;  %v2091_v26 = vmax.f32 %v6163_v40, 0.0  ;;  %v6164_v49 = vld [vmem:[#allocation2_spill] sm:$0xff]  ;;  %v6165_v15 = vld [vmem:[#allocation4_spill] sm:$0xff] }
 0x3b8   : > { %2174 = vst [vmem:[%s5093_s19 + $0x210] sm:$0xff] %v2063_v36  ;;  %2175 = vst [vmem:[%s5093_s19 + $0x218] sm:$0xff] %v2064_v33  ;;  %v2092_v54 = vmax.f32 %v6164_v49, 0.0  ;;  %v2093_v28 = vmax.f32 %v6165_v15, 0.0  ;;  %v6166_v6 = vld [vmem:[#allocation7_spill] sm:$0xff]  ;;  %v6167_v57 = vld [vmem:[#allocation9_spill] sm:$0xff] }
 0x3b9   : > { %2176 = vst [vmem:[%s5093_s19 + $0x220] sm:$0xff] %v2065_v11  ;;  %2177 = vst [vmem:[%s5093_s19 + $0x228] sm:$0xff] %v2066_v12  ;;  %v2094_v34 = vmax.f32 %v6166_v6, 0.0  ;;  %v2095_v55 = vmax.f32 %v6167_v57, 0.0  ;;  %v6168_v45 = vld [vmem:[#allocation6_spill] sm:$0xff]  ;;  %v6169_v36 = vld [vmem:[#allocation8_spill] sm:$0xff] }
 0x3ba   : > { %2178 = vst [vmem:[%s5093_s19 + $0x230] sm:$0xff] %v2067_v37  ;;  %2179 = vst [vmem:[%s5093_s19 + $0x238] sm:$0xff] %v2068_v10  ;;  %v2096_v7 = vmax.f32 %v6168_v45, 0.0  ;;  %v2097_v21 = vmax.f32 %v6169_v36, 0.0  ;;  %v6170_v33 = vld [vmem:[#allocation11_spill] sm:$0xff]  ;;  %v6171_v12 = vld [vmem:[#allocation13_spill] sm:$0xff] }
 0x3bb   : > { %2180 = vst [vmem:[%s5093_s19 + $0x240] sm:$0xff] %v2069_v2  ;;  %2181 = vst [vmem:[%s5093_s19 + $0x248] sm:$0xff] %v2070_v3  ;;  %v2098_v11 = vmax.f32 %v6170_v33, 0.0  ;;  %v2099_v37 = vmax.f32 %v6171_v12, 0.0  ;;  %v6172_v17 = vld [vmem:[#allocation10_spill] sm:$0xff]  ;;  %v6173_v20 = vld [vmem:[#allocation12_spill] sm:$0xff] }
 0x3bc   : > { %2182 = vst [vmem:[%s5093_s19 + $0x250] sm:$0xff] %v2071_v14  ;;  %2183 = vst [vmem:[%s5093_s19 + $0x258] sm:$0xff] %v2072_v27  ;;  %v2100_v10 = vmax.f32 %v6172_v17, 0.0  ;;  %v2101_v2 = vmax.f32 %v6173_v20, 0.0  ;;  %v6174_v31 = vld [vmem:[#allocation15_spill] sm:$0xff]  ;;  %v6175_v8 = vld [vmem:[#allocation17_spill] sm:$0xff] }
 0x3bd   : > { %2184 = vst [vmem:[%s5093_s19 + $0x260] sm:$0xff] %v2073_v41  ;;  %2185 = vst [vmem:[%s5093_s19 + $0x268] sm:$0xff] %v2074_v29  ;;  %v2102_v3 = vmax.f32 %v6174_v31, 0.0  ;;  %v2103_v14 = vmax.f32 %v6175_v8, 0.0  ;;  %v6176_v30 = vld [vmem:[#allocation14_spill] sm:$0xff]  ;;  %v6177_v50 = vld [vmem:[#allocation16_spill] sm:$0xff] }
 0x3be   : > { %2186 = vst [vmem:[%s5093_s19 + $0x270] sm:$0xff] %v2075_v5  ;;  %2187 = vst [vmem:[%s5093_s19 + $0x278] sm:$0xff] %v2076_v22  ;;  %v2104_v27 = vmax.f32 %v6176_v30, 0.0  ;;  %v2105_v41 = vmax.f32 %v6177_v50, 0.0  ;;  %v6178_v19 = vld [vmem:[#allocation19_spill] sm:$0xff]  ;;  %v6179_v35 = vld [vmem:[#allocation21_spill] sm:$0xff] }
 0x3bf   : > { %2188 = vst [vmem:[%s5093_s19 + $0x280] sm:$0xff] %v2077_v23  ;;  %2189 = vst [vmem:[%s5093_s19 + $0x288] sm:$0xff] %v2078_v32  ;;  %v2106_v29 = vmax.f32 %v6178_v19, 0.0  ;;  %v2107_v5 = vmax.f32 %v6179_v35, 0.0 }
 0x3c0   : > { %2190 = vst [vmem:[%s5093_s19 + $0x290] sm:$0xff] %v2079_v47  ;;  %2191 = vst [vmem:[%s5093_s19 + $0x298] sm:$0xff] %v2080_v44 }
 0x3c1   : > { %2192 = vst [vmem:[%s5093_s19 + $0x2a0] sm:$0xff] %v2081_v59  ;;  %2193 = vst [vmem:[%s5093_s19 + $0x2a8] sm:$0xff] %v2082_v56 }
 0x3c2   : > { %2194 = vst [vmem:[%s5093_s19 + $0x2b0] sm:$0xff] %v2083_v25  ;;  %2195 = vst [vmem:[%s5093_s19 + $0x2b8] sm:$0xff] %v2084_v43 }
 0x3c3   : > { %2196 = vst [vmem:[%s5093_s19 + $0x2c0] sm:$0xff] %v2085_v9  ;;  %2197 = vst [vmem:[%s5093_s19 + $0x2c8] sm:$0xff] %v2086_v51 }
 0x3c4   : > { %2198 = vst [vmem:[%s5093_s19 + $0x2d0] sm:$0xff] %v2087_v18  ;;  %2199 = vst [vmem:[%s5093_s19 + $0x2d8] sm:$0xff] %v2088_v46 }
 0x3c5   : > { %2200 = vst [vmem:[%s5093_s19 + $0x2e0] sm:$0xff] %v2089_v48  ;;  %2201 = vst [vmem:[%s5093_s19 + $0x2e8] sm:$0xff] %v2090_v52 }
 0x3c6   : > { %2202 = vst [vmem:[%s5093_s19 + $0x2f0] sm:$0xff] %v2091_v26  ;;  %2203 = vst [vmem:[%s5093_s19 + $0x2f8] sm:$0xff] %v2092_v54 }
 0x3c7   : > { %2204 = vst [vmem:[%s5093_s19 + $0x300] sm:$0xff] %v2093_v28  ;;  %2205 = vst [vmem:[%s5093_s19 + $0x308] sm:$0xff] %v2094_v34 }
 0x3c8   : > { %2206 = vst [vmem:[%s5093_s19 + $0x310] sm:$0xff] %v2095_v55  ;;  %2207 = vst [vmem:[%s5093_s19 + $0x318] sm:$0xff] %v2096_v7 }
 0x3c9   : > { %2208 = vst [vmem:[%s5093_s19 + $0x320] sm:$0xff] %v2097_v21  ;;  %2209 = vst [vmem:[%s5093_s19 + $0x328] sm:$0xff] %v2098_v11 }
 0x3ca   : > { %2210 = vst [vmem:[%s5093_s19 + $0x330] sm:$0xff] %v2099_v37  ;;  %2211 = vst [vmem:[%s5093_s19 + $0x338] sm:$0xff] %v2100_v10 }
 0x3cb   : > { %2212 = vst [vmem:[%s5093_s19 + $0x340] sm:$0xff] %v2101_v2  ;;  %2213 = vst [vmem:[%s5093_s19 + $0x348] sm:$0xff] %v2102_v3 }
 0x3cc   : > { %2214 = vst [vmem:[%s5093_s19 + $0x350] sm:$0xff] %v2103_v14  ;;  %2215 = vst [vmem:[%s5093_s19 + $0x358] sm:$0xff] %v2104_v27 }
 0x3cd   : > { %2216 = vst [vmem:[%s5093_s19 + $0x360] sm:$0xff] %v2105_v41  ;;  %2217 = vst [vmem:[%s5093_s19 + $0x368] sm:$0xff] %v2106_v29 }
 0x3ce   : > { %2218 = vst [vmem:[%s5093_s19 + $0x370] sm:$0x3] %v2107_v5 }
 0x3cf PF: > { %s14_s15 = sadd.s32 1, %s2639_s15  }
 0x3d0   : > { %p11_p4 = scmp.ge.s32.totalorder %s14_s15, 4  }
 0x3d2   :  { %13 = sbr.rel (!%p11_p4) target bundleno = 1 (0x1), region = 66 }

// kernel: a_call__.7
= control target key start
LH: loop header
LB: loop body
LE: loop exit
PB: predicated region body
PF: predicated region fallthrough
CT: control target
= control target key end

     0   :  { %s1805_s15 = smov 0   ;;  %s2260_s0 = inlined_call_operand.vmem [shape: bf16[2,242,384], index: 0, kind: input, shape index: {}]   ;;  %s2261_s1 = inlined_call_operand.vmem [shape: bf16[384,128], index: 1, kind: input, shape index: {}]   ;;  %s2262_s2 = inlined_call_operand.vmem [shape: f32[1,128], index: 2, kind: input, shape index: {}]   ;;  %s2263_s3 = inlined_call_operand.vmem [shape: f32[1,128], index: 3, kind: input, shape index: {}]   ;;  %s2264_s4 = inlined_call_operand.vmem [shape: f32[2,242,128], index: 4, kind: output, shape index: {}]  }
   0x1 LB: > { %s1390_s16 = sadd.s32 4294967295, %s1778_s15   ;;  %p1394_p0 = scmp.ge.s32.totalorder %s1778_s15, 1  ;;  %s1778_s15 = sphi %s1805_s15, %s14_s15  }
   0x2   : > { %p162_p1 = scmp.lt.s32.totalorder %s1778_s15, 3 }
   0x4   : > { %p163_p2 = pnand %p1394_p0, %p162_p1 }
   0x5   : > { %v1683_v0 = vld [vmem:[%s2261_s1 + $0x40] sm:$0xff] (!%p163_p2)   ;;  %v1685_v2 = vld [vmem:[%s2261_s1 + $0x48] sm:$0xff] (!%p163_p2)   ;;  %p188_p3 = scmp.lt.s32.totalorder (!%p163_p2), %s1390_s16, 1  ;;  %v1687_v4 = vld [vmem:[%s2261_s1 + $0x50] sm:$0xff] (!%p163_p2)   ;;  %vm1053_vm0 = vcmask (!%p163_p2), 1041408  }
   0x6   : > { %166 = sbr.rel (%p163_p2) target bundleno = 510 (0x1fe), region = 36  ;;  %v1684_v1 = vld [vmem:[%s2261_s1] sm:$0xff] (!%p163_p2)   ;;  %1473 = vmatprep.subr.bf16.mxu0 (!%p163_p2), %v1683_v0  ;;  %1657 = vmatprep.subr.bf16.mxu1 (!%p163_p2), %v1683_v0  ;;  %v1686_v3 = vld [vmem:[%s2261_s1 + $0x8] sm:$0xff] (!%p163_p2)   ;;  %v1688_v5 = vld [vmem:[%s2261_s1 + $0x10] sm:$0xff] (!%p163_p2)  }
   0x7   : > { %1474 = vmatpush3.bf16.msra.mxu0 (!%p163_p2), %v1684_v1  ;;  %1665 = vmatpush3.bf16.msra.mxu1 (!%p163_p2), %v1684_v1  ;;  %v1689_v6 = vld [vmem:[%s2261_s1 + $0x58] sm:$0xff] (!%p163_p2)   ;;  %v1691_v8 = vld [vmem:[%s2261_s1 + $0x60] sm:$0xff] (!%p163_p2)   ;;  %v1693_v10 = vld [vmem:[%s2261_s1 + $0x68] sm:$0xff] (!%p163_p2)  }
   0x8   : > { %1475 = vmatprep.subr.bf16.mxu0 (!%p163_p2), %v1685_v2  ;;  %1658 = vmatprep.subr.bf16.mxu1 (!%p163_p2), %v1685_v2  ;;  %v1690_v7 = vld [vmem:[%s2261_s1 + $0x18] sm:$0xff] (!%p163_p2)   ;;  %v1692_v9 = vld [vmem:[%s2261_s1 + $0x20] sm:$0xff] (!%p163_p2)   ;;  %v1694_v13 = vld [vmem:[%s2261_s1 + $0x28] sm:$0xff] (!%p163_p2)  }
   0x9   : > { %v1695_v14 = vld [vmem:[%s2261_s1 + $0x70] sm:$0xff] (!%p163_p2)   ;;  %v1697_v16 = vld [vmem:[%s2261_s1 + $0x78] sm:$0xff] (!%p163_p2)   ;;  %v1705_v18 = vld [vmem:[%s2261_s1 + $0x80] sm:$0xff] (!%p163_p2)  }
   0xa   : > { %v1696_v15 = vld [vmem:[%s2261_s1 + $0x30] sm:$0xff] (!%p163_p2)   ;;  %v1698_v17 = vld [vmem:[%s2261_s1 + $0x38] sm:$0xff] (!%p163_p2)   ;;  %v1706_v21 = vld [vmem:[%s2261_s1 + $0x88] sm:$0xff] (!%p163_p2)  }
   0xb   : > { %1476 = vmatpush3.bf16.msra.mxu0 (!%p163_p2), %v1686_v3  ;;  %1666 = vmatpush3.bf16.msra.mxu1 (!%p163_p2), %v1686_v3  ;;  %v1713_v25 = vld [vmem:[%s2261_s1 + $0x90] sm:$0xff] (!%p163_p2)   ;;  %v1714_v27 = vld [vmem:[%s2261_s1 + $0x98] sm:$0xff] (!%p163_p2)   ;;  %v1721_v30 = vld [vmem:[%s2261_s1 + $0xa0] sm:$0xff] (!%p163_p2)  }
   0xc   : > { %1477 = vmatprep.subr.bf16.mxu0 (!%p163_p2), %v1687_v4  ;;  %1659 = vmatprep.subr.bf16.mxu1 (!%p163_p2), %v1687_v4  ;;  %v1722_v35 = vld [vmem:[%s2261_s1 + $0xa8] sm:$0xff] (!%p163_p2)   ;;  %v1728_v37 = vld [vmem:[%s2261_s1 + $0xb0] sm:$0xff] (!%p163_p2)   ;;  %v1729_v40 = vld [vmem:[%s2261_s1 + $0xb8] sm:$0xff] (!%p163_p2)  }
   0xd   : > { %s2266_s16 = smov (!%p188_p3, %s1390_s16), 1 }
   0xe   : > { %s1673_s5 = smul.u32 372, %s2266_s16 }
   0xf   : > { %1478 = vmatpush3.bf16.msra.mxu0 %v1688_v5  ;;  %1667 = vmatpush3.bf16.msra.mxu1 %v1688_v5  ;;  %s1674_s25 = smul.u32 248, %s2266_s16 }
  0x10   : > { %1479 = vmatprep.subr.bf16.mxu0 %v1689_v6  ;;  %1660 = vmatprep.subr.bf16.mxu1 %v1689_v6  ;;  %s1846_s12 = scalar_lea.vmem %s2260_s0, %s1673_s5 }
  0x11   : > { %v1701_v11 = vld [vmem:[%s1846_s12 + $0x4] ss:$12 sps:$4 sm:$0xff]   ;;  %v1699_v19 = vld [vmem:[%s1846_s12] ss:$12 sps:$4 sm:$0xff]   ;;  %v1707_v22 = vld [vmem:[%s1846_s12 + $0x1c] ss:$12 sps:$4 sm:$0xff]   ;;  %s2217_s27 = scalar_lea.vmem %s2264_s4, %s1674_s25 }
  0x12   : > { %v1704_v12 = vld [vmem:[%s1846_s12 + $0x124] ss:$12 sps:$4 sm:$0xff]   ;;  %736 = vmatprep.mubr.bf16.mxu0 %v1701_v11  ;;  %v1702_v20 = vld [vmem:[%s1846_s12 + $0x120] ss:$12 sps:$4 sm:$0xff]   ;;  %v1709_v23 = vld [vmem:[%s1846_s12 + $0x13c] ss:$12 sps:$4 sm:$0xff]  }
  0x13   : > { %1480 = vmatpush3.bf16.msra.mxu0 %v1690_v7  ;;  %1668 = vmatpush3.bf16.msra.mxu1 %v1690_v7  ;;  %v1711_v24 = vld [vmem:[%s1846_s12 + $0x18] ss:$12 sps:$4 sm:$0xff]   ;;  %v1715_v28 = vld [vmem:[%s1846_s12 + $0x34] ss:$12 sps:$4 sm:$0xff]   ;;  %v1719_v31 = vld [vmem:[%s1846_s12 + $0x30] ss:$12 sps:$4 sm:$0xff]  }
  0x14   : > { %1481 = vmatprep.subr.bf16.mxu0 %v1691_v8  ;;  %1661 = vmatprep.subr.bf16.mxu1 %v1691_v8  ;;  %v1712_v26 = vld [vmem:[%s1846_s12 + $0x138] ss:$12 sps:$4 sm:$0xff]   ;;  %v1717_v29 = vld [vmem:[%s1846_s12 + $0x154] ss:$12 sps:$4 sm:$0xff]   ;;  %v259_v32 = vld [vmem:[%s1846_s12 + $0x168] sm:$0x11] }
  0x15   : > { %832 = vmatprep.mubr.bf16.mxu1 %v1704_v12  ;;  %v1720_v33 = vld [vmem:[%s1846_s12 + $0x150] ss:$12 sps:$4 sm:$0xff]   ;;  %v1723_v34 = vld [vmem:[%s1846_s12 + $0x4c] ss:$12 sps:$4 sm:$0xff]   ;;  %v1443_v36 = vcombine.high %v259_v32, %v259_v32  ;;  %v1726_v38 = vld [vmem:[%s1846_s12 + $0x48] ss:$12 sps:$4 sm:$0xff]   ;;  %v1442_v39 = vcombine.low %v259_v32, %v259_v32 }
  0x16   : > { %v1730_v41 = vld [vmem:[%s1846_s12 + $0x64] ss:$12 sps:$4 sm:$0xff]   ;;  %v1732_v42 = vld [vmem:[%s1846_s12 + $0x8] ss:$12 sps:$4 sm:$0xff]   ;;  %v1733_v43 = vld [vmem:[%s1846_s12 + $0x60] ss:$12 sps:$4 sm:$0xff]  }
  0x17   : > { %1482 = vmatpush3.bf16.msra.mxu0 %v1692_v9  ;;  %1669 = vmatpush3.bf16.msra.mxu1 %v1692_v9  ;;  %v1734_v44 = vld [vmem:[%s1846_s12 + $0x20] ss:$12 sps:$4 sm:$0xff]   ;;  %v1735_v45 = vld [vmem:[%s1846_s12 + $0x7c] ss:$12 sps:$4 sm:$0xff]   ;;  %v1737_v46 = vld [vmem:[%s1846_s12 + $0x38] ss:$12 sps:$4 sm:$0xff]  }
  0x18   : > { %1483 = vmatprep.subr.bf16.mxu0 %v1693_v10  ;;  %1662 = vmatprep.subr.bf16.mxu1 %v1693_v10  ;;  %v1738_v47 = vld [vmem:[%s1846_s12 + $0x78] ss:$12 sps:$4 sm:$0xff]   ;;  %v1739_v48 = vld [vmem:[%s1846_s12 + $0x50] ss:$12 sps:$4 sm:$0xff]   ;;  %v1740_v49 = vld [vmem:[%s1846_s12 + $0x94] ss:$12 sps:$4 sm:$0xff]  }
  0x19   : > { %v1742_v50 = vld [vmem:[%s1846_s12 + $0x68] ss:$12 sps:$4 sm:$0xff]   ;;  %v1743_v51 = vld [vmem:[%s1846_s12 + $0x90] ss:$12 sps:$4 sm:$0xff]   ;;  %v1744_v52 = vld [vmem:[%s1846_s12 + $0x80] ss:$12 sps:$4 sm:$0xff]  }
  0x1a   : > { %v1745_v53 = vld [vmem:[%s1846_s12 + $0xac] ss:$12 sps:$4 sm:$0xff]   ;;  %v1748_v55 = vld [vmem:[%s1846_s12 + $0xa8] ss:$12 sps:$4 sm:$0xff]   ;;  %v1749_v56 = vld [vmem:[%s1846_s12 + $0xb0] ss:$12 sps:$4 sm:$0xff]  }
  0x1b   : > { %1484 = vmatpush3.bf16.msra.mxu0 %v1694_v13  ;;  %1670 = vmatpush3.bf16.msra.mxu1 %v1694_v13  ;;  %v1747_v54 = vld [vmem:[%s1846_s12 + $0x98] ss:$12 sps:$4 sm:$0xff]   ;;  %v1752_v58 = vld [vmem:[%s1846_s12 + $0xc8] ss:$12 sps:$4 sm:$0xff]   ;;  %v1753_v59 = vld [vmem:[%s1846_s12 + $0xc0] ss:$12 sps:$4 sm:$0xff]  }
  0x1c   : > { %1485 = vmatprep.subr.bf16.mxu0 %v1695_v14  ;;  %1663 = vmatprep.subr.bf16.mxu1 %v1695_v14  ;;  %v1750_v57 = vld [vmem:[%s1846_s12 + $0xc4] ss:$12 sps:$4 sm:$0xff]   ;;  %v1754_v60 = vld [vmem:[%s1846_s12 + $0xe0] ss:$12 sps:$4 sm:$0xff]   ;;  %v1755_v61 = vld [vmem:[%s1846_s12 + $0xdc] ss:$12 sps:$4 sm:$0xff]  }
  0x1d   : > { %v1757_v62 = vld [vmem:[%s1846_s12 + $0xf8] ss:$12 sps:$4 sm:$0xff]   ;;  %v1759_v0 = vld [vmem:[%s1846_s12 + $0x110] ss:$12 sps:$4 sm:$0xff]   ;;  %v1760_v1 = vld [vmem:[%s1846_s12 + $0xf4] ss:$12 sps:$4 sm:$0xff]  }
  0x1e   : > { %v1758_v63 = vld [vmem:[%s1846_s12 + $0xd8] ss:$12 sps:$4 sm:$0xff]   ;;  %v1762_v2 = vld [vmem:[%s1846_s12 + $0x128] ss:$12 sps:$4 sm:$0xff]   ;;  %v1763_v3 = vld [vmem:[%s1846_s12 + $0xf0] ss:$12 sps:$4 sm:$0xff]  }
  0x1f   : > { %1486 = vmatpush3.bf16.msra.mxu0 %v1696_v15  ;;  %1671 = vmatpush3.bf16.msra.mxu1 %v1696_v15  ;;  %v1764_v4 = vld [vmem:[%s1846_s12 + $0x140] ss:$12 sps:$4 sm:$0xff]   ;;  %v1767_v6 = vld [vmem:[%s1846_s12 + $0x158] ss:$12 sps:$4 sm:$0xff]   ;;  %v1768_v7 = vld [vmem:[%s1846_s12 + $0x108] ss:$12 sps:$4 sm:$0xff]  }
  0x20   : > { %1487 = vmatprep.subr.bf16.mxu0 %v1697_v16  ;;  %1664 = vmatprep.subr.bf16.mxu1 %v1697_v16  ;;  %v1765_v5 = vld [vmem:[%s1846_s12 + $0x10c] ss:$12 sps:$4 sm:$0xff]   ;;  %v1769_v8 = vld [vmem:[%s1846_s12 + $0x170] ss:$0 sps:$4 sm:$0x11]  }
  0x23   : > { %1488 = vmatpush3.bf16.msra.mxu0 %v1698_v17  ;;  %1672 = vmatpush3.bf16.msra.mxu1 %v1698_v17 }
  0x24   : > { %1609 = vmatprep.subr.bf16.mxu1 %v1705_v18 }
  0x26   : > { %737 = vmatmul.mubr.bf16.vlgmr.msra.gmra.mrb[0].mxu0 %v1699_v19  ;;  %833 = vmatmul.mubr.bf16.vlgmr.msra.gmra.mrb[0].mxu1 %v1702_v20 }
  0x27   : > { %1610 = vmatpush3.bf16.msra.mxu1 %v1705_v18  ;;  %744 = vmatprep.mubr.bf16.mxu0 %v1707_v22 }
  0x28   : > { %1611 = vmatprep.subr.bf16.mxu1 %v1706_v21  ;;  %840 = vmatprep.mubr.bf16.mxu1 %v1709_v23 }
  0x2b   : > { %1612 = vmatpush3.bf16.msra.mxu1 %v1706_v21 }
  0x2c   : > { %1613 = vmatprep.subr.bf16.mxu1 %v1713_v25 }
  0x2e   : > { %745 = vmatmul.mubr.bf16.gmra.mrb[4].mxu0 %v1711_v24  ;;  %841 = vmatmul.mubr.bf16.gmra.mrb[4].mxu1 %v1712_v26 }
  0x2f   : > { %1614 = vmatpush3.bf16.msra.mxu1 %v1713_v25  ;;  %752 = vmatprep.mubr.bf16.mxu0 %v1715_v28 }
  0x30   : > { %1615 = vmatprep.subr.bf16.mxu1 %v1714_v27  ;;  %848 = vmatprep.mubr.bf16.mxu1 %v1717_v29 }
  0x33   : > { %1616 = vmatpush3.bf16.msra.mxu1 %v1714_v27 }
  0x34   : > { %1617 = vmatprep.subr.bf16.mxu1 %v1721_v30 }
  0x36   : > { %753 = vmatmul.mubr.bf16.gmra.mrb[8].mxu0 %v1719_v31  ;;  %849 = vmatmul.mubr.bf16.gmra.mrb[8].mxu1 %v1720_v33 }
  0x37   : > { %1618 = vmatpush3.bf16.msra.mxu1 %v1721_v30  ;;  %760 = vmatprep.mubr.bf16.mxu0 %v1723_v34 }
  0x38   : > { %1619 = vmatprep.subr.bf16.mxu1 %v1722_v35  ;;  %856 = vmatprep.mubr.bf16.mxu1 %v1443_v36 }
  0x3b   : > { %1620 = vmatpush3.bf16.msra.mxu1 %v1722_v35 }
  0x3c   : > { %1621 = vmatprep.subr.bf16.mxu1 %v1728_v37 }
  0x3e   : > { %761 = vmatmul.mubr.bf16.gmra.mrb[12].mxu0 %v1726_v38  ;;  %857 = vmatmul.mubr.bf16.gmra.mrb[12].mxu1 %v1442_v39 }
  0x3f   : > { %1622 = vmatpush3.bf16.msra.mxu1 %v1728_v37  ;;  %768 = vmatprep.mubr.bf16.mxu0 %v1730_v41 }
  0x40   : > { %1623 = vmatprep.subr.bf16.mxu1 %v1729_v40  ;;  %1625 = vmatprep.mubr.bf16.mxu1 %v1732_v42 }
  0x43   : > { %1624 = vmatpush3.bf16.msra.mxu1 %v1729_v40 }
  0x46   : > { %769 = vmatmul.mubr.bf16.gmra.mrb[16].mxu0 %v1733_v43  ;;  %1626 = vmatmul.mubr.bf16.vlgmr.msra.gmra.mrb[16].mxu1 %v1734_v44 }
  0x47   : > { %776 = vmatprep.mubr.bf16.mxu0 %v1735_v45  ;;  %1629 = vmatprep.mubr.bf16.mxu1 %v1737_v46 }
  0x4e   : > { %777 = vmatmul.mubr.bf16.gmra.mrb[20].mxu0 %v1738_v47  ;;  %1630 = vmatmul.mubr.bf16.gmra.mrb[20].mxu1 %v1739_v48 }
  0x4f   : > { %784 = vmatprep.mubr.bf16.mxu0 %v1740_v49  ;;  %1633 = vmatprep.mubr.bf16.mxu1 %v1742_v50 }
  0x56   : > { %785 = vmatmul.mubr.bf16.gmra.mrb[24].mxu0 %v1743_v51  ;;  %1634 = vmatmul.mubr.bf16.gmra.mrb[24].mxu1 %v1744_v52 }
  0x57   : > { %792 = vmatprep.mubr.bf16.mxu0 %v1745_v53  ;;  %1637 = vmatprep.mubr.bf16.mxu1 %v1747_v54 }
  0x5e   : > { %793 = vmatmul.mubr.bf16.gmra.mrb[28].mxu0 %v1748_v55  ;;  %1638 = vmatmul.mubr.bf16.gmra.mrb[28].mxu1 %v1749_v56 }
  0x5f   : > { %800 = vmatprep.mubr.bf16.mxu0 %v1750_v57  ;;  %1641 = vmatprep.mubr.bf16.mxu1 %v1752_v58 }
  0x66   : > { %801 = vmatmul.mubr.bf16.gmra.mrb[32].mxu0 %v1753_v59  ;;  %1642 = vmatmul.mubr.bf16.gmra.mrb[32].mxu1 %v1754_v60 }
  0x67   : > { %808 = vmatprep.mubr.bf16.mxu0 %v1755_v61  ;;  %1645 = vmatprep.mubr.bf16.mxu1 %v1757_v62 }
  0x6e   : > { %809 = vmatmul.mubr.bf16.gmra.mrb[36].mxu0 %v1758_v63  ;;  %1646 = vmatmul.mubr.bf16.gmra.mrb[36].mxu1 %v1759_v0 }
  0x6f   : > { %816 = vmatprep.mubr.bf16.mxu0 %v1760_v1  ;;  %1649 = vmatprep.mubr.bf16.mxu1 %v1762_v2 }
  0x76   : > { %817 = vmatmul.mubr.bf16.gmra.mrb[40].mxu0 %v1763_v3  ;;  %1650 = vmatmul.mubr.bf16.gmra.mrb[40].mxu1 %v1764_v4 }
  0x77   : > { %824 = vmatprep.mubr.bf16.mxu0 %v1765_v5  ;;  %1653 = vmatprep.mubr.bf16.mxu1 %v1767_v6 }
  0x7e   : > { %825 = vmatmul.mubr.bf16.gmra.mrb[44].mxu0 %v1768_v7  ;;  %1654 = vmatmul.mubr.bf16.gmra.mrb[44].mxu1 %v1769_v8 }
  0xf9   : > { %v1489_v9 = vpop.f32.mrb[0].mxu0  ;;  %v1561_v10 = vpop.f32.mrb[0].mxu1 }
  0xfa   : > { %v1490_v11 = vpop.f32.mrb[1].mxu0  ;;  %v1562_v12 = vpop.f32.mrb[1].mxu1 }
  0xfb   : > { %v1491_v13 = vadd.f32 %v1490_v11, %v1489_v9  ;;  %v1492_v14 = vpop.f32.mrb[2].mxu0  ;;  %v1940_v15 = vadd.f32 %v1562_v12, %v1561_v10  ;;  %v1564_v16 = vpop.f32.mrb[2].mxu1 }
  0xfc   : > { %v1493_v17 = vpop.f32.mrb[3].mxu0  ;;  %v1565_v18 = vpop.f32.mrb[3].mxu1 }
  0xfd   : > { %v1494_v19 = vadd.f32 %v1493_v17, %v1492_v14  ;;  %v1942_v20 = vadd.f32 %v1565_v18, %v1564_v16 }
 0x101   : > { %v1495_v21 = vpop.f32.mrb[4].mxu0  ;;  %v1567_v22 = vpop.f32.mrb[4].mxu1 }
 0x102   : > { %v1496_v23 = vpop.f32.mrb[5].mxu0  ;;  %v1568_v24 = vpop.f32.mrb[5].mxu1 }
 0x103   : > { %v1497_v25 = vadd.f32 %v1496_v23, %v1495_v21  ;;  %v1498_v26 = vpop.f32.mrb[6].mxu0  ;;  %v1944_v27 = vadd.f32 %v1568_v24, %v1567_v22  ;;  %v1570_v28 = vpop.f32.mrb[6].mxu1 }
 0x104   : > { %v1499_v29 = vpop.f32.mrb[7].mxu0  ;;  %v1571_v30 = vpop.f32.mrb[7].mxu1 }
 0x105   : > { %v1500_v31 = vadd.f32 %v1499_v29, %v1498_v26  ;;  %v1946_v32 = vadd.f32 %v1571_v30, %v1570_v28 }
 0x109   : > { %v1501_v33 = vpop.f32.mrb[8].mxu0  ;;  %v1573_v34 = vpop.f32.mrb[8].mxu1 }
 0x10a   : > { %v1502_v35 = vpop.f32.mrb[9].mxu0  ;;  %v1574_v36 = vpop.f32.mrb[9].mxu1 }
 0x10b   : > { %v1503_v37 = vadd.f32 %v1502_v35, %v1501_v33  ;;  %v1504_v38 = vpop.f32.mrb[10].mxu0  ;;  %v1948_v39 = vadd.f32 %v1574_v36, %v1573_v34  ;;  %v1576_v40 = vpop.f32.mrb[10].mxu1 }
 0x10c   : > { %v1505_v41 = vpop.f32.mrb[11].mxu0  ;;  %v1577_v42 = vpop.f32.mrb[11].mxu1 }
 0x10d   : > { %v1506_v43 = vadd.f32 %v1505_v41, %v1504_v38  ;;  %v1950_v44 = vadd.f32 %v1577_v42, %v1576_v40 }
 0x111   : > { %v1507_v45 = vpop.f32.mrb[12].mxu0  ;;  %v1579_v46 = vpop.f32.mrb[12].mxu1 }
 0x112   : > { %v1508_v47 = vpop.f32.mrb[13].mxu0  ;;  %v1580_v48 = vpop.f32.mrb[13].mxu1 }
 0x113   : > { %v1509_v49 = vadd.f32 %v1508_v47, %v1507_v45  ;;  %v1510_v50 = vpop.f32.mrb[14].mxu0  ;;  %v1952_v51 = vadd.f32 %v1580_v48, %v1579_v46  ;;  %v1582_v52 = vpop.f32.mrb[14].mxu1 }
 0x114   : > { %v1511_v53 = vpop.f32.mrb[15].mxu0  ;;  %v1583_v54 = vpop.f32.mrb[15].mxu1 }
 0x115   : > { %v1512_v55 = vadd.f32 %v1511_v53, %v1510_v50 }
 0x119   : > { %v1513_v56 = vpop.f32.mrb[16].mxu0  ;;  %v1627_v57 = vpop.f32.mrb[16].mxu1 }
 0x11a   : > { %v1954_v58 = vadd.f32 %v1627_v57, %v1497_v25  ;;  %v1514_v59 = vpop.f32.mrb[17].mxu0  ;;  %v898_v60 = vpop.f32.mrb[17].mxu1 }
 0x11b   : > { %v1515_v61 = vadd.f32 %v1514_v59, %v1513_v56  ;;  %v1956_v62 = vadd.f32 %v1491_v13, %v898_v60  ;;  %v1516_v63 = vpop.f32.mrb[18].mxu0  ;;  %v1628_v0 = vpop.f32.mrb[18].mxu1 }
 0x11c   : > { %v1958_v1 = vadd.f32 %v1628_v0, %v1500_v31  ;;  %v1517_v2 = vpop.f32.mrb[19].mxu0  ;;  %v901_v3 = vpop.f32.mrb[19].mxu1 }
 0x11d   : > { %v1518_v4 = vadd.f32 %v1517_v2, %v1516_v63  ;;  %v1960_v5 = vadd.f32 %v1494_v19, %v901_v3 }
 0x11f   : > { %v1024_v6 = vadd.f32 %v1960_v5, %v1956_v62 }
 0x121   : > { %v1025_v7 = vadd.f32 %v1024_v6, %v1954_v58  ;;  %v1519_v8 = vpop.f32.mrb[20].mxu0  ;;  %v1631_v9 = vpop.f32.mrb[20].mxu1 }
 0x122   : > { %v1965_v10 = vadd.f32 %v1631_v9, %v1509_v49  ;;  %v1520_v11 = vpop.f32.mrb[21].mxu0  ;;  %v914_v12 = vpop.f32.mrb[21].mxu1 }
 0x123   : > { %v1521_v13 = vadd.f32 %v1520_v11, %v1519_v8  ;;  %v1967_v14 = vadd.f32 %v1503_v37, %v914_v12  ;;  %v1026_v16 = vadd.f32 %v1025_v7, %v1958_v1  ;;  %v1522_v17 = vpop.f32.mrb[22].mxu0  ;;  %v1632_v18 = vpop.f32.mrb[22].mxu1 }
 0x124   : > { %v1970_v19 = vadd.f32 %v1632_v18, %v1512_v55  ;;  %v1523_v21 = vpop.f32.mrb[23].mxu0  ;;  %v917_v22 = vpop.f32.mrb[23].mxu1 }
 0x125   : > { %v1027_v23 = vadd.f32 %v1026_v16, %v1967_v14  ;;  %v1524_v24 = vadd.f32 %v1523_v21, %v1522_v17  ;;  %v1973_v25 = vadd.f32 %v1506_v43, %v917_v22 }
 0x127   : > { %v1028_v26 = vadd.f32 %v1027_v23, %v1973_v25 }
 0x129   : > { %v1029_v28 = vadd.f32 %v1028_v26, %v1965_v10  ;;  %v1525_v29 = vpop.f32.mrb[24].mxu0  ;;  %v1635_v30 = vpop.f32.mrb[24].mxu1 }
 0x12a   : > { %v1977_v31 = vadd.f32 %v1635_v30, %v1521_v13  ;;  %v1526_v33 = vpop.f32.mrb[25].mxu0  ;;  %v930_v34 = vpop.f32.mrb[25].mxu1 }
 0x12b   : > { %v1527_v35 = vadd.f32 %v1526_v33, %v1525_v29  ;;  %v1979_v36 = vadd.f32 %v1515_v61, %v930_v34  ;;  %v1030_v37 = vadd.f32 %v1029_v28, %v1970_v19  ;;  %v1528_v38 = vpop.f32.mrb[26].mxu0  ;;  %v1636_v40 = vpop.f32.mrb[26].mxu1 }
 0x12c   : > { %v1982_v41 = vadd.f32 %v1636_v40, %v1524_v24  ;;  %v1529_v42 = vpop.f32.mrb[27].mxu0  ;;  %v933_v43 = vpop.f32.mrb[27].mxu1 }
 0x12d   : > { %v1031_v45 = vadd.f32 %v1030_v37, %v1979_v36  ;;  %v1530_v46 = vadd.f32 %v1529_v42, %v1528_v38  ;;  %v1985_v47 = vadd.f32 %v1518_v4, %v933_v43 }
 0x12f   : > { %v1032_v48 = vadd.f32 %v1031_v45, %v1985_v47 }
 0x131   : > { %v1033_v49 = vadd.f32 %v1032_v48, %v1977_v31  ;;  %v1531_v50 = vpop.f32.mrb[28].mxu0  ;;  %v1639_v52 = vpop.f32.mrb[28].mxu1 }
 0x132   : > { %v1532_v53 = vpop.f32.mrb[29].mxu0  ;;  %v946_v54 = vpop.f32.mrb[29].mxu1 }
 0x133   : > { %v1533_v55 = vadd.f32 %v1532_v53, %v1531_v50  ;;  %v1989_v56 = vadd.f32 %v1527_v35, %v946_v54  ;;  %v1034_v57 = vadd.f32 %v1033_v49, %v1982_v41  ;;  %v1534_v59 = vpop.f32.mrb[30].mxu0  ;;  %v1640_v60 = vpop.f32.mrb[30].mxu1 }
 0x134   : > { %v1535_v61 = vpop.f32.mrb[31].mxu0  ;;  %v949_v63 = vpop.f32.mrb[31].mxu1 }
 0x135   : > { %v1992_v0 = vadd.f32 %v1639_v52, %v1533_v55  ;;  %v1035_v2 = vadd.f32 %v1034_v57, %v1989_v56  ;;  %v1536_v3 = vadd.f32 %v1535_v61, %v1534_v59  ;;  %v1995_v4 = vadd.f32 %v1530_v46, %v949_v63 }
 0x137   : > { %v1997_v6 = vadd.f32 %v1640_v60, %v1536_v3  ;;  %v1036_v7 = vadd.f32 %v1035_v2, %v1995_v4 }
 0x139   : > { %v1037_v8 = vadd.f32 %v1036_v7, %v1992_v0  ;;  %v1537_v9 = vpop.f32.mrb[32].mxu0  ;;  %v1643_v11 = vpop.f32.mrb[32].mxu1 }
 0x13a   : > { %v1538_v12 = vpop.f32.mrb[33].mxu0  ;;  %v962_v13 = vpop.f32.mrb[33].mxu1 }
 0x13b   : > { %v1539_v16 = vadd.f32 %v1538_v12, %v1537_v9  ;;  %v1540_v17 = vpop.f32.mrb[34].mxu0  ;;  %v1644_v18 = vpop.f32.mrb[34].mxu1  ;;  %v1038_v26 = vadd.f32 %v1037_v8, %v1997_v6 }
 0x13c   : > { %v1541_v21 = vpop.f32.mrb[35].mxu0  ;;  %v965_v22 = vpop.f32.mrb[35].mxu1 }
 0x13d   : > { %v1542_v23 = vadd.f32 %v1541_v21, %v1540_v17  ;;  %v2001_v24 = vadd.f32 %v1539_v16, %v962_v13 }
 0x13f   : > { %v1039_v28 = vadd.f32 %v1038_v26, %v2001_v24  ;;  %v2005_v29 = vadd.f32 %v1542_v23, %v965_v22 }
 0x141   : > { %v1040_v30 = vadd.f32 %v1039_v28, %v2005_v29  ;;  %v1543_v33 = vpop.f32.mrb[36].mxu0  ;;  %v1647_v34 = vpop.f32.mrb[36].mxu1 }
 0x142   : > { %v1544_v35 = vpop.f32.mrb[37].mxu0  ;;  %v978_v37 = vpop.f32.mrb[37].mxu1 }
 0x143   : > { %v1545_v38 = vadd.f32 %v1544_v35, %v1543_v33  ;;  %v1546_v40 = vpop.f32.mrb[38].mxu0  ;;  %v1648_v42 = vpop.f32.mrb[38].mxu1 }
 0x144   : > { %v1547_v43 = vpop.f32.mrb[39].mxu0  ;;  %v981_v45 = vpop.f32.mrb[39].mxu1 }
 0x145   : > { %v971_v46 = vadd.f32 %v1643_v11, %v1545_v38  ;;  %v1548_v48 = vadd.f32 %v1547_v43, %v1546_v40 }
 0x147   : > { %v1041_v49 = vadd.f32 %v1040_v30, %v971_v46  ;;  %v974_v50 = vadd.f32 %v1644_v18, %v1548_v48 }
 0x149   : > { %v1042_v52 = vadd.f32 %v1041_v49, %v974_v50  ;;  %v1549_v53 = vpop.f32.mrb[40].mxu0  ;;  %v1651_v54 = vpop.f32.mrb[40].mxu1 }
 0x14a   : > { %v1003_v55 = vadd.f32 %v1651_v54, %v1944_v27  ;;  %v1550_v57 = vpop.f32.mrb[41].mxu0  ;;  %v994_v59 = vpop.f32.mrb[41].mxu1 }
 0x14b   : > { %v1551_v60 = vadd.f32 %v1550_v57, %v1549_v53  ;;  %v995_v61 = vadd.f32 %v1940_v15, %v994_v59  ;;  %v1552_v63 = vpop.f32.mrb[42].mxu0  ;;  %v1652_v2 = vpop.f32.mrb[42].mxu1 }
 0x14c   : > { %v1006_v3 = vadd.f32 %v1652_v2, %v1946_v32  ;;  %v1553_v7 = vpop.f32.mrb[43].mxu0  ;;  %v997_v8 = vpop.f32.mrb[43].mxu1 }
 0x14d   : > { %v979_v9 = vadd.f32 %v1551_v60, %v978_v37  ;;  %v1554_v11 = vadd.f32 %v1553_v7, %v1552_v63  ;;  %v998_v12 = vadd.f32 %v1942_v20, %v997_v8 }
 0x14f   : > { %v1043_v13 = vadd.f32 %v1042_v52, %v979_v9  ;;  %v982_v16 = vadd.f32 %v1554_v11, %v981_v45 }
 0x151   : > { %v1044_v17 = vadd.f32 %v1043_v13, %v982_v16  ;;  %v1555_v18 = vpop.f32.mrb[44].mxu0  ;;  %v1655_v27 = vpop.f32.mrb[44].mxu1 }
 0x152   : > { %v1019_v21 = vadd.f32 %v1655_v27, %v1952_v51  ;;  %v1556_v22 = vpop.f32.mrb[45].mxu0  ;;  %v1010_v23 = vpop.f32.mrb[45].mxu1 }
 0x153   : > { %v1557_v15 = vadd.f32 %v1556_v22, %v1555_v18  ;;  %v1011_v26 = vadd.f32 %v1948_v39, %v1010_v23  ;;  %v1558_v28 = vpop.f32.mrb[46].mxu0  ;;  %v1656_v32 = vpop.f32.mrb[46].mxu1 }
 0x154   : > { %v1559_v30 = vpop.f32.mrb[47].mxu0  ;;  %v1013_v33 = vpop.f32.mrb[47].mxu1  ;;  %v1054_v39 = vsel %vm1053_vm0, %v1019_v21, 0.0 }
 0x155   : > { %v987_v35 = vadd.f32 %v1647_v34, %v1557_v15  ;;  %v1560_v37 = vadd.f32 %v1559_v30, %v1558_v28  ;;  %v1014_v20 = vadd.f32 %v1950_v44, %v1013_v33 }
 0x157   : > { %v1045_v38 = vadd.f32 %v1044_v17, %v987_v35  ;;  %v990_v40 = vadd.f32 %v1648_v42, %v1560_v37 }
 0x159   : > { %v1046_v43 = vadd.f32 %v1045_v38, %v990_v40 }
 0x15b   : > { %v1047_v45 = vadd.f32 %v1046_v43, %v995_v61 }
 0x15d   : > { %v1048_v48 = vadd.f32 %v1047_v45, %v998_v12 }
 0x15f   : > { %v1049_v49 = vadd.f32 %v1048_v48, %v1003_v55 }
 0x161   : > { %v1050_v51 = vadd.f32 %v1049_v49, %v1006_v3 }
 0x163   : > { %v1051_v52 = vadd.f32 %v1050_v51, %v1011_v26 }
 0x165   : > { %v1052_v53 = vadd.f32 %v1051_v52, %v1014_v20 }
 0x167   : > { %v1055_v54 = vadd.f32 %v1054_v39, %v1052_v53 }
 0x169   : > { %v1056_v57 = vrot.slane %v1055_v54, 4 }
 0x16b   : > { %v1057_v59 = vadd.f32 %v1056_v57, %v1055_v54 }
 0x16d   : > { %v1058_v60 = vrot.slane %v1057_v59, 2 }
 0x16f   : > { %v1059_v34 = vadd.f32 %v1058_v60, %v1057_v59 }
 0x171   : > { %v1060_v63 = vrot.slane %v1059_v34, 1 }
 0x173   : > { %v1061_v2 = vadd.f32 %v1060_v63, %v1059_v34 }
 0x175   : > { %v1063_v44 = vmul.f32 0.004132231, %v1061_v2 }
 0x177   : > { %v2017_v42 = vsub.f32 %v1956_v62, %v1063_v44  ;;  %v2020_v7 = vsub.f32 %v1997_v6, %v1063_v44  ;;  %v2023_v8 = vsub.f32 %v2001_v24, %v1063_v44  ;;  %v2026_v11 = vsub.f32 %v2005_v29, %v1063_v44 }
 0x178   : > { %v2028_v13 = vsub.f32 %v971_v46, %v1063_v44  ;;  %v2030_v17 = vsub.f32 %v974_v50, %v1063_v44  ;;  %v2032_v18 = vsub.f32 %v979_v9, %v1063_v44  ;;  %v2034_v27 = vsub.f32 %v982_v16, %v1063_v44 }
 0x179   : > { %v2036_v22 = vsub.f32 %v987_v35, %v1063_v44  ;;  %v2038_v62 = vsub.f32 %v990_v40, %v1063_v44  ;;  %v2040_v6 = vsub.f32 %v995_v61, %v1063_v44  ;;  %v2042_v23 = vsub.f32 %v998_v12, %v1063_v44 }
 0x17a   : > { %v2044_v24 = vsub.f32 %v1003_v55, %v1063_v44  ;;  %v2046_v29 = vsub.f32 %v1006_v3, %v1063_v44  ;;  %v2049_v46 = vsub.f32 %v1960_v5, %v1063_v44  ;;  %v2051_v50 = vsub.f32 %v1011_v26, %v1063_v44 }
 0x17b   : > { %v2053_v9 = vsub.f32 %v1014_v20, %v1063_v44  ;;  %v2055_v16 = vsub.f32 %v1019_v21, %v1063_v44  ;;  %v2058_v15 = vsub.f32 %v1954_v58, %v1063_v44  ;;  %v1095_v61 = vmul.f32 %v2017_v42, %v2017_v42 }
 0x17c   : > { %v1096_v55 = vmul.f32 %v2049_v46, %v2049_v46  ;;  %v2065_v3 = vsub.f32 %v1958_v1, %v1063_v44  ;;  %v2068_v5 = vsub.f32 %v1967_v14, %v1063_v44  ;;  %v2075_v26 = vsub.f32 %v1973_v25, %v1063_v44 }
 0x17d   : > { %v1097_v12 = vmul.f32 %v2058_v15, %v2058_v15  ;;  %v1125_v21 = vmul.f32 %v2055_v16, %v2055_v16  ;;  %v2083_v14 = vsub.f32 %v1965_v10, %v1063_v44  ;;  %v2088_v35 = vsub.f32 %v1970_v19, %v1063_v44 }
 0x17e   : > { %v1126_v58 = vadd.f32 %v1096_v55, %v1095_v61  ;;  %v1098_v28 = vmul.f32 %v2065_v3, %v2065_v3  ;;  %v1099_v30 = vmul.f32 %v2068_v5, %v2068_v5  ;;  %v1100_v25 = vmul.f32 %v2075_v26, %v2075_v26 }
 0x17f   : > { %v2080_v1 = vsel %vm1053_vm0, %v1125_v21, 0.0  ;;  %v2093_v20 = vsub.f32 %v1979_v36, %v1063_v44  ;;  %v1101_v38 = vmul.f32 %v2083_v14, %v2083_v14  ;;  %v2098_v10 = vsub.f32 %v1985_v47, %v1063_v44 }
 0x180   : > { %v1127_v32 = vadd.f32 %v1126_v58, %v1097_v12  ;;  %v1102_v43 = vmul.f32 %v2088_v35, %v2088_v35  ;;  %v2103_v19 = vsub.f32 %v1977_v31, %v1063_v44  ;;  %v2108_v36 = vsub.f32 %v1982_v41, %v1063_v44 }
 0x181   : > { %v1103_v48 = vmul.f32 %v2093_v20, %v2093_v20  ;;  %v1104_v51 = vmul.f32 %v2098_v10, %v2098_v10  ;;  %v2113_v47 = vsub.f32 %v1989_v56, %v1063_v44  ;;  %v2118_v31 = vsub.f32 %v1995_v4, %v1063_v44 }
 0x182   : > { %v1128_v33 = vadd.f32 %v1127_v32, %v1098_v28  ;;  %v1105_v53 = vmul.f32 %v2103_v19, %v2103_v19  ;;  %v1106_v54 = vmul.f32 %v2108_v36, %v2108_v36  ;;  %v2123_v41 = vsub.f32 %v1992_v0, %v1063_v44 }
 0x183   : > { %v1107_v59 = vmul.f32 %v2113_v47, %v2113_v47  ;;  %v1108_v56 = vmul.f32 %v2118_v31, %v2118_v31  ;;  %v1110_v2 = vmul.f32 %v2020_v7, %v2020_v7  ;;  %v1111_v0 = vmul.f32 %v2023_v8, %v2023_v8 }
 0x184   : > { %v1129_v37 = vadd.f32 %v1128_v33, %v1099_v30  ;;  %v1109_v63 = vmul.f32 %v2123_v41, %v2123_v41  ;;  %v1112_v55 = vmul.f32 %v2026_v11, %v2026_v11  ;;  %v1113_v21 = vmul.f32 %v2028_v13, %v2028_v13 }
 0x185   : > { %v1114_v28 = vmul.f32 %v2030_v17, %v2030_v17  ;;  %v1115_v30 = vmul.f32 %v2032_v18, %v2032_v18 }
 0x186   : > { %v1130_v40 = vadd.f32 %v1129_v37, %v1100_v25  ;;  %v1116_v25 = vmul.f32 %v2034_v27, %v2034_v27 }
 0x188   : > { %v1131_v45 = vadd.f32 %v1130_v40, %v1101_v38  ;;  %v1117_v38 = vmul.f32 %v2036_v22, %v2036_v22 }
 0x18a   : > { %v1132_v49 = vadd.f32 %v1131_v45, %v1102_v43  ;;  %v1118_v43 = vmul.f32 %v2038_v62, %v2038_v62 }
 0x18c   : > { %v1133_v52 = vadd.f32 %v1132_v49, %v1103_v48  ;;  %v1119_v48 = vmul.f32 %v2040_v6, %v2040_v6 }
 0x18e   : > { %v1134_v39 = vadd.f32 %v1133_v52, %v1104_v51  ;;  %v1120_v51 = vmul.f32 %v2042_v23, %v2042_v23 }
 0x190   : > { %v1135_v57 = vadd.f32 %v1134_v39, %v1105_v53  ;;  %v1121_v53 = vmul.f32 %v2044_v24, %v2044_v24 }
 0x192   : > { %v1136_v60 = vadd.f32 %v1135_v57, %v1106_v54  ;;  %v1122_v54 = vmul.f32 %v2046_v29, %v2046_v29 }
 0x194   : > { %v1137_v34 = vadd.f32 %v1136_v60, %v1107_v59  ;;  %v1123_v59 = vmul.f32 %v2051_v50, %v2051_v50 }
 0x196   : > { %v1138_v4 = vadd.f32 %v1137_v34, %v1108_v56  ;;  %v1124_v56 = vmul.f32 %v2053_v9, %v2053_v9 }
 0x198   : > { %v1139_v61 = vadd.f32 %v1138_v4, %v1109_v63 }
 0x19a   : > { %v1140_v44 = vadd.f32 %v1139_v61, %v1110_v2 }
 0x19c   : > { %v1141_v12 = vadd.f32 %v1140_v44, %v1111_v0 }
 0x19e   : > { %v1142_v58 = vadd.f32 %v1141_v12, %v1112_v55 }
 0x1a0   : > { %v1143_v32 = vadd.f32 %v1142_v58, %v1113_v21 }
 0x1a2   : > { %v1144_v33 = vadd.f32 %v1143_v32, %v1114_v28 }
 0x1a4   : > { %v1145_v37 = vadd.f32 %v1144_v33, %v1115_v30 }
 0x1a6   : > { %v1146_v40 = vadd.f32 %v1145_v37, %v1116_v25 }
 0x1a8   : > { %v1147_v45 = vadd.f32 %v1146_v40, %v1117_v38 }
 0x1aa   : > { %v1148_v49 = vadd.f32 %v1147_v45, %v1118_v43 }
 0x1ac   : > { %v1149_v52 = vadd.f32 %v1148_v49, %v1119_v48 }
 0x1ae   : > { %v1150_v39 = vadd.f32 %v1149_v52, %v1120_v51 }
 0x1b0   : > { %v1151_v57 = vadd.f32 %v1150_v39, %v1121_v53 }
 0x1b2   : > { %v1152_v60 = vadd.f32 %v1151_v57, %v1122_v54 }
 0x1b4   : > { %v1153_v34 = vadd.f32 %v1152_v60, %v1123_v59 }
 0x1b6   : > { %v1154_v63 = vadd.f32 %v1153_v34, %v1124_v56 }
 0x1b8   : > { %v1156_v4 = vadd.f32 %v2080_v1, %v1154_v63  ;;  %v1470_v63 = vld [vmem:[%s2263_s3] ss:$0 sm:$0xff] }
 0x1ba   : > { %v1157_v2 = vrot.slane %v1156_v4, 4 }
 0x1bc   : > { %v1158_v61 = vadd.f32 %v1157_v2, %v1156_v4 }
 0x1be   : > { %v1159_v0 = vrot.slane %v1158_v61, 2 }
 0x1c0   : > { %v1160_v44 = vadd.f32 %v1159_v0, %v1158_v61 }
 0x1c2   : > { %v1161_v55 = vrot.slane %v1160_v44, 1 }
 0x1c4   : > { %v1162_v12 = vadd.f32 %v1161_v55, %v1160_v44 }
 0x1c6   : > { %v1163_v21 = vmul.f32 0.004132231, %v1162_v12 }
 0x1c8   : > { %v1164_v58 = vadd.f32 1e-05, %v1163_v21 }
 0x1ca   : > { %1770 = vrsqrt.f32 %v1164_v58 }
 0x1d4   : > { %v1771_v28 = vpop.eup %1770 }
 0x1d5   : > { %v1166_v32 = vmul.f32 %v1771_v28, %v2017_v42  ;;  %v1167_v30 = vmul.f32 %v1771_v28, %v2049_v46  ;;  %v1168_v33 = vmul.f32 %v1771_v28, %v2058_v15  ;;  %v1169_v25 = vmul.f32 %v1771_v28, %v2065_v3 }
 0x1d6   : > { %v1170_v1 = vmul.f32 %v1771_v28, %v2068_v5  ;;  %v1171_v37 = vmul.f32 %v1771_v28, %v2075_v26  ;;  %v1172_v38 = vmul.f32 %v1771_v28, %v2083_v14  ;;  %v1173_v40 = vmul.f32 %v1771_v28, %v2088_v35 }
 0x1d7   : > { %v1174_v43 = vmul.f32 %v1771_v28, %v2093_v20  ;;  %v1175_v45 = vmul.f32 %v1771_v28, %v2098_v10  ;;  %v1176_v42 = vmul.f32 %v1771_v28, %v2103_v19  ;;  %v1177_v46 = vmul.f32 %v1771_v28, %v2108_v36  ;;  %v1469_v19 = vld [vmem:[%s2262_s2] ss:$0 sm:$0xff] }
 0x1d8   : > { %v1178_v15 = vmul.f32 %v1771_v28, %v2113_v47  ;;  %v1179_v3 = vmul.f32 %v1771_v28, %v2118_v31  ;;  %v1180_v5 = vmul.f32 %v1771_v28, %v2123_v41  ;;  %v1181_v26 = vmul.f32 %v1771_v28, %v2020_v7 }
 0x1d9   : > { %v1182_v14 = vmul.f32 %v1771_v28, %v2023_v8  ;;  %v1183_v35 = vmul.f32 %v1771_v28, %v2026_v11  ;;  %v1184_v20 = vmul.f32 %v1771_v28, %v2028_v13  ;;  %v1185_v10 = vmul.f32 %v1771_v28, %v2030_v17 }
 0x1da   : > { %v1186_v36 = vmul.f32 %v1771_v28, %v2032_v18  ;;  %v1187_v47 = vmul.f32 %v1771_v28, %v2034_v27  ;;  %v1188_v31 = vmul.f32 %v1771_v28, %v2036_v22  ;;  %v1189_v7 = vmul.f32 %v1771_v28, %v2038_v62 }
 0x1db   : > { %v1190_v8 = vmul.f32 %v1771_v28, %v2040_v6  ;;  %v1191_v11 = vmul.f32 %v1771_v28, %v2042_v23  ;;  %v1192_v13 = vmul.f32 %v1771_v28, %v2044_v24  ;;  %v1193_v17 = vmul.f32 %v1771_v28, %v2046_v29 }
 0x1dc   : > { %v1194_v41 = vmul.f32 %v1771_v28, %v2051_v50  ;;  %v1195_v48 = vmul.f32 %v1771_v28, %v2053_v9  ;;  %v1196_v18 = vmul.f32 %v1771_v28, %v2055_v16  ;;  %v1204_v49 = vmul.f32 %v1469_v19, %v1166_v32 }
 0x1dd   : > { %v1205_v27 = vmul.f32 %v1469_v19, %v1167_v30  ;;  %v1206_v51 = vmul.f32 %v1469_v19, %v1168_v33  ;;  %v1207_v22 = vmul.f32 %v1469_v19, %v1169_v25  ;;  %v1208_v52 = vmul.f32 %v1469_v19, %v1170_v1 }
 0x1de   : > { %v1209_v62 = vmul.f32 %v1469_v19, %v1171_v37  ;;  %v1210_v53 = vmul.f32 %v1469_v19, %v1172_v38  ;;  %v1211_v6 = vmul.f32 %v1469_v19, %v1173_v40  ;;  %v1212_v39 = vmul.f32 %v1469_v19, %v1174_v43 }
 0x1df   : > { %v1213_v23 = vmul.f32 %v1469_v19, %v1175_v45  ;;  %v1214_v54 = vmul.f32 %v1469_v19, %v1176_v42  ;;  %v1215_v24 = vmul.f32 %v1469_v19, %v1177_v46  ;;  %v1216_v57 = vmul.f32 %v1469_v19, %v1178_v15 }
 0x1e0   : > { %v1217_v29 = vmul.f32 %v1469_v19, %v1179_v3  ;;  %v1218_v59 = vmul.f32 %v1469_v19, %v1180_v5  ;;  %v1219_v50 = vmul.f32 %v1469_v19, %v1181_v26  ;;  %v1220_v60 = vmul.f32 %v1469_v19, %v1182_v14 }
 0x1e1   : > { %v1221_v9 = vmul.f32 %v1469_v19, %v1183_v35  ;;  %v1222_v56 = vmul.f32 %v1469_v19, %v1184_v20  ;;  %v1223_v16 = vmul.f32 %v1469_v19, %v1185_v10  ;;  %v1224_v34 = vmul.f32 %v1469_v19, %v1186_v36 }
 0x1e2   : > { %v1225_v4 = vmul.f32 %v1469_v19, %v1187_v47  ;;  %v1226_v2 = vmul.f32 %v1469_v19, %v1188_v31  ;;  %v1227_v61 = vmul.f32 %v1469_v19, %v1189_v7  ;;  %v1228_v0 = vmul.f32 %v1469_v19, %v1190_v8 }
 0x1e3   : > { %v1229_v44 = vmul.f32 %v1469_v19, %v1191_v11  ;;  %v1230_v55 = vmul.f32 %v1469_v19, %v1192_v13  ;;  %v1231_v12 = vmul.f32 %v1469_v19, %v1193_v17  ;;  %v1232_v21 = vmul.f32 %v1469_v19, %v1194_v41 }
 0x1e4   : > { %v1233_v58 = vmul.f32 %v1469_v19, %v1195_v48  ;;  %v1234_v28 = vmul.f32 %v1469_v19, %v1196_v18  ;;  %v1242_v32 = vadd.f32 %v1470_v63, %v1204_v49  ;;  %v1243_v30 = vadd.f32 %v1470_v63, %v1205_v27 }
 0x1e5   : > { %v1244_v33 = vadd.f32 %v1470_v63, %v1206_v51  ;;  %v1245_v25 = vadd.f32 %v1470_v63, %v1207_v22  ;;  %v1246_v1 = vadd.f32 %v1470_v63, %v1208_v52  ;;  %v1247_v37 = vadd.f32 %v1470_v63, %v1209_v62 }
 0x1e6   : > { %v1248_v38 = vadd.f32 %v1470_v63, %v1210_v53  ;;  %v1249_v40 = vadd.f32 %v1470_v63, %v1211_v6  ;;  %v1250_v43 = vadd.f32 %v1470_v63, %v1212_v39  ;;  %v1251_v45 = vadd.f32 %v1470_v63, %v1213_v23 }
 0x1e7   : > { %v1252_v42 = vadd.f32 %v1470_v63, %v1214_v54  ;;  %v1253_v46 = vadd.f32 %v1470_v63, %v1215_v24  ;;  %v1254_v15 = vadd.f32 %v1470_v63, %v1216_v57  ;;  %v1255_v3 = vadd.f32 %v1470_v63, %v1217_v29 }
 0x1e8   : > { %v1256_v5 = vadd.f32 %v1470_v63, %v1218_v59  ;;  %v1257_v26 = vadd.f32 %v1470_v63, %v1219_v50  ;;  %v1258_v14 = vadd.f32 %v1470_v63, %v1220_v60  ;;  %v1259_v35 = vadd.f32 %v1470_v63, %v1221_v9 }
 0x1e9   : > { %v1260_v20 = vadd.f32 %v1470_v63, %v1222_v56  ;;  %v2200_v10 = vadd.f32 %v1470_v63, %v1223_v16  ;;  %v2202_v19 = vadd.f32 %v1470_v63, %v1224_v34  ;;  %v2204_v36 = vadd.f32 %v1470_v63, %v1225_v4 }
 0x1ea   : > { %v2206_v47 = vadd.f32 %v1470_v63, %v1226_v2  ;;  %v2208_v31 = vadd.f32 %v1470_v63, %v1227_v61  ;;  %v2210_v7 = vadd.f32 %v1470_v63, %v1228_v0  ;;  %v2212_v8 = vadd.f32 %v1470_v63, %v1229_v44 }
 0x1eb   : > { %v1268_v11 = vadd.f32 %v1470_v63, %v1230_v55  ;;  %v1269_v13 = vadd.f32 %v1470_v63, %v1231_v12  ;;  %v1270_v17 = vadd.f32 %v1470_v63, %v1232_v21  ;;  %v1271_v41 = vadd.f32 %v1470_v63, %v1233_v58 }
 0x1ec   : > { %v1272_v48 = vadd.f32 %v1470_v63, %v1234_v28  ;;  %v1273_v18 = vmax.f32 %v1242_v32, 0.0  ;;  %v1274_v49 = vmax.f32 %v1243_v30, 0.0  ;;  %v1275_v27 = vmax.f32 %v1244_v33, 0.0 }
 0x1ed   : > { %v1276_v51 = vmax.f32 %v1245_v25, 0.0  ;;  %v1277_v22 = vmax.f32 %v1246_v1, 0.0  ;;  %v1278_v52 = vmax.f32 %v1247_v37, 0.0  ;;  %v1279_v62 = vmax.f32 %v1248_v38, 0.0 }
 0x1ee   : > { %v1280_v53 = vmax.f32 %v1249_v40, 0.0  ;;  %v1281_v6 = vmax.f32 %v1250_v43, 0.0  ;;  %v1282_v39 = vmax.f32 %v1251_v45, 0.0  ;;  %v1283_v23 = vmax.f32 %v1252_v42, 0.0  ;;  %1304 = vst [vmem:[%s2217_s27] sm:$0xff] %v1273_v18  ;;  %1305 = vst [vmem:[%s2217_s27 + $0x8] sm:$0xff] %v1274_v49 }
 0x1ef   : > { %1306 = vst [vmem:[%s2217_s27 + $0x10] sm:$0xff] %v1275_v27  ;;  %v1284_v54 = vmax.f32 %v1253_v46, 0.0  ;;  %v1285_v24 = vmax.f32 %v1254_v15, 0.0  ;;  %v1286_v57 = vmax.f32 %v1255_v3, 0.0  ;;  %v1287_v29 = vmax.f32 %v1256_v5, 0.0  ;;  %1307 = vst [vmem:[%s2217_s27 + $0x18] sm:$0xff] %v1276_v51 }
 0x1f0   : > { %1308 = vst [vmem:[%s2217_s27 + $0x20] sm:$0xff] %v1277_v22  ;;  %1309 = vst [vmem:[%s2217_s27 + $0x28] sm:$0xff] %v1278_v52  ;;  %v1288_v59 = vmax.f32 %v1257_v26, 0.0  ;;  %v1289_v50 = vmax.f32 %v1258_v14, 0.0  ;;  %v1290_v60 = vmax.f32 %v1259_v35, 0.0  ;;  %v1291_v9 = vmax.f32 %v1260_v20, 0.0 }
 0x1f1   : > { %1310 = vst [vmem:[%s2217_s27 + $0x30] sm:$0xff] %v1279_v62  ;;  %1311 = vst [vmem:[%s2217_s27 + $0x38] sm:$0xff] %v1280_v53  ;;  %v1292_v56 = vmax.f32 %v2200_v10, 0.0  ;;  %v1293_v16 = vmax.f32 %v2202_v19, 0.0  ;;  %v1294_v34 = vmax.f32 %v2204_v36, 0.0  ;;  %v1295_v63 = vmax.f32 %v2206_v47, 0.0 }
 0x1f2   : > { %1312 = vst [vmem:[%s2217_s27 + $0x40] sm:$0xff] %v1281_v6  ;;  %1313 = vst [vmem:[%s2217_s27 + $0x48] sm:$0xff] %v1282_v39  ;;  %v1296_v4 = vmax.f32 %v2208_v31, 0.0  ;;  %v1297_v2 = vmax.f32 %v2210_v7, 0.0  ;;  %v1298_v61 = vmax.f32 %v2212_v8, 0.0  ;;  %v1299_v0 = vmax.f32 %v1268_v11, 0.0 }
 0x1f3   : > { %1314 = vst [vmem:[%s2217_s27 + $0x50] sm:$0xff] %v1283_v23  ;;  %1315 = vst [vmem:[%s2217_s27 + $0x58] sm:$0xff] %v1284_v54  ;;  %v1300_v44 = vmax.f32 %v1269_v13, 0.0  ;;  %v1301_v55 = vmax.f32 %v1270_v17, 0.0  ;;  %v1302_v12 = vmax.f32 %v1271_v41, 0.0  ;;  %v1303_v21 = vmax.f32 %v1272_v48, 0.0 }
 0x1f4   : > { %1316 = vst [vmem:[%s2217_s27 + $0x60] sm:$0xff] %v1285_v24  ;;  %1317 = vst [vmem:[%s2217_s27 + $0x68] sm:$0xff] %v1286_v57 }
 0x1f5   : > { %1318 = vst [vmem:[%s2217_s27 + $0x70] sm:$0xff] %v1287_v29  ;;  %1319 = vst [vmem:[%s2217_s27 + $0x78] sm:$0xff] %v1288_v59 }
 0x1f6   : > { %1320 = vst [vmem:[%s2217_s27 + $0x80] sm:$0xff] %v1289_v50  ;;  %1321 = vst [vmem:[%s2217_s27 + $0x88] sm:$0xff] %v1290_v60 }
 0x1f7   : > { %1322 = vst [vmem:[%s2217_s27 + $0x90] sm:$0xff] %v1291_v9  ;;  %1323 = vst [vmem:[%s2217_s27 + $0x98] sm:$0xff] %v1292_v56 }
 0x1f8   : > { %1324 = vst [vmem:[%s2217_s27 + $0xa0] sm:$0xff] %v1293_v16  ;;  %1325 = vst [vmem:[%s2217_s27 + $0xa8] sm:$0xff] %v1294_v34 }
 0x1f9   : > { %1326 = vst [vmem:[%s2217_s27 + $0xb0] sm:$0xff] %v1295_v63  ;;  %1327 = vst [vmem:[%s2217_s27 + $0xb8] sm:$0xff] %v1296_v4 }
 0x1fa   : > { %1328 = vst [vmem:[%s2217_s27 + $0xc0] sm:$0xff] %v1297_v2  ;;  %1329 = vst [vmem:[%s2217_s27 + $0xc8] sm:$0xff] %v1298_v61 }
 0x1fb   : > { %1330 = vst [vmem:[%s2217_s27 + $0xd0] sm:$0xff] %v1299_v0  ;;  %1331 = vst [vmem:[%s2217_s27 + $0xd8] sm:$0xff] %v1300_v44 }
 0x1fc   : > { %1332 = vst [vmem:[%s2217_s27 + $0xe0] sm:$0xff] %v1301_v55  ;;  %1333 = vst [vmem:[%s2217_s27 + $0xe8] sm:$0xff] %v1302_v12 }
 0x1fd   : > { %1334 = vst [vmem:[%s2217_s27 + $0xf0] sm:$0x3] %v1303_v21 }
 0x1fe PF: > { %s14_s15 = sadd.s32 1, %s1778_s15  }
 0x1ff   : > { %p11_p4 = scmp.ge.s32.totalorder %s14_s15, 4  }
 0x201   :  { %13 = sbr.rel (!%p11_p4) target bundleno = 1 (0x1), region = 66 }

// kernel: a_call__.8
= control target key start
LH: loop header
LB: loop body
LE: loop exit
PB: predicated region body
PF: predicated region fallthrough
CT: control target
= control target key end

     0   :  { %s1030_s15 = smov 0   ;;  %s1175_s0 = inlined_call_operand.vmem [shape: bf16[2,72,384], index: 0, kind: input, shape index: {}]   ;;  %s1176_s1 = inlined_call_operand.vmem [shape: bf16[384,128], index: 1, kind: input, shape index: {}]   ;;  %s1177_s2 = inlined_call_operand.vmem [shape: f32[1,128], index: 2, kind: input, shape index: {}]   ;;  %s1178_s3 = inlined_call_operand.vmem [shape: f32[1,128], index: 3, kind: input, shape index: {}]   ;;  %s1179_s4 = inlined_call_operand.vmem [shape: f32[2,72,128], index: 4, kind: output, shape index: {}]  }
   0x1 LB: > { %s793_s16 = sadd.s32 4294967295, %s1001_s15   ;;  %p797_p0 = scmp.ge.s32.totalorder %s1001_s15, 1  ;;  %s1001_s15 = sphi %s1030_s15, %s14_s15  }
   0x2   : > { %p162_p1 = scmp.lt.s32.totalorder %s1001_s15, 3 }
   0x4   : > { %p163_p2 = pnand %p797_p0, %p162_p1 }
   0x5   : > { %v950_v0 = vld [vmem:[%s1176_s1 + $0x40] sm:$0xff] (!%p163_p2)   ;;  %v1003_v1 = vmov (!%p163_p2), 0.0   ;;  %v953_v4 = vld [vmem:[%s1176_s1 + $0x48] sm:$0xff] (!%p163_p2)   ;;  %vm1004_vm0 = vmmov (!%p163_p2), 0   ;;  %v956_v7 = vld [vmem:[%s1176_s1 + $0x50] sm:$0xff] (!%p163_p2)   ;;  %p188_p3 = scmp.lt.s32.totalorder (!%p163_p2), %s793_s16, 1 }
   0x6   : > { %166 = sbr.rel (%p163_p2) target bundleno = 363 (0x16b), region = 36  ;;  %902 = vmatprep.subr.bf16.mxu1 (!%p163_p2), %v1003_v1  ;;  %v951_v2 = vld [vmem:[%s1176_s1] sm:$0xff] (!%p163_p2)   ;;  %843 = vmatprep.subr.bf16.mxu0 (!%p163_p2), %v950_v0  ;;  %v954_v5 = vld [vmem:[%s1176_s1 + $0x8] sm:$0xff] (!%p163_p2)   ;;  %v957_v8 = vld [vmem:[%s1176_s1 + $0x10] sm:$0xff] (!%p163_p2)  }
   0x7   : > { %v952_v3 = vld [vmem:[%s1176_s1 + $0x80] sm:$0xff] (!%p163_p2)   ;;  %844 = vmatpush3.bf16.msra.mxu0 (!%p163_p2), %v951_v2  ;;  %918 = vmatprep.mubr.msk.bf16.mxu1 (!%p163_p2), %vm1004_vm0, %v1003_v1  ;;  %v955_v6 = vld [vmem:[%s1176_s1 + $0x88] sm:$0xff] (!%p163_p2)   ;;  %v958_v9 = vld [vmem:[%s1176_s1 + $0x90] sm:$0xff] (!%p163_p2)  }
   0x8   : > { %903 = vmatpush3.bf16.msra.mxu1 (!%p163_p2), %v952_v3  ;;  %845 = vmatprep.subr.bf16.mxu0 (!%p163_p2), %v953_v4  ;;  %v959_v10 = vld [vmem:[%s1176_s1 + $0x58] sm:$0xff] (!%p163_p2)   ;;  %v962_v13 = vld [vmem:[%s1176_s1 + $0x60] sm:$0xff] (!%p163_p2)   ;;  %v965_v16 = vld [vmem:[%s1176_s1 + $0x68] sm:$0xff] (!%p163_p2)  }
   0x9   : > { %904 = vmatprep.subr.bf16.mxu1 (!%p163_p2), %v1003_v1  ;;  %v960_v11 = vld [vmem:[%s1176_s1 + $0x18] sm:$0xff] (!%p163_p2)   ;;  %v963_v14 = vld [vmem:[%s1176_s1 + $0x20] sm:$0xff] (!%p163_p2)   ;;  %v966_v17 = vld [vmem:[%s1176_s1 + $0x28] sm:$0xff] (!%p163_p2)  }
   0xa   : > { %v961_v12 = vld [vmem:[%s1176_s1 + $0x98] sm:$0xff] (!%p163_p2)   ;;  %v964_v15 = vld [vmem:[%s1176_s1 + $0xa0] sm:$0xff] (!%p163_p2)   ;;  %v967_v18 = vld [vmem:[%s1176_s1 + $0xa8] sm:$0xff] (!%p163_p2)  }
   0xb   : > { %846 = vmatpush3.bf16.msra.mxu0 (!%p163_p2), %v954_v5  ;;  %v968_v19 = vld [vmem:[%s1176_s1 + $0x70] sm:$0xff] (!%p163_p2)   ;;  %v971_v22 = vld [vmem:[%s1176_s1 + $0x78] sm:$0xff] (!%p163_p2)  }
   0xc   : > { %905 = vmatpush3.bf16.msra.mxu1 (!%p163_p2), %v955_v6  ;;  %847 = vmatprep.subr.bf16.mxu0 (!%p163_p2), %v956_v7  ;;  %v969_v20 = vld [vmem:[%s1176_s1 + $0x30] sm:$0xff] (!%p163_p2)   ;;  %v972_v24 = vld [vmem:[%s1176_s1 + $0x38] sm:$0xff] (!%p163_p2)  }
   0xd   : > { %906 = vmatprep.subr.bf16.mxu1 %v1003_v1  ;;  %s1181_s16 = smov (!%p188_p3, %s793_s16), 1  ;;  %v970_v21 = vld [vmem:[%s1176_s1 + $0xb0] sm:$0xff]   ;;  %v973_v25 = vld [vmem:[%s1176_s1 + $0xb8] sm:$0xff]  }
   0xe   : > { %s938_s27 = smul.u32 108, %s1181_s16 }
   0xf   : > { %848 = vmatpush3.bf16.msra.mxu0 %v957_v8  ;;  %s939_s23 = smul.u32 72, %s1181_s16 }
  0x10   : > { %907 = vmatpush3.bf16.msra.mxu1 %v958_v9  ;;  %849 = vmatprep.subr.bf16.mxu0 %v959_v10  ;;  %s1116_s10 = scalar_lea.vmem %s1175_s0, %s938_s27 }
  0x11   : > { %908 = vmatprep.subr.bf16.mxu1 %v1003_v1  ;;  %v976_v23 = vld [vmem:[%s1116_s10 + $0x4] ss:$12 sps:$4 sm:$0xff]   ;;  %v974_v26 = vld [vmem:[%s1116_s10] ss:$12 sps:$4 sm:$0xff]   ;;  %v977_v27 = vld [vmem:[%s1116_s10 + $0x8] ss:$12 sps:$4 sm:$0xff]   ;;  %s197_s27 = scalar_lea.vmem %s1179_s4, %s939_s23 }
  0x12   : > { %516 = vmatprep.mubr.bf16.mxu0 %v976_v23  ;;  %v978_v28 = vld [vmem:[%s1116_s10 + $0x1c] ss:$12 sps:$4 sm:$0xff]   ;;  %v980_v29 = vld [vmem:[%s1116_s10 + $0x18] ss:$12 sps:$4 sm:$0xff]   ;;  %v981_v30 = vld [vmem:[%s1116_s10 + $0x20] ss:$12 sps:$4 sm:$0xff]  }
  0x13   : > { %850 = vmatpush3.bf16.msra.mxu0 %v960_v11  ;;  %v982_v31 = vld [vmem:[%s1116_s10 + $0x34] ss:$12 sps:$4 sm:$0xff]   ;;  %v984_v32 = vld [vmem:[%s1116_s10 + $0x30] ss:$12 sps:$4 sm:$0xff]   ;;  %v985_v33 = vld [vmem:[%s1116_s10 + $0x38] ss:$12 sps:$4 sm:$0xff]  }
  0x14   : > { %909 = vmatpush3.bf16.msra.mxu1 %v961_v12  ;;  %851 = vmatprep.subr.bf16.mxu0 %v962_v13  ;;  %v986_v34 = vld [vmem:[%s1116_s10 + $0x4c] ss:$12 sps:$4 sm:$0xff]   ;;  %v215_v35 = vld [vmem:[%s1116_s10 + $0x60] sm:$0xff]  ;;  %v988_v36 = vld [vmem:[%s1116_s10 + $0x48] ss:$12 sps:$4 sm:$0xff]  }
  0x15   : > { %910 = vmatprep.subr.bf16.mxu1 %v1003_v1  ;;  %v989_v37 = vld [vmem:[%s1116_s10 + $0x50] ss:$12 sps:$4 sm:$0xff]   ;;  %v813_v38 = vcombine.high %v215_v35, %v215_v35  ;;  %v812_v39 = vcombine.low %v215_v35, %v215_v35  ;;  %v992_v40 = vld [vmem:[%s1116_s10 + $0x68] ss:$0 sps:$4 sm:$0xff]  }
  0x17   : > { %852 = vmatpush3.bf16.msra.mxu0 %v963_v14 }
  0x18   : > { %911 = vmatpush3.bf16.msra.mxu1 %v964_v15  ;;  %853 = vmatprep.subr.bf16.mxu0 %v965_v16 }
  0x19   : > { %912 = vmatprep.subr.bf16.mxu1 %v1003_v1 }
  0x1b   : > { %854 = vmatpush3.bf16.msra.mxu0 %v966_v17 }
  0x1c   : > { %913 = vmatpush3.bf16.msra.mxu1 %v967_v18  ;;  %855 = vmatprep.subr.bf16.mxu0 %v968_v19 }
  0x1d   : > { %914 = vmatprep.subr.bf16.mxu1 %v1003_v1 }
  0x1f   : > { %856 = vmatpush3.bf16.msra.mxu0 %v969_v20 }
  0x20   : > { %915 = vmatpush3.bf16.msra.mxu1 %v970_v21  ;;  %857 = vmatprep.subr.bf16.mxu0 %v971_v22 }
  0x21   : > { %916 = vmatprep.subr.bf16.mxu1 %v1003_v1 }
  0x23   : > { %858 = vmatpush3.bf16.msra.mxu0 %v972_v24 }
  0x24   : > { %917 = vmatpush3.bf16.msra.mxu1 %v973_v25 }
  0x26   : > { %517 = vmatmul.mubr.bf16.vlgmr.msra.gmra.mrb[0].mxu0 %v974_v26 }
  0x27   : > { %919 = vmatmul.mubr.bf16.vlgmr.msra.gmra.mrb[0].mxu1 %v977_v27  ;;  %524 = vmatprep.mubr.bf16.mxu0 %v978_v28 }
  0x28   : > { %922 = vmatprep.mubr.msk.bf16.mxu1 %vm1004_vm0, %v1003_v1 }
  0x2e   : > { %525 = vmatmul.mubr.bf16.gmra.mrb[4].mxu0 %v980_v29 }
  0x2f   : > { %923 = vmatmul.mubr.bf16.gmra.mrb[4].mxu1 %v981_v30  ;;  %532 = vmatprep.mubr.bf16.mxu0 %v982_v31 }
  0x30   : > { %926 = vmatprep.mubr.msk.bf16.mxu1 %vm1004_vm0, %v1003_v1 }
  0x36   : > { %533 = vmatmul.mubr.bf16.gmra.mrb[8].mxu0 %v984_v32 }
  0x37   : > { %927 = vmatmul.mubr.bf16.gmra.mrb[8].mxu1 %v985_v33  ;;  %540 = vmatprep.mubr.bf16.mxu0 %v986_v34 }
  0x38   : > { %930 = vmatprep.mubr.msk.bf16.mxu1 %vm1004_vm0, %v1003_v1 }
  0x3e   : > { %541 = vmatmul.mubr.bf16.gmra.mrb[12].mxu0 %v988_v36 }
  0x3f   : > { %931 = vmatmul.mubr.bf16.gmra.mrb[12].mxu1 %v989_v37  ;;  %548 = vmatprep.mubr.bf16.mxu0 %v813_v38 }
  0x40   : > { %934 = vmatprep.mubr.msk.bf16.mxu1 %vm1004_vm0, %v1003_v1 }
  0x46   : > { %549 = vmatmul.mubr.bf16.gmra.mrb[16].mxu0 %v812_v39 }
  0x47   : > { %935 = vmatmul.mubr.bf16.gmra.mrb[16].mxu1 %v992_v40 }
  0xf9   : > { %v859_v41 = vpop.f32.mrb[0].mxu0 }
  0xfa   : > { %v590_v42 = vpop.f32.mrb[0].mxu1  ;;  %v860_v43 = vpop.f32.mrb[1].mxu0 }
  0xfb   : > { %v861_v44 = vadd.f32 %v860_v43, %v859_v41  ;;  %v920_v45 = vpop.f32.mrb[1].mxu1  ;;  %v862_v46 = vpop.f32.mrb[2].mxu0 }
  0xfc   : > { %v593_v47 = vpop.f32.mrb[2].mxu1  ;;  %v863_v48 = vpop.f32.mrb[3].mxu0 }
  0xfd   : > { %v1154_v49 = vadd.f32 %v861_v44, %v590_v42  ;;  %v864_v50 = vadd.f32 %v863_v48, %v862_v46  ;;  %v921_v51 = vpop.f32.mrb[3].mxu1 }
  0xff   : > { %v1156_v52 = vadd.f32 %v864_v50, %v593_v47 }
 0x101   : > { %v628_v53 = vadd.f32 %v1156_v52, %v1154_v49  ;;  %v865_v54 = vpop.f32.mrb[4].mxu0 }
 0x102   : > { %v598_v55 = vpop.f32.mrb[4].mxu1  ;;  %v866_v56 = vpop.f32.mrb[5].mxu0 }
 0x103   : > { %v867_v57 = vadd.f32 %v866_v56, %v865_v54  ;;  %v924_v58 = vpop.f32.mrb[5].mxu1  ;;  %v868_v59 = vpop.f32.mrb[6].mxu0 }
 0x104   : > { %v601_v60 = vpop.f32.mrb[6].mxu1  ;;  %v869_v61 = vpop.f32.mrb[7].mxu0 }
 0x105   : > { %v599_v62 = vadd.f32 %v867_v57, %v598_v55  ;;  %v870_v63 = vadd.f32 %v869_v61, %v868_v59  ;;  %v925_v0 = vpop.f32.mrb[7].mxu1 }
 0x107   : > { %v629_v1 = vadd.f32 %v628_v53, %v599_v62  ;;  %v602_v2 = vadd.f32 %v870_v63, %v601_v60 }
 0x109   : > { %v630_v3 = vadd.f32 %v629_v1, %v602_v2  ;;  %v871_v4 = vpop.f32.mrb[8].mxu0 }
 0x10a   : > { %v606_v5 = vpop.f32.mrb[8].mxu1  ;;  %v872_v6 = vpop.f32.mrb[9].mxu0 }
 0x10b   : > { %v873_v7 = vadd.f32 %v872_v6, %v871_v4  ;;  %v928_v8 = vpop.f32.mrb[9].mxu1  ;;  %v874_v9 = vpop.f32.mrb[10].mxu0 }
 0x10c   : > { %v609_v10 = vpop.f32.mrb[10].mxu1  ;;  %v875_v11 = vpop.f32.mrb[11].mxu0 }
 0x10d   : > { %v607_v12 = vadd.f32 %v873_v7, %v606_v5  ;;  %v876_v13 = vadd.f32 %v875_v11, %v874_v9  ;;  %v929_v14 = vpop.f32.mrb[11].mxu1 }
 0x10f   : > { %v631_v15 = vadd.f32 %v630_v3, %v607_v12  ;;  %v610_v16 = vadd.f32 %v876_v13, %v609_v10 }
 0x111   : > { %v632_v17 = vadd.f32 %v631_v15, %v610_v16  ;;  %v877_v18 = vpop.f32.mrb[12].mxu0 }
 0x112   : > { %v614_v19 = vpop.f32.mrb[12].mxu1  ;;  %v878_v20 = vpop.f32.mrb[13].mxu0 }
 0x113   : > { %v879_v21 = vadd.f32 %v878_v20, %v877_v18  ;;  %v932_v22 = vpop.f32.mrb[13].mxu1  ;;  %v880_v23 = vpop.f32.mrb[14].mxu0 }
 0x114   : > { %v617_v24 = vpop.f32.mrb[14].mxu1  ;;  %v881_v25 = vpop.f32.mrb[15].mxu0 }
 0x115   : > { %v615_v26 = vadd.f32 %v879_v21, %v614_v19  ;;  %v882_v27 = vadd.f32 %v881_v25, %v880_v23  ;;  %v933_v28 = vpop.f32.mrb[15].mxu1  ;;  %v839_v21 = vld [vmem:[%s1177_s2] ss:$0 sm:$0xff] }
 0x117   : > { %v633_v29 = vadd.f32 %v632_v17, %v615_v26  ;;  %v618_v30 = vadd.f32 %v882_v27, %v617_v24 }
 0x119   : > { %v634_v31 = vadd.f32 %v633_v29, %v618_v30  ;;  %v883_v32 = vpop.f32.mrb[16].mxu0 }
 0x11a   : > { %v622_v33 = vpop.f32.mrb[16].mxu1  ;;  %v884_v34 = vpop.f32.mrb[17].mxu0 }
 0x11b   : > { %v885_v35 = vadd.f32 %v884_v34, %v883_v32  ;;  %v936_v36 = vpop.f32.mrb[17].mxu1  ;;  %v886_v37 = vpop.f32.mrb[18].mxu0 }
 0x11c   : > { %v625_v38 = vpop.f32.mrb[18].mxu1  ;;  %v887_v39 = vpop.f32.mrb[19].mxu0 }
 0x11d   : > { %v623_v40 = vadd.f32 %v885_v35, %v622_v33  ;;  %v937_v41 = vpop.f32.mrb[19].mxu1 }
 0x11f   : > { %v635_v42 = vadd.f32 %v634_v31, %v623_v40 }
 0x121   : > { %v636_v43 = vrot.slane %v635_v42, 4 }
 0x123   : > { %v637_v44 = vadd.f32 %v636_v43, %v635_v42 }
 0x125   : > { %v638_v45 = vrot.slane %v637_v44, 2 }
 0x127   : > { %v639_v46 = vadd.f32 %v638_v45, %v637_v44 }
 0x129   : > { %v640_v47 = vrot.slane %v639_v46, 1 }
 0x12b   : > { %v641_v48 = vadd.f32 %v640_v47, %v639_v46 }
 0x12d   : > { %v643_v50 = vmul.f32 0.013888889, %v641_v48 }
 0x12f   : > { %v644_v51 = vsub.f32 %v1154_v49, %v643_v50  ;;  %v645_v53 = vsub.f32 %v1156_v52, %v643_v50  ;;  %v646_v54 = vsub.f32 %v599_v62, %v643_v50  ;;  %v647_v55 = vsub.f32 %v602_v2, %v643_v50 }
 0x130   : > { %v648_v56 = vsub.f32 %v607_v12, %v643_v50  ;;  %v649_v57 = vsub.f32 %v610_v16, %v643_v50  ;;  %v650_v58 = vsub.f32 %v615_v26, %v643_v50  ;;  %v651_v59 = vsub.f32 %v618_v30, %v643_v50  ;;  %v840_v30 = vld [vmem:[%s1178_s3] ss:$0 sm:$0xff] }
 0x131   : > { %v652_v60 = vsub.f32 %v623_v40, %v643_v50  ;;  %v653_v61 = vmul.f32 %v644_v51, %v644_v51  ;;  %v654_v63 = vmul.f32 %v645_v53, %v645_v53  ;;  %v655_v0 = vmul.f32 %v646_v54, %v646_v54 }
 0x132   : > { %v656_v3 = vmul.f32 %v647_v55, %v647_v55  ;;  %v657_v5 = vmul.f32 %v648_v56, %v648_v56  ;;  %v658_v7 = vmul.f32 %v649_v57, %v649_v57  ;;  %v659_v49 = vmul.f32 %v650_v58, %v650_v58 }
 0x133   : > { %v662_v1 = vadd.f32 %v654_v63, %v653_v61  ;;  %v660_v52 = vmul.f32 %v651_v59, %v651_v59  ;;  %v661_v2 = vmul.f32 %v652_v60, %v652_v60 }
 0x135   : > { %v663_v4 = vadd.f32 %v662_v1, %v655_v0 }
 0x137   : > { %v664_v6 = vadd.f32 %v663_v4, %v656_v3 }
 0x139   : > { %v665_v8 = vadd.f32 %v664_v6, %v657_v5 }
 0x13b   : > { %v666_v9 = vadd.f32 %v665_v8, %v658_v7 }
 0x13d   : > { %v667_v62 = vadd.f32 %v666_v9, %v659_v49 }
 0x13f   : > { %v668_v10 = vadd.f32 %v667_v62, %v660_v52 }
 0x141   : > { %v669_v11 = vadd.f32 %v668_v10, %v661_v2 }
 0x143   : > { %v670_v12 = vrot.slane %v669_v11, 4 }
 0x145   : > { %v671_v13 = vadd.f32 %v670_v12, %v669_v11 }
 0x147   : > { %v672_v14 = vrot.slane %v671_v13, 2 }
 0x149   : > { %v673_v15 = vadd.f32 %v672_v14, %v671_v13 }
 0x14b   : > { %v674_v16 = vrot.slane %v673_v15, 1 }
 0x14d   : > { %v675_v17 = vadd.f32 %v674_v16, %v673_v15 }
 0x14f   : > { %v676_v18 = vmul.f32 0.013888889, %v675_v17 }
 0x151   : > { %v677_v19 = vadd.f32 1e-05, %v676_v18 }
 0x153   : > { %993 = vrsqrt.f32 %v677_v19 }
 0x15d   : > { %v994_v20 = vpop.eup %993 }
 0x15e   : > { %v679_v22 = vmul.f32 %v994_v20, %v644_v51  ;;  %v680_v23 = vmul.f32 %v994_v20, %v645_v53  ;;  %v681_v24 = vmul.f32 %v994_v20, %v646_v54  ;;  %v682_v25 = vmul.f32 %v994_v20, %v647_v55 }
 0x15f   : > { %v683_v26 = vmul.f32 %v994_v20, %v648_v56  ;;  %v684_v27 = vmul.f32 %v994_v20, %v649_v57  ;;  %v685_v28 = vmul.f32 %v994_v20, %v650_v58  ;;  %v686_v29 = vmul.f32 %v994_v20, %v651_v59 }
 0x160   : > { %v687_v31 = vmul.f32 %v994_v20, %v652_v60  ;;  %v695_v32 = vmul.f32 %v839_v21, %v679_v22  ;;  %v696_v33 = vmul.f32 %v839_v21, %v680_v23  ;;  %v697_v34 = vmul.f32 %v839_v21, %v681_v24 }
 0x161   : > { %v698_v35 = vmul.f32 %v839_v21, %v682_v25  ;;  %v699_v36 = vmul.f32 %v839_v21, %v683_v26  ;;  %v700_v37 = vmul.f32 %v839_v21, %v684_v27  ;;  %v701_v38 = vmul.f32 %v839_v21, %v685_v28 }
 0x162   : > { %v702_v39 = vmul.f32 %v839_v21, %v686_v29  ;;  %v703_v40 = vmul.f32 %v839_v21, %v687_v31  ;;  %v711_v41 = vadd.f32 %v840_v30, %v695_v32  ;;  %v712_v42 = vadd.f32 %v840_v30, %v696_v33 }
 0x163   : > { %v713_v43 = vadd.f32 %v840_v30, %v697_v34  ;;  %v714_v44 = vadd.f32 %v840_v30, %v698_v35  ;;  %v715_v45 = vadd.f32 %v840_v30, %v699_v36  ;;  %v716_v46 = vadd.f32 %v840_v30, %v700_v37 }
 0x164   : > { %v717_v47 = vadd.f32 %v840_v30, %v701_v38  ;;  %v718_v48 = vadd.f32 %v840_v30, %v702_v39  ;;  %v719_v50 = vadd.f32 %v840_v30, %v703_v40  ;;  %v720_v51 = vmax.f32 %v711_v41, 0.0 }
 0x165   : > { %v721_v53 = vmax.f32 %v712_v42, 0.0  ;;  %v722_v54 = vmax.f32 %v713_v43, 0.0  ;;  %v723_v55 = vmax.f32 %v714_v44, 0.0  ;;  %v724_v56 = vmax.f32 %v715_v45, 0.0 }
 0x166   : > { %v725_v57 = vmax.f32 %v716_v46, 0.0  ;;  %v726_v58 = vmax.f32 %v717_v47, 0.0  ;;  %v727_v59 = vmax.f32 %v718_v48, 0.0  ;;  %v728_v60 = vmax.f32 %v719_v50, 0.0  ;;  %729 = vst [vmem:[%s197_s27] sm:$0xff] %v720_v51 }
 0x167   : > { %730 = vst [vmem:[%s197_s27 + $0x8] sm:$0xff] %v721_v53  ;;  %731 = vst [vmem:[%s197_s27 + $0x10] sm:$0xff] %v722_v54 }
 0x168   : > { %732 = vst [vmem:[%s197_s27 + $0x18] sm:$0xff] %v723_v55  ;;  %733 = vst [vmem:[%s197_s27 + $0x20] sm:$0xff] %v724_v56 }
 0x169   : > { %734 = vst [vmem:[%s197_s27 + $0x28] sm:$0xff] %v725_v57  ;;  %735 = vst [vmem:[%s197_s27 + $0x30] sm:$0xff] %v726_v58 }
 0x16a   : > { %736 = vst [vmem:[%s197_s27 + $0x38] sm:$0xff] %v727_v59  ;;  %737 = vst [vmem:[%s197_s27 + $0x40] sm:$0xff] %v728_v60 }
 0x16b PF: > { %s14_s15 = sadd.s32 1, %s1001_s15  }
 0x16c   : > { %p11_p4 = scmp.ge.s32.totalorder %s14_s15, 4  }
 0x16e   :  { %13 = sbr.rel (!%p11_p4) target bundleno = 1 (0x1), region = 66 }

// kernel: a_call__.9
= control target key start
LH: loop header
LB: loop body
LE: loop exit
PB: predicated region body
PF: predicated region fallthrough
CT: control target
= control target key end

     0   :  { %s809_s15 = smov 0   ;;  %s914_s0 = inlined_call_operand.vmem [shape: bf16[2,18,384], index: 0, kind: input, shape index: {}]   ;;  %s915_s1 = inlined_call_operand.vmem [shape: bf16[384,128], index: 1, kind: input, shape index: {}]   ;;  %s916_s2 = inlined_call_operand.vmem [shape: f32[1,128], index: 2, kind: input, shape index: {}]   ;;  %s917_s3 = inlined_call_operand.vmem [shape: f32[1,128], index: 3, kind: input, shape index: {}]   ;;  %s918_s4 = inlined_call_operand.vmem [shape: f32[2,18,128], index: 4, kind: output, shape index: {}]  }
   0x1 LB: > { %s634_s16 = sadd.s32 4294967295, %s782_s15   ;;  %p638_p0 = scmp.ge.s32.totalorder %s782_s15, 1  ;;  %s782_s15 = sphi %s809_s15, %s14_s15  }
   0x2   : > { %p162_p1 = scmp.lt.s32.totalorder %s782_s15, 3 }
   0x4   : > { %p163_p2 = pnand %p638_p0, %p162_p1 }
   0x5   : > { %v743_v0 = vld [vmem:[%s915_s1 + $0x40] sm:$0xff] (!%p163_p2)   ;;  %v746_v3 = vld [vmem:[%s915_s1 + $0x48] sm:$0xff] (!%p163_p2)   ;;  %v749_v6 = vld [vmem:[%s915_s1 + $0x50] sm:$0xff] (!%p163_p2)   ;;  %p188_p3 = scmp.lt.s32.totalorder (!%p163_p2), %s634_s16, 1  ;;  %vm521_vm0 = vcmask (!%p163_p2), 1041408  }
   0x6   : > { %166 = sbr.rel (%p163_p2) target bundleno = 325 (0x145), region = 36  ;;  %v744_v1 = vld [vmem:[%s915_s1] sm:$0xff] (!%p163_p2)   ;;  %675 = vmatprep.subr.bf16.mxu0 (!%p163_p2), %v743_v0  ;;  %v747_v4 = vld [vmem:[%s915_s1 + $0x8] sm:$0xff] (!%p163_p2)   ;;  %v750_v7 = vld [vmem:[%s915_s1 + $0x10] sm:$0xff] (!%p163_p2)  }
   0x7   : > { %v745_v2 = vld [vmem:[%s915_s1 + $0x80] sm:$0xff] (!%p163_p2)   ;;  %676 = vmatpush3.bf16.msra.mxu0 (!%p163_p2), %v744_v1  ;;  %v748_v5 = vld [vmem:[%s915_s1 + $0x88] sm:$0xff] (!%p163_p2)   ;;  %v751_v8 = vld [vmem:[%s915_s1 + $0x90] sm:$0xff] (!%p163_p2)  }
   0x8   : > { %713 = vmatprep.subr.bf16.mxu1 (!%p163_p2), %v745_v2  ;;  %677 = vmatprep.subr.bf16.mxu0 (!%p163_p2), %v746_v3  ;;  %v752_v9 = vld [vmem:[%s915_s1 + $0x58] sm:$0xff] (!%p163_p2)   ;;  %v755_v12 = vld [vmem:[%s915_s1 + $0x60] sm:$0xff] (!%p163_p2)   ;;  %v758_v15 = vld [vmem:[%s915_s1 + $0x68] sm:$0xff] (!%p163_p2)  }
   0x9   : > { %714 = vmatpush3.bf16.msra.mxu1 (!%p163_p2), %v745_v2  ;;  %v753_v10 = vld [vmem:[%s915_s1 + $0x18] sm:$0xff] (!%p163_p2)   ;;  %v757_v13 = vld [vmem:[%s915_s1 + $0xa0] sm:$0xff] (!%p163_p2)   ;;  %v760_v16 = vld [vmem:[%s915_s1 + $0xa8] sm:$0xff] (!%p163_p2)  }
   0xa   : > { %715 = vmatprep.subr.bf16.mxu1 (!%p163_p2), %v748_v5  ;;  %v754_v11 = vld [vmem:[%s915_s1 + $0x98] sm:$0xff] (!%p163_p2)   ;;  %v756_v14 = vld [vmem:[%s915_s1 + $0x20] sm:$0xff] (!%p163_p2)   ;;  %v759_v17 = vld [vmem:[%s915_s1 + $0x28] sm:$0xff] (!%p163_p2)  }
   0xb   : > { %678 = vmatpush3.bf16.msra.mxu0 (!%p163_p2), %v747_v4  ;;  %v761_v18 = vld [vmem:[%s915_s1 + $0x70] sm:$0xff] (!%p163_p2)   ;;  %v764_v21 = vld [vmem:[%s915_s1 + $0x78] sm:$0xff] (!%p163_p2)  }
   0xc   : > { %679 = vmatprep.subr.bf16.mxu0 (!%p163_p2), %v749_v6  ;;  %v763_v19 = vld [vmem:[%s915_s1 + $0xb0] sm:$0xff] (!%p163_p2)   ;;  %v766_v23 = vld [vmem:[%s915_s1 + $0xb8] sm:$0xff] (!%p163_p2)  }
   0xd   : > { %716 = vmatpush3.bf16.msra.mxu1 %v748_v5  ;;  %s920_s16 = smov (!%p188_p3, %s634_s16), 1  ;;  %v762_v20 = vld [vmem:[%s915_s1 + $0x30] sm:$0xff]   ;;  %v765_v25 = vld [vmem:[%s915_s1 + $0x38] sm:$0xff]  }
   0xe   : > { %717 = vmatprep.subr.bf16.mxu1 %v751_v8  ;;  %s733_s27 = smul.u32 36, %s920_s16 }
   0xf   : > { %680 = vmatpush3.bf16.msra.mxu0 %v750_v7  ;;  %s734_s23 = smul.u32 24, %s920_s16 }
  0x10   : > { %681 = vmatprep.subr.bf16.mxu0 %v752_v9  ;;  %s192_s10 = scalar_lea.vmem %s914_s0, %s733_s27 }
  0x11   : > { %718 = vmatpush3.bf16.msra.mxu1 %v751_v8  ;;  %v769_v22 = vld [vmem:[%s192_s10 + $0x4] ss:$12 sps:$4 sm:$0xff]   ;;  %v770_v24 = vld [vmem:[%s192_s10 + $0x8] ss:$12 sps:$4 sm:$0xff]   ;;  %v203_v26 = vld [vmem:[%s192_s10 + $0x18] sm:$0x11]  ;;  %s197_s28 = scalar_lea.vmem %s918_s4, %s734_s23 }
  0x12   : > { %719 = vmatprep.subr.bf16.mxu1 %v754_v11  ;;  %456 = vmatprep.mubr.bf16.mxu0 %v769_v22  ;;  %v767_v27 = vld [vmem:[%s192_s10] ss:$12 sps:$4 sm:$0xff]   ;;  %v645_v28 = vcombine.high %v203_v26, %v203_v26  ;;  %v644_v30 = vcombine.low %v203_v26, %v203_v26 }
  0x13   : > { %682 = vmatpush3.bf16.msra.mxu0 %v753_v10  ;;  %729 = vmatprep.mubr.bf16.mxu1 %v770_v24  ;;  %v771_v29 = vld [vmem:[%s192_s10 + $0x20] ss:$0 sps:$4 sm:$0x11]  }
  0x14   : > { %683 = vmatprep.subr.bf16.mxu0 %v755_v12 }
  0x15   : > { %720 = vmatpush3.bf16.msra.mxu1 %v754_v11 }
  0x16   : > { %721 = vmatprep.subr.bf16.mxu1 %v757_v13 }
  0x17   : > { %684 = vmatpush3.bf16.msra.mxu0 %v756_v14 }
  0x18   : > { %685 = vmatprep.subr.bf16.mxu0 %v758_v15 }
  0x19   : > { %722 = vmatpush3.bf16.msra.mxu1 %v757_v13  ;;  %v671_v13 = vld [vmem:[%s916_s2] ss:$0 sm:$0xff] }
  0x1a   : > { %723 = vmatprep.subr.bf16.mxu1 %v760_v16 }
  0x1b   : > { %686 = vmatpush3.bf16.msra.mxu0 %v759_v17  ;;  %v672_v17 = vld [vmem:[%s917_s3] ss:$0 sm:$0xff] }
  0x1c   : > { %687 = vmatprep.subr.bf16.mxu0 %v761_v18 }
  0x1d   : > { %724 = vmatpush3.bf16.msra.mxu1 %v760_v16 }
  0x1e   : > { %725 = vmatprep.subr.bf16.mxu1 %v763_v19 }
  0x1f   : > { %688 = vmatpush3.bf16.msra.mxu0 %v762_v20 }
  0x20   : > { %689 = vmatprep.subr.bf16.mxu0 %v764_v21 }
  0x21   : > { %726 = vmatpush3.bf16.msra.mxu1 %v763_v19 }
  0x22   : > { %727 = vmatprep.subr.bf16.mxu1 %v766_v23 }
  0x23   : > { %690 = vmatpush3.bf16.msra.mxu0 %v765_v25 }
  0x25   : > { %728 = vmatpush3.bf16.msra.mxu1 %v766_v23 }
  0x26   : > { %457 = vmatmul.mubr.bf16.vlgmr.msra.gmra.mrb[0].mxu0 %v767_v27 }
  0x27   : > { %464 = vmatprep.mubr.bf16.mxu0 %v645_v28 }
  0x28   : > { %730 = vmatmul.mubr.bf16.vlgmr.msra.gmra.mrb[0].mxu1 %v771_v29 }
  0x2e   : > { %465 = vmatmul.mubr.bf16.gmra.mrb[4].mxu0 %v644_v30 }
  0xf9   : > { %v691_v31 = vpop.f32.mrb[0].mxu0 }
  0xfa   : > { %v692_v32 = vpop.f32.mrb[1].mxu0 }
  0xfb   : > { %v693_v33 = vadd.f32 %v692_v32, %v691_v31  ;;  %v694_v34 = vpop.f32.mrb[2].mxu0  ;;  %v731_v35 = vpop.f32.mrb[0].mxu1 }
  0xfc   : > { %v695_v36 = vpop.f32.mrb[3].mxu0  ;;  %v506_v37 = vpop.f32.mrb[1].mxu1 }
  0xfd   : > { %v696_v38 = vadd.f32 %v695_v36, %v694_v34  ;;  %v507_v39 = vadd.f32 %v693_v33, %v506_v37  ;;  %v732_v40 = vpop.f32.mrb[2].mxu1 }
  0xfe   : > { %v509_v41 = vpop.f32.mrb[3].mxu1 }
  0xff   : > { %v510_v42 = vadd.f32 %v696_v38, %v509_v41 }
 0x101   : > { %v520_v43 = vadd.f32 %v510_v42, %v507_v39  ;;  %v697_v44 = vpop.f32.mrb[4].mxu0 }
 0x102   : > { %v698_v45 = vpop.f32.mrb[5].mxu0 }
 0x103   : > { %v699_v46 = vadd.f32 %v698_v45, %v697_v44  ;;  %v700_v47 = vpop.f32.mrb[6].mxu0 }
 0x104   : > { %v701_v48 = vpop.f32.mrb[7].mxu0 }
 0x105   : > { %v515_v49 = vadd.f32 %v731_v35, %v699_v46 }
 0x107   : > { %v522_v50 = vsel %vm521_vm0, %v515_v49, 0.0 }
 0x108   : > { %v523_v51 = vadd.f32 %v522_v50, %v520_v43 }
 0x10a   : > { %v524_v52 = vrot.slane %v523_v51, 4 }
 0x10c   : > { %v525_v53 = vadd.f32 %v524_v52, %v523_v51 }
 0x10e   : > { %v526_v54 = vrot.slane %v525_v53, 2 }
 0x110   : > { %v527_v55 = vadd.f32 %v526_v54, %v525_v53 }
 0x112   : > { %v528_v56 = vrot.slane %v527_v55, 1 }
 0x114   : > { %v529_v57 = vadd.f32 %v528_v56, %v527_v55 }
 0x116   : > { %v531_v58 = vmul.f32 0.055555556, %v529_v57 }
 0x118   : > { %v532_v59 = vsub.f32 %v507_v39, %v531_v58  ;;  %v533_v60 = vsub.f32 %v510_v42, %v531_v58  ;;  %v534_v61 = vsub.f32 %v515_v49, %v531_v58 }
 0x11a   : > { %v535_v62 = vmul.f32 %v532_v59, %v532_v59  ;;  %v536_v63 = vmul.f32 %v533_v60, %v533_v60  ;;  %v537_v0 = vmul.f32 %v534_v61, %v534_v61 }
 0x11c   : > { %v538_v1 = vadd.f32 %v536_v63, %v535_v62  ;;  %v539_v2 = vsel %vm521_vm0, %v537_v0, 0.0 }
 0x11e   : > { %v540_v3 = vadd.f32 %v539_v2, %v538_v1 }
 0x120   : > { %v541_v4 = vrot.slane %v540_v3, 4 }
 0x122   : > { %v542_v5 = vadd.f32 %v541_v4, %v540_v3 }
 0x124   : > { %v543_v6 = vrot.slane %v542_v5, 2 }
 0x126   : > { %v544_v7 = vadd.f32 %v543_v6, %v542_v5 }
 0x128   : > { %v545_v8 = vrot.slane %v544_v7, 1 }
 0x12a   : > { %v546_v9 = vadd.f32 %v545_v8, %v544_v7 }
 0x12c   : > { %v547_v10 = vmul.f32 0.055555556, %v546_v9 }
 0x12e   : > { %v548_v11 = vadd.f32 1e-05, %v547_v10 }
 0x130   : > { %774 = vrsqrt.f32 %v548_v11 }
 0x13a   : > { %v775_v12 = vpop.eup %774 }
 0x13b   : > { %v550_v14 = vmul.f32 %v775_v12, %v532_v59  ;;  %v551_v15 = vmul.f32 %v775_v12, %v533_v60  ;;  %v552_v16 = vmul.f32 %v775_v12, %v534_v61 }
 0x13d   : > { %v560_v18 = vmul.f32 %v671_v13, %v550_v14  ;;  %v561_v19 = vmul.f32 %v671_v13, %v551_v15  ;;  %v562_v20 = vmul.f32 %v671_v13, %v552_v16 }
 0x13f   : > { %v570_v21 = vadd.f32 %v672_v17, %v560_v18  ;;  %v571_v22 = vadd.f32 %v672_v17, %v561_v19  ;;  %v572_v23 = vadd.f32 %v672_v17, %v562_v20 }
 0x141   : > { %v573_v24 = vmax.f32 %v570_v21, 0.0  ;;  %v574_v25 = vmax.f32 %v571_v22, 0.0  ;;  %v575_v26 = vmax.f32 %v572_v23, 0.0 }
 0x143   : > { %576 = vst [vmem:[%s197_s28] sm:$0xff] %v573_v24  ;;  %577 = vst [vmem:[%s197_s28 + $0x8] sm:$0xff] %v574_v25 }
 0x144   : > { %578 = vst [vmem:[%s197_s28 + $0x10] sm:$0x3] %v575_v26 }
 0x145 PF: > { %s14_s15 = sadd.s32 1, %s782_s15  }
 0x146   : > { %p11_p4 = scmp.ge.s32.totalorder %s14_s15, 4  }
 0x148   :  { %13 = sbr.rel (!%p11_p4) target bundleno = 1 (0x1), region = 66 }

// kernel: a_call__.10
= control target key start
LH: loop header
LB: loop body
LE: loop exit
PB: predicated region body
PF: predicated region fallthrough
CT: control target
= control target key end

     0   :  { %v34_v1 = vlaneseq  ;;  %v1169_v3 = vmov 0   ;;  %v1170_v6 = vmov 1983009808   ;;  %vm328_vm0 = vcmask 261120   ;;  %s1524_s0 = inlined_call_operand.vmem [shape: f32[2,288], index: 0, kind: input, shape index: {}]   ;;  %s1525_s1 = inlined_call_operand.vmem [shape: f32[2,288], index: 1, kind: input, shape index: {}]   ;;  %s1526_s2 = inlined_call_operand.vmem [shape: bf16[288,256], index: 2, kind: input, shape index: {}]   ;;  %s1527_s3 = inlined_call_operand.vmem [shape: bf16[288,256], index: 3, kind: input, shape index: {}]   ;;  %s1528_s4 = inlined_call_operand.vmem [shape: f32[1,256], index: 4, kind: input, shape index: {}]   ;;  %s1529_s5 = inlined_call_operand.vmem [shape: bf16[256,6], index: 5, kind: input, shape index: {}]   ;;  %s1530_s6 = inlined_call_operand.vmem [shape: f32[1,6], index: 6, kind: input, shape index: {}]   ;;  %s1531_s7 = inlined_call_operand.hbm [shape: f32[2,6], index: 7, kind: output, shape index: {}]  }
   0x1   :  { %v1015_v0 = vld [vmem:[%s1527_s3 + $0x4] ss:$8 sps:$4 sm:$0xff]   ;;  %405 = vmatprep.mubr.bf16.mxu1 %v1169_v3  ;;  %v1019_v4 = vld [vmem:[%s1527_s3] ss:$8 sps:$4 sm:$0xff]   ;;  %v32_v7 = vunpack.c.l.s4 %v1170_v6  ;;  %v1021_v9 = vld [vmem:[%s1527_s3 + $0x14] ss:$8 sps:$4 sm:$0xff]  }
   0x2   :  { %v1017_v2 = vld [vmem:[%s1527_s3 + $0x104] ss:$8 sps:$4 sm:$0xff]   ;;  %332 = vmatprep.subr.bf16.mxu0 %v1015_v0  ;;  %v1020_v5 = vld [vmem:[%s1527_s3 + $0x100] ss:$8 sps:$4 sm:$0xff]   ;;  %v1225_v8 = vshrl.u32 %v34_v1, 7 }
   0x3   :  { %373 = vmatprep.subr.bf16.mxu1 %v1017_v2  ;;  %333 = vmatpush1.bf16.msra.mxu0 %v1019_v4  ;;  %v1023_v10 = vld [vmem:[%s1527_s3 + $0x114] ss:$8 sps:$4 sm:$0xff]   ;;  %v1025_v11 = vld [vmem:[%s1527_s3 + $0x10] ss:$8 sps:$4 sm:$0xff]   ;;  %v33_v12 = vunpack.c.0.s8 %v32_v7  ;;  %v1027_v14 = vld [vmem:[%s1527_s3 + $0x24] ss:$8 sps:$4 sm:$0xff]  }
   0x4   :  { %374 = vmatpush1.bf16.msra.mxu1 %v1020_v5  ;;  %334 = vmatprep.subr.bf16.mxu0 %v1021_v9  ;;  %v1026_v13 = vld [vmem:[%s1527_s3 + $0x110] ss:$8 sps:$4 sm:$0xff]   ;;  %v52_v16 = vld [vmem:[%s1525_s1] sm:$0x3f]  ;;  %v1034_v22 = vld [vmem:[%s1527_s3 + $0x34] ss:$8 sps:$4 sm:$0xff]  }
   0x5   :  { %375 = vmatprep.subr.bf16.mxu1 %v1023_v10  ;;  %v1243_v15 = vsub.s32 %v33_v12, %v1225_v8  ;;  %v54_v17 = vcombine.high %v52_v16, %v52_v16  ;;  %v1032_v18 = vld [vmem:[%s1526_s2 + $0x4] ss:$8 sps:$4 sm:$0xff]   ;;  %v1033_v19 = vld [vmem:[%s1527_s3 + $0x20] ss:$8 sps:$4 sm:$0xff]   ;;  %v1038_v26 = vld [vmem:[%s1526_s2 + $0x14] ss:$8 sps:$4 sm:$0xff]  }
   0x6   :  { %v1030_v23 = vld [vmem:[%s1526_s2] ss:$8 sps:$4 sm:$0xff]   ;;  %v1039_v27 = vld [vmem:[%s1527_s3 + $0x30] ss:$8 sps:$4 sm:$0xff]   ;;  %v1040_v29 = vld [vmem:[%s1527_s3 + $0x44] ss:$8 sps:$4 sm:$0xff]  }
   0x7   :  { %335 = vmatpush1.bf16.msra.mxu0 %v1025_v11  ;;  %v1255_v20 = vrot.slane %v52_v16, %v1243_v15  ;;  %v68_v21 = vrot.slane %v54_v17, %v1243_v15  ;;  %v1036_v30 = vld [vmem:[%s1526_s2 + $0x10] ss:$8 sps:$4 sm:$0xff]   ;;  %v1044_v31 = vld [vmem:[%s1526_s2 + $0x24] ss:$8 sps:$4 sm:$0xff]   ;;  %v1045_v32 = vld [vmem:[%s1527_s3 + $0x40] ss:$8 sps:$4 sm:$0xff]  }
   0x8   :  { %376 = vmatpush1.bf16.msra.mxu1 %v1026_v13  ;;  %336 = vmatprep.subr.bf16.mxu0 %v1027_v14  ;;  %v1046_v33 = vld [vmem:[%s1527_s3 + $0x54] ss:$8 sps:$4 sm:$0xff]   ;;  %v1042_v34 = vld [vmem:[%s1526_s2 + $0x20] ss:$8 sps:$4 sm:$0xff]   ;;  %v1051_v36 = vld [vmem:[%s1527_s3 + $0x50] ss:$8 sps:$4 sm:$0xff]  }
   0x9   :  { %597 = vmatprep.subr.bf16.mxu1 %v1032_v18  ;;  %v69_v24 = vcombine.high %v1255_v20, %v1255_v20  ;;  %v75_v25 = vpack.c.bf16 %v68_v21, %v68_v21  ;;  %v1050_v35 = vld [vmem:[%s1526_s2 + $0x34] ss:$8 sps:$4 sm:$0xff]   ;;  %v1052_v37 = vld [vmem:[%s1527_s3 + $0x64] ss:$8 sps:$4 sm:$0xff]   ;;  %v1048_v38 = vld [vmem:[%s1526_s2 + $0x30] ss:$8 sps:$4 sm:$0xff]  }
   0xa   :  { %v1056_v39 = vld [vmem:[%s1526_s2 + $0x44] ss:$8 sps:$4 sm:$0xff]   ;;  %v1057_v40 = vld [vmem:[%s1527_s3 + $0x60] ss:$8 sps:$4 sm:$0xff]   ;;  %v1058_v41 = vld [vmem:[%s1527_s3 + $0x74] ss:$8 sps:$4 sm:$0xff]  }
   0xb   :  { %337 = vmatpush1.bf16.msra.mxu0 %v1033_v19  ;;  %v74_v28 = vpack.c.bf16 %v69_v24, %v69_v24  ;;  %935 = vmatmul.mubr.msk.bf16.vlgmr.msra.gmra.mrb[0].mxu1 %vm328_vm0, %v75_v25  ;;  %v1054_v42 = vld [vmem:[%s1526_s2 + $0x40] ss:$8 sps:$4 sm:$0xff]   ;;  %v1062_v43 = vld [vmem:[%s1526_s2 + $0x54] ss:$8 sps:$4 sm:$0xff]   ;;  %v1063_v44 = vld [vmem:[%s1527_s3 + $0x70] ss:$8 sps:$4 sm:$0xff]  }
   0xc   :  { %338 = vmatprep.subr.bf16.mxu0 %v1034_v22  ;;  %598 = vmatpush1.bf16.msra.mxu1 %v1030_v23  ;;  %v1064_v45 = vld [vmem:[%s1527_s3 + $0x84] ss:$8 sps:$4 sm:$0xff]   ;;  %v1060_v46 = vld [vmem:[%s1526_s2 + $0x50] ss:$8 sps:$4 sm:$0xff]   ;;  %v1069_v48 = vld [vmem:[%s1527_s3 + $0x80] ss:$8 sps:$4 sm:$0xff]  }
   0xd   :  { %364 = vmatprep.mubr.bf16.mxu0 %v74_v28  ;;  %599 = vmatprep.subr.bf16.mxu1 %v1038_v26  ;;  %v1068_v47 = vld [vmem:[%s1526_s2 + $0x64] ss:$8 sps:$4 sm:$0xff]   ;;  %v1070_v49 = vld [vmem:[%s1527_s3 + $0x94] ss:$8 sps:$4 sm:$0xff]   ;;  %v1066_v50 = vld [vmem:[%s1526_s2 + $0x60] ss:$8 sps:$4 sm:$0xff]  }
   0xe   :  { %v1074_v51 = vld [vmem:[%s1526_s2 + $0x74] ss:$8 sps:$4 sm:$0xff]   ;;  %v1075_v52 = vld [vmem:[%s1527_s3 + $0x90] ss:$8 sps:$4 sm:$0xff]   ;;  %v1076_v53 = vld [vmem:[%s1527_s3 + $0xa4] ss:$8 sps:$4 sm:$0xff]  }
   0xf   :  { %339 = vmatpush1.bf16.msra.mxu0 %v1039_v27  ;;  %v1072_v54 = vld [vmem:[%s1526_s2 + $0x70] ss:$8 sps:$4 sm:$0xff]   ;;  %v1080_v55 = vld [vmem:[%s1526_s2 + $0x84] ss:$8 sps:$4 sm:$0xff]   ;;  %v1081_v56 = vld [vmem:[%s1527_s3 + $0xa0] ss:$8 sps:$4 sm:$0xff]  }
  0x10   :  { %340 = vmatprep.subr.bf16.mxu0 %v1040_v29  ;;  %600 = vmatpush1.bf16.msra.mxu1 %v1036_v30  ;;  %v1082_v57 = vld [vmem:[%s1527_s3 + $0xb4] ss:$8 sps:$4 sm:$0xff]   ;;  %v1078_v58 = vld [vmem:[%s1526_s2 + $0x80] ss:$8 sps:$4 sm:$0xff]   ;;  %v1087_v60 = vld [vmem:[%s1527_s3 + $0xb0] ss:$8 sps:$4 sm:$0xff]  }
  0x11   :  { %601 = vmatprep.subr.bf16.mxu1 %v1044_v31  ;;  %v1086_v59 = vld [vmem:[%s1526_s2 + $0x94] ss:$8 sps:$4 sm:$0xff]   ;;  %v1088_v61 = vld [vmem:[%s1527_s3 + $0xc4] ss:$8 sps:$4 sm:$0xff]   ;;  %v1084_v63 = vld [vmem:[%s1526_s2 + $0x90] ss:$8 sps:$4 sm:$0xff]  }
  0x12   :  { %v28_v62 = vld [vmem:[%s1524_s0] sm:$0x3f]  ;;  %v1094_v5 = vld [vmem:[%s1527_s3 + $0xd4] ss:$8 sps:$4 sm:$0xff]   ;;  %v1099_v9 = vld [vmem:[%s1527_s3 + $0xd0] ss:$8 sps:$4 sm:$0xff]  }
  0x13   :  { %341 = vmatpush1.bf16.msra.mxu0 %v1045_v32  ;;  %v37_v0 = vrot.slane %v28_v62, %v1243_v15  ;;  %v1092_v1 = vld [vmem:[%s1526_s2 + $0xa4] ss:$8 sps:$4 sm:$0xff]   ;;  %v1090_v2 = vld [vmem:[%s1526_s2 + $0xa0] ss:$8 sps:$4 sm:$0xff]   ;;  %v1098_v7 = vld [vmem:[%s1526_s2 + $0xb4] ss:$8 sps:$4 sm:$0xff]  }
  0x14   :  { %342 = vmatprep.subr.bf16.mxu0 %v1046_v33  ;;  %602 = vmatpush1.bf16.msra.mxu1 %v1042_v34  ;;  %v1093_v4 = vld [vmem:[%s1527_s3 + $0xc0] ss:$8 sps:$4 sm:$0xff]   ;;  %v1100_v11 = vld [vmem:[%s1527_s3 + $0xe4] ss:$8 sps:$4 sm:$0xff]   ;;  %v1096_v12 = vld [vmem:[%s1526_s2 + $0xb0] ss:$8 sps:$4 sm:$0xff]  }
  0x15   :  { %603 = vmatprep.subr.bf16.mxu1 %v1050_v35  ;;  %v45_v6 = vcombine.high %v37_v0, %v37_v0  ;;  %v1104_v13 = vld [vmem:[%s1526_s2 + $0xc4] ss:$8 sps:$4 sm:$0xff]   ;;  %v1105_v14 = vld [vmem:[%s1527_s3 + $0xe0] ss:$8 sps:$4 sm:$0xff]   ;;  %v1106_v16 = vld [vmem:[%s1527_s3 + $0xf4] ss:$8 sps:$4 sm:$0xff]  }
  0x16   :  { %v1102_v17 = vld [vmem:[%s1526_s2 + $0xc0] ss:$8 sps:$4 sm:$0xff]   ;;  %v1110_v18 = vld [vmem:[%s1526_s2 + $0xd4] ss:$8 sps:$4 sm:$0xff]  }
  0x17   :  { %343 = vmatpush1.bf16.msra.mxu0 %v1051_v36  ;;  %v50_v10 = vpack.c.bf16 %v45_v6, %v45_v6 }
  0x18   :  { %344 = vmatprep.subr.bf16.mxu0 %v1052_v37  ;;  %604 = vmatpush1.bf16.msra.mxu1 %v1048_v38 }
  0x19   :  { %605 = vmatprep.subr.bf16.mxu1 %v1056_v39  ;;  %629 = vmatprep.mubr.bf16.mxu1 %v50_v10 }
  0x1b   :  { %345 = vmatpush1.bf16.msra.mxu0 %v1057_v40 }
  0x1c   :  { %346 = vmatprep.subr.bf16.mxu0 %v1058_v41  ;;  %606 = vmatpush1.bf16.msra.mxu1 %v1054_v42 }
  0x1d   :  { %607 = vmatprep.subr.bf16.mxu1 %v1062_v43 }
  0x1f   :  { %347 = vmatpush1.bf16.msra.mxu0 %v1063_v44 }
  0x20   :  { %348 = vmatprep.subr.bf16.mxu0 %v1064_v45  ;;  %608 = vmatpush1.bf16.msra.mxu1 %v1060_v46 }
  0x21   :  { %609 = vmatprep.subr.bf16.mxu1 %v1068_v47 }
  0x23   :  { %349 = vmatpush1.bf16.msra.mxu0 %v1069_v48 }
  0x24   :  { %350 = vmatprep.subr.bf16.mxu0 %v1070_v49  ;;  %610 = vmatpush1.bf16.msra.mxu1 %v1066_v50 }
  0x25   :  { %611 = vmatprep.subr.bf16.mxu1 %v1074_v51 }
  0x27   :  { %351 = vmatpush1.bf16.msra.mxu0 %v1075_v52 }
  0x28   :  { %352 = vmatprep.subr.bf16.mxu0 %v1076_v53  ;;  %612 = vmatpush1.bf16.msra.mxu1 %v1072_v54 }
  0x29   :  { %613 = vmatprep.subr.bf16.mxu1 %v1080_v55 }
  0x2b   :  { %353 = vmatpush1.bf16.msra.mxu0 %v1081_v56 }
  0x2c   :  { %354 = vmatprep.subr.bf16.mxu0 %v1082_v57  ;;  %614 = vmatpush1.bf16.msra.mxu1 %v1078_v58 }
  0x2d   :  { %615 = vmatprep.subr.bf16.mxu1 %v1086_v59 }
  0x2f   :  { %355 = vmatpush1.bf16.msra.mxu0 %v1087_v60 }
  0x30   :  { %356 = vmatprep.subr.bf16.mxu0 %v1088_v61  ;;  %616 = vmatpush1.bf16.msra.mxu1 %v1084_v63 }
  0x31   :  { %617 = vmatprep.subr.bf16.mxu1 %v1092_v1 }
  0x33   :  { %357 = vmatpush1.bf16.msra.mxu0 %v1093_v4 }
  0x34   :  { %358 = vmatprep.subr.bf16.mxu0 %v1094_v5  ;;  %618 = vmatpush1.bf16.msra.mxu1 %v1090_v2 }
  0x35   :  { %619 = vmatprep.subr.bf16.mxu1 %v1098_v7 }
  0x37   :  { %359 = vmatpush1.bf16.msra.mxu0 %v1099_v9 }
  0x38   :  { %360 = vmatprep.subr.bf16.mxu0 %v1100_v11  ;;  %620 = vmatpush1.bf16.msra.mxu1 %v1096_v12 }
  0x39   :  { %621 = vmatprep.subr.bf16.mxu1 %v1104_v13 }
  0x3a   :  { %12 = vsyncpa [#allocation3], 0  ;;  %v1111_v19 = vld [vmem:[%s1527_s3 + $0xf0] ss:$8 sps:$4 sm:$0xff]   ;;  %v73_v22 = vpack.c.bf16 %v1255_v20, %v1255_v20  ;;  %v1114_v23 = vld [vmem:[%s1526_s2 + $0xe4] ss:$8 sps:$4 sm:$0xff]   ;;  %v30_v27 = vcombine.high %v28_v62, %v28_v62  ;;  %v49_v28 = vpack.c.bf16 %v37_v0, %v37_v0 }
  0x3b   :  { %361 = vmatpush1.bf16.msra.mxu0 %v1105_v14  ;;  %v1108_v21 = vld [vmem:[%s1526_s2 + $0xd0] ss:$8 sps:$4 sm:$0xff]   ;;  %v1112_v24 = vld [vmem:[%s1526_s2 + $0xe0] ss:$8 sps:$4 sm:$0xff]   ;;  %v1117_v25 = vld [vmem:[%s1526_s2 + $0xf4] ss:$8 sps:$4 sm:$0xff]  }
  0x3c   :  { %362 = vmatprep.subr.bf16.mxu0 %v1106_v16  ;;  %622 = vmatpush1.bf16.msra.mxu1 %v1102_v17  ;;  %v1115_v20 = vld [vmem:[%s1526_s2 + $0xf0] ss:$8 sps:$4 sm:$0xff]   ;;  %v1121_v26 = vld [vmem:[%s1526_s2 + $0x104] ss:$8 sps:$4 sm:$0xff]   ;;  %v1119_v29 = vld [vmem:[%s1526_s2 + $0x100] ss:$8 sps:$4 sm:$0xff]   ;;  %v44_v31 = vrot.slane %v30_v27, %v1243_v15 }
  0x3d   :  { %623 = vmatprep.subr.bf16.mxu1 %v1110_v18  ;;  %v1124_v30 = vld [vmem:[%s1526_s2 + $0x114] ss:$8 sps:$4 sm:$0xff]   ;;  %v1122_v32 = vld [vmem:[%s1526_s2 + $0x110] ss:$8 sps:$4 sm:$0xff]   ;;  %v1125_v34 = vld [vmem:[%s1529_s5 + $0x40] sm:$0xff]   ;;  %v683_v0 = vsub.s32 0, %v1225_v8 }
  0x3e   :  { %v51_v33 = vpack.c.bf16 %v44_v31, %v44_v31  ;;  %v1126_v15 = vld [vmem:[%s1529_s5] sm:$0xff]   ;;  %v1127_v35 = vld [vmem:[%s1529_s5 + $0x48] sm:$0xff]   ;;  %v1129_v36 = vld [vmem:[%s1529_s5 + $0x50] sm:$0xff]   ;;  %v687_v2 = vsub.s32 1, %v1225_v8  ;;  %vm872_vm1 = vcmask 41984   ;;  %s1171_s8 = smov [#allocation2]  }
  0x3f   :  { %363 = vmatpush1.bf16.msra.mxu0 %v1111_v19  ;;  %v1130_v37 = vld [vmem:[%s1529_s5 + $0x10] sm:$0xff]   ;;  %v1131_v38 = vld [vmem:[%s1529_s5 + $0x58] sm:$0xff]   ;;  %v1133_v40 = vld [vmem:[%s1529_s5 + $0x60] sm:$0xff]  }
  0x40   :  { %624 = vmatpush1.bf16.msra.mxu1 %v1108_v21  ;;  %990 = vmatprep.subr.bf16.mxu0 %v1125_v34  ;;  %v1132_v39 = vld [vmem:[%s1529_s5 + $0x18] sm:$0xff]   ;;  %v1134_v41 = vld [vmem:[%s1529_s5 + $0x20] sm:$0xff]   ;;  %v1135_v42 = vld [vmem:[%s1529_s5 + $0x68] sm:$0xff]  }
  0x41   :  { %625 = vmatprep.subr.bf16.mxu1 %v1114_v23  ;;  %v1136_v43 = vld [vmem:[%s1529_s5 + $0x28] sm:$0xff]   ;;  %v1137_v44 = vld [vmem:[%s1529_s5 + $0x70] sm:$0xff]   ;;  %v1139_v46 = vld [vmem:[%s1529_s5 + $0x78] sm:$0xff]  }
  0x42   :  { %365 = vmatmul.mubr.bf16.vlgmr.msra.gmra.mrb[0].mxu0 %v73_v22  ;;  %v1138_v45 = vld [vmem:[%s1529_s5 + $0x30] sm:$0xff]   ;;  %v1140_v47 = vld [vmem:[%s1529_s5 + $0x38] sm:$0xff]   ;;  %v679_v1 = vld [vmem:[%s1528_s4] sm:$0x3] }
  0x43   :  { %991 = vmatpush3.bf16.msra.mxu0 %v1126_v15  ;;  %v684_v4 = vrot.slane %v679_v1, %v683_v0  ;;  %v688_v6 = vrot.slane %v679_v1, %v687_v2  ;;  %v973_v8 = vld [vmem:[%s1530_s6] ss:$0 sm:$0xff]  ;;  %s891_s6 = sshll.u32 %s1171_s8, 4  ;;  %s892_s6 = int_to_ptr.vmem [resolvable:$true] %s891_s6 }
  0x44   :  { %626 = vmatpush1.bf16.msra.mxu1 %v1112_v24  ;;  %992 = vmatprep.subr.bf16.mxu0 %v1127_v35  ;;  %s1145_s9 = scalar_lea.vmem %s892_s6, 32  ;;  %p1150_p1 = scmp.lt.s32.totalorder %s892_s6, %s892_s6 }
  0x45   :  { %627 = vmatprep.subr.bf16.mxu1 %v1117_v25  ;;  %p1146_p0 = scmp.ne.s32.totalorder %s892_s6, %s1145_s9  ;;  %p1151_p2 = scmp.lt.s32.totalorder %s1145_s9, %s1145_s9 }
  0x47   :  { %p1152_p3 = por %p1151_p2, %p1150_p1 }
  0x48   :  { %628 = vmatpush1.bf16.msra.mxu1 %v1115_v20 }
  0x49   :  { %638 = vmatprep.subr.bf16.mxu1 %v1121_v26  ;;  %p1153_p4 = pnand %p1152_p3, %p1146_p0 }
  0x4b   :  { %630 = vmatmul.mubr.bf16.vlgmr.msra.gmra.mrb[4].mxu1 %v49_v28 }
  0x4c   :  { %639 = vmatpush1.bf16.msra.mxu1 %v1119_v29  ;;  %670 = vmatprep.mubr.bf16.mxu1 %v1169_v3  ;;  %v1128_v3 = vld [vmem:[%s1529_s5 + $0x8] sm:$0xff]  }
  0x4d   :  { %640 = vmatprep.subr.bf16.mxu1 %v1124_v30  ;;  %993 = vmatpush3.bf16.msra.mxu0 %v1128_v3 }
  0x4e   :  { %994 = vmatprep.subr.bf16.mxu0 %v1129_v36 }
  0x50   :  { %641 = vmatpush1.bf16.msra.mxu1 %v1122_v32 }
  0x51   :  { %995 = vmatpush3.bf16.msra.mxu0 %v1130_v37 }
  0x52   :  { %996 = vmatprep.subr.bf16.mxu0 %v1131_v38 }
  0x53   :  { %972 = vmatmul.mubr.msk.bf16.vlgmr.msra.gmra.mrb[8].mxu1 %vm328_vm0, %v51_v33 }
  0x55   :  { %997 = vmatpush3.bf16.msra.mxu0 %v1132_v39 }
  0x56   :  { %998 = vmatprep.subr.bf16.mxu0 %v1133_v40 }
  0x59   :  { %999 = vmatpush3.bf16.msra.mxu0 %v1134_v41 }
  0x5a   :  { %1000 = vmatprep.subr.bf16.mxu0 %v1135_v42 }
  0x5d   :  { %1001 = vmatpush3.bf16.msra.mxu0 %v1136_v43 }
  0x5e   :  { %1002 = vmatprep.subr.bf16.mxu0 %v1137_v44 }
  0x61   :  { %1003 = vmatpush3.bf16.msra.mxu0 %v1138_v45 }
  0x62   :  { %1004 = vmatprep.subr.bf16.mxu0 %v1139_v46 }
  0x65   :  { %1005 = vmatpush3.bf16.msra.mxu0 %v1140_v47 }
  0xde   :  { %v407_v48 = vpop.f32.mrb[0].mxu1 }
  0xdf   :  { %v409_v49 = vpop.f32.mrb[1].mxu1 }
  0xe0   :  { %v411_v50 = vpop.f32.mrb[2].mxu1 }
  0xe1   :  { %v412_v51 = vpop.f32.mrb[3].mxu1 }
 0x115   :  { %v366_v52 = vpop.f32.mrb[0].mxu0 }
 0x116   :  { %v408_v53 = vadd.f32 %v407_v48, %v366_v52  ;;  %v368_v54 = vpop.f32.mrb[1].mxu0 }
 0x117   :  { %v410_v55 = vadd.f32 %v409_v49, %v368_v54  ;;  %v370_v56 = vpop.f32.mrb[2].mxu0 }
 0x118   :  { %v371_v57 = vpop.f32.mrb[3].mxu0 }
 0x11e   :  { %v631_v58 = vpop.f32.mrb[4].mxu1 }
 0x11f   :  { %v632_v59 = vadd.f32 %v631_v58, %v408_v53  ;;  %v633_v60 = vpop.f32.mrb[5].mxu1 }
 0x120   :  { %v634_v61 = vadd.f32 %v633_v60, %v410_v55  ;;  %v635_v62 = vpop.f32.mrb[6].mxu1 }
 0x121   :  { %v636_v63 = vpop.f32.mrb[7].mxu1 }
 0x126   :  { %v672_v5 = vpop.f32.mrb[8].mxu1 }
 0x127   :  { %v673_v7 = vadd.f32 %v672_v5, %v632_v59  ;;  %v674_v9 = vpop.f32.mrb[9].mxu1 }
 0x128   :  { %v675_v10 = vadd.f32 %v674_v9, %v634_v61  ;;  %v676_v11 = vpop.f32.mrb[10].mxu1 }
 0x129   :  { %v691_v12 = vadd.f32 %v684_v4, %v673_v7  ;;  %v677_v13 = vpop.f32.mrb[11].mxu1 }
 0x12a   :  { %v692_v14 = vadd.f32 %v688_v6, %v675_v10 }
 0x12b   :  { %v693_v16 = vmax.f32 %v691_v12, 0.0 }
 0x12c   :  { %v694_v17 = vmax.f32 %v692_v14, 0.0 }
 0x12d   :  { %v695_v19 = vpack.c.bf16 %v693_v16, %v693_v16 }
 0x12e   :  { %v696_v18 = vpack.c.bf16 %v694_v17, %v694_v17 }
 0x130   :  { %864 = vmatprep.mubr.bf16.mxu0 %v696_v18 }
 0x131   :  { %865 = vmatmul.mubr.bf16.vlgmr.msra.gmra.mrb[4].mxu0 %v695_v19 }
 0x204   :  { %v1006_v21 = vpop.f32.mrb[4].mxu0 }
 0x205   :  { %v1007_v22 = vpop.f32.mrb[5].mxu0 }
 0x206   :  { %v1008_v23 = vadd.f32 %v1007_v22, %v1006_v21  ;;  %v1009_v24 = vpop.f32.mrb[6].mxu0 }
 0x207   :  { %v1010_v25 = vpop.f32.mrb[7].mxu0 }
 0x208   :  { %v867_v20 = vadd.f32 %v1008_v23, %v973_v8 }
 0x20a   :  { %v873_v26 = vsel %vm872_vm1, %v867_v20, -inf }
 0x20b   :  { %874 = vmax.xlane.f32.xlu0 %v873_v26 }
 0x298   :  { %v875_v27 = vpop.xlane.xlu0 %874 }
 0x299   :  { %v876_v28 = vsub.f32 %v867_v20, %v875_v27 }
 0x29b   :  { %v877_v29 = vmul.f32 1.442695, %v876_v28 }
 0x29d   :  { %1141 = vpow2.f32 %v877_v29 }
 0x2a7   :  { %v1142_v30 = vpop.eup %1141 }
 0x2a8   :  { %v879_v31 = vsel %vm872_vm1, %v1142_v30, 0.0 }
 0x2a9   :  { %880 = vadd.xlane.f32.xlu0 %v879_v31 }
 0x336   :  { %v881_v32 = vpop.xlane.xlu0 %880 }
 0x337   :  { %1143 = vrcp.f32 %v881_v32 }
 0x341   :  { %v1144_v33 = vpop.eup %1143 }
 0x342   :  { %v883_v34 = vmul.f32 %v1144_v33, %v1142_v30 }
 0x344   :  { %884 = vst.msk [vmem:[#allocation2] sm:$0x3] %vm872_vm1, %v883_v34 }
 0x345   :  { %1156 = shalt.err (!%p1153_p4)
}
 0x346   :  { %s1157_s12 = scalar_lea.hbm %s1531_s7, 32 }
 0x347   :  { %p1158_p5 = scmp.ne.s32.totalorder %s1531_s7, %s1157_s12  ;;  %p1161_p6 = scmp.lt.u32.totalorder %s1157_s12, %s1531_s7 }
 0x349   :  { %p1163_p7 = pnand %p1161_p6, %p1158_p5 }
 0x34b   :  { %1166 = shalt.err (!%p1163_p7)
}
 0x34c   :  { %894 = dma.vmem_to_hbm [thread:$0]  %s892_s6, 32, %s1531_s7, [#allocation3]  }
 0x34d   :  { %1167 = dma.done.wait [#allocation3], 32  }
 0x34e   :  { %1168 = vsyncadd [#allocation3], 4294967264 }
 0x34f   :  { %898 = vsyncpa [#allocation3], 1 }

// kernel: a_call__.11
= control target key start
LH: loop header
LB: loop body
LE: loop exit
PB: predicated region body
PF: predicated region fallthrough
CT: control target
= control target key end

     0   :  { %v1149_v2 = vmov 0   ;;  %v1150_v10 = vmov 1983009808   ;;  %v34_v12 = vlaneseq  ;;  %vm100_vm0 = vcmask 1042432   ;;  %s1489_s0 = inlined_call_operand.vmem [shape: f32[2,288], index: 0, kind: input, shape index: {}]   ;;  %s1490_s1 = inlined_call_operand.vmem [shape: f32[2,6], index: 1, kind: input, shape index: {}]   ;;  %s1491_s2 = inlined_call_operand.vmem [shape: bf16[288,256], index: 2, kind: input, shape index: {}]   ;;  %s1492_s3 = inlined_call_operand.vmem [shape: bf16[6,256], index: 3, kind: input, shape index: {}]   ;;  %s1493_s4 = inlined_call_operand.vmem [shape: f32[1,256], index: 4, kind: input, shape index: {}]   ;;  %s1494_s5 = inlined_call_operand.vmem [shape: bf16[256,288], index: 5, kind: input, shape index: {}]   ;;  %s1495_s6 = inlined_call_operand.vmem [shape: f32[1,288], index: 6, kind: input, shape index: {}]   ;;  %s1496_s7 = inlined_call_operand.hbm [shape: f32[2,288], index: 7, kind: output, shape index: {}]  }
   0x1   :  { %v1004_v0 = vld [vmem:[%s1491_s2 + $0x4] ss:$8 sps:$4 sm:$0xff]   ;;  %v1006_v1 = vld [vmem:[%s1491_s2] ss:$8 sps:$4 sm:$0xff]   ;;  %139 = vmatprep.mubr.bf16.mxu0 %v1149_v2  ;;  %v1007_v3 = vld [vmem:[%s1491_s2 + $0x14] ss:$8 sps:$4 sm:$0xff]   ;;  %v32_v11 = vunpack.c.l.s4 %v1150_v10 }
   0x2   :  { %332 = vmatprep.subr.bf16.mxu1 %v1004_v0  ;;  %v1009_v4 = vld [vmem:[%s1491_s2 + $0x10] ss:$8 sps:$4 sm:$0xff]   ;;  %v1010_v5 = vld [vmem:[%s1491_s2 + $0x24] ss:$8 sps:$4 sm:$0xff]   ;;  %v1012_v6 = vld [vmem:[%s1491_s2 + $0x20] ss:$8 sps:$4 sm:$0xff]  }
   0x3   :  { %333 = vmatpush1.bf16.msra.mxu1 %v1006_v1  ;;  %v1013_v7 = vld [vmem:[%s1491_s2 + $0x34] ss:$8 sps:$4 sm:$0xff]   ;;  %v1015_v8 = vld [vmem:[%s1491_s2 + $0x30] ss:$8 sps:$4 sm:$0xff]   ;;  %v1016_v9 = vld [vmem:[%s1491_s2 + $0x44] ss:$8 sps:$4 sm:$0xff]   ;;  %v33_v16 = vunpack.c.0.s8 %v32_v11 }
   0x4   :  { %334 = vmatprep.subr.bf16.mxu1 %v1007_v3  ;;  %v1018_v13 = vld [vmem:[%s1491_s2 + $0x40] ss:$8 sps:$4 sm:$0xff]   ;;  %v1019_v14 = vld [vmem:[%s1491_s2 + $0x54] ss:$8 sps:$4 sm:$0xff]   ;;  %v1228_v17 = vshrl.u32 %v34_v12, 7  ;;  %vm96_vm1 = vcmask 48128  }
   0x5   :  { %v90_v15 = vld [vmem:[%s1492_s3] sm:$0x77]  ;;  %v1021_v18 = vld [vmem:[%s1491_s2 + $0x50] ss:$8 sps:$4 sm:$0xff]   ;;  %v1056_v29 = vld [vmem:[%s1491_s2 + $0x114] ss:$8 sps:$4 sm:$0xff]  }
   0x6   :  { %v891_v19 = vcombine.high %v90_v15, %v90_v15  ;;  %v890_v20 = vcombine.low %v90_v15, %v90_v15  ;;  %v52_v21 = vld [vmem:[%s1490_s1] sm:$0x3]  ;;  %v1022_v22 = vld [vmem:[%s1491_s2 + $0x64] ss:$8 sps:$4 sm:$0xff]   ;;  %v1246_v27 = vsub.s32 %v33_v16, %v1228_v17  ;;  %v1025_v30 = vld [vmem:[%s1491_s2 + $0x74] ss:$8 sps:$4 sm:$0xff]  }
   0x7   :  { %335 = vmatpush1.bf16.msra.mxu1 %v1009_v4  ;;  %v53_v24 = vpack.c.bf16 %v52_v21, %v52_v21  ;;  %v1050_v25 = vld [vmem:[%s1491_s2 + $0x104] ss:$8 sps:$4 sm:$0xff]   ;;  %v1048_v26 = vld [vmem:[%s1491_s2 + $0x100] ss:$8 sps:$4 sm:$0xff]   ;;  %v1054_v32 = vld [vmem:[%s1491_s2 + $0x110] ss:$8 sps:$4 sm:$0xff]  }
   0x8   :  { %336 = vmatprep.subr.bf16.mxu1 %v1010_v5  ;;  %892 = vmatprep.subr.msk.bf16.mxu0 %vm100_vm0, %v891_v19  ;;  %v102_v23 = vsel %vm100_vm0, %v890_v20, 0  ;;  %v1024_v28 = vld [vmem:[%s1491_s2 + $0x60] ss:$8 sps:$4 sm:$0xff]   ;;  %v1063_v35 = vld [vmem:[%s1494_s5 + $0x4] ss:$12 sps:$4 sm:$0xff]   ;;  %vm328_vm2 = vcmask 261120  }
   0x9   :  { %108 = vmatpush1.bf16.msra.mxu0 %v102_v23  ;;  %v28_v31 = vld [vmem:[%s1489_s0] sm:$0x3f]  ;;  %v1027_v36 = vld [vmem:[%s1491_s2 + $0x70] ss:$8 sps:$4 sm:$0xff]   ;;  %v1066_v43 = vld [vmem:[%s1494_s5 + $0x1c] ss:$12 sps:$4 sm:$0xff]  }
   0xa   :  { %373 = vmatprep.subr.bf16.mxu0 %v1050_v25  ;;  %v30_v33 = vcombine.high %v28_v31, %v28_v31  ;;  %v1264_v34 = vrot.slane %v28_v31, %v1246_v27  ;;  %v1028_v39 = vld [vmem:[%s1491_s2 + $0x84] ss:$8 sps:$4 sm:$0xff]   ;;  %v1030_v44 = vld [vmem:[%s1491_s2 + $0x80] ss:$8 sps:$4 sm:$0xff]   ;;  %v1031_v45 = vld [vmem:[%s1491_s2 + $0x94] ss:$8 sps:$4 sm:$0xff]  }
   0xb   :  { %337 = vmatpush1.bf16.msra.mxu1 %v1012_v6  ;;  %v1061_v42 = vld [vmem:[%s1494_s5] ss:$12 sps:$4 sm:$0xff]   ;;  %v1064_v46 = vld [vmem:[%s1494_s5 + $0x18] ss:$12 sps:$4 sm:$0xff]   ;;  %v1067_v50 = vld [vmem:[%s1494_s5 + $0x30] ss:$12 sps:$4 sm:$0xff]  }
   0xc   :  { %338 = vmatprep.subr.bf16.mxu1 %v1013_v7  ;;  %893 = vmatmul.mubr.msk.bf16.vlgmr.msra.gmra.mrb[0].mxu0 %vm96_vm1, %v53_v24  ;;  %v44_v37 = vrot.slane %v30_v33, %v1246_v27  ;;  %v45_v38 = vcombine.high %v1264_v34, %v1264_v34  ;;  %v1069_v47 = vld [vmem:[%s1494_s5 + $0x34] ss:$12 sps:$4 sm:$0xff]   ;;  %v1033_v48 = vld [vmem:[%s1491_s2 + $0x90] ss:$8 sps:$4 sm:$0xff]   ;;  %v1034_v49 = vld [vmem:[%s1491_s2 + $0xa4] ss:$8 sps:$4 sm:$0xff]  }
   0xd   :  { %374 = vmatpush1.bf16.msra.mxu0 %v1048_v26  ;;  %405 = vmatprep.mubr.bf16.mxu0 %v1149_v2  ;;  %v1072_v51 = vld [vmem:[%s1494_s5 + $0x4c] ss:$12 sps:$4 sm:$0xff]   ;;  %v1036_v52 = vld [vmem:[%s1491_s2 + $0xa0] ss:$8 sps:$4 sm:$0xff]   ;;  %v1037_v53 = vld [vmem:[%s1491_s2 + $0xb4] ss:$8 sps:$4 sm:$0xff]  }
   0xe   :  { %375 = vmatprep.subr.bf16.mxu0 %v1056_v29  ;;  %v50_v40 = vpack.c.bf16 %v45_v38, %v45_v38  ;;  %v51_v41 = vpack.c.bf16 %v44_v37, %v44_v37  ;;  %v1070_v54 = vld [vmem:[%s1494_s5 + $0x48] ss:$12 sps:$4 sm:$0xff]   ;;  %v1075_v55 = vld [vmem:[%s1494_s5 + $0x64] ss:$12 sps:$4 sm:$0xff]   ;;  %v1073_v58 = vld [vmem:[%s1494_s5 + $0x60] ss:$12 sps:$4 sm:$0xff]  }
   0xf   :  { %339 = vmatpush1.bf16.msra.mxu1 %v1015_v8  ;;  %v1039_v56 = vld [vmem:[%s1491_s2 + $0xb0] ss:$8 sps:$4 sm:$0xff]   ;;  %v1040_v57 = vld [vmem:[%s1491_s2 + $0xc4] ss:$8 sps:$4 sm:$0xff]   ;;  %v1042_v59 = vld [vmem:[%s1491_s2 + $0xc0] ss:$8 sps:$4 sm:$0xff]  }
  0x10   :  { %340 = vmatprep.subr.bf16.mxu1 %v1016_v9  ;;  %364 = vmatprep.mubr.bf16.mxu1 %v50_v40  ;;  %v1078_v60 = vld [vmem:[%s1494_s5 + $0x7c] ss:$12 sps:$4 sm:$0xff]   ;;  %v1076_v62 = vld [vmem:[%s1494_s5 + $0x78] ss:$12 sps:$4 sm:$0xff]   ;;  %v1081_v63 = vld [vmem:[%s1494_s5 + $0x94] ss:$12 sps:$4 sm:$0xff]  }
  0x11   :  { %376 = vmatpush1.bf16.msra.mxu0 %v1054_v32  ;;  %v1045_v61 = vld [vmem:[%s1491_s2 + $0xd4] ss:$8 sps:$4 sm:$0xff]   ;;  %v1047_v0 = vld [vmem:[%s1491_s2 + $0xd0] ss:$8 sps:$4 sm:$0xff]   ;;  %v1051_v1 = vld [vmem:[%s1491_s2 + $0xe4] ss:$8 sps:$4 sm:$0xff]  }
  0x12   :  { %769 = vmatprep.subr.bf16.mxu0 %v1063_v35  ;;  %v1079_v2 = vld [vmem:[%s1494_s5 + $0x90] ss:$12 sps:$4 sm:$0xff]   ;;  %v1084_v3 = vld [vmem:[%s1494_s5 + $0xac] ss:$12 sps:$4 sm:$0xff]   ;;  %v1053_v4 = vld [vmem:[%s1491_s2 + $0xe0] ss:$8 sps:$4 sm:$0xff]  }
  0x13   :  { %341 = vmatpush1.bf16.msra.mxu1 %v1018_v13 }
  0x14   :  { %342 = vmatprep.subr.bf16.mxu1 %v1019_v14  ;;  %930 = vmatmul.mubr.msk.bf16.vlgmr.msra.gmra.mrb[4].mxu0 %vm328_vm2, %v51_v41 }
  0x15   :  { %770 = vmatpush1.bf16.msra.mxu0 %v1061_v42 }
  0x16   :  { %771 = vmatprep.subr.bf16.mxu0 %v1066_v43 }
  0x17   :  { %343 = vmatpush1.bf16.msra.mxu1 %v1021_v18 }
  0x18   :  { %344 = vmatprep.subr.bf16.mxu1 %v1022_v22 }
  0x19   :  { %772 = vmatpush1.bf16.msra.mxu0 %v1064_v46 }
  0x1a   :  { %773 = vmatprep.subr.bf16.mxu0 %v1069_v47 }
  0x1b   :  { %345 = vmatpush1.bf16.msra.mxu1 %v1024_v28 }
  0x1c   :  { %346 = vmatprep.subr.bf16.mxu1 %v1025_v30 }
  0x1d   :  { %774 = vmatpush1.bf16.msra.mxu0 %v1067_v50 }
  0x1e   :  { %775 = vmatprep.subr.bf16.mxu0 %v1072_v51 }
  0x1f   :  { %347 = vmatpush1.bf16.msra.mxu1 %v1027_v36 }
  0x20   :  { %348 = vmatprep.subr.bf16.mxu1 %v1028_v39 }
  0x21   :  { %776 = vmatpush1.bf16.msra.mxu0 %v1070_v54 }
  0x22   :  { %777 = vmatprep.subr.bf16.mxu0 %v1075_v55 }
  0x23   :  { %349 = vmatpush1.bf16.msra.mxu1 %v1030_v44 }
  0x24   :  { %350 = vmatprep.subr.bf16.mxu1 %v1031_v45 }
  0x25   :  { %778 = vmatpush1.bf16.msra.mxu0 %v1073_v58 }
  0x26   :  { %779 = vmatprep.subr.bf16.mxu0 %v1078_v60 }
  0x27   :  { %351 = vmatpush1.bf16.msra.mxu1 %v1033_v48 }
  0x28   :  { %352 = vmatprep.subr.bf16.mxu1 %v1034_v49 }
  0x29   :  { %780 = vmatpush1.bf16.msra.mxu0 %v1076_v62 }
  0x2a   :  { %781 = vmatprep.subr.bf16.mxu0 %v1081_v63 }
  0x2b   :  { %353 = vmatpush1.bf16.msra.mxu1 %v1036_v52 }
  0x2c   :  { %354 = vmatprep.subr.bf16.mxu1 %v1037_v53 }
  0x2f   :  { %355 = vmatpush1.bf16.msra.mxu1 %v1039_v56 }
  0x30   :  { %356 = vmatprep.subr.bf16.mxu1 %v1040_v57 }
  0x33   :  { %357 = vmatpush1.bf16.msra.mxu1 %v1042_v59 }
  0x34   :  { %358 = vmatprep.subr.bf16.mxu1 %v1045_v61 }
  0x37   :  { %359 = vmatpush1.bf16.msra.mxu1 %v1047_v0 }
  0x38   :  { %12 = vsyncpa [#allocation3], 0  ;;  %360 = vmatprep.subr.bf16.mxu1 %v1051_v1  ;;  %v1057_v5 = vld [vmem:[%s1491_s2 + $0xf4] ss:$8 sps:$4 sm:$0xff]   ;;  %782 = vmatpush1.bf16.msra.mxu0 %v1079_v2  ;;  %v1087_v7 = vld [vmem:[%s1494_s5 + $0xc4] ss:$12 sps:$4 sm:$0xff]   ;;  %v49_v11 = vpack.c.bf16 %v1264_v34, %v1264_v34 }
  0x39   :  { %v1082_v6 = vld [vmem:[%s1494_s5 + $0xa8] ss:$12 sps:$4 sm:$0xff]   ;;  %783 = vmatprep.subr.bf16.mxu0 %v1084_v3  ;;  %v1059_v8 = vld [vmem:[%s1491_s2 + $0xf0] ss:$8 sps:$4 sm:$0xff]   ;;  %v1085_v10 = vld [vmem:[%s1494_s5 + $0xc0] ss:$12 sps:$4 sm:$0xff]  }
  0x3a   :  { %v1088_v9 = vld [vmem:[%s1494_s5 + $0xc8] ss:$12 sps:$4 sm:$0xff]   ;;  %v1093_v14 = vld [vmem:[%s1494_s5 + $0xe0] ss:$12 sps:$4 sm:$0xff]   ;;  %v1090_v15 = vld [vmem:[%s1494_s5 + $0xd8] ss:$12 sps:$4 sm:$0xff]  }
  0x3b   :  { %361 = vmatpush1.bf16.msra.mxu1 %v1053_v4  ;;  %v1092_v12 = vld [vmem:[%s1494_s5 + $0xdc] ss:$12 sps:$4 sm:$0xff]   ;;  %v1097_v16 = vld [vmem:[%s1494_s5 + $0xf4] ss:$12 sps:$4 sm:$0xff]   ;;  %v1098_v19 = vld [vmem:[%s1494_s5 + $0xf8] ss:$12 sps:$4 sm:$0xff]  }
  0x3c   :  { %362 = vmatprep.subr.bf16.mxu1 %v1057_v5  ;;  %784 = vmatpush1.bf16.msra.mxu0 %v1082_v6  ;;  %v1089_v13 = vld [vmem:[%s1494_s5 + $0x8] ss:$12 sps:$4 sm:$0xff]   ;;  %v1094_v18 = vld [vmem:[%s1494_s5 + $0x20] ss:$12 sps:$4 sm:$0xff]   ;;  %v1095_v20 = vld [vmem:[%s1494_s5 + $0xf0] ss:$12 sps:$4 sm:$0xff]  }
  0x3d   :  { %785 = vmatprep.subr.bf16.mxu0 %v1087_v7  ;;  %v1099_v21 = vld [vmem:[%s1494_s5 + $0x38] ss:$12 sps:$4 sm:$0xff]   ;;  %v1100_v22 = vld [vmem:[%s1494_s5 + $0x108] ss:$12 sps:$4 sm:$0xff]   ;;  %v1103_v24 = vld [vmem:[%s1494_s5 + $0x110] ss:$12 sps:$4 sm:$0xff]  }
  0x3e   :  { %v1102_v23 = vld [vmem:[%s1494_s5 + $0x10c] ss:$12 sps:$4 sm:$0xff]   ;;  %v1104_v25 = vld [vmem:[%s1494_s5 + $0x50] ss:$12 sps:$4 sm:$0xff]   ;;  %v1108_v28 = vld [vmem:[%s1494_s5 + $0x128] ss:$12 sps:$4 sm:$0xff]  }
  0x3f   :  { %363 = vmatpush1.bf16.msra.mxu1 %v1059_v8  ;;  %v1107_v26 = vld [vmem:[%s1494_s5 + $0x124] ss:$12 sps:$4 sm:$0xff]   ;;  %v1105_v29 = vld [vmem:[%s1494_s5 + $0x120] ss:$12 sps:$4 sm:$0xff]   ;;  %v1109_v30 = vld [vmem:[%s1494_s5 + $0x68] ss:$12 sps:$4 sm:$0xff]  }
  0x40   :  { %979 = vmatprep.subr.bf16.mxu1 %v1088_v9  ;;  %786 = vmatpush1.bf16.msra.mxu0 %v1085_v10  ;;  %v1112_v31 = vld [vmem:[%s1494_s5 + $0x13c] ss:$12 sps:$4 sm:$0xff]   ;;  %v1113_v32 = vld [vmem:[%s1494_s5 + $0x140] ss:$12 sps:$4 sm:$0xff]   ;;  %v1110_v33 = vld [vmem:[%s1494_s5 + $0x138] ss:$12 sps:$4 sm:$0xff]  }
  0x41   :  { %787 = vmatprep.subr.bf16.mxu0 %v1092_v12  ;;  %v1114_v34 = vld [vmem:[%s1494_s5 + $0x80] ss:$12 sps:$4 sm:$0xff]   ;;  %v1118_v36 = vld [vmem:[%s1494_s5 + $0x158] ss:$12 sps:$4 sm:$0xff]   ;;  %v1115_v37 = vld [vmem:[%s1494_s5 + $0x150] ss:$12 sps:$4 sm:$0xff]  }
  0x42   :  { %365 = vmatmul.mubr.bf16.vlgmr.msra.gmra.mrb[0].mxu1 %v49_v11  ;;  %v1117_v35 = vld [vmem:[%s1494_s5 + $0x154] ss:$12 sps:$4 sm:$0xff]   ;;  %v1119_v38 = vld [vmem:[%s1494_s5 + $0x98] ss:$12 sps:$4 sm:$0xff]   ;;  %v1123_v40 = vld [vmem:[%s1494_s5 + $0x170] ss:$12 sps:$4 sm:$0xff]  }
  0x43   :  { %980 = vmatpush3.bf16.msra.mxu1 %v1089_v13  ;;  %v1122_v39 = vld [vmem:[%s1494_s5 + $0x16c] ss:$12 sps:$4 sm:$0xff]   ;;  %v1120_v41 = vld [vmem:[%s1494_s5 + $0x168] ss:$12 sps:$4 sm:$0xff]   ;;  %v1124_v42 = vld [vmem:[%s1494_s5 + $0xb0] ss:$12 sps:$4 sm:$0xff]  }
  0x44   :  { %981 = vmatprep.subr.bf16.mxu1 %v1093_v14  ;;  %788 = vmatpush1.bf16.msra.mxu0 %v1090_v15  ;;  %v418_v51 = vsub.s32 0, %v1228_v17  ;;  %v414_v52 = vld [vmem:[%s1493_s4] sm:$0x3]  ;;  %v422_v53 = vsub.s32 1, %v1228_v17  ;;  %v508_v7 = vsub.s32 2, %v1228_v17  ;;  %vm870_vm3 = vcmask 1041408  }
  0x45   :  { %789 = vmatprep.subr.bf16.mxu0 %v1097_v16  ;;  %v496_v6 = vld [vmem:[%s1495_s6] sm:$0x7]  ;;  %vm871_vm4 = vcmask 1043458   ;;  %vm873_vm6 = vcmask 259076   ;;  %s1151_s6 = smov [#allocation2]  }
  0x46   :  { %v419_v56 = vrot.slane %v414_v52, %v418_v51  ;;  %v423_v59 = vrot.slane %v414_v52, %v422_v53  ;;  %v501_v8 = vrot.slane %v496_v6, %v418_v51  ;;  %v505_v9 = vrot.slane %v496_v6, %v422_v53  ;;  %vm872_vm5 = vmor %vm871_vm4, %vm870_vm3  ;;  %s882_s19 = sshll.u32 %s1151_s6, 4  ;;  %s883_s19 = int_to_ptr.vmem [resolvable:$true] %s882_s19 }
  0x47   :  { %982 = vmatpush3.bf16.msra.mxu1 %v1094_v18  ;;  %v509_v12 = vrot.slane %v496_v6, %v508_v7  ;;  %vm874_vm7 = vmor %vm873_vm6, %vm872_vm5  ;;  %s1125_s20 = scalar_lea.vmem %s883_s19, 96  ;;  %p1130_p1 = scmp.lt.s32.totalorder %s883_s19, %s883_s19 }
  0x48   :  { %983 = vmatprep.subr.bf16.mxu1 %v1098_v19  ;;  %790 = vmatpush1.bf16.msra.mxu0 %v1095_v20  ;;  %p1126_p0 = scmp.ne.s32.totalorder %s883_s19, %s1125_s20  ;;  %p1131_p2 = scmp.lt.s32.totalorder %s1125_s20, %s1125_s20 }
  0x49   :  { %791 = vmatprep.subr.bf16.mxu0 %v1102_v23 }
  0x4a   :  { %p1132_p3 = por %p1131_p2, %p1130_p1 }
  0x4b   :  { %984 = vmatpush3.bf16.msra.mxu1 %v1099_v21 }
  0x4c   :  { %985 = vmatprep.subr.bf16.mxu1 %v1103_v24  ;;  %792 = vmatpush1.bf16.msra.mxu0 %v1100_v22  ;;  %p1133_p4 = pnand %p1132_p3, %p1126_p0 }
  0x4d   :  { %793 = vmatprep.subr.bf16.mxu0 %v1107_v26 }
  0x4f   :  { %986 = vmatpush3.bf16.msra.mxu1 %v1104_v25 }
  0x50   :  { %987 = vmatprep.subr.bf16.mxu1 %v1108_v28  ;;  %794 = vmatpush1.bf16.msra.mxu0 %v1105_v29 }
  0x51   :  { %795 = vmatprep.subr.bf16.mxu0 %v1112_v31 }
  0x53   :  { %988 = vmatpush3.bf16.msra.mxu1 %v1109_v30 }
  0x54   :  { %989 = vmatprep.subr.bf16.mxu1 %v1113_v32  ;;  %796 = vmatpush1.bf16.msra.mxu0 %v1110_v33 }
  0x55   :  { %797 = vmatprep.subr.bf16.mxu0 %v1117_v35 }
  0x57   :  { %990 = vmatpush3.bf16.msra.mxu1 %v1114_v34 }
  0x58   :  { %991 = vmatprep.subr.bf16.mxu1 %v1118_v36  ;;  %798 = vmatpush1.bf16.msra.mxu0 %v1115_v37 }
  0x59   :  { %799 = vmatprep.subr.bf16.mxu0 %v1122_v39 }
  0x5b   :  { %992 = vmatpush3.bf16.msra.mxu1 %v1119_v38 }
  0x5c   :  { %993 = vmatprep.subr.bf16.mxu1 %v1123_v40  ;;  %800 = vmatpush1.bf16.msra.mxu0 %v1120_v41 }
  0x5f   :  { %994 = vmatpush3.bf16.msra.mxu1 %v1124_v42 }
  0xdf   :  { %v141_v43 = vpop.f32.mrb[0].mxu0 }
  0xe0   :  { %v143_v44 = vpop.f32.mrb[1].mxu0 }
  0xe1   :  { %v145_v45 = vpop.f32.mrb[2].mxu0 }
  0xe2   :  { %v146_v46 = vpop.f32.mrb[3].mxu0 }
  0xe7   :  { %v407_v47 = vpop.f32.mrb[4].mxu0 }
  0xe8   :  { %v409_v48 = vpop.f32.mrb[5].mxu0 }
  0xe9   :  { %v411_v49 = vpop.f32.mrb[6].mxu0 }
  0xea   :  { %v412_v50 = vpop.f32.mrb[7].mxu0 }
 0x115   :  { %v366_v54 = vpop.f32.mrb[0].mxu1 }
 0x116   :  { %v367_v55 = vadd.f32 %v366_v54, %v141_v43  ;;  %v368_v57 = vpop.f32.mrb[1].mxu1 }
 0x117   :  { %v369_v58 = vadd.f32 %v368_v57, %v143_v44  ;;  %v370_v60 = vpop.f32.mrb[2].mxu1 }
 0x118   :  { %v408_v61 = vadd.f32 %v407_v47, %v367_v55  ;;  %v371_v62 = vpop.f32.mrb[3].mxu1 }
 0x119   :  { %v410_v63 = vadd.f32 %v409_v48, %v369_v58 }
 0x11a   :  { %v426_v0 = vadd.f32 %v419_v56, %v408_v61 }
 0x11b   :  { %v427_v1 = vadd.f32 %v423_v59, %v410_v63 }
 0x11c   :  { %v428_v2 = vmax.f32 %v426_v0, 0.0 }
 0x11d   :  { %v429_v3 = vmax.f32 %v427_v1, 0.0 }
 0x11e   :  { %v430_v5 = vpack.c.bf16 %v428_v2, %v428_v2 }
 0x11f   :  { %v431_v4 = vpack.c.bf16 %v429_v3, %v429_v3 }
 0x121   :  { %801 = vmatprep.mubr.bf16.mxu0 %v431_v4  ;;  %842 = vmatprep.mubr.bf16.mxu1 %v431_v4 }
 0x122   :  { %802 = vmatmul.mubr.bf16.vlgmr.msra.gmra.mrb[8].mxu0 %v430_v5  ;;  %843 = vmatmul.mubr.bf16.vlgmr.msra.gmra.mrb[4].mxu1 %v430_v5 }
 0x1f5   :  { %v803_v10 = vpop.f32.mrb[8].mxu0  ;;  %v995_v11 = vpop.f32.mrb[4].mxu1 }
 0x1f6   :  { %v804_v13 = vadd.f32 %v803_v10, %v501_v8  ;;  %v805_v14 = vpop.f32.mrb[9].mxu0  ;;  %v996_v15 = vpop.f32.mrb[5].mxu1 }
 0x1f7   :  { %v806_v16 = vadd.f32 %v805_v14, %v505_v9  ;;  %v997_v18 = vadd.f32 %v996_v15, %v995_v11  ;;  %v807_v19 = vpop.f32.mrb[10].mxu0  ;;  %v998_v20 = vpop.f32.mrb[6].mxu1 }
 0x1f8   :  { %v808_v21 = vpop.f32.mrb[11].mxu0  ;;  %v999_v22 = vpop.f32.mrb[7].mxu1 }
 0x1f9   :  { %v853_v23 = vcombine.low %v804_v13, %v806_v16  ;;  %v845_v24 = vadd.f32 %v997_v18, %v509_v12 }
 0x1fb   :  { %v860_v17 = vrot.slane %v853_v23, %v1246_v27  ;;  %v867_v25 = vrot.slane %v845_v24, %v1246_v27 }
 0x1fd   :  { %v868_v26 = vcombine.low %v860_v17, %v867_v25 }
 0x1ff   :  { %875 = vst.msk [vmem:[#allocation2] sm:$0x3f] %vm874_vm7, %v868_v26 }
 0x200   :  { %1136 = shalt.err (!%p1133_p4)
}
 0x201   :  { %s1137_s23 = scalar_lea.hbm %s1496_s7, 96 }
 0x202   :  { %p1138_p5 = scmp.ne.s32.totalorder %s1496_s7, %s1137_s23  ;;  %p1141_p6 = scmp.lt.u32.totalorder %s1137_s23, %s1496_s7 }
 0x204   :  { %p1143_p7 = pnand %p1141_p6, %p1138_p5 }
 0x206   :  { %1146 = shalt.err (!%p1143_p7)
}
 0x207   :  { %885 = dma.vmem_to_hbm [thread:$0]  %s883_s19, 96, %s1496_s7, [#allocation3]  }
 0x208   :  { %1147 = dma.done.wait [#allocation3], 96  }
 0x209   :  { %1148 = vsyncadd [#allocation3], 4294967200 }
 0x20a   :  { %889 = vsyncpa [#allocation3], 1 }

</bundles_post_ra>
